<compile_context>
chip_gen: v6e
topology: v6e:2x2x1
jax: 0.10.0
libtpu: 0.0.40
codegen_flags: <defaults>
</compile_context>

<pallas_src>
import functools

import jax
import jax.numpy as jnp
from jax import lax
from jax.experimental import pallas as pl
from jax.experimental.pallas import tpu as pltpu


def _plastic_rnn_kernel(eta_ref, x_ref, y0_ref, hebb0_hbm, w_hbm, alpha_hbm,
                        yout_ref, hebb_out_hbm,
                        y_scr, yo_scr, hebb_scr, weff_scr, w_scr, a_scr, sem,
                        *, steps_per_block):
    """One grid step == `steps_per_block` RNN timesteps. All O(N^2) state is VMEM scratch."""
    t = pl.program_id(0)

    @pl.when(t == 0)
    def _init():
        # One-time DMA of parameters + initial plastic trace into single-copy VMEM scratch
        # (replaces double-buffered blocked inputs -> roughly halves resident VMEM).
        cp_h = pltpu.make_async_copy(hebb0_hbm, hebb_scr, sem.at[0])
        cp_w = pltpu.make_async_copy(w_hbm, w_scr, sem.at[1])
        cp_a = pltpu.make_async_copy(alpha_hbm, a_scr, sem.at[2])
        cp_h.start()
        cp_w.start()
        cp_a.start()
        cp_h.wait()
        cp_w.wait()
        cp_a.wait()

        # y0_ref is host-padded to (8, Np) with rows 1..7 zero.
        y_scr[...] = y0_ref[...]
        yo_scr[...] = jnp.zeros_like(yo_scr)
        # Effective weights for the first step; thereafter updated in the fused pass below.
        weff_scr[...] = w_scr[...] + a_scr[...] * hebb_scr[...]

    eta = eta_ref[0]
    one_minus_eta = eta_ref[1]        # hoisted on the host

    for s in range(steps_per_block):  # static unroll (LLO-friendly straight-line region)
        yin = y_scr[pl.ds(0, 1), :]   # (1, Np) current state (row 0; rows 1..7 zero)

        # MXU consumes LAST step's w_eff scratch -> can issue right at step entry.
        pre = jnp.dot(yin, weff_scr[...], preferred_element_type=jnp.float32)
        yout = jnp.tanh(pre + x_ref[pl.ds(s, 1), :])          # (1, Np), EUP

        yout_ref[pl.ds(s, 1), :] = yout.astype(yout_ref.dtype)

        # Fold eta into the rank-1 factor: outer_eta = yin^T @ (eta * yout),
        # computed on the MXU as a K=8 x^T @ y over the zero-padded (8, Np) buffers.
        yo_scr[pl.ds(0, 1), :] = eta * yout
        outer_eta = lax.dot_general(
            y_scr[...], yo_scr[...],
            dimension_numbers=(((0,), (0,)), ((), ())),
            preferred_element_type=jnp.float32)

        # Fused elementwise update: new trace AND next step's effective weights.
        hebb_new = one_minus_eta * hebb_scr[...] + outer_eta
        hebb_scr[...] = hebb_new
        weff_scr[...] = w_scr[...] + a_scr[...] * hebb_new

        # Carry the state: y <- yout (row 0 only; pad rows stay zero).
        y_scr[pl.ds(0, 1), :] = yout

    @pl.when(t == pl.num_programs(0) - 1)
    def _finalize():
        # Write the final plastic trace back to HBM (aliased with the hebb0 buffer).
        cp_out = pltpu.make_async_copy(hebb_scr, hebb_out_hbm, sem.at[3])
        cp_out.start()
        cp_out.wait()


def _round_up(x, m):
    return (x + m - 1) // m * m


def _pick_steps_per_block(t, max_s=8):
    """Largest divisor of t that is <= max_s (amortizes per-grid-step pipeline overhead)."""
    for s in range(min(t, max_s), 0, -1):
        if t % s == 0:
            return s
    return 1


def plastic_rnn_run(inputs, y0, hebb0, w, alpha, eta):
    """Run T plastic-RNN steps with w / alpha / hebb / w_eff resident in VMEM.

    inputs: (T, N) external input per step
    y0:     (1, N) initial state
    hebb0:  (N, N) initial plastic trace  (its HBM buffer is aliased to the hebb output)
    w, alpha: (N, N) parameters; eta: scalar

    Returns (youts (T, N), final hebb (N, N)).
    """
    T, n = inputs.shape
    n_pad = _round_up(n, 128)
    pad = n_pad - n
    f32 = jnp.float32

    S = _pick_steps_per_block(T)
    num_blocks = T // S

    # Host-side padding to lane-aligned shapes (exact for this recurrence).
    x = jnp.pad(inputs.astype(f32), ((0, 0), (0, pad))).reshape(num_blocks, S, n_pad)
    y0p = jnp.pad(y0.astype(f32), ((0, 7), (0, pad)))            # (8, Np), rows 1..7 zero
    hebb0p = jnp.pad(hebb0.astype(f32), ((0, pad), (0, pad)))
    wp = jnp.pad(w.astype(f32), ((0, pad), (0, pad)))
    ap = jnp.pad(alpha.astype(f32), ((0, pad), (0, pad)))

    eta_s = jnp.asarray(eta, f32).reshape(())
    eta_v = jnp.stack([eta_s, 1.0 - eta_s])                      # [eta, 1-eta] in SMEM

    cost = pl.CostEstimate(
        flops=int(T * 8 * n_pad * n_pad),         # ~2 N^2 MXU + ~4-6 N^2 VPU per step
        transcendentals=int(T * n_pad),           # tanh
        bytes_accessed=int(4 * (4 * n_pad * n_pad + 2 * T * n_pad)),
    )

    kernel = functools.partial(_plastic_rnn_kernel, steps_per_block=S)

    youts, hebb_new = pl.pallas_call(
        kernel,
        grid=(num_blocks,),
        out_shape=(
            jax.ShapeDtypeStruct((num_blocks, S, n_pad), f32),
            jax.ShapeDtypeStruct((n_pad, n_pad), f32),
        ),
        in_specs=[
            pl.BlockSpec(memory_space=pltpu.SMEM),                    # [eta, 1-eta]
            pl.BlockSpec((None, S, n_pad), lambda t: (t, 0, 0)),      # x block (streamed)
            pl.BlockSpec((8, n_pad), lambda t: (0, 0)),               # y0 (tiny, resident)
            pl.BlockSpec(memory_space=pl.ANY),                        # hebb0 (HBM, DMA once)
            pl.BlockSpec(memory_space=pl.ANY),                        # w     (HBM, DMA once)
            pl.BlockSpec(memory_space=pl.ANY),                        # alpha (HBM, DMA once)
        ],
        out_specs=(
            pl.BlockSpec((None, S, n_pad), lambda t: (t, 0, 0)),      # yout block (lane-dense)
            pl.BlockSpec(memory_space=pl.ANY),                        # hebb (DMA at last step)
        ),
        scratch_shapes=[
            pltpu.VMEM((8, n_pad), f32),          # y state   (row 0 live, rows 1..7 zero)
            pltpu.VMEM((8, n_pad), f32),          # eta*yout staging for the x^T @ y outer
            pltpu.VMEM((n_pad, n_pad), f32),      # hebb  (single-copy resident state)
            pltpu.VMEM((n_pad, n_pad), f32),      # w_eff (persistent, fused update)
            pltpu.VMEM((n_pad, n_pad), f32),      # w     (single-copy resident)
            pltpu.VMEM((n_pad, n_pad), f32),      # alpha (single-copy resident)
            pltpu.SemaphoreType.DMA((4,)),
        ],
        input_output_aliases={3: 1},              # hebb0 HBM buffer -> hebb output (donated)
        compiler_params=pltpu.CompilerParams(
            dimension_semantics=("arbitrary",),   # sequential recurrence over time blocks
            vmem_limit_bytes=40 * 1024 * 1024,    # ~16 MiB residents + temporaries, w/ headroom
        ),
        cost_estimate=cost,
    )(eta_v, x, y0p, hebb0p, wp, ap)

    youts = youts.reshape(T, n_pad)[:, :n]
    hebb_new = hebb_new[:n, :n]
    return youts, hebb_new


def plastic_rnn_forward(inp, yin, hebb, w, alpha, eta):
    """Exact NETWORK.forward semantics: one step, returns (yout (1, N), hebb_new (N, N))."""
    youts, hebb_new = plastic_rnn_run(inp.reshape(1, -1), yin, hebb, w, alpha, eta)
    return youts, hebb_new


# ----------------------------- pure-JAX references ------------------------------------

def plastic_rnn_step_ref(inp, yin, hebb, w, alpha, eta):
    w_eff = w + alpha * hebb
    yout = jnp.tanh(jnp.dot(yin, w_eff, precision=lax.Precision.HIGHEST) + inp)
    hebb_new = (1.0 - eta) * hebb + eta * jnp.dot(yin.T, yout,
                                                  precision=lax.Precision.HIGHEST)
    return yout, hebb_new


def plastic_rnn_run_ref(inputs, y0, hebb0, w, alpha, eta):
    def step(carry, x):
        y, h = carry
        y2, h2 = plastic_rnn_step_ref(x[None, :], y, h, w, alpha, eta)
        return (y2, h2), y2[0]
    (_, hebb), ys = lax.scan(step, (y0, hebb0), inputs)
    return ys, hebb


if __name__ == "__main__":
    # Small synthetic sizes (module uses NBNEUR = 1001; scaled down for the demo).
    N, T = 256, 8

    key = jax.random.PRNGKey(0)
    k_w, k_a, k_x, k_y, k_h = jax.random.split(key, 5)

    w = 0.01 * jax.random.normal(k_w, (N, N), dtype=jnp.float32)
    alpha = 0.01 * jax.random.normal(k_a, (N, N), dtype=jnp.float32)
    eta = jnp.float32(0.01)

    xs = jax.random.normal(k_x, (T, N), dtype=jnp.float32)
    y0 = jax.random.normal(k_y, (1, N), dtype=jnp.float32)
    hebb0 = 0.1 * jax.random.normal(k_h, (N, N), dtype=jnp.float32)

    # Fused T-step run: w / alpha / hebb / w_eff stay resident in VMEM across the grid.
    youts, hebb_T = plastic_rnn_run(xs, y0, hebb0, w, alpha, eta)
    jax.block_until_ready((youts, hebb_T))

    youts_ref, hebb_T_ref = plastic_rnn_run_ref(xs, y0, hebb0, w, alpha, eta)
    assert jnp.allclose(youts, youts_ref, atol=1e-4, rtol=1e-4)
    assert jnp.allclose(hebb_T, hebb_T_ref, atol=1e-4, rtol=1e-4)

    # Single-step forward (module semantics) at a non-lane-aligned size to exercise the
    # internal pad-to-128 path (the real model's NBNEUR = 1001 is also unaligned).
    N2 = 200
    k2 = jax.random.split(key, 4)
    w2 = 0.01 * jax.random.normal(k2[0], (N2, N2), dtype=jnp.float32)
    a2 = 0.01 * jax.random.normal(k2[1], (N2, N2), dtype=jnp.float32)
    x2 = jax.random.normal(k2[2], (1, N2), dtype=jnp.float32)
    y2 = jax.random.normal(k2[3], (1, N2), dtype=jnp.float32)
    h2 = jnp.zeros((N2, N2), jnp.float32)

    yout2, hebb2 = plastic_rnn_forward(x2, y2, h2, w2, a2, eta)
    jax.block_until_ready((yout2, hebb2))
    yout2_ref, hebb2_ref = plastic_rnn_step_ref(x2, y2, h2, w2, a2, eta)
    assert jnp.allclose(yout2, yout2_ref, atol=1e-4, rtol=1e-4)
    assert jnp.allclose(hebb2, hebb2_ref, atol=1e-4, rtol=1e-4)

    print("KERNEL_OK")
</pallas_src>

<mosaic_0001>
module attributes {stable_mosaic.version = 11 : i64} {
  func.func @_plastic_rnn_kernel(%arg0: i32, %arg1: memref<2xf32, #tpu.memory_space<smem>>, %arg2: memref<1x8x256xf32, #tpu.memory_space<vmem>>, %arg3: memref<8x256xf32, #tpu.memory_space<vmem>>, %arg4: memref<256x256xf32, #tpu.memory_space<any>>, %arg5: memref<256x256xf32, #tpu.memory_space<any>>, %arg6: memref<256x256xf32, #tpu.memory_space<any>>, %arg7: memref<1x8x256xf32, #tpu.memory_space<vmem>>, %arg8: memref<256x256xf32, #tpu.memory_space<any>>, %arg9: memref<8x256xf32, #tpu.memory_space<vmem>>, %arg10: memref<8x256xf32, #tpu.memory_space<vmem>>, %arg11: memref<256x256xf32, #tpu.memory_space<vmem>>, %arg12: memref<256x256xf32, #tpu.memory_space<vmem>>, %arg13: memref<256x256xf32, #tpu.memory_space<vmem>>, %arg14: memref<256x256xf32, #tpu.memory_space<vmem>>, %arg15: memref<4x!tpu.dma_semaphore, #tpu.memory_space<semaphore_mem>>) attributes {dimension_semantics = [#tpu.dimension_semantics<arbitrary>], iteration_bounds = array<i64: 1>, scalar_prefetch = 0 : i64, scratch_operands = 7 : i64, tpu.core_type = #tpu.core_type<tc>, window_params = [{transform_indices = @transform_0, window_bounds = array<i64: 2>}, {transform_indices = @transform_1, window_bounds = array<i64: 1, 8, 256>}, {pipeline_mode = #tpu.pipeline_mode<synchronous>, transform_indices = @transform_2, window_bounds = array<i64: 8, 256>}, {}, {}, {}, {transform_indices = @transform_6, window_bounds = array<i64: 1, 8, 256>}, {}]} {
    %c0_i32 = arith.constant 0 : i32
    %0 = arith.cmpi eq, %arg0, %c0_i32 : i32
    %1 = arith.extui %0 : i1 to i32
    %c0_i32_0 = arith.constant 0 : i32
    %2 = arith.cmpi ne, %1, %c0_i32_0 : i32
    scf.if %2 {
      %c0_i32_236 = arith.constant 0 : i32
      %224 = tpu.memref_slice %arg15[%c0_i32_236] : memref<4x!tpu.dma_semaphore, #tpu.memory_space<semaphore_mem>> -> memref<1x!tpu.dma_semaphore, #tpu.memory_space<semaphore_mem>>
      %225 = tpu.memref_squeeze %224 : memref<1x!tpu.dma_semaphore, #tpu.memory_space<semaphore_mem>> -> memref<!tpu.dma_semaphore, #tpu.memory_space<semaphore_mem>>
      tpu.enqueue_dma source(%arg4 : memref<256x256xf32, #tpu.memory_space<any>>) target(%arg11 : memref<256x256xf32, #tpu.memory_space<vmem>>) target_semaphore(%225 : memref<!tpu.dma_semaphore, #tpu.memory_space<semaphore_mem>>)
      %c1_i32 = arith.constant 1 : i32
      %226 = tpu.memref_slice %arg15[%c1_i32] : memref<4x!tpu.dma_semaphore, #tpu.memory_space<semaphore_mem>> -> memref<1x!tpu.dma_semaphore, #tpu.memory_space<semaphore_mem>>
      %227 = tpu.memref_squeeze %226 : memref<1x!tpu.dma_semaphore, #tpu.memory_space<semaphore_mem>> -> memref<!tpu.dma_semaphore, #tpu.memory_space<semaphore_mem>>
      tpu.enqueue_dma source(%arg5 : memref<256x256xf32, #tpu.memory_space<any>>) target(%arg13 : memref<256x256xf32, #tpu.memory_space<vmem>>) target_semaphore(%227 : memref<!tpu.dma_semaphore, #tpu.memory_space<semaphore_mem>>)
      %c2_i32 = arith.constant 2 : i32
      %228 = tpu.memref_slice %arg15[%c2_i32] : memref<4x!tpu.dma_semaphore, #tpu.memory_space<semaphore_mem>> -> memref<1x!tpu.dma_semaphore, #tpu.memory_space<semaphore_mem>>
      %229 = tpu.memref_squeeze %228 : memref<1x!tpu.dma_semaphore, #tpu.memory_space<semaphore_mem>> -> memref<!tpu.dma_semaphore, #tpu.memory_space<semaphore_mem>>
      tpu.enqueue_dma source(%arg6 : memref<256x256xf32, #tpu.memory_space<any>>) target(%arg14 : memref<256x256xf32, #tpu.memory_space<vmem>>) target_semaphore(%229 : memref<!tpu.dma_semaphore, #tpu.memory_space<semaphore_mem>>)
      %c0_i32_237 = arith.constant 0 : i32
      %230 = tpu.memref_slice %arg15[%c0_i32_237] : memref<4x!tpu.dma_semaphore, #tpu.memory_space<semaphore_mem>> -> memref<1x!tpu.dma_semaphore, #tpu.memory_space<semaphore_mem>>
      %231 = tpu.memref_squeeze %230 : memref<1x!tpu.dma_semaphore, #tpu.memory_space<semaphore_mem>> -> memref<!tpu.dma_semaphore, #tpu.memory_space<semaphore_mem>>
      tpu.wait_dma2 semaphore(%231 : memref<!tpu.dma_semaphore, #tpu.memory_space<semaphore_mem>>) src(%arg4 : memref<256x256xf32, #tpu.memory_space<any>>) dst(%arg11 : memref<256x256xf32, #tpu.memory_space<vmem>>)
      %c1_i32_238 = arith.constant 1 : i32
      %232 = tpu.memref_slice %arg15[%c1_i32_238] : memref<4x!tpu.dma_semaphore, #tpu.memory_space<semaphore_mem>> -> memref<1x!tpu.dma_semaphore, #tpu.memory_space<semaphore_mem>>
      %233 = tpu.memref_squeeze %232 : memref<1x!tpu.dma_semaphore, #tpu.memory_space<semaphore_mem>> -> memref<!tpu.dma_semaphore, #tpu.memory_space<semaphore_mem>>
      tpu.wait_dma2 semaphore(%233 : memref<!tpu.dma_semaphore, #tpu.memory_space<semaphore_mem>>) src(%arg5 : memref<256x256xf32, #tpu.memory_space<any>>) dst(%arg13 : memref<256x256xf32, #tpu.memory_space<vmem>>)
      %c2_i32_239 = arith.constant 2 : i32
      %234 = tpu.memref_slice %arg15[%c2_i32_239] : memref<4x!tpu.dma_semaphore, #tpu.memory_space<semaphore_mem>> -> memref<1x!tpu.dma_semaphore, #tpu.memory_space<semaphore_mem>>
      %235 = tpu.memref_squeeze %234 : memref<1x!tpu.dma_semaphore, #tpu.memory_space<semaphore_mem>> -> memref<!tpu.dma_semaphore, #tpu.memory_space<semaphore_mem>>
      tpu.wait_dma2 semaphore(%235 : memref<!tpu.dma_semaphore, #tpu.memory_space<semaphore_mem>>) src(%arg6 : memref<256x256xf32, #tpu.memory_space<any>>) dst(%arg14 : memref<256x256xf32, #tpu.memory_space<vmem>>)
      %c0_240 = arith.constant 0 : index
      %c0_241 = arith.constant 0 : index
      %236 = vector.load %arg3[%c0_240, %c0_241] : memref<8x256xf32, #tpu.memory_space<vmem>>, vector<8x256xf32>
      %c0_242 = arith.constant 0 : index
      %c0_243 = arith.constant 0 : index
      %237 = vector.load %arg9[%c0_242, %c0_243] : memref<8x256xf32, #tpu.memory_space<vmem>>, vector<8x256xf32>
      tpu.vector_store %arg9[%c0_242, %c0_243], %236 {strides = array<i32>} : memref<8x256xf32, #tpu.memory_space<vmem>>, vector<8x256xf32>,
      %cst_244 = arith.constant 0.000000e+00 : f32
      %238 = vector.broadcast %cst_244 : f32 to vector<8x256xf32>
      %c0_245 = arith.constant 0 : index
      %c0_246 = arith.constant 0 : index
      %239 = vector.load %arg10[%c0_245, %c0_246] : memref<8x256xf32, #tpu.memory_space<vmem>>, vector<8x256xf32>
      tpu.vector_store %arg10[%c0_245, %c0_246], %238 {strides = array<i32>} : memref<8x256xf32, #tpu.memory_space<vmem>>, vector<8x256xf32>,
      %c0_247 = arith.constant 0 : index
      %c0_248 = arith.constant 0 : index
      %240 = vector.load %arg13[%c0_247, %c0_248] : memref<256x256xf32, #tpu.memory_space<vmem>>, vector<256x256xf32>
      %c0_249 = arith.constant 0 : index
      %c0_250 = arith.constant 0 : index
      %241 = vector.load %arg14[%c0_249, %c0_250] : memref<256x256xf32, #tpu.memory_space<vmem>>, vector<256x256xf32>
      %c0_251 = arith.constant 0 : index
      %c0_252 = arith.constant 0 : index
      %242 = vector.load %arg11[%c0_251, %c0_252] : memref<256x256xf32, #tpu.memory_space<vmem>>, vector<256x256xf32>
      %243 = arith.mulf %241, %242 : vector<256x256xf32>
      %244 = arith.addf %240, %243 : vector<256x256xf32>
      %c0_253 = arith.constant 0 : index
      %c0_254 = arith.constant 0 : index
      %245 = vector.load %arg12[%c0_253, %c0_254] : memref<256x256xf32, #tpu.memory_space<vmem>>, vector<256x256xf32>
      tpu.vector_store %arg12[%c0_253, %c0_254], %244 {strides = array<i32>} : memref<256x256xf32, #tpu.memory_space<vmem>>, vector<256x256xf32>,
    } else {
    }
    %c0 = arith.constant 0 : index
    %3 = memref.load %arg1[%c0] : memref<2xf32, #tpu.memory_space<smem>>
    %c1 = arith.constant 1 : index
    %4 = memref.load %arg1[%c1] : memref<2xf32, #tpu.memory_space<smem>>
    %c0_1 = arith.constant 0 : index
    %c0_2 = arith.constant 0 : index
    %5 = vector.load %arg9[%c0_1, %c0_2] : memref<8x256xf32, #tpu.memory_space<vmem>>, vector<1x256xf32>
    %c0_3 = arith.constant 0 : index
    %c0_4 = arith.constant 0 : index
    %6 = vector.load %arg12[%c0_3, %c0_4] : memref<256x256xf32, #tpu.memory_space<vmem>>, vector<256x256xf32>
    %cst = arith.constant dense<0.000000e+00> : vector<1x256xf32>
    %7 = tpu.matmul %5, %6, %cst {dimension_numbers = #tpu.dot_dimension_numbers<[1], [0], [0], [1], [0, 0, 1, 1], [], []>} : vector<1x256xf32>, vector<256x256xf32>, vector<1x256xf32> -> vector<1x256xf32>
    %c0_5 = arith.constant 0 : index
    %c0_6 = arith.constant 0 : index
    %c0_7 = arith.constant 0 : index
    %8 = vector.load %arg2[%c0_5, %c0_6, %c0_7] : memref<1x8x256xf32, #tpu.memory_space<vmem>>, vector<1x1x256xf32>
    %9 = vector.shape_cast %8 : vector<1x1x256xf32> to vector<1x256xf32>
    %10 = arith.addf %7, %9 : vector<1x256xf32>
    %11 = math.tanh %10 : vector<1x256xf32>
    %c0_8 = arith.constant 0 : index
    %c0_9 = arith.constant 0 : index
    %c0_10 = arith.constant 0 : index
    %12 = vector.load %arg7[%c0_8, %c0_9, %c0_10] : memref<1x8x256xf32, #tpu.memory_space<vmem>>, vector<1x1x256xf32>
    %13 = vector.shape_cast %12 : vector<1x1x256xf32> to vector<1x256xf32>
    %14 = vector.shape_cast %11 : vector<1x256xf32> to vector<1x1x256xf32>
    tpu.vector_store %arg7[%c0_8, %c0_9, %c0_10], %14 {strides = array<i32>} : memref<1x8x256xf32, #tpu.memory_space<vmem>>, vector<1x1x256xf32>,
    %15 = vector.broadcast %3 : f32 to vector<1x256xf32>
    %16 = arith.mulf %15, %11 : vector<1x256xf32>
    %c0_11 = arith.constant 0 : index
    %c0_12 = arith.constant 0 : index
    %17 = vector.load %arg10[%c0_11, %c0_12] : memref<8x256xf32, #tpu.memory_space<vmem>>, vector<1x256xf32>
    tpu.vector_store %arg10[%c0_11, %c0_12], %16 {strides = array<i32>} : memref<8x256xf32, #tpu.memory_space<vmem>>, vector<1x256xf32>,
    %c0_13 = arith.constant 0 : index
    %c0_14 = arith.constant 0 : index
    %18 = vector.load %arg9[%c0_13, %c0_14] : memref<8x256xf32, #tpu.memory_space<vmem>>, vector<8x256xf32>
    %c0_15 = arith.constant 0 : index
    %c0_16 = arith.constant 0 : index
    %19 = vector.load %arg10[%c0_15, %c0_16] : memref<8x256xf32, #tpu.memory_space<vmem>>, vector<8x256xf32>
    %cst_17 = arith.constant dense<0.000000e+00> : vector<256x256xf32>
    %20 = tpu.matmul %18, %19, %cst_17 {dimension_numbers = #tpu.dot_dimension_numbers<[0], [0], [1], [1], [0, 1, 1, 1], [], []>} : vector<8x256xf32>, vector<8x256xf32>, vector<256x256xf32> -> vector<256x256xf32>
    %c0_18 = arith.constant 0 : index
    %c0_19 = arith.constant 0 : index
    %21 = vector.load %arg11[%c0_18, %c0_19] : memref<256x256xf32, #tpu.memory_space<vmem>>, vector<256x256xf32>
    %22 = vector.broadcast %4 : f32 to vector<256x256xf32>
    %23 = arith.mulf %22, %21 : vector<256x256xf32>
    %24 = arith.addf %23, %20 : vector<256x256xf32>
    %c0_20 = arith.constant 0 : index
    %c0_21 = arith.constant 0 : index
    %25 = vector.load %arg11[%c0_20, %c0_21] : memref<256x256xf32, #tpu.memory_space<vmem>>, vector<256x256xf32>
    tpu.vector_store %arg11[%c0_20, %c0_21], %24 {strides = array<i32>} : memref<256x256xf32, #tpu.memory_space<vmem>>, vector<256x256xf32>,
    %c0_22 = arith.constant 0 : index
    %c0_23 = arith.constant 0 : index
    %26 = vector.load %arg13[%c0_22, %c0_23] : memref<256x256xf32, #tpu.memory_space<vmem>>, vector<256x256xf32>
    %c0_24 = arith.constant 0 : index
    %c0_25 = arith.constant 0 : index
    %27 = vector.load %arg14[%c0_24, %c0_25] : memref<256x256xf32, #tpu.memory_space<vmem>>, vector<256x256xf32>
    %28 = arith.mulf %27, %24 : vector<256x256xf32>
    %29 = arith.addf %26, %28 : vector<256x256xf32>
    %c0_26 = arith.constant 0 : index
    %c0_27 = arith.constant 0 : index
    %30 = vector.load %arg12[%c0_26, %c0_27] : memref<256x256xf32, #tpu.memory_space<vmem>>, vector<256x256xf32>
    tpu.vector_store %arg12[%c0_26, %c0_27], %29 {strides = array<i32>} : memref<256x256xf32, #tpu.memory_space<vmem>>, vector<256x256xf32>,
    %c0_28 = arith.constant 0 : index
    %c0_29 = arith.constant 0 : index
    %31 = vector.load %arg9[%c0_28, %c0_29] : memref<8x256xf32, #tpu.memory_space<vmem>>, vector<1x256xf32>
    tpu.vector_store %arg9[%c0_28, %c0_29], %11 {strides = array<i32>} : memref<8x256xf32, #tpu.memory_space<vmem>>, vector<1x256xf32>,
    %c0_30 = arith.constant 0 : index
    %c0_31 = arith.constant 0 : index
    %32 = vector.load %arg9[%c0_30, %c0_31] : memref<8x256xf32, #tpu.memory_space<vmem>>, vector<1x256xf32>
    %c0_32 = arith.constant 0 : index
    %c0_33 = arith.constant 0 : index
    %33 = vector.load %arg12[%c0_32, %c0_33] : memref<256x256xf32, #tpu.memory_space<vmem>>, vector<256x256xf32>
    %cst_34 = arith.constant dense<0.000000e+00> : vector<1x256xf32>
    %34 = tpu.matmul %32, %33, %cst_34 {dimension_numbers = #tpu.dot_dimension_numbers<[1], [0], [0], [1], [0, 0, 1, 1], [], []>} : vector<1x256xf32>, vector<256x256xf32>, vector<1x256xf32> -> vector<1x256xf32>
    %c0_35 = arith.constant 0 : index
    %c1_36 = arith.constant 1 : index
    %c0_37 = arith.constant 0 : index
    %35 = vector.load %arg2[%c0_35, %c1_36, %c0_37] : memref<1x8x256xf32, #tpu.memory_space<vmem>>, vector<1x1x256xf32>
    %36 = vector.shape_cast %35 : vector<1x1x256xf32> to vector<1x256xf32>
    %37 = arith.addf %34, %36 : vector<1x256xf32>
    %38 = math.tanh %37 : vector<1x256xf32>
    %c0_38 = arith.constant 0 : index
    %c1_39 = arith.constant 1 : index
    %c0_40 = arith.constant 0 : index
    %39 = vector.load %arg7[%c0_38, %c1_39, %c0_40] : memref<1x8x256xf32, #tpu.memory_space<vmem>>, vector<1x1x256xf32>
    %40 = vector.shape_cast %39 : vector<1x1x256xf32> to vector<1x256xf32>
    %41 = vector.shape_cast %38 : vector<1x256xf32> to vector<1x1x256xf32>
    tpu.vector_store %arg7[%c0_38, %c1_39, %c0_40], %41 {strides = array<i32>} : memref<1x8x256xf32, #tpu.memory_space<vmem>>, vector<1x1x256xf32>,
    %42 = vector.broadcast %3 : f32 to vector<1x256xf32>
    %43 = arith.mulf %42, %38 : vector<1x256xf32>
    %c0_41 = arith.constant 0 : index
    %c0_42 = arith.constant 0 : index
    %44 = vector.load %arg10[%c0_41, %c0_42] : memref<8x256xf32, #tpu.memory_space<vmem>>, vector<1x256xf32>
    tpu.vector_store %arg10[%c0_41, %c0_42], %43 {strides = array<i32>} : memref<8x256xf32, #tpu.memory_space<vmem>>, vector<1x256xf32>,
    %c0_43 = arith.constant 0 : index
    %c0_44 = arith.constant 0 : index
    %45 = vector.load %arg9[%c0_43, %c0_44] : memref<8x256xf32, #tpu.memory_space<vmem>>, vector<8x256xf32>
    %c0_45 = arith.constant 0 : index
    %c0_46 = arith.constant 0 : index
    %46 = vector.load %arg10[%c0_45, %c0_46] : memref<8x256xf32, #tpu.memory_space<vmem>>, vector<8x256xf32>
    %cst_47 = arith.constant dense<0.000000e+00> : vector<256x256xf32>
    %47 = tpu.matmul %45, %46, %cst_47 {dimension_numbers = #tpu.dot_dimension_numbers<[0], [0], [1], [1], [0, 1, 1, 1], [], []>} : vector<8x256xf32>, vector<8x256xf32>, vector<256x256xf32> -> vector<256x256xf32>
    %c0_48 = arith.constant 0 : index
    %c0_49 = arith.constant 0 : index
    %48 = vector.load %arg11[%c0_48, %c0_49] : memref<256x256xf32, #tpu.memory_space<vmem>>, vector<256x256xf32>
    %49 = vector.broadcast %4 : f32 to vector<256x256xf32>
    %50 = arith.mulf %49, %48 : vector<256x256xf32>
    %51 = arith.addf %50, %47 : vector<256x256xf32>
    %c0_50 = arith.constant 0 : index
    %c0_51 = arith.constant 0 : index
    %52 = vector.load %arg11[%c0_50, %c0_51] : memref<256x256xf32, #tpu.memory_space<vmem>>, vector<256x256xf32>
    tpu.vector_store %arg11[%c0_50, %c0_51], %51 {strides = array<i32>} : memref<256x256xf32, #tpu.memory_space<vmem>>, vector<256x256xf32>,
    %c0_52 = arith.constant 0 : index
    %c0_53 = arith.constant 0 : index
    %53 = vector.load %arg13[%c0_52, %c0_53] : memref<256x256xf32, #tpu.memory_space<vmem>>, vector<256x256xf32>
    %c0_54 = arith.constant 0 : index
    %c0_55 = arith.constant 0 : index
    %54 = vector.load %arg14[%c0_54, %c0_55] : memref<256x256xf32, #tpu.memory_space<vmem>>, vector<256x256xf32>
    %55 = arith.mulf %54, %51 : vector<256x256xf32>
    %56 = arith.addf %53, %55 : vector<256x256xf32>
    %c0_56 = arith.constant 0 : index
    %c0_57 = arith.constant 0 : index
    %57 = vector.load %arg12[%c0_56, %c0_57] : memref<256x256xf32, #tpu.memory_space<vmem>>, vector<256x256xf32>
    tpu.vector_store %arg12[%c0_56, %c0_57], %56 {strides = array<i32>} : memref<256x256xf32, #tpu.memory_space<vmem>>, vector<256x256xf32>,
    %c0_58 = arith.constant 0 : index
    %c0_59 = arith.constant 0 : index
    %58 = vector.load %arg9[%c0_58, %c0_59] : memref<8x256xf32, #tpu.memory_space<vmem>>, vector<1x256xf32>
    tpu.vector_store %arg9[%c0_58, %c0_59], %38 {strides = array<i32>} : memref<8x256xf32, #tpu.memory_space<vmem>>, vector<1x256xf32>,
    %c0_60 = arith.constant 0 : index
    %c0_61 = arith.constant 0 : index
    %59 = vector.load %arg9[%c0_60, %c0_61] : memref<8x256xf32, #tpu.memory_space<vmem>>, vector<1x256xf32>
    %c0_62 = arith.constant 0 : index
    %c0_63 = arith.constant 0 : index
    %60 = vector.load %arg12[%c0_62, %c0_63] : memref<256x256xf32, #tpu.memory_space<vmem>>, vector<256x256xf32>
    %cst_64 = arith.constant dense<0.000000e+00> : vector<1x256xf32>
    %61 = tpu.matmul %59, %60, %cst_64 {dimension_numbers = #tpu.dot_dimension_numbers<[1], [0], [0], [1], [0, 0, 1, 1], [], []>} : vector<1x256xf32>, vector<256x256xf32>, vector<1x256xf32> -> vector<1x256xf32>
    %c0_65 = arith.constant 0 : index
    %c2 = arith.constant 2 : index
    %c0_66 = arith.constant 0 : index
    %62 = vector.load %arg2[%c0_65, %c2, %c0_66] : memref<1x8x256xf32, #tpu.memory_space<vmem>>, vector<1x1x256xf32>
    %63 = vector.shape_cast %62 : vector<1x1x256xf32> to vector<1x256xf32>
    %64 = arith.addf %61, %63 : vector<1x256xf32>
    %65 = math.tanh %64 : vector<1x256xf32>
    %c0_67 = arith.constant 0 : index
    %c2_68 = arith.constant 2 : index
    %c0_69 = arith.constant 0 : index
    %66 = vector.load %arg7[%c0_67, %c2_68, %c0_69] : memref<1x8x256xf32, #tpu.memory_space<vmem>>, vector<1x1x256xf32>
    %67 = vector.shape_cast %66 : vector<1x1x256xf32> to vector<1x256xf32>
    %68 = vector.shape_cast %65 : vector<1x256xf32> to vector<1x1x256xf32>
    tpu.vector_store %arg7[%c0_67, %c2_68, %c0_69], %68 {strides = array<i32>} : memref<1x8x256xf32, #tpu.memory_space<vmem>>, vector<1x1x256xf32>,
    %69 = vector.broadcast %3 : f32 to vector<1x256xf32>
    %70 = arith.mulf %69, %65 : vector<1x256xf32>
    %c0_70 = arith.constant 0 : index
    %c0_71 = arith.constant 0 : index
    %71 = vector.load %arg10[%c0_70, %c0_71] : memref<8x256xf32, #tpu.memory_space<vmem>>, vector<1x256xf32>
    tpu.vector_store %arg10[%c0_70, %c0_71], %70 {strides = array<i32>} : memref<8x256xf32, #tpu.memory_space<vmem>>, vector<1x256xf32>,
    %c0_72 = arith.constant 0 : index
    %c0_73 = arith.constant 0 : index
    %72 = vector.load %arg9[%c0_72, %c0_73] : memref<8x256xf32, #tpu.memory_space<vmem>>, vector<8x256xf32>
    %c0_74 = arith.constant 0 : index
    %c0_75 = arith.constant 0 : index
    %73 = vector.load %arg10[%c0_74, %c0_75] : memref<8x256xf32, #tpu.memory_space<vmem>>, vector<8x256xf32>
    %cst_76 = arith.constant dense<0.000000e+00> : vector<256x256xf32>
    %74 = tpu.matmul %72, %73, %cst_76 {dimension_numbers = #tpu.dot_dimension_numbers<[0], [0], [1], [1], [0, 1, 1, 1], [], []>} : vector<8x256xf32>, vector<8x256xf32>, vector<256x256xf32> -> vector<256x256xf32>
    %c0_77 = arith.constant 0 : index
    %c0_78 = arith.constant 0 : index
    %75 = vector.load %arg11[%c0_77, %c0_78] : memref<256x256xf32, #tpu.memory_space<vmem>>, vector<256x256xf32>
    %76 = vector.broadcast %4 : f32 to vector<256x256xf32>
    %77 = arith.mulf %76, %75 : vector<256x256xf32>
    %78 = arith.addf %77, %74 : vector<256x256xf32>
    %c0_79 = arith.constant 0 : index
    %c0_80 = arith.constant 0 : index
    %79 = vector.load %arg11[%c0_79, %c0_80] : memref<256x256xf32, #tpu.memory_space<vmem>>, vector<256x256xf32>
    tpu.vector_store %arg11[%c0_79, %c0_80], %78 {strides = array<i32>} : memref<256x256xf32, #tpu.memory_space<vmem>>, vector<256x256xf32>,
    %c0_81 = arith.constant 0 : index
    %c0_82 = arith.constant 0 : index
    %80 = vector.load %arg13[%c0_81, %c0_82] : memref<256x256xf32, #tpu.memory_space<vmem>>, vector<256x256xf32>
    %c0_83 = arith.constant 0 : index
    %c0_84 = arith.constant 0 : index
    %81 = vector.load %arg14[%c0_83, %c0_84] : memref<256x256xf32, #tpu.memory_space<vmem>>, vector<256x256xf32>
    %82 = arith.mulf %81, %78 : vector<256x256xf32>
    %83 = arith.addf %80, %82 : vector<256x256xf32>
    %c0_85 = arith.constant 0 : index
    %c0_86 = arith.constant 0 : index
    %84 = vector.load %arg12[%c0_85, %c0_86] : memref<256x256xf32, #tpu.memory_space<vmem>>, vector<256x256xf32>
    tpu.vector_store %arg12[%c0_85, %c0_86], %83 {strides = array<i32>} : memref<256x256xf32, #tpu.memory_space<vmem>>, vector<256x256xf32>,
    %c0_87 = arith.constant 0 : index
    %c0_88 = arith.constant 0 : index
    %85 = vector.load %arg9[%c0_87, %c0_88] : memref<8x256xf32, #tpu.memory_space<vmem>>, vector<1x256xf32>
    tpu.vector_store %arg9[%c0_87, %c0_88], %65 {strides = array<i32>} : memref<8x256xf32, #tpu.memory_space<vmem>>, vector<1x256xf32>,
    %c0_89 = arith.constant 0 : index
    %c0_90 = arith.constant 0 : index
    %86 = vector.load %arg9[%c0_89, %c0_90] : memref<8x256xf32, #tpu.memory_space<vmem>>, vector<1x256xf32>
    %c0_91 = arith.constant 0 : index
    %c0_92 = arith.constant 0 : index
    %87 = vector.load %arg12[%c0_91, %c0_92] : memref<256x256xf32, #tpu.memory_space<vmem>>, vector<256x256xf32>
    %cst_93 = arith.constant dense<0.000000e+00> : vector<1x256xf32>
    %88 = tpu.matmul %86, %87, %cst_93 {dimension_numbers = #tpu.dot_dimension_numbers<[1], [0], [0], [1], [0, 0, 1, 1], [], []>} : vector<1x256xf32>, vector<256x256xf32>, vector<1x256xf32> -> vector<1x256xf32>
    %c0_94 = arith.constant 0 : index
    %c3 = arith.constant 3 : index
    %c0_95 = arith.constant 0 : index
    %89 = vector.load %arg2[%c0_94, %c3, %c0_95] : memref<1x8x256xf32, #tpu.memory_space<vmem>>, vector<1x1x256xf32>
    %90 = vector.shape_cast %89 : vector<1x1x256xf32> to vector<1x256xf32>
    %91 = arith.addf %88, %90 : vector<1x256xf32>
    %92 = math.tanh %91 : vector<1x256xf32>
    %c0_96 = arith.constant 0 : index
    %c3_97 = arith.constant 3 : index
    %c0_98 = arith.constant 0 : index
    %93 = vector.load %arg7[%c0_96, %c3_97, %c0_98] : memref<1x8x256xf32, #tpu.memory_space<vmem>>, vector<1x1x256xf32>
    %94 = vector.shape_cast %93 : vector<1x1x256xf32> to vector<1x256xf32>
    %95 = vector.shape_cast %92 : vector<1x256xf32> to vector<1x1x256xf32>
    tpu.vector_store %arg7[%c0_96, %c3_97, %c0_98], %95 {strides = array<i32>} : memref<1x8x256xf32, #tpu.memory_space<vmem>>, vector<1x1x256xf32>,
    %96 = vector.broadcast %3 : f32 to vector<1x256xf32>
    %97 = arith.mulf %96, %92 : vector<1x256xf32>
    %c0_99 = arith.constant 0 : index
    %c0_100 = arith.constant 0 : index
    %98 = vector.load %arg10[%c0_99, %c0_100] : memref<8x256xf32, #tpu.memory_space<vmem>>, vector<1x256xf32>
    tpu.vector_store %arg10[%c0_99, %c0_100], %97 {strides = array<i32>} : memref<8x256xf32, #tpu.memory_space<vmem>>, vector<1x256xf32>,
    %c0_101 = arith.constant 0 : index
    %c0_102 = arith.constant 0 : index
    %99 = vector.load %arg9[%c0_101, %c0_102] : memref<8x256xf32, #tpu.memory_space<vmem>>, vector<8x256xf32>
    %c0_103 = arith.constant 0 : index
    %c0_104 = arith.constant 0 : index
    %100 = vector.load %arg10[%c0_103, %c0_104] : memref<8x256xf32, #tpu.memory_space<vmem>>, vector<8x256xf32>
    %cst_105 = arith.constant dense<0.000000e+00> : vector<256x256xf32>
    %101 = tpu.matmul %99, %100, %cst_105 {dimension_numbers = #tpu.dot_dimension_numbers<[0], [0], [1], [1], [0, 1, 1, 1], [], []>} : vector<8x256xf32>, vector<8x256xf32>, vector<256x256xf32> -> vector<256x256xf32>
    %c0_106 = arith.constant 0 : index
    %c0_107 = arith.constant 0 : index
    %102 = vector.load %arg11[%c0_106, %c0_107] : memref<256x256xf32, #tpu.memory_space<vmem>>, vector<256x256xf32>
    %103 = vector.broadcast %4 : f32 to vector<256x256xf32>
    %104 = arith.mulf %103, %102 : vector<256x256xf32>
    %105 = arith.addf %104, %101 : vector<256x256xf32>
    %c0_108 = arith.constant 0 : index
    %c0_109 = arith.constant 0 : index
    %106 = vector.load %arg11[%c0_108, %c0_109] : memref<256x256xf32, #tpu.memory_space<vmem>>, vector<256x256xf32>
    tpu.vector_store %arg11[%c0_108, %c0_109], %105 {strides = array<i32>} : memref<256x256xf32, #tpu.memory_space<vmem>>, vector<256x256xf32>,
    %c0_110 = arith.constant 0 : index
    %c0_111 = arith.constant 0 : index
    %107 = vector.load %arg13[%c0_110, %c0_111] : memref<256x256xf32, #tpu.memory_space<vmem>>, vector<256x256xf32>
    %c0_112 = arith.constant 0 : index
    %c0_113 = arith.constant 0 : index
    %108 = vector.load %arg14[%c0_112, %c0_113] : memref<256x256xf32, #tpu.memory_space<vmem>>, vector<256x256xf32>
    %109 = arith.mulf %108, %105 : vector<256x256xf32>
    %110 = arith.addf %107, %109 : vector<256x256xf32>
    %c0_114 = arith.constant 0 : index
    %c0_115 = arith.constant 0 : index
    %111 = vector.load %arg12[%c0_114, %c0_115] : memref<256x256xf32, #tpu.memory_space<vmem>>, vector<256x256xf32>
    tpu.vector_store %arg12[%c0_114, %c0_115], %110 {strides = array<i32>} : memref<256x256xf32, #tpu.memory_space<vmem>>, vector<256x256xf32>,
    %c0_116 = arith.constant 0 : index
    %c0_117 = arith.constant 0 : index
    %112 = vector.load %arg9[%c0_116, %c0_117] : memref<8x256xf32, #tpu.memory_space<vmem>>, vector<1x256xf32>
    tpu.vector_store %arg9[%c0_116, %c0_117], %92 {strides = array<i32>} : memref<8x256xf32, #tpu.memory_space<vmem>>, vector<1x256xf32>,
    %c0_118 = arith.constant 0 : index
    %c0_119 = arith.constant 0 : index
    %113 = vector.load %arg9[%c0_118, %c0_119] : memref<8x256xf32, #tpu.memory_space<vmem>>, vector<1x256xf32>
    %c0_120 = arith.constant 0 : index
    %c0_121 = arith.constant 0 : index
    %114 = vector.load %arg12[%c0_120, %c0_121] : memref<256x256xf32, #tpu.memory_space<vmem>>, vector<256x256xf32>
    %cst_122 = arith.constant dense<0.000000e+00> : vector<1x256xf32>
    %115 = tpu.matmul %113, %114, %cst_122 {dimension_numbers = #tpu.dot_dimension_numbers<[1], [0], [0], [1], [0, 0, 1, 1], [], []>} : vector<1x256xf32>, vector<256x256xf32>, vector<1x256xf32> -> vector<1x256xf32>
    %c0_123 = arith.constant 0 : index
    %c4 = arith.constant 4 : index
    %c0_124 = arith.constant 0 : index
    %116 = vector.load %arg2[%c0_123, %c4, %c0_124] : memref<1x8x256xf32, #tpu.memory_space<vmem>>, vector<1x1x256xf32>
    %117 = vector.shape_cast %116 : vector<1x1x256xf32> to vector<1x256xf32>
    %118 = arith.addf %115, %117 : vector<1x256xf32>
    %119 = math.tanh %118 : vector<1x256xf32>
    %c0_125 = arith.constant 0 : index
    %c4_126 = arith.constant 4 : index
    %c0_127 = arith.constant 0 : index
    %120 = vector.load %arg7[%c0_125, %c4_126, %c0_127] : memref<1x8x256xf32, #tpu.memory_space<vmem>>, vector<1x1x256xf32>
    %121 = vector.shape_cast %120 : vector<1x1x256xf32> to vector<1x256xf32>
    %122 = vector.shape_cast %119 : vector<1x256xf32> to vector<1x1x256xf32>
    tpu.vector_store %arg7[%c0_125, %c4_126, %c0_127], %122 {strides = array<i32>} : memref<1x8x256xf32, #tpu.memory_space<vmem>>, vector<1x1x256xf32>,
    %123 = vector.broadcast %3 : f32 to vector<1x256xf32>
    %124 = arith.mulf %123, %119 : vector<1x256xf32>
    %c0_128 = arith.constant 0 : index
    %c0_129 = arith.constant 0 : index
    %125 = vector.load %arg10[%c0_128, %c0_129] : memref<8x256xf32, #tpu.memory_space<vmem>>, vector<1x256xf32>
    tpu.vector_store %arg10[%c0_128, %c0_129], %124 {strides = array<i32>} : memref<8x256xf32, #tpu.memory_space<vmem>>, vector<1x256xf32>,
    %c0_130 = arith.constant 0 : index
    %c0_131 = arith.constant 0 : index
    %126 = vector.load %arg9[%c0_130, %c0_131] : memref<8x256xf32, #tpu.memory_space<vmem>>, vector<8x256xf32>
    %c0_132 = arith.constant 0 : index
    %c0_133 = arith.constant 0 : index
    %127 = vector.load %arg10[%c0_132, %c0_133] : memref<8x256xf32, #tpu.memory_space<vmem>>, vector<8x256xf32>
    %cst_134 = arith.constant dense<0.000000e+00> : vector<256x256xf32>
    %128 = tpu.matmul %126, %127, %cst_134 {dimension_numbers = #tpu.dot_dimension_numbers<[0], [0], [1], [1], [0, 1, 1, 1], [], []>} : vector<8x256xf32>, vector<8x256xf32>, vector<256x256xf32> -> vector<256x256xf32>
    %c0_135 = arith.constant 0 : index
    %c0_136 = arith.constant 0 : index
    %129 = vector.load %arg11[%c0_135, %c0_136] : memref<256x256xf32, #tpu.memory_space<vmem>>, vector<256x256xf32>
    %130 = vector.broadcast %4 : f32 to vector<256x256xf32>
    %131 = arith.mulf %130, %129 : vector<256x256xf32>
    %132 = arith.addf %131, %128 : vector<256x256xf32>
    %c0_137 = arith.constant 0 : index
    %c0_138 = arith.constant 0 : index
    %133 = vector.load %arg11[%c0_137, %c0_138] : memref<256x256xf32, #tpu.memory_space<vmem>>, vector<256x256xf32>
    tpu.vector_store %arg11[%c0_137, %c0_138], %132 {strides = array<i32>} : memref<256x256xf32, #tpu.memory_space<vmem>>, vector<256x256xf32>,
    %c0_139 = arith.constant 0 : index
    %c0_140 = arith.constant 0 : index
    %134 = vector.load %arg13[%c0_139, %c0_140] : memref<256x256xf32, #tpu.memory_space<vmem>>, vector<256x256xf32>
    %c0_141 = arith.constant 0 : index
    %c0_142 = arith.constant 0 : index
    %135 = vector.load %arg14[%c0_141, %c0_142] : memref<256x256xf32, #tpu.memory_space<vmem>>, vector<256x256xf32>
    %136 = arith.mulf %135, %132 : vector<256x256xf32>
    %137 = arith.addf %134, %136 : vector<256x256xf32>
    %c0_143 = arith.constant 0 : index
    %c0_144 = arith.constant 0 : index
    %138 = vector.load %arg12[%c0_143, %c0_144] : memref<256x256xf32, #tpu.memory_space<vmem>>, vector<256x256xf32>
    tpu.vector_store %arg12[%c0_143, %c0_144], %137 {strides = array<i32>} : memref<256x256xf32, #tpu.memory_space<vmem>>, vector<256x256xf32>,
    %c0_145 = arith.constant 0 : index
    %c0_146 = arith.constant 0 : index
    %139 = vector.load %arg9[%c0_145, %c0_146] : memref<8x256xf32, #tpu.memory_space<vmem>>, vector<1x256xf32>
    tpu.vector_store %arg9[%c0_145, %c0_146], %119 {strides = array<i32>} : memref<8x256xf32, #tpu.memory_space<vmem>>, vector<1x256xf32>,
    %c0_147 = arith.constant 0 : index
    %c0_148 = arith.constant 0 : index
    %140 = vector.load %arg9[%c0_147, %c0_148] : memref<8x256xf32, #tpu.memory_space<vmem>>, vector<1x256xf32>
    %c0_149 = arith.constant 0 : index
    %c0_150 = arith.constant 0 : index
    %141 = vector.load %arg12[%c0_149, %c0_150] : memref<256x256xf32, #tpu.memory_space<vmem>>, vector<256x256xf32>
    %cst_151 = arith.constant dense<0.000000e+00> : vector<1x256xf32>
    %142 = tpu.matmul %140, %141, %cst_151 {dimension_numbers = #tpu.dot_dimension_numbers<[1], [0], [0], [1], [0, 0, 1, 1], [], []>} : vector<1x256xf32>, vector<256x256xf32>, vector<1x256xf32> -> vector<1x256xf32>
    %c0_152 = arith.constant 0 : index
    %c5 = arith.constant 5 : index
    %c0_153 = arith.constant 0 : index
    %143 = vector.load %arg2[%c0_152, %c5, %c0_153] : memref<1x8x256xf32, #tpu.memory_space<vmem>>, vector<1x1x256xf32>
    %144 = vector.shape_cast %143 : vector<1x1x256xf32> to vector<1x256xf32>
    %145 = arith.addf %142, %144 : vector<1x256xf32>
    %146 = math.tanh %145 : vector<1x256xf32>
    %c0_154 = arith.constant 0 : index
    %c5_155 = arith.constant 5 : index
    %c0_156 = arith.constant 0 : index
    %147 = vector.load %arg7[%c0_154, %c5_155, %c0_156] : memref<1x8x256xf32, #tpu.memory_space<vmem>>, vector<1x1x256xf32>
    %148 = vector.shape_cast %147 : vector<1x1x256xf32> to vector<1x256xf32>
    %149 = vector.shape_cast %146 : vector<1x256xf32> to vector<1x1x256xf32>
    tpu.vector_store %arg7[%c0_154, %c5_155, %c0_156], %149 {strides = array<i32>} : memref<1x8x256xf32, #tpu.memory_space<vmem>>, vector<1x1x256xf32>,
    %150 = vector.broadcast %3 : f32 to vector<1x256xf32>
    %151 = arith.mulf %150, %146 : vector<1x256xf32>
    %c0_157 = arith.constant 0 : index
    %c0_158 = arith.constant 0 : index
    %152 = vector.load %arg10[%c0_157, %c0_158] : memref<8x256xf32, #tpu.memory_space<vmem>>, vector<1x256xf32>
    tpu.vector_store %arg10[%c0_157, %c0_158], %151 {strides = array<i32>} : memref<8x256xf32, #tpu.memory_space<vmem>>, vector<1x256xf32>,
    %c0_159 = arith.constant 0 : index
    %c0_160 = arith.constant 0 : index
    %153 = vector.load %arg9[%c0_159, %c0_160] : memref<8x256xf32, #tpu.memory_space<vmem>>, vector<8x256xf32>
    %c0_161 = arith.constant 0 : index
    %c0_162 = arith.constant 0 : index
    %154 = vector.load %arg10[%c0_161, %c0_162] : memref<8x256xf32, #tpu.memory_space<vmem>>, vector<8x256xf32>
    %cst_163 = arith.constant dense<0.000000e+00> : vector<256x256xf32>
    %155 = tpu.matmul %153, %154, %cst_163 {dimension_numbers = #tpu.dot_dimension_numbers<[0], [0], [1], [1], [0, 1, 1, 1], [], []>} : vector<8x256xf32>, vector<8x256xf32>, vector<256x256xf32> -> vector<256x256xf32>
    %c0_164 = arith.constant 0 : index
    %c0_165 = arith.constant 0 : index
    %156 = vector.load %arg11[%c0_164, %c0_165] : memref<256x256xf32, #tpu.memory_space<vmem>>, vector<256x256xf32>
    %157 = vector.broadcast %4 : f32 to vector<256x256xf32>
    %158 = arith.mulf %157, %156 : vector<256x256xf32>
    %159 = arith.addf %158, %155 : vector<256x256xf32>
    %c0_166 = arith.constant 0 : index
    %c0_167 = arith.constant 0 : index
    %160 = vector.load %arg11[%c0_166, %c0_167] : memref<256x256xf32, #tpu.memory_space<vmem>>, vector<256x256xf32>
    tpu.vector_store %arg11[%c0_166, %c0_167], %159 {strides = array<i32>} : memref<256x256xf32, #tpu.memory_space<vmem>>, vector<256x256xf32>,
    %c0_168 = arith.constant 0 : index
    %c0_169 = arith.constant 0 : index
    %161 = vector.load %arg13[%c0_168, %c0_169] : memref<256x256xf32, #tpu.memory_space<vmem>>, vector<256x256xf32>
    %c0_170 = arith.constant 0 : index
    %c0_171 = arith.constant 0 : index
    %162 = vector.load %arg14[%c0_170, %c0_171] : memref<256x256xf32, #tpu.memory_space<vmem>>, vector<256x256xf32>
    %163 = arith.mulf %162, %159 : vector<256x256xf32>
    %164 = arith.addf %161, %163 : vector<256x256xf32>
    %c0_172 = arith.constant 0 : index
    %c0_173 = arith.constant 0 : index
    %165 = vector.load %arg12[%c0_172, %c0_173] : memref<256x256xf32, #tpu.memory_space<vmem>>, vector<256x256xf32>
    tpu.vector_store %arg12[%c0_172, %c0_173], %164 {strides = array<i32>} : memref<256x256xf32, #tpu.memory_space<vmem>>, vector<256x256xf32>,
    %c0_174 = arith.constant 0 : index
    %c0_175 = arith.constant 0 : index
    %166 = vector.load %arg9[%c0_174, %c0_175] : memref<8x256xf32, #tpu.memory_space<vmem>>, vector<1x256xf32>
    tpu.vector_store %arg9[%c0_174, %c0_175], %146 {strides = array<i32>} : memref<8x256xf32, #tpu.memory_space<vmem>>, vector<1x256xf32>,
    %c0_176 = arith.constant 0 : index
    %c0_177 = arith.constant 0 : index
    %167 = vector.load %arg9[%c0_176, %c0_177] : memref<8x256xf32, #tpu.memory_space<vmem>>, vector<1x256xf32>
    %c0_178 = arith.constant 0 : index
    %c0_179 = arith.constant 0 : index
    %168 = vector.load %arg12[%c0_178, %c0_179] : memref<256x256xf32, #tpu.memory_space<vmem>>, vector<256x256xf32>
    %cst_180 = arith.constant dense<0.000000e+00> : vector<1x256xf32>
    %169 = tpu.matmul %167, %168, %cst_180 {dimension_numbers = #tpu.dot_dimension_numbers<[1], [0], [0], [1], [0, 0, 1, 1], [], []>} : vector<1x256xf32>, vector<256x256xf32>, vector<1x256xf32> -> vector<1x256xf32>
    %c0_181 = arith.constant 0 : index
    %c6 = arith.constant 6 : index
    %c0_182 = arith.constant 0 : index
    %170 = vector.load %arg2[%c0_181, %c6, %c0_182] : memref<1x8x256xf32, #tpu.memory_space<vmem>>, vector<1x1x256xf32>
    %171 = vector.shape_cast %170 : vector<1x1x256xf32> to vector<1x256xf32>
    %172 = arith.addf %169, %171 : vector<1x256xf32>
    %173 = math.tanh %172 : vector<1x256xf32>
    %c0_183 = arith.constant 0 : index
    %c6_184 = arith.constant 6 : index
    %c0_185 = arith.constant 0 : index
    %174 = vector.load %arg7[%c0_183, %c6_184, %c0_185] : memref<1x8x256xf32, #tpu.memory_space<vmem>>, vector<1x1x256xf32>
    %175 = vector.shape_cast %174 : vector<1x1x256xf32> to vector<1x256xf32>
    %176 = vector.shape_cast %173 : vector<1x256xf32> to vector<1x1x256xf32>
    tpu.vector_store %arg7[%c0_183, %c6_184, %c0_185], %176 {strides = array<i32>} : memref<1x8x256xf32, #tpu.memory_space<vmem>>, vector<1x1x256xf32>,
    %177 = vector.broadcast %3 : f32 to vector<1x256xf32>
    %178 = arith.mulf %177, %173 : vector<1x256xf32>
    %c0_186 = arith.constant 0 : index
    %c0_187 = arith.constant 0 : index
    %179 = vector.load %arg10[%c0_186, %c0_187] : memref<8x256xf32, #tpu.memory_space<vmem>>, vector<1x256xf32>
    tpu.vector_store %arg10[%c0_186, %c0_187], %178 {strides = array<i32>} : memref<8x256xf32, #tpu.memory_space<vmem>>, vector<1x256xf32>,
    %c0_188 = arith.constant 0 : index
    %c0_189 = arith.constant 0 : index
    %180 = vector.load %arg9[%c0_188, %c0_189] : memref<8x256xf32, #tpu.memory_space<vmem>>, vector<8x256xf32>
    %c0_190 = arith.constant 0 : index
    %c0_191 = arith.constant 0 : index
    %181 = vector.load %arg10[%c0_190, %c0_191] : memref<8x256xf32, #tpu.memory_space<vmem>>, vector<8x256xf32>
    %cst_192 = arith.constant dense<0.000000e+00> : vector<256x256xf32>
    %182 = tpu.matmul %180, %181, %cst_192 {dimension_numbers = #tpu.dot_dimension_numbers<[0], [0], [1], [1], [0, 1, 1, 1], [], []>} : vector<8x256xf32>, vector<8x256xf32>, vector<256x256xf32> -> vector<256x256xf32>
    %c0_193 = arith.constant 0 : index
    %c0_194 = arith.constant 0 : index
    %183 = vector.load %arg11[%c0_193, %c0_194] : memref<256x256xf32, #tpu.memory_space<vmem>>, vector<256x256xf32>
    %184 = vector.broadcast %4 : f32 to vector<256x256xf32>
    %185 = arith.mulf %184, %183 : vector<256x256xf32>
    %186 = arith.addf %185, %182 : vector<256x256xf32>
    %c0_195 = arith.constant 0 : index
    %c0_196 = arith.constant 0 : index
    %187 = vector.load %arg11[%c0_195, %c0_196] : memref<256x256xf32, #tpu.memory_space<vmem>>, vector<256x256xf32>
    tpu.vector_store %arg11[%c0_195, %c0_196], %186 {strides = array<i32>} : memref<256x256xf32, #tpu.memory_space<vmem>>, vector<256x256xf32>,
    %c0_197 = arith.constant 0 : index
    %c0_198 = arith.constant 0 : index
    %188 = vector.load %arg13[%c0_197, %c0_198] : memref<256x256xf32, #tpu.memory_space<vmem>>, vector<256x256xf32>
    %c0_199 = arith.constant 0 : index
    %c0_200 = arith.constant 0 : index
    %189 = vector.load %arg14[%c0_199, %c0_200] : memref<256x256xf32, #tpu.memory_space<vmem>>, vector<256x256xf32>
    %190 = arith.mulf %189, %186 : vector<256x256xf32>
    %191 = arith.addf %188, %190 : vector<256x256xf32>
    %c0_201 = arith.constant 0 : index
    %c0_202 = arith.constant 0 : index
    %192 = vector.load %arg12[%c0_201, %c0_202] : memref<256x256xf32, #tpu.memory_space<vmem>>, vector<256x256xf32>
    tpu.vector_store %arg12[%c0_201, %c0_202], %191 {strides = array<i32>} : memref<256x256xf32, #tpu.memory_space<vmem>>, vector<256x256xf32>,
    %c0_203 = arith.constant 0 : index
    %c0_204 = arith.constant 0 : index
    %193 = vector.load %arg9[%c0_203, %c0_204] : memref<8x256xf32, #tpu.memory_space<vmem>>, vector<1x256xf32>
    tpu.vector_store %arg9[%c0_203, %c0_204], %173 {strides = array<i32>} : memref<8x256xf32, #tpu.memory_space<vmem>>, vector<1x256xf32>,
    %c0_205 = arith.constant 0 : index
    %c0_206 = arith.constant 0 : index
    %194 = vector.load %arg9[%c0_205, %c0_206] : memref<8x256xf32, #tpu.memory_space<vmem>>, vector<1x256xf32>
    %c0_207 = arith.constant 0 : index
    %c0_208 = arith.constant 0 : index
    %195 = vector.load %arg12[%c0_207, %c0_208] : memref<256x256xf32, #tpu.memory_space<vmem>>, vector<256x256xf32>
    %cst_209 = arith.constant dense<0.000000e+00> : vector<1x256xf32>
    %196 = tpu.matmul %194, %195, %cst_209 {dimension_numbers = #tpu.dot_dimension_numbers<[1], [0], [0], [1], [0, 0, 1, 1], [], []>} : vector<1x256xf32>, vector<256x256xf32>, vector<1x256xf32> -> vector<1x256xf32>
    %c0_210 = arith.constant 0 : index
    %c7 = arith.constant 7 : index
    %c0_211 = arith.constant 0 : index
    %197 = vector.load %arg2[%c0_210, %c7, %c0_211] : memref<1x8x256xf32, #tpu.memory_space<vmem>>, vector<1x1x256xf32>
    %198 = vector.shape_cast %197 : vector<1x1x256xf32> to vector<1x256xf32>
    %199 = arith.addf %196, %198 : vector<1x256xf32>
    %200 = math.tanh %199 : vector<1x256xf32>
    %c0_212 = arith.constant 0 : index
    %c7_213 = arith.constant 7 : index
    %c0_214 = arith.constant 0 : index
    %201 = vector.load %arg7[%c0_212, %c7_213, %c0_214] : memref<1x8x256xf32, #tpu.memory_space<vmem>>, vector<1x1x256xf32>
    %202 = vector.shape_cast %201 : vector<1x1x256xf32> to vector<1x256xf32>
    %203 = vector.shape_cast %200 : vector<1x256xf32> to vector<1x1x256xf32>
    tpu.vector_store %arg7[%c0_212, %c7_213, %c0_214], %203 {strides = array<i32>} : memref<1x8x256xf32, #tpu.memory_space<vmem>>, vector<1x1x256xf32>,
    %204 = vector.broadcast %3 : f32 to vector<1x256xf32>
    %205 = arith.mulf %204, %200 : vector<1x256xf32>
    %c0_215 = arith.constant 0 : index
    %c0_216 = arith.constant 0 : index
    %206 = vector.load %arg10[%c0_215, %c0_216] : memref<8x256xf32, #tpu.memory_space<vmem>>, vector<1x256xf32>
    tpu.vector_store %arg10[%c0_215, %c0_216], %205 {strides = array<i32>} : memref<8x256xf32, #tpu.memory_space<vmem>>, vector<1x256xf32>,
    %c0_217 = arith.constant 0 : index
    %c0_218 = arith.constant 0 : index
    %207 = vector.load %arg9[%c0_217, %c0_218] : memref<8x256xf32, #tpu.memory_space<vmem>>, vector<8x256xf32>
    %c0_219 = arith.constant 0 : index
    %c0_220 = arith.constant 0 : index
    %208 = vector.load %arg10[%c0_219, %c0_220] : memref<8x256xf32, #tpu.memory_space<vmem>>, vector<8x256xf32>
    %cst_221 = arith.constant dense<0.000000e+00> : vector<256x256xf32>
    %209 = tpu.matmul %207, %208, %cst_221 {dimension_numbers = #tpu.dot_dimension_numbers<[0], [0], [1], [1], [0, 1, 1, 1], [], []>} : vector<8x256xf32>, vector<8x256xf32>, vector<256x256xf32> -> vector<256x256xf32>
    %c0_222 = arith.constant 0 : index
    %c0_223 = arith.constant 0 : index
    %210 = vector.load %arg11[%c0_222, %c0_223] : memref<256x256xf32, #tpu.memory_space<vmem>>, vector<256x256xf32>
    %211 = vector.broadcast %4 : f32 to vector<256x256xf32>
    %212 = arith.mulf %211, %210 : vector<256x256xf32>
    %213 = arith.addf %212, %209 : vector<256x256xf32>
    %c0_224 = arith.constant 0 : index
    %c0_225 = arith.constant 0 : index
    %214 = vector.load %arg11[%c0_224, %c0_225] : memref<256x256xf32, #tpu.memory_space<vmem>>, vector<256x256xf32>
    tpu.vector_store %arg11[%c0_224, %c0_225], %213 {strides = array<i32>} : memref<256x256xf32, #tpu.memory_space<vmem>>, vector<256x256xf32>,
    %c0_226 = arith.constant 0 : index
    %c0_227 = arith.constant 0 : index
    %215 = vector.load %arg13[%c0_226, %c0_227] : memref<256x256xf32, #tpu.memory_space<vmem>>, vector<256x256xf32>
    %c0_228 = arith.constant 0 : index
    %c0_229 = arith.constant 0 : index
    %216 = vector.load %arg14[%c0_228, %c0_229] : memref<256x256xf32, #tpu.memory_space<vmem>>, vector<256x256xf32>
    %217 = arith.mulf %216, %213 : vector<256x256xf32>
    %218 = arith.addf %215, %217 : vector<256x256xf32>
    %c0_230 = arith.constant 0 : index
    %c0_231 = arith.constant 0 : index
    %219 = vector.load %arg12[%c0_230, %c0_231] : memref<256x256xf32, #tpu.memory_space<vmem>>, vector<256x256xf32>
    tpu.vector_store %arg12[%c0_230, %c0_231], %218 {strides = array<i32>} : memref<256x256xf32, #tpu.memory_space<vmem>>, vector<256x256xf32>,
    %c0_232 = arith.constant 0 : index
    %c0_233 = arith.constant 0 : index
    %220 = vector.load %arg9[%c0_232, %c0_233] : memref<8x256xf32, #tpu.memory_space<vmem>>, vector<1x256xf32>
    tpu.vector_store %arg9[%c0_232, %c0_233], %200 {strides = array<i32>} : memref<8x256xf32, #tpu.memory_space<vmem>>, vector<1x256xf32>,
    %c0_i32_234 = arith.constant 0 : i32
    %221 = arith.cmpi eq, %arg0, %c0_i32_234 : i32
    %222 = arith.extui %221 : i1 to i32
    %c0_i32_235 = arith.constant 0 : i32
    %223 = arith.cmpi ne, %222, %c0_i32_235 : i32
    scf.if %223 {
      %c3_i32 = arith.constant 3 : i32
      %224 = tpu.memref_slice %arg15[%c3_i32] : memref<4x!tpu.dma_semaphore, #tpu.memory_space<semaphore_mem>> -> memref<1x!tpu.dma_semaphore, #tpu.memory_space<semaphore_mem>>
      %225 = tpu.memref_squeeze %224 : memref<1x!tpu.dma_semaphore, #tpu.memory_space<semaphore_mem>> -> memref<!tpu.dma_semaphore, #tpu.memory_space<semaphore_mem>>
      tpu.enqueue_dma source(%arg11 : memref<256x256xf32, #tpu.memory_space<vmem>>) target(%arg8 : memref<256x256xf32, #tpu.memory_space<any>>) target_semaphore(%225 : memref<!tpu.dma_semaphore, #tpu.memory_space<semaphore_mem>>)
      %c3_i32_236 = arith.constant 3 : i32
      %226 = tpu.memref_slice %arg15[%c3_i32_236] : memref<4x!tpu.dma_semaphore, #tpu.memory_space<semaphore_mem>> -> memref<1x!tpu.dma_semaphore, #tpu.memory_space<semaphore_mem>>
      %227 = tpu.memref_squeeze %226 : memref<1x!tpu.dma_semaphore, #tpu.memory_space<semaphore_mem>> -> memref<!tpu.dma_semaphore, #tpu.memory_space<semaphore_mem>>
      tpu.wait_dma2 semaphore(%227 : memref<!tpu.dma_semaphore, #tpu.memory_space<semaphore_mem>>) src(%arg11 : memref<256x256xf32, #tpu.memory_space<vmem>>) dst(%arg8 : memref<256x256xf32, #tpu.memory_space<any>>)
    } else {
    }
    return
  }
  func.func @transform_0(%arg0: i32) -> i32 {
    %c0_i32 = arith.constant 0 : i32
    %c0_i32_0 = arith.constant 0 : i32
    return %c0_i32 : i32
  }
  func.func @transform_1(%arg0: i32) -> (i32, i32, i32) {
    %c0_i32 = arith.constant 0 : i32
    %c0_i32_0 = arith.constant 0 : i32
    %c0_i32_1 = arith.constant 0 : i32
    return %arg0, %c0_i32, %c0_i32_0 : i32, i32, i32
  }
  func.func @transform_2(%arg0: i32) -> (i32, i32) {
    %c0_i32 = arith.constant 0 : i32
    %c0_i32_0 = arith.constant 0 : i32
    %c0_i32_1 = arith.constant 0 : i32
    return %c0_i32, %c0_i32_0 : i32, i32
  }
  func.func @transform_6(%arg0: i32) -> (i32, i32, i32) {
    %c0_i32 = arith.constant 0 : i32
    %c0_i32_0 = arith.constant 0 : i32
    %c0_i32_1 = arith.constant 0 : i32
    return %arg0, %c0_i32, %c0_i32_0 : i32, i32, i32
  }
}

</mosaic_0001>

<bundles_post_ra>
// kernel: tpu_custom_call.1
= control target key start
LH: loop header
LB: loop body
LE: loop exit
PB: predicated region body
PF: predicated region fallthrough
CT: control target
= control target key end

     0   :  { %13 = vsyncpa [#allocation12], 0  ;;  %s15542_s0 = inlined_call_operand.hbm [shape: f32[2], index: 0, kind: input, shape index: {}]   ;;  %s15543_s1 = inlined_call_operand.hbm [shape: f32[1,8,256], index: 1, kind: input, shape index: {}]   ;;  %s15544_s2 = inlined_call_operand.hbm [shape: f32[8,256], index: 2, kind: input, shape index: {}]   ;;  %s15545_s3 = inlined_call_operand.hbm [shape: f32[256,256], index: 3, kind: input, shape index: {}, may-alias: {3,7}]   ;;  %s15546_s4 = inlined_call_operand.vmem [shape: f32[256,256], index: 4, kind: input, shape index: {}]   ;;  %s15547_s5 = inlined_call_operand.vmem [shape: f32[256,256], index: 5, kind: input, shape index: {}]   ;;  %s15548_s6 = inlined_call_operand.hbm [shape: f32[1,8,256], index: 6, kind: output, shape index: {0}]   ;;  %s15549_s7 = inlined_call_operand.hbm [shape: f32[256,256], index: 7, kind: output, shape index: {1}, may-alias: {3,7}]  }
   0x1   :  { %14 = vsyncpa [#allocation10], 0 }
   0x2   :  { %15 = vsyncpa [#allocation15], 0 }
   0x3   :  { %16 = vsyncpa [#allocation11], 0  ;;  %s10970_s24 = smov [#allocation9]   ;;  %s10971_s27 = smov [#allocation13]  }
   0x4   :  { %24 = dma.hbm_to_smem %s15542_s0, 16, %s10970_s24, [#allocation12]  }
   0x5   :  { %s31_s28 = sshll.u32 %s10971_s27, 4  ;;  %s10972_s29 = smov [#allocation14]   ;;  %s32_s28 = int_to_ptr.vmem [resolvable:$true] %s31_s28 }
   0x6   :  { %s41_s30 = sshll.u32 %s10972_s29, 4  ;;  %s10862_s8 = scalar_lea.vmem %s32_s28, 256  ;;  %s42_s30 = int_to_ptr.vmem [resolvable:$true] %s41_s30 }
   0x7   :  { %p10863_p0 = scmp.ne.s32.totalorder %s32_s28, %s10862_s8  ;;  %p10867_p1 = scmp.lt.s32.totalorder %s32_s28, %s32_s28 }
   0x8   :  { %p10868_p2 = scmp.lt.s32.totalorder %s10862_s8, %s10862_s8 }
   0xa   :  { %p10869_p3 = por %p10868_p2, %p10867_p1 }
   0xc   :  { %p10870_p4 = pnand %p10869_p3, %p10863_p0 }
   0xe   :  { %10873 = shalt.err (!%p10870_p4)
}
   0xf   :  { %34 = dma.hbm_to_vmem [thread:$0]  %s15543_s1, 256, %s32_s28, [#allocation10]  }
  0x10   :  { %s10882_s11 = scalar_lea.vmem %s42_s30, 256  ;;  %p10887_p6 = scmp.lt.s32.totalorder %s42_s30, %s42_s30 }
  0x11   :  { %p10883_p5 = scmp.ne.s32.totalorder %s42_s30, %s10882_s11  ;;  %p10888_p7 = scmp.lt.s32.totalorder %s10882_s11, %s10882_s11 }
  0x13   :  { %p10889_p8 = por %p10888_p7, %p10887_p6 }
  0x15   :  { %p10890_p9 = pnand %p10889_p8, %p10883_p5 }
  0x17   :  { %10893 = shalt.err (!%p10890_p9)
}
  0x18   :  { %44 = dma.hbm_to_vmem [thread:$0]  %s15544_s2, 256, %s42_s30, [#allocation15]  }
  0x19   :  { %10954 = dma.done.wait [#allocation12], 16  }
  0x1a   :  { %10955 = vsyncadd [#allocation12], 4294967280 }
  0x1b   :  { %10956 = dma.done.wait [#allocation10], 256  }
  0x1c   :  { %10957 = vsyncadd [#allocation10], 4294967040 }
  0x1d   :  { %10958 = dma.done.wait [#allocation15], 256  }
  0x1e   :  { %10959 = vsyncadd [#allocation15], 4294967040 }
  0x1f   :  { %54 = sfence }
  0x20   :  { %v11029_v0 = vld [vmem:[%s15546_s4] sm:$0xff]  ;;  %v11034_v1 = vld [vmem:[%s15546_s4 + $0x8] sm:$0xff]  ;;  %v11039_v2 = vld [vmem:[%s15546_s4 + $0x10] sm:$0xff]  ;;  %s10973_s2 = smov [#allocation4]  }
  0x21   :  { %15846 = vst [vmem:[#allocation33_spill] sm:$0xff] %v11029_v0  ;;  %15847 = vst [vmem:[#allocation34_spill] sm:$0xff] %v11034_v1  ;;  %s66_s18 = sshll.u32 %s10973_s2, 4  ;;  %v11044_v3 = vld [vmem:[%s15546_s4 + $0x18] sm:$0xff]  ;;  %v11049_v4 = vld [vmem:[%s15546_s4 + $0x20] sm:$0xff]  ;;  %s11056_s18 = int_to_ptr.vmem [resolvable:$true] %s66_s18 }
  0x22   :  { %15848 = vst [vmem:[#allocation35_spill] sm:$0xff] %v11039_v2  ;;  %15849 = vst [vmem:[#allocation36_spill] sm:$0xff] %v11044_v3  ;;  %v11054_v5 = vld [vmem:[%s15546_s4 + $0x28] sm:$0xff]  ;;  %v11061_v6 = vld [vmem:[%s15546_s4 + $0x30] sm:$0xff]  ;;  %s10902_s8 = scalar_lea.vmem %s11056_s18, 8192  ;;  %p10907_p11 = scmp.lt.s32.totalorder %s11056_s18, %s11056_s18 }
  0x23   :  { %15850 = vst [vmem:[#allocation37_spill] sm:$0xff] %v11049_v4  ;;  %15851 = vst [vmem:[#allocation38_spill] sm:$0xff] %v11054_v5  ;;  %v11066_v7 = vld [vmem:[%s15546_s4 + $0x38] sm:$0xff]  ;;  %v11071_v8 = vld [vmem:[%s15546_s4 + $0x40] sm:$0xff]  ;;  %p10903_p10 = scmp.ne.s32.totalorder %s11056_s18, %s10902_s8  ;;  %p10908_p12 = scmp.lt.s32.totalorder %s10902_s8, %s10902_s8 }
  0x24   :  { %15852 = vst [vmem:[#allocation39_spill] sm:$0xff] %v11061_v6  ;;  %15853 = vst [vmem:[#allocation40_spill] sm:$0xff] %v11066_v7 }
  0x25   :  { %15854 = vst [vmem:[#allocation41_spill] sm:$0xff] %v11071_v8  ;;  %p10909_p13 = por %p10908_p12, %p10907_p11 }
  0x27   :  { %p11077_p0 = pnand %p10909_p13, %p10903_p10 }
  0x29   :  { %10913 = shalt.err (!%p11077_p0)  }
  0x2a   :  { %69 = dma.hbm_to_vmem [thread:$0]  %s15545_s3, 8192, %s11056_s18, [#allocation8]  ;;  %v11090_v9 = vld [vmem:[%s15546_s4 + $0x48] sm:$0xff]  ;;  %v11095_v10 = vld [vmem:[%s15546_s4 + $0x50] sm:$0xff]  ;;  %v11100_v11 = vld [vmem:[%s15546_s4 + $0x58] sm:$0xff] }
  0x2b   :  { %15856 = vst [vmem:[#allocation42_spill] sm:$0xff] %v11090_v9  ;;  %15857 = vst [vmem:[#allocation43_spill] sm:$0xff] %v11095_v10  ;;  %v11105_v12 = vld [vmem:[%s15546_s4 + $0x60] sm:$0xff]  ;;  %v11110_v13 = vld [vmem:[%s15546_s4 + $0x68] sm:$0xff] }
  0x2c   :  { %15858 = vst [vmem:[#allocation44_spill] sm:$0xff] %v11100_v11  ;;  %15859 = vst [vmem:[#allocation45_spill] sm:$0xff] %v11105_v12  ;;  %v11115_v14 = vld [vmem:[%s15546_s4 + $0x70] sm:$0xff]  ;;  %v11120_v15 = vld [vmem:[%s15546_s4 + $0x78] sm:$0xff] }
  0x2d   :  { %15860 = vst [vmem:[#allocation46_spill] sm:$0xff] %v11110_v13  ;;  %15861 = vst [vmem:[#allocation47_spill] sm:$0xff] %v11115_v14  ;;  %v11125_v16 = vld [vmem:[%s15546_s4 + $0x80] sm:$0xff]  ;;  %v11130_v17 = vld [vmem:[%s15546_s4 + $0x88] sm:$0xff] }
  0x2e   :  { %15862 = vst [vmem:[#allocation48_spill] sm:$0xff] %v11120_v15  ;;  %15863 = vst [vmem:[#allocation49_spill] sm:$0xff] %v11125_v16  ;;  %v11135_v18 = vld [vmem:[%s15546_s4 + $0x90] sm:$0xff]  ;;  %v11140_v19 = vld [vmem:[%s15546_s4 + $0x98] sm:$0xff] }
  0x2f   :  { %15864 = vst [vmem:[#allocation50_spill] sm:$0xff] %v11130_v17  ;;  %15865 = vst [vmem:[#allocation51_spill] sm:$0xff] %v11135_v18  ;;  %v11145_v20 = vld [vmem:[%s15546_s4 + $0xa0] sm:$0xff]  ;;  %v11150_v21 = vld [vmem:[%s15546_s4 + $0xa8] sm:$0xff] }
  0x30   :  { %15866 = vst [vmem:[#allocation52_spill] sm:$0xff] %v11140_v19  ;;  %15867 = vst [vmem:[#allocation53_spill] sm:$0xff] %v11145_v20  ;;  %v11155_v22 = vld [vmem:[%s15546_s4 + $0xb0] sm:$0xff]  ;;  %v11160_v23 = vld [vmem:[%s15546_s4 + $0xb8] sm:$0xff] }
  0x31   :  { %15868 = vst [vmem:[#allocation54_spill] sm:$0xff] %v11150_v21  ;;  %15869 = vst [vmem:[#allocation55_spill] sm:$0xff] %v11155_v22  ;;  %v11165_v24 = vld [vmem:[%s15546_s4 + $0xc0] sm:$0xff]  ;;  %v11170_v25 = vld [vmem:[%s15546_s4 + $0xc8] sm:$0xff] }
  0x32   :  { %15870 = vst [vmem:[#allocation56_spill] sm:$0xff] %v11160_v23  ;;  %15871 = vst [vmem:[#allocation57_spill] sm:$0xff] %v11165_v24  ;;  %v11175_v26 = vld [vmem:[%s15546_s4 + $0xd0] sm:$0xff]  ;;  %v11180_v27 = vld [vmem:[%s15546_s4 + $0xd8] sm:$0xff] }
  0x33   :  { %15872 = vst [vmem:[#allocation58_spill] sm:$0xff] %v11170_v25  ;;  %15873 = vst [vmem:[#allocation59_spill] sm:$0xff] %v11175_v26  ;;  %v11185_v28 = vld [vmem:[%s15546_s4 + $0xe0] sm:$0xff]  ;;  %v11190_v29 = vld [vmem:[%s15546_s4 + $0xe8] sm:$0xff] }
  0x34   :  { %15874 = vst [vmem:[#allocation60_spill] sm:$0xff] %v11180_v27  ;;  %15875 = vst [vmem:[#allocation61_spill] sm:$0xff] %v11185_v28  ;;  %v11195_v30 = vld [vmem:[%s15546_s4 + $0xf0] sm:$0xff]  ;;  %v11200_v31 = vld [vmem:[%s15546_s4 + $0xf8] sm:$0xff] }
  0x35   :  { %15876 = vst [vmem:[#allocation62_spill] sm:$0xff] %v11190_v29  ;;  %15877 = vst [vmem:[#allocation63_spill] sm:$0xff] %v11195_v30  ;;  %v11205_v32 = vld [vmem:[%s15546_s4 + $0x100] sm:$0xff]  ;;  %v11210_v33 = vld [vmem:[%s15546_s4 + $0x108] sm:$0xff] }
  0x36   :  { %15878 = vst [vmem:[#allocation64_spill] sm:$0xff] %v11200_v31  ;;  %15879 = vst [vmem:[#allocation65_spill] sm:$0xff] %v11205_v32  ;;  %v11215_v34 = vld [vmem:[%s15546_s4 + $0x110] sm:$0xff]  ;;  %v11220_v35 = vld [vmem:[%s15546_s4 + $0x118] sm:$0xff] }
  0x37   :  { %15880 = vst [vmem:[#allocation66_spill] sm:$0xff] %v11210_v33  ;;  %15881 = vst [vmem:[#allocation67_spill] sm:$0xff] %v11215_v34  ;;  %v11225_v36 = vld [vmem:[%s15546_s4 + $0x120] sm:$0xff]  ;;  %v11230_v37 = vld [vmem:[%s15546_s4 + $0x128] sm:$0xff] }
  0x38   :  { %15882 = vst [vmem:[#allocation68_spill] sm:$0xff] %v11220_v35  ;;  %15883 = vst [vmem:[#allocation69_spill] sm:$0xff] %v11225_v36  ;;  %v11235_v38 = vld [vmem:[%s15546_s4 + $0x130] sm:$0xff]  ;;  %v11240_v39 = vld [vmem:[%s15546_s4 + $0x138] sm:$0xff] }
  0x39   :  { %15884 = vst [vmem:[#allocation70_spill] sm:$0xff] %v11230_v37  ;;  %15885 = vst [vmem:[#allocation71_spill] sm:$0xff] %v11235_v38  ;;  %v11245_v40 = vld [vmem:[%s15546_s4 + $0x140] sm:$0xff]  ;;  %v11250_v41 = vld [vmem:[%s15546_s4 + $0x148] sm:$0xff] }
  0x3a   :  { %15886 = vst [vmem:[#allocation72_spill] sm:$0xff] %v11240_v39  ;;  %15887 = vst [vmem:[#allocation73_spill] sm:$0xff] %v11245_v40  ;;  %v11255_v42 = vld [vmem:[%s15546_s4 + $0x150] sm:$0xff]  ;;  %v11260_v43 = vld [vmem:[%s15546_s4 + $0x158] sm:$0xff] }
  0x3b   :  { %15888 = vst [vmem:[#allocation74_spill] sm:$0xff] %v11250_v41  ;;  %15889 = vst [vmem:[#allocation75_spill] sm:$0xff] %v11255_v42  ;;  %v11265_v44 = vld [vmem:[%s15546_s4 + $0x160] sm:$0xff]  ;;  %v11270_v45 = vld [vmem:[%s15546_s4 + $0x168] sm:$0xff] }
  0x3c   :  { %15890 = vst [vmem:[#allocation76_spill] sm:$0xff] %v11260_v43  ;;  %15891 = vst [vmem:[#allocation77_spill] sm:$0xff] %v11265_v44  ;;  %v11275_v46 = vld [vmem:[%s15546_s4 + $0x170] sm:$0xff]  ;;  %v11280_v47 = vld [vmem:[%s15546_s4 + $0x178] sm:$0xff] }
  0x3d   :  { %15892 = vst [vmem:[#allocation78_spill] sm:$0xff] %v11270_v45  ;;  %15893 = vst [vmem:[#allocation79_spill] sm:$0xff] %v11275_v46  ;;  %v11285_v48 = vld [vmem:[%s15546_s4 + $0x180] sm:$0xff]  ;;  %v11290_v49 = vld [vmem:[%s15546_s4 + $0x188] sm:$0xff] }
  0x3e   :  { %15894 = vst [vmem:[#allocation80_spill] sm:$0xff] %v11280_v47  ;;  %15895 = vst [vmem:[#allocation81_spill] sm:$0xff] %v11285_v48  ;;  %v11295_v50 = vld [vmem:[%s15546_s4 + $0x190] sm:$0xff]  ;;  %v11300_v51 = vld [vmem:[%s15546_s4 + $0x198] sm:$0xff] }
  0x3f   :  { %15896 = vst [vmem:[#allocation82_spill] sm:$0xff] %v11290_v49  ;;  %15897 = vst [vmem:[#allocation83_spill] sm:$0xff] %v11295_v50  ;;  %v11305_v52 = vld [vmem:[%s15546_s4 + $0x1a0] sm:$0xff]  ;;  %v11310_v53 = vld [vmem:[%s15546_s4 + $0x1a8] sm:$0xff] }
  0x40   :  { %15898 = vst [vmem:[#allocation84_spill] sm:$0xff] %v11300_v51  ;;  %15899 = vst [vmem:[#allocation85_spill] sm:$0xff] %v11305_v52  ;;  %v11315_v54 = vld [vmem:[%s15546_s4 + $0x1b0] sm:$0xff]  ;;  %v11320_v55 = vld [vmem:[%s15546_s4 + $0x1b8] sm:$0xff] }
  0x41   :  { %15900 = vst [vmem:[#allocation86_spill] sm:$0xff] %v11310_v53  ;;  %15901 = vst [vmem:[#allocation87_spill] sm:$0xff] %v11315_v54  ;;  %v11325_v56 = vld [vmem:[%s15546_s4 + $0x1c0] sm:$0xff]  ;;  %v11330_v57 = vld [vmem:[%s15546_s4 + $0x1c8] sm:$0xff] }
  0x42   :  { %15902 = vst [vmem:[#allocation88_spill] sm:$0xff] %v11320_v55  ;;  %15903 = vst [vmem:[#allocation89_spill] sm:$0xff] %v11325_v56  ;;  %v11335_v58 = vld [vmem:[%s15546_s4 + $0x1d0] sm:$0xff]  ;;  %v11340_v59 = vld [vmem:[%s15546_s4 + $0x1d8] sm:$0xff] }
  0x43   :  { %15904 = vst [vmem:[#allocation90_spill] sm:$0xff] %v11330_v57  ;;  %15905 = vst [vmem:[#allocation91_spill] sm:$0xff] %v11335_v58  ;;  %v11345_v60 = vld [vmem:[%s15546_s4 + $0x1e0] sm:$0xff]  ;;  %v11350_v61 = vld [vmem:[%s15546_s4 + $0x1e8] sm:$0xff] }
  0x44   :  { %15906 = vst [vmem:[#allocation92_spill] sm:$0xff] %v11340_v59  ;;  %15907 = vst [vmem:[#allocation93_spill] sm:$0xff] %v11345_v60  ;;  %v11355_v62 = vld [vmem:[%s15546_s4 + $0x1f0] sm:$0xff]  ;;  %v11360_v63 = vld [vmem:[%s15546_s4 + $0x1f8] sm:$0xff] }
  0x45   :  { %15908 = vst [vmem:[#allocation94_spill] sm:$0xff] %v11350_v61  ;;  %15909 = vst [vmem:[#allocation95_spill] sm:$0xff] %v11355_v62 }
  0x46   :  { %15910 = vst [vmem:[#allocation96_spill] sm:$0xff] %v11360_v63 }
  0x47   :  { %239 = vsyncadd [#allocation8 + $0x1], 8192  ;;  %v11365_v32 = vld [vmem:[%s15547_s5] sm:$0xff]  ;;  %v11370_v33 = vld [vmem:[%s15547_s5 + $0x8] sm:$0xff] }
  0x48   :  { %15911 = vst [vmem:[#allocation97_spill] sm:$0xff] %v11365_v32  ;;  %15912 = vst [vmem:[#allocation98_spill] sm:$0xff] %v11370_v33  ;;  %v11375_v34 = vld [vmem:[%s15547_s5 + $0x10] sm:$0xff]  ;;  %v11380_v35 = vld [vmem:[%s15547_s5 + $0x18] sm:$0xff] }
  0x49   :  { %15913 = vst [vmem:[#allocation99_spill] sm:$0xff] %v11375_v34  ;;  %15914 = vst [vmem:[#allocation100_spill] sm:$0xff] %v11380_v35  ;;  %v11385_v36 = vld [vmem:[%s15547_s5 + $0x20] sm:$0xff]  ;;  %v11390_v37 = vld [vmem:[%s15547_s5 + $0x28] sm:$0xff] }
  0x4a   :  { %15915 = vst [vmem:[#allocation101_spill] sm:$0xff] %v11385_v36  ;;  %15916 = vst [vmem:[#allocation102_spill] sm:$0xff] %v11390_v37  ;;  %v11395_v38 = vld [vmem:[%s15547_s5 + $0x30] sm:$0xff]  ;;  %v11400_v39 = vld [vmem:[%s15547_s5 + $0x38] sm:$0xff] }
  0x4b   :  { %15917 = vst [vmem:[#allocation103_spill] sm:$0xff] %v11395_v38  ;;  %15918 = vst [vmem:[#allocation104_spill] sm:$0xff] %v11400_v39  ;;  %v11405_v40 = vld [vmem:[%s15547_s5 + $0x40] sm:$0xff]  ;;  %v11410_v41 = vld [vmem:[%s15547_s5 + $0x48] sm:$0xff] }
  0x4c   :  { %15919 = vst [vmem:[#allocation105_spill] sm:$0xff] %v11405_v40  ;;  %15920 = vst [vmem:[#allocation106_spill] sm:$0xff] %v11410_v41  ;;  %v11415_v42 = vld [vmem:[%s15547_s5 + $0x50] sm:$0xff]  ;;  %v11420_v43 = vld [vmem:[%s15547_s5 + $0x58] sm:$0xff] }
  0x4d   :  { %15921 = vst [vmem:[#allocation107_spill] sm:$0xff] %v11415_v42  ;;  %15922 = vst [vmem:[#allocation108_spill] sm:$0xff] %v11420_v43  ;;  %v11425_v44 = vld [vmem:[%s15547_s5 + $0x60] sm:$0xff]  ;;  %v11430_v45 = vld [vmem:[%s15547_s5 + $0x68] sm:$0xff] }
  0x4e   :  { %15923 = vst [vmem:[#allocation109_spill] sm:$0xff] %v11425_v44  ;;  %15924 = vst [vmem:[#allocation110_spill] sm:$0xff] %v11430_v45  ;;  %v11435_v46 = vld [vmem:[%s15547_s5 + $0x70] sm:$0xff]  ;;  %v11440_v47 = vld [vmem:[%s15547_s5 + $0x78] sm:$0xff] }
  0x4f   :  { %15925 = vst [vmem:[#allocation111_spill] sm:$0xff] %v11435_v46  ;;  %15926 = vst [vmem:[#allocation112_spill] sm:$0xff] %v11440_v47  ;;  %v11445_v48 = vld [vmem:[%s15547_s5 + $0x80] sm:$0xff]  ;;  %v11450_v49 = vld [vmem:[%s15547_s5 + $0x88] sm:$0xff] }
  0x50   :  { %15927 = vst [vmem:[#allocation113_spill] sm:$0xff] %v11445_v48  ;;  %15928 = vst [vmem:[#allocation114_spill] sm:$0xff] %v11450_v49  ;;  %v11455_v50 = vld [vmem:[%s15547_s5 + $0x90] sm:$0xff]  ;;  %v11460_v51 = vld [vmem:[%s15547_s5 + $0x98] sm:$0xff] }
  0x51   :  { %15929 = vst [vmem:[#allocation115_spill] sm:$0xff] %v11455_v50  ;;  %15930 = vst [vmem:[#allocation116_spill] sm:$0xff] %v11460_v51  ;;  %v11465_v52 = vld [vmem:[%s15547_s5 + $0xa0] sm:$0xff]  ;;  %v11470_v53 = vld [vmem:[%s15547_s5 + $0xa8] sm:$0xff] }
  0x52   :  { %15931 = vst [vmem:[#allocation117_spill] sm:$0xff] %v11465_v52  ;;  %15932 = vst [vmem:[#allocation118_spill] sm:$0xff] %v11470_v53  ;;  %v11475_v54 = vld [vmem:[%s15547_s5 + $0xb0] sm:$0xff]  ;;  %v11480_v55 = vld [vmem:[%s15547_s5 + $0xb8] sm:$0xff] }
  0x53   :  { %15933 = vst [vmem:[#allocation119_spill] sm:$0xff] %v11475_v54  ;;  %15934 = vst [vmem:[#allocation120_spill] sm:$0xff] %v11480_v55  ;;  %v11485_v56 = vld [vmem:[%s15547_s5 + $0xc0] sm:$0xff]  ;;  %v11490_v57 = vld [vmem:[%s15547_s5 + $0xc8] sm:$0xff] }
  0x54   :  { %15935 = vst [vmem:[#allocation121_spill] sm:$0xff] %v11485_v56  ;;  %15936 = vst [vmem:[#allocation122_spill] sm:$0xff] %v11490_v57  ;;  %v11495_v58 = vld [vmem:[%s15547_s5 + $0xd0] sm:$0xff]  ;;  %v11500_v59 = vld [vmem:[%s15547_s5 + $0xd8] sm:$0xff] }
  0x55   :  { %15937 = vst [vmem:[#allocation123_spill] sm:$0xff] %v11495_v58  ;;  %15938 = vst [vmem:[#allocation124_spill] sm:$0xff] %v11500_v59  ;;  %v11505_v60 = vld [vmem:[%s15547_s5 + $0xe0] sm:$0xff]  ;;  %v11510_v61 = vld [vmem:[%s15547_s5 + $0xe8] sm:$0xff] }
  0x56   :  { %15939 = vst [vmem:[#allocation125_spill] sm:$0xff] %v11505_v60  ;;  %15940 = vst [vmem:[#allocation126_spill] sm:$0xff] %v11510_v61  ;;  %v11515_v62 = vld [vmem:[%s15547_s5 + $0xf0] sm:$0xff]  ;;  %v11520_v63 = vld [vmem:[%s15547_s5 + $0xf8] sm:$0xff] }
  0x57   :  { %15941 = vst [vmem:[#allocation127_spill] sm:$0xff] %v11515_v62  ;;  %15942 = vst [vmem:[#allocation128_spill] sm:$0xff] %v11520_v63  ;;  %v11525_v0 = vld [vmem:[%s15547_s5 + $0x100] sm:$0xff]  ;;  %v11530_v1 = vld [vmem:[%s15547_s5 + $0x108] sm:$0xff] }
  0x58   :  { %15943 = vst [vmem:[#allocation129_spill] sm:$0xff] %v11525_v0  ;;  %15944 = vst [vmem:[#allocation130_spill] sm:$0xff] %v11530_v1  ;;  %v11535_v2 = vld [vmem:[%s15547_s5 + $0x110] sm:$0xff]  ;;  %v11540_v3 = vld [vmem:[%s15547_s5 + $0x118] sm:$0xff] }
  0x59   :  { %15945 = vst [vmem:[#allocation131_spill] sm:$0xff] %v11535_v2  ;;  %15946 = vst [vmem:[#allocation132_spill] sm:$0xff] %v11540_v3  ;;  %v11545_v32 = vld [vmem:[%s15547_s5 + $0x120] sm:$0xff]  ;;  %v11550_v0 = vld [vmem:[%s15547_s5 + $0x128] sm:$0xff] }
  0x5a   :  { %15947 = vst [vmem:[#allocation133_spill] sm:$0xff] %v11545_v32  ;;  %15948 = vst [vmem:[#allocation134_spill] sm:$0xff] %v11550_v0  ;;  %v11555_v1 = vld [vmem:[%s15547_s5 + $0x130] sm:$0xff]  ;;  %v11560_v2 = vld [vmem:[%s15547_s5 + $0x138] sm:$0xff] }
  0x5b   :  { %15949 = vst [vmem:[#allocation135_spill] sm:$0xff] %v11555_v1  ;;  %15950 = vst [vmem:[#allocation136_spill] sm:$0xff] %v11560_v2  ;;  %v11565_v3 = vld [vmem:[%s15547_s5 + $0x140] sm:$0xff]  ;;  %v11570_v32 = vld [vmem:[%s15547_s5 + $0x148] sm:$0xff] }
  0x5c   :  { %15951 = vst [vmem:[#allocation137_spill] sm:$0xff] %v11565_v3  ;;  %15952 = vst [vmem:[#allocation138_spill] sm:$0xff] %v11570_v32  ;;  %v11575_v0 = vld [vmem:[%s15547_s5 + $0x150] sm:$0xff]  ;;  %v11580_v1 = vld [vmem:[%s15547_s5 + $0x158] sm:$0xff] }
  0x5d   :  { %15953 = vst [vmem:[#allocation139_spill] sm:$0xff] %v11575_v0  ;;  %15954 = vst [vmem:[#allocation140_spill] sm:$0xff] %v11580_v1  ;;  %v11585_v2 = vld [vmem:[%s15547_s5 + $0x160] sm:$0xff]  ;;  %v11590_v3 = vld [vmem:[%s15547_s5 + $0x168] sm:$0xff] }
  0x5e   :  { %15955 = vst [vmem:[#allocation141_spill] sm:$0xff] %v11585_v2  ;;  %15956 = vst [vmem:[#allocation142_spill] sm:$0xff] %v11590_v3  ;;  %v11595_v32 = vld [vmem:[%s15547_s5 + $0x170] sm:$0xff]  ;;  %v11600_v0 = vld [vmem:[%s15547_s5 + $0x178] sm:$0xff] }
  0x5f   :  { %15957 = vst [vmem:[#allocation143_spill] sm:$0xff] %v11595_v32  ;;  %15958 = vst [vmem:[#allocation144_spill] sm:$0xff] %v11600_v0  ;;  %v11605_v1 = vld [vmem:[%s15547_s5 + $0x180] sm:$0xff]  ;;  %v11610_v2 = vld [vmem:[%s15547_s5 + $0x188] sm:$0xff] }
  0x60   :  { %15959 = vst [vmem:[#allocation145_spill] sm:$0xff] %v11605_v1  ;;  %15960 = vst [vmem:[#allocation146_spill] sm:$0xff] %v11610_v2  ;;  %v11615_v3 = vld [vmem:[%s15547_s5 + $0x190] sm:$0xff]  ;;  %v11620_v32 = vld [vmem:[%s15547_s5 + $0x198] sm:$0xff] }
  0x61   :  { %15961 = vst [vmem:[#allocation147_spill] sm:$0xff] %v11615_v3  ;;  %15962 = vst [vmem:[#allocation148_spill] sm:$0xff] %v11620_v32  ;;  %v11625_v0 = vld [vmem:[%s15547_s5 + $0x1a0] sm:$0xff]  ;;  %v11630_v1 = vld [vmem:[%s15547_s5 + $0x1a8] sm:$0xff] }
  0x62   :  { %15963 = vst [vmem:[#allocation149_spill] sm:$0xff] %v11625_v0  ;;  %15964 = vst [vmem:[#allocation150_spill] sm:$0xff] %v11630_v1  ;;  %v11635_v2 = vld [vmem:[%s15547_s5 + $0x1b0] sm:$0xff]  ;;  %v11640_v3 = vld [vmem:[%s15547_s5 + $0x1b8] sm:$0xff] }
  0x63   :  { %15965 = vst [vmem:[#allocation151_spill] sm:$0xff] %v11635_v2  ;;  %15966 = vst [vmem:[#allocation152_spill] sm:$0xff] %v11640_v3  ;;  %v11645_v32 = vld [vmem:[%s15547_s5 + $0x1c0] sm:$0xff]  ;;  %v11650_v0 = vld [vmem:[%s15547_s5 + $0x1c8] sm:$0xff] }
  0x64   :  { %15967 = vst [vmem:[#allocation153_spill] sm:$0xff] %v11645_v32  ;;  %15968 = vst [vmem:[#allocation154_spill] sm:$0xff] %v11650_v0  ;;  %v11655_v1 = vld [vmem:[%s15547_s5 + $0x1d0] sm:$0xff]  ;;  %v11660_v2 = vld [vmem:[%s15547_s5 + $0x1d8] sm:$0xff] }
  0x65   :  { %15969 = vst [vmem:[#allocation155_spill] sm:$0xff] %v11655_v1  ;;  %15970 = vst [vmem:[#allocation156_spill] sm:$0xff] %v11660_v2  ;;  %v11665_v3 = vld [vmem:[%s15547_s5 + $0x1e0] sm:$0xff]  ;;  %v11670_v32 = vld [vmem:[%s15547_s5 + $0x1e8] sm:$0xff] }
  0x66   :  { %15971 = vst [vmem:[#allocation157_spill] sm:$0xff] %v11665_v3  ;;  %15972 = vst [vmem:[#allocation158_spill] sm:$0xff] %v11670_v32  ;;  %v11675_v0 = vld [vmem:[%s15547_s5 + $0x1f0] sm:$0xff]  ;;  %v11680_v1 = vld [vmem:[%s15547_s5 + $0x1f8] sm:$0xff] }
  0x67   :  { %15973 = vst [vmem:[#allocation159_spill] sm:$0xff] %v11675_v0  ;;  %15974 = vst [vmem:[#allocation160_spill] sm:$0xff] %v11680_v1 }
  0x68   :  { %409 = vsyncadd [#allocation8 + $0x2], 8192 }
  0x69   :  { %10960 = dma.done.wait [#allocation8], 8192 }
  0x6a   :  { %10961 = vsyncadd [#allocation8], 4294959104 }
  0x6b   :  { %10962 = dma.done.wait [#allocation8 + $0x1], 8192 }
  0x6c   :  { %10963 = vsyncadd [#allocation8 + $0x1], 4294959104 }
  0x6d   :  { %10964 = dma.done.wait [#allocation8 + $0x2], 8192 }
  0x6e   :  { %10965 = vsyncadd [#allocation8 + $0x2], 4294959104  ;;  %v583_v2 = vld [vmem:[#allocation4 + $0xf8] sm:$0xff]  ;;  %v582_v3 = vld [vmem:[#allocation4 + $0xf0] sm:$0xff]  ;;  %s808_s5 = sld [smem:[#allocation9]]  ;;  %vm1086_vm1 = vcmask 64512  }
  0x6f   :  { %v581_v32 = vld [vmem:[#allocation4 + $0xe8] sm:$0xff]  ;;  %v647_v4 = vmul.f32 %v583_v2, %v11520_v63  ;;  %v646_v33 = vmul.f32 %v582_v3, %v11515_v62  ;;  %v580_v5 = vld [vmem:[#allocation4 + $0xe0] sm:$0xff]  ;;  %v579_v34 = vld [vmem:[#allocation4 + $0xd8] sm:$0xff]  ;;  %s10526_s3 = sld [smem:[#allocation9 + $0x1]] }
  0x70   :  { %v645_v0 = vmul.f32 %v581_v32, %v11510_v61  ;;  %v578_v6 = vld [vmem:[#allocation4 + $0xd0] sm:$0xff]  ;;  %v644_v1 = vmul.f32 %v580_v5, %v11505_v60  ;;  %v643_v35 = vmul.f32 %v579_v34, %v11500_v59  ;;  %v577_v36 = vld [vmem:[#allocation4 + $0xc8] sm:$0xff]  ;;  %v576_v8 = vld [vmem:[#allocation4 + $0xc0] sm:$0xff] }
  0x71   :  { %v642_v7 = vmul.f32 %v578_v6, %v11495_v58  ;;  %v575_v37 = vld [vmem:[#allocation4 + $0xb8] sm:$0xff]  ;;  %v711_v9 = vadd.f32 %v647_v4, %v11200_v31  ;;  %v710_v2 = vadd.f32 %v646_v33, %v11195_v30  ;;  %v641_v32 = vmul.f32 %v577_v36, %v11490_v57  ;;  %v574_v63 = vld [vmem:[#allocation4 + $0xb0] sm:$0xff]  ;;  %v11694_v60 = vld [vmem:[#allocation4 + $0xa8] sm:$0xff] }
  0x72   :  { %v709_v3 = vadd.f32 %v645_v0, %v11190_v29  ;;  %v708_v61 = vadd.f32 %v644_v1, %v11185_v28  ;;  %v640_v5 = vmul.f32 %v576_v8, %v11485_v56  ;;  %v707_v6 = vadd.f32 %v643_v35, %v11180_v27  ;;  %v11698_v58 = vld [vmem:[#allocation4 + $0xa0] sm:$0xff]  ;;  %v11702_v33 = vld [vmem:[#allocation4 + $0x98] sm:$0xff]  ;;  %v605_v27 = vld [vmem:[#allocation4 + $0x1a8] sm:$0xff] }
  0x73   :  { %898 = vmatprep.subr.mxu0 %v711_v9  ;;  %v639_v34 = vmul.f32 %v575_v37, %v11480_v55  ;;  %v706_v4 = vadd.f32 %v642_v7, %v11175_v26  ;;  %v638_v0 = vmul.f32 %v574_v63, %v11475_v54  ;;  %v705_v1 = vadd.f32 %v641_v32, %v11170_v25  ;;  %v11707_v9 = vld [vmem:[#allocation4 + $0x90] sm:$0xff]  ;;  %v11712_v37 = vld [vmem:[#allocation4 + $0x88] sm:$0xff]  ;;  %v11722_v32 = vld [vmem:[#allocation4 + $0x78] sm:$0xff] }
  0x74   :  { %899 = vmatpush1.msra.mxu0 %v710_v2  ;;  %v637_v8 = vmul.f32 %v11694_v60, %v11470_v53  ;;  %v704_v35 = vadd.f32 %v640_v5, %v11165_v24  ;;  %v636_v36 = vmul.f32 %v11698_v58, %v11465_v52  ;;  %v635_v63 = vmul.f32 %v11702_v33, %v11460_v51  ;;  %v11717_v2 = vld [vmem:[#allocation4 + $0x80] sm:$0xff]  ;;  %v15989_v24 = vld [vmem:[#allocation160_spill] sm:$0xff]  ;;  %v611_v25 = vld [vmem:[#allocation4 + $0x1d8] sm:$0xff] }
  0x75   :  { %900 = vmatprep.subr.mxu0 %v709_v3  ;;  %v703_v7 = vadd.f32 %v639_v34, %v11160_v23  ;;  %v702_v3 = vadd.f32 %v638_v0, %v11155_v22  ;;  %v11727_v34 = vld [vmem:[#allocation4 + $0x70] sm:$0xff]  ;;  %v11732_v0 = vld [vmem:[#allocation4 + $0x68] sm:$0xff]  ;;  %v612_v52 = vld [vmem:[#allocation4 + $0x1e0] sm:$0xff] }
  0x76   :  { %901 = vmatpush1.msra.mxu0 %v708_v61  ;;  %v634_v61 = vmul.f32 %v11707_v9, %v11455_v50  ;;  %v701_v5 = vadd.f32 %v637_v8, %v11150_v21  ;;  %v700_v23 = vadd.f32 %v636_v36, %v11145_v20  ;;  %v699_v22 = vadd.f32 %v635_v63, %v11140_v19  ;;  %v11737_v8 = vld [vmem:[#allocation4 + $0x60] sm:$0xff]  ;;  %v11742_v36 = vld [vmem:[#allocation4 + $0x58] sm:$0xff]  ;;  %v11747_v63 = vld [vmem:[#allocation4 + $0x50] sm:$0xff] }
  0x77   :  { %902 = vmatprep.subr.mxu0 %v707_v6  ;;  %v633_v6 = vmul.f32 %v11712_v37, %v11450_v49  ;;  %v15987_v50 = vld [vmem:[#allocation97_spill] sm:$0xff]  ;;  %v609_v54 = vld [vmem:[#allocation4 + $0x1c8] sm:$0xff] }
  0x78   :  { %903 = vmatpush1.msra.mxu0 %v706_v4  ;;  %v632_v4 = vmul.f32 %v11717_v2, %v11445_v48  ;;  %v698_v21 = vadd.f32 %v634_v61, %v11135_v18  ;;  %v11752_v61 = vld [vmem:[#allocation4 + $0x48] sm:$0xff]  ;;  %v15985_v48 = vld [vmem:[#allocation98_spill] sm:$0xff] }
  0x79   :  { %904 = vmatprep.subr.mxu0 %v705_v1  ;;  %v631_v1 = vmul.f32 %v11722_v32, %v11440_v47  ;;  %v697_v20 = vadd.f32 %v633_v6, %v11130_v17  ;;  %v11757_v6 = vld [vmem:[#allocation4 + $0x40] sm:$0xff]  ;;  %v15984_v47 = vld [vmem:[#allocation38_spill] sm:$0xff] }
  0x7a   :  { %905 = vmatpush1.msra.mxu0 %v704_v35  ;;  %v630_v35 = vmul.f32 %v11727_v34, %v11435_v46  ;;  %v696_v19 = vadd.f32 %v632_v4, %v11125_v16  ;;  %v11762_v4 = vld [vmem:[#allocation4 + $0x38] sm:$0xff] }
  0x7b   :  { %906 = vmatprep.subr.mxu0 %v703_v7  ;;  %v629_v7 = vmul.f32 %v11732_v0, %v11430_v45  ;;  %v695_v18 = vadd.f32 %v631_v1, %v11120_v15  ;;  %v11767_v1 = vld [vmem:[#allocation4 + $0x30] sm:$0xff]  ;;  %v15980_v45 = vld [vmem:[#allocation100_spill] sm:$0xff] }
  0x7c   :  { %907 = vmatpush1.msra.mxu0 %v702_v3  ;;  %v628_v3 = vmul.f32 %v11737_v8, %v11425_v44  ;;  %v694_v17 = vadd.f32 %v630_v35, %v11115_v14  ;;  %v11772_v35 = vld [vmem:[#allocation4 + $0x28] sm:$0xff] }
  0x7d   :  { %908 = vmatprep.subr.mxu0 %v701_v5  ;;  %v627_v5 = vmul.f32 %v11742_v36, %v11420_v43  ;;  %v693_v16 = vadd.f32 %v629_v7, %v11110_v13  ;;  %v11777_v7 = vld [vmem:[#allocation4 + $0x20] sm:$0xff]  ;;  %v418_v13 = vld [vmem:[#allocation14] sm:$0xff]  ;;  %v15979_v43 = vld [vmem:[#allocation40_spill] sm:$0xff] }
  0x7e   :  { %909 = vmatpush1.msra.mxu0 %v700_v23  ;;  %v626_v23 = vmul.f32 %v11747_v63, %v11415_v42  ;;  %v692_v15 = vadd.f32 %v628_v3, %v11105_v12  ;;  %v622_v3 = vmul.f32 %v11767_v1, %v11395_v38  ;;  %v11784_v12 = vld [vmem:[#allocation4 + $0x18] sm:$0xff]  ;;  %420 = vst [vmem:[#allocation2] sm:$0xff] %v418_v13  ;;  %v11795_v38 = vld [vmem:[#allocation4 + $0x8] sm:$0xff] }
  0x7f   :  { %910 = vmatprep.subr.mxu0 %v699_v22  ;;  %v625_v22 = vmul.f32 %v11752_v61, %v11410_v41  ;;  %v691_v14 = vadd.f32 %v627_v5, %v11100_v11  ;;  %v11779_v41 = vld [vmem:[#allocation14 + $0x8] sm:$0xff]  ;;  %1022 = vxpose.xlu0.b32.start.end [1/1] (short) %v418_v13, 128  ;;  %v16005_v13 = vld [vmem:[#allocation92_spill] sm:$0xff] }
  0x80   :  { %911 = vmatpush1.msra.mxu0 %v698_v21  ;;  %v624_v21 = vmul.f32 %v11757_v6, %v11405_v40  ;;  %421 = vst [vmem:[#allocation2 + $0x8] sm:$0xff] %v11779_v41  ;;  %v15976_v11 = vld [vmem:[#allocation102_spill] sm:$0xff]  ;;  %v11790_v40 = vld [vmem:[#allocation4 + $0x10] sm:$0xff] }
  0x81   :  { %912 = vmatprep.subr.mxu0 %v697_v20  ;;  %v623_v20 = vmul.f32 %v11762_v4, %v11400_v39  ;;  %v621_v39 = vmul.f32 %v11772_v35, %v15976_v11 }
  0x82   :  { %913 = vmatpush1.msra.mxu0 %v696_v19  ;;  %v690_v19 = vadd.f32 %v626_v23, %v11095_v10  ;;  %v15978_v23 = vld [vmem:[#allocation101_spill] sm:$0xff] }
  0x83   :  { %914 = vmatprep.subr.mxu0 %v695_v18  ;;  %v15975_v18 = vld [vmem:[#allocation42_spill] sm:$0xff]  ;;  %v620_v10 = vmul.f32 %v11777_v7, %v15978_v23  ;;  %v687_v44 = vadd.f32 %v623_v20, %v15979_v43  ;;  %v617_v20 = vmul.f32 %v11795_v38, %v15985_v48  ;;  %v614_v43 = vld [vmem:[#allocation4 + $0x1f0] sm:$0xff]  ;;  %v15992_v48 = vld [vmem:[#allocation159_spill] sm:$0xff] }
  0x84   :  { %915 = vmatpush1.msra.mxu0 %v694_v17  ;;  %v689_v5 = vadd.f32 %v625_v22, %v15975_v18  ;;  %v15977_v17 = vld [vmem:[#allocation41_spill] sm:$0xff]  ;;  %v11800_v22 = vld [vmem:[#allocation4] sm:$0xff]  ;;  %v15981_v18 = vlaneseq  ;;  %v615_v23 = vld [vmem:[#allocation4 + $0x1f8] sm:$0xff] }
  0x85   :  { %916 = vmatprep.subr.mxu0 %v693_v16  ;;  %v688_v42 = vadd.f32 %v624_v21, %v15977_v17  ;;  %v619_v16 = vmul.f32 %v11784_v12, %v15980_v45  ;;  %v15983_v21 = vld [vmem:[#allocation99_spill] sm:$0xff]  ;;  %v15986_v45 = vld [vmem:[#allocation37_spill] sm:$0xff]  ;;  %v616_v51 = vmul.f32 %v11800_v22, %v15987_v50 }
  0x86   :  { %917 = vmatpush1.msra.mxu0 %v692_v15  ;;  %v11803_v11 = vshrl.u32 %v15981_v18, 7  ;;  %v15982_v15 = vld [vmem:[#allocation39_spill] sm:$0xff]  ;;  %v618_v17 = vmul.f32 %v11790_v40, %v15983_v21  ;;  %v684_v49 = vadd.f32 %v620_v10, %v15986_v45  ;;  %v679_v21 = vmul.f32 %v615_v23, %v15989_v24  ;;  %v15993_v45 = vld [vmem:[#allocation34_spill] sm:$0xff]  ;;  %v15995_v23 = vld [vmem:[#allocation33_spill] sm:$0xff] }
  0x87   :  { %918 = vmatprep.subr.mxu0 %v691_v14  ;;  %v686_v46 = vadd.f32 %v622_v3, %v15982_v15  ;;  %v685_v14 = vadd.f32 %v621_v39, %v15984_v47  ;;  %v15988_v3 = vld [vmem:[#allocation36_spill] sm:$0xff]  ;;  %v15991_v39 = vld [vmem:[#allocation35_spill] sm:$0xff]  ;;  %v681_v50 = vadd.f32 %v617_v20, %v15993_v45  ;;  %v680_v24 = vadd.f32 %v616_v51, %v15995_v23  ;;  %v607_v45 = vld [vmem:[#allocation4 + $0x1b8] sm:$0xff] }
  0x88   :  { %919 = vmatpush1.msra.mxu0 %v690_v19  ;;  %v613_v19 = vld [vmem:[#allocation4 + $0x1e8] sm:$0xff]  ;;  %v683_v15 = vadd.f32 %v619_v16, %v15988_v3  ;;  %v682_v47 = vadd.f32 %v618_v17, %v15991_v39  ;;  %v610_v16 = vld [vmem:[#allocation4 + $0x1d0] sm:$0xff]  ;;  %v15999_v20 = vld [vmem:[#allocation95_spill] sm:$0xff]  ;;  %vm11909_vm0 = vcmp.lt.s32.totalorder %v15981_v18, 256 }
  0x89   :  { %920 = vmatprep.subr.mxu0 %v689_v5  ;;  %v11817_v5 = vsub.s32 1, %v11803_v11  ;;  %v11821_v10 = vld [vmem:[#allocation2] ss:$8 sm:$0x3]  ;;  %v15996_v3 = vld [vmem:[#allocation157_spill] sm:$0xff]  ;;  %v16001_v51 = vld [vmem:[#allocation94_spill] sm:$0xff] }
  0x8a   :  { %921 = vmatpush1.msra.mxu0 %v688_v42  ;;  %v678_v42 = vmul.f32 %v614_v43, %v15992_v48  ;;  %v676_v26 = vmul.f32 %v612_v52, %v15996_v3  ;;  %v15998_v39 = vld [vmem:[#allocation156_spill] sm:$0xff]  ;;  %v608_v48 = vld [vmem:[#allocation4 + $0x1c0] sm:$0xff]  ;;  %v16002_v3 = vld [vmem:[#allocation154_spill] sm:$0xff] }
  0x8b   :  { %922 = vmatprep.subr.mxu0 %v687_v44  ;;  %15990 = vst [vmem:[#allocation161_spill] sm:$0xff] %v11817_v5  ;;  %v15994_v44 = vld [vmem:[#allocation158_spill] sm:$0xff]  ;;  %v675_v43 = vmul.f32 %v611_v25, %v15998_v39  ;;  %v606_v23 = vld [vmem:[#allocation4 + $0x1b0] sm:$0xff] }
  0x8c   :  { %923 = vmatpush1.msra.mxu0 %v686_v46  ;;  %v677_v53 = vmul.f32 %v613_v19, %v15994_v44  ;;  %v15997_v46 = vld [vmem:[#allocation96_spill] sm:$0xff]  ;;  %v742_v19 = vadd.f32 %v678_v42, %v15999_v20  ;;  %v16000_v44 = vld [vmem:[#allocation155_spill] sm:$0xff]  ;;  %v16003_v25 = vld [vmem:[#allocation93_spill] sm:$0xff] }
  0x8d   :  { %924 = vmatprep.subr.mxu0 %v685_v14  ;;  %v743_v17 = vadd.f32 %v679_v21, %v15997_v46  ;;  %v884_v14 = vrot.slane %v11821_v10, %v11817_v5  ;;  %v740_v21 = vadd.f32 %v676_v26, %v16003_v25  ;;  %v16004_v46 = vld [vmem:[#allocation153_spill] sm:$0xff]  ;;  %v16006_v42 = vld [vmem:[#allocation152_spill] sm:$0xff] }
  0x8e   :  { %925 = vmatpush1.msra.mxu0 %v684_v49  ;;  %v674_v49 = vmul.f32 %v610_v16, %v16000_v44  ;;  %v741_v52 = vadd.f32 %v677_v53, %v16001_v51  ;;  %v672_v39 = vmul.f32 %v608_v48, %v16004_v46  ;;  %v671_v20 = vmul.f32 %v607_v45, %v16006_v42  ;;  %v604_v16 = vld [vmem:[#allocation4 + $0x1a0] sm:$0xff]  ;;  %v602_v25 = vld [vmem:[#allocation4 + $0x190] sm:$0xff]  ;;  %v16013_v45 = vld [vmem:[#allocation88_spill] sm:$0xff] }
  0x8f   :  { %926 = vmatprep.subr.mxu0 %v683_v15  ;;  %v673_v15 = vmul.f32 %v609_v54, %v16002_v3  ;;  %962 = vmatprep.mubr.f32.mxu0 %v884_v14  ;;  %v16008_v53 = vld [vmem:[#allocation151_spill] sm:$0xff]  ;;  %v603_v54 = vld [vmem:[#allocation4 + $0x198] sm:$0xff]  ;;  %v16011_v48 = vld [vmem:[#allocation89_spill] sm:$0xff] }
  0x90   :  { %927 = vmatpush1.msra.mxu0 %v682_v47  ;;  %v739_v47 = vadd.f32 %v675_v43, %v16005_v13  ;;  %v670_v51 = vmul.f32 %v606_v23, %v16008_v53  ;;  %v16009_v14 = vld [vmem:[#allocation90_spill] sm:$0xff]  ;;  %v16012_v46 = vld [vmem:[#allocation149_spill] sm:$0xff]  ;;  %v601_v13 = vld [vmem:[#allocation4 + $0x188] sm:$0xff] }
  0x91   :  { %928 = vmatprep.subr.mxu0 %v681_v50  ;;  %v16007_v50 = vld [vmem:[#allocation91_spill] sm:$0xff]  ;;  %v16010_v3 = vld [vmem:[#allocation150_spill] sm:$0xff]  ;;  %v668_v43 = vmul.f32 %v604_v16, %v16012_v46  ;;  %v16014_v42 = vld [vmem:[#allocation148_spill] sm:$0xff] }
  0x92   :  { %929 = vmatpush1.msra.mxu0 %v680_v24  ;;  %v738_v44 = vadd.f32 %v674_v49, %v16007_v50  ;;  %v737_v24 = vadd.f32 %v673_v15, %v16009_v14  ;;  %v669_v26 = vmul.f32 %v605_v27, %v16010_v3  ;;  %v667_v49 = vmul.f32 %v603_v54, %v16014_v42  ;;  %v600_v50 = vld [vmem:[#allocation4 + $0x180] sm:$0xff]  ;;  %v599_v14 = vld [vmem:[#allocation4 + $0x178] sm:$0xff]  ;;  %v16019_v16 = vld [vmem:[#allocation85_spill] sm:$0xff] }
  0x93   :  { %930 = vmatprep.subr.mxu0 %v743_v17  ;;  %v736_v17 = vadd.f32 %v672_v39, %v16011_v48  ;;  %v16015_v23 = vld [vmem:[#allocation87_spill] sm:$0xff]  ;;  %v16017_v27 = vld [vmem:[#allocation86_spill] sm:$0xff]  ;;  %v598_v48 = vld [vmem:[#allocation4 + $0x170] sm:$0xff] }
  0x94   :  { %931 = vmatpush2.msra.mxu0 %v742_v19  ;;  %v735_v19 = vadd.f32 %v671_v20, %v16013_v45  ;;  %v16016_v53 = vld [vmem:[#allocation147_spill] sm:$0xff]  ;;  %v16018_v3 = vld [vmem:[#allocation146_spill] sm:$0xff]  ;;  %v16020_v46 = vld [vmem:[#allocation145_spill] sm:$0xff] }
  0x95   :  { %932 = vmatprep.subr.mxu0 %v741_v52  ;;  %v734_v52 = vadd.f32 %v670_v51, %v16015_v23  ;;  %v666_v15 = vmul.f32 %v602_v25, %v16016_v53  ;;  %v665_v39 = vmul.f32 %v601_v13, %v16018_v3  ;;  %v664_v20 = vmul.f32 %v600_v50, %v16020_v46  ;;  %v597_v45 = vld [vmem:[#allocation4 + $0x168] sm:$0xff]  ;;  %v596_v23 = vld [vmem:[#allocation4 + $0x160] sm:$0xff]  ;;  %v16025_v13 = vld [vmem:[#allocation82_spill] sm:$0xff] }
  0x96   :  { %933 = vmatpush2.msra.mxu0 %v740_v21  ;;  %v733_v21 = vadd.f32 %v669_v26, %v16017_v27  ;;  %v16021_v54 = vld [vmem:[#allocation84_spill] sm:$0xff]  ;;  %v16023_v25 = vld [vmem:[#allocation83_spill] sm:$0xff]  ;;  %v595_v27 = vld [vmem:[#allocation4 + $0x158] sm:$0xff] }
  0x97   :  { %934 = vmatprep.subr.mxu0 %v739_v47  ;;  %v732_v47 = vadd.f32 %v668_v43, %v16019_v16  ;;  %v16022_v42 = vld [vmem:[#allocation144_spill] sm:$0xff]  ;;  %v16024_v53 = vld [vmem:[#allocation143_spill] sm:$0xff]  ;;  %v16026_v3 = vld [vmem:[#allocation142_spill] sm:$0xff] }
  0x98   :  { %935 = vmatpush2.msra.mxu0 %v738_v44  ;;  %v731_v44 = vadd.f32 %v667_v49, %v16021_v54  ;;  %v663_v51 = vmul.f32 %v599_v14, %v16022_v42  ;;  %v662_v26 = vmul.f32 %v598_v48, %v16024_v53  ;;  %v661_v43 = vmul.f32 %v597_v45, %v16026_v3  ;;  %v594_v16 = vld [vmem:[#allocation4 + $0x150] sm:$0xff]  ;;  %v593_v54 = vld [vmem:[#allocation4 + $0x148] sm:$0xff]  ;;  %v16031_v48 = vld [vmem:[#allocation79_spill] sm:$0xff] }
  0x99   :  { %936 = vmatprep.subr.mxu0 %v737_v24  ;;  %v730_v24 = vadd.f32 %v666_v15, %v16023_v25  ;;  %v16027_v50 = vld [vmem:[#allocation81_spill] sm:$0xff]  ;;  %v16029_v14 = vld [vmem:[#allocation80_spill] sm:$0xff]  ;;  %v592_v25 = vld [vmem:[#allocation4 + $0x140] sm:$0xff] }
  0x9a   :  { %937 = vmatpush2.msra.mxu0 %v736_v17  ;;  %v729_v17 = vadd.f32 %v665_v39, %v16025_v13  ;;  %v16028_v46 = vld [vmem:[#allocation141_spill] sm:$0xff]  ;;  %v16030_v42 = vld [vmem:[#allocation140_spill] sm:$0xff]  ;;  %v16032_v53 = vld [vmem:[#allocation139_spill] sm:$0xff] }
  0x9b   :  { %938 = vmatprep.subr.mxu0 %v735_v19  ;;  %v728_v19 = vadd.f32 %v664_v20, %v16027_v50  ;;  %v660_v49 = vmul.f32 %v596_v23, %v16028_v46  ;;  %v659_v15 = vmul.f32 %v595_v27, %v16030_v42  ;;  %v658_v39 = vmul.f32 %v594_v16, %v16032_v53  ;;  %v591_v13 = vld [vmem:[#allocation4 + $0x138] sm:$0xff]  ;;  %v590_v50 = vld [vmem:[#allocation4 + $0x130] sm:$0xff]  ;;  %v16037_v27 = vld [vmem:[#allocation76_spill] sm:$0xff] }
  0x9c   :  { %939 = vmatpush2.msra.mxu0 %v734_v52  ;;  %v727_v52 = vadd.f32 %v663_v51, %v16029_v14  ;;  %v16033_v45 = vld [vmem:[#allocation78_spill] sm:$0xff]  ;;  %v16035_v23 = vld [vmem:[#allocation77_spill] sm:$0xff]  ;;  %v589_v14 = vld [vmem:[#allocation4 + $0x128] sm:$0xff] }
  0x9d   :  { %940 = vmatprep.subr.mxu0 %v733_v21  ;;  %v726_v21 = vadd.f32 %v662_v26, %v16031_v48  ;;  %v16034_v3 = vld [vmem:[#allocation138_spill] sm:$0xff]  ;;  %v16036_v46 = vld [vmem:[#allocation137_spill] sm:$0xff]  ;;  %v16038_v42 = vld [vmem:[#allocation136_spill] sm:$0xff] }
  0x9e   :  { %941 = vmatpush2.msra.mxu0 %v732_v47  ;;  %v725_v47 = vadd.f32 %v661_v43, %v16033_v45  ;;  %v657_v20 = vmul.f32 %v593_v54, %v16034_v3  ;;  %v656_v51 = vmul.f32 %v592_v25, %v16036_v46  ;;  %v655_v26 = vmul.f32 %v591_v13, %v16038_v42  ;;  %v588_v48 = vld [vmem:[#allocation4 + $0x120] sm:$0xff]  ;;  %v587_v45 = vld [vmem:[#allocation4 + $0x118] sm:$0xff]  ;;  %v16043_v25 = vld [vmem:[#allocation73_spill] sm:$0xff] }
  0x9f   :  { %942 = vmatprep.subr.mxu0 %v731_v44  ;;  %v724_v44 = vadd.f32 %v660_v49, %v16035_v23  ;;  %v16039_v16 = vld [vmem:[#allocation75_spill] sm:$0xff]  ;;  %v16041_v54 = vld [vmem:[#allocation74_spill] sm:$0xff]  ;;  %v586_v23 = vld [vmem:[#allocation4 + $0x110] sm:$0xff] }
  0xa0   :  { %943 = vmatpush2.msra.mxu0 %v730_v24  ;;  %v723_v24 = vadd.f32 %v659_v15, %v16037_v27  ;;  %v16040_v53 = vld [vmem:[#allocation135_spill] sm:$0xff]  ;;  %v16042_v3 = vld [vmem:[#allocation134_spill] sm:$0xff]  ;;  %v16044_v46 = vld [vmem:[#allocation133_spill] sm:$0xff] }
  0xa1   :  { %944 = vmatprep.subr.mxu0 %v729_v17  ;;  %v722_v17 = vadd.f32 %v658_v39, %v16039_v16  ;;  %v654_v43 = vmul.f32 %v590_v50, %v16040_v53  ;;  %v653_v49 = vmul.f32 %v589_v14, %v16042_v3  ;;  %v652_v15 = vmul.f32 %v588_v48, %v16044_v46  ;;  %v585_v27 = vld [vmem:[#allocation4 + $0x108] sm:$0xff]  ;;  %v584_v16 = vld [vmem:[#allocation4 + $0x100] sm:$0xff]  ;;  %v16049_v14 = vld [vmem:[#allocation70_spill] sm:$0xff] }
  0xa2   :  { %945 = vmatpush2.msra.mxu0 %v728_v19  ;;  %v721_v19 = vadd.f32 %v657_v20, %v16041_v54  ;;  %v16045_v13 = vld [vmem:[#allocation72_spill] sm:$0xff]  ;;  %v16047_v50 = vld [vmem:[#allocation71_spill] sm:$0xff] }
  0xa3   :  { %946 = vmatprep.subr.mxu0 %v727_v52  ;;  %v720_v52 = vadd.f32 %v656_v51, %v16043_v25  ;;  %v16046_v42 = vld [vmem:[#allocation132_spill] sm:$0xff]  ;;  %v16048_v53 = vld [vmem:[#allocation131_spill] sm:$0xff]  ;;  %v717_v54 = vadd.f32 %v653_v49, %v16049_v14  ;;  %v16051_v51 = vld [vmem:[#allocation69_spill] sm:$0xff] }
  0xa4   :  { %947 = vmatpush2.msra.mxu0 %v726_v21  ;;  %v719_v21 = vadd.f32 %v655_v26, %v16045_v13  ;;  %v651_v39 = vmul.f32 %v587_v45, %v16046_v42  ;;  %v650_v20 = vmul.f32 %v586_v23, %v16048_v53  ;;  %v716_v48 = vadd.f32 %v652_v15, %v16051_v51  ;;  %v16052_v25 = vld [vmem:[#allocation129_spill] sm:$0xff]  ;;  %v16053_v26 = vld [vmem:[#allocation68_spill] sm:$0xff]  ;;  %v16056_v23 = vld [vmem:[#allocation66_spill] sm:$0xff] }
  0xa5   :  { %948 = vmatprep.subr.mxu0 %v725_v47  ;;  %v718_v47 = vadd.f32 %v654_v43, %v16047_v50  ;;  %v11887_v45 = vsub.s32 0, %v11803_v11  ;;  %v16057_v49 = vld [vmem:[#allocation65_spill] sm:$0xff] }
  0xa6   :  { %949 = vmatpush2.msra.mxu0 %v724_v44  ;;  %v16050_v44 = vld [vmem:[#allocation130_spill] sm:$0xff]  ;;  %v715_v13 = vadd.f32 %v651_v39, %v16053_v26 }
  0xa7   :  { %950 = vmatprep.subr.mxu0 %v723_v24  ;;  %v649_v3 = vmul.f32 %v585_v27, %v16050_v44  ;;  %v648_v24 = vmul.f32 %v584_v16, %v16052_v25  ;;  %16054 = vst [vmem:[#allocation162_spill] sm:$0xff] %v11887_v45  ;;  %v15709_v16 = vmov 0.0  }
  0xa8   :  { %951 = vmatpush2.msra.mxu0 %v722_v17  ;;  %v16055_v17 = vld [vmem:[#allocation67_spill] sm:$0xff]  ;;  %422 = vst [vmem:[#allocation3] sm:$0xff] %v15709_v16  ;;  %423 = vst [vmem:[#allocation3 + $0x8] sm:$0xff] %v15709_v16  ;;  %1247 = vmatprep.mubr.f32.mxu1 %v15709_v16 }
  0xa9   :  { %952 = vmatprep.subr.mxu0 %v721_v19  ;;  %v714_v43 = vadd.f32 %v650_v20, %v16055_v17  ;;  %v713_v19 = vadd.f32 %v649_v3, %v16056_v23  ;;  %v712_v27 = vadd.f32 %v648_v24, %v16057_v49  ;;  %v11900_v17 = vstv %s808_s5 }
  0xaa   :  { %953 = vmatpush2.msra.mxu0 %v720_v52  ;;  %v880_v52 = vrot.slane %v11821_v10, %v11887_v45  ;;  %16058 = vst [vmem:[#allocation163_spill] sm:$0xff] %v11900_v17 }
  0xab   :  { %954 = vmatprep.subr.mxu0 %v719_v21  ;;  %v875_v21 = vld [vmem:[#allocation13] ss:$8 sm:$0x3] }
  0xac   :  { %955 = vmatpush2.msra.mxu0 %v718_v47  ;;  %v891_v10 = vrot.slane %v875_v21, %v11887_v45  ;;  %v895_v47 = vrot.slane %v875_v21, %v11817_v5 }
  0xad   :  { %956 = vmatprep.subr.mxu0 %v717_v54 }
  0xae   :  { %957 = vmatpush2.msra.mxu0 %v716_v48 }
  0xaf   :  { %958 = vmatprep.subr.mxu0 %v715_v13 }
  0xb0   :  { %959 = vmatpush2.msra.mxu0 %v714_v43 }
  0xb1   :  { %960 = vmatprep.subr.mxu0 %v713_v19 }
  0xb2   :  { %961 = vmatpush2.msra.mxu0 %v712_v27  ;;  %v10975_v27 = vmov 1966171168  }
  0xb3   :  { %963 = vmatmul.mubr.f32.vlgmr.msra.gmra.mxu0 %v880_v52  ;;  %v975_v52 = vunpack.c.l.s4 %v10975_v27  ;;  %v16060_v27 = vmov 0 }
  0xb4   :  { %v16061_v27 = vsel %vm11909_vm0, 4294967295, %v16060_v27 }
  0xb5   :  { %v976_v16 = vunpack.c.0.s8 %v975_v52  ;;  %16062 = vst [vmem:[#allocation165_spill] sm:$0xff] %v16061_v27 }
  0xb7   :  { %v11903_v45 = vsub.s32 %v976_v16, %v11803_v11 }
  0xb9   :  { %16059 = vst [vmem:[#allocation164_spill] sm:$0xff] %v11903_v45 }
  0xbc   :  { %1054 = vxpose.xlu0.b32.start.end [1/1] (short) %v11779_v41, 128 }
  0xfb   :  { %v1038_v3 = vpop.trf.xlu0 }
  0xff   :  { %v1039_v54 = vpop.trf.xlu0 }
 0x103   :  { %v1040_v15 = vpop.trf.xlu0 }
 0x107   :  { %v1041_v13 = vpop.trf.xlu0 }
 0x10b   :  { %v1042_v39 = vpop.trf.xlu0 }
 0x10f   :  { %v1043_v24 = vpop.trf.xlu0 }
 0x113   :  { %v1044_v19 = vpop.trf.xlu0 }
 0x117   :  { %v1045_v49 = vpop.trf.xlu0 }
 0x173   :  { %v964_v20 = vpop.f32.mrf.mxu0 }
 0x174   :  { %v965_v48 = vadd.f32 %v964_v20, %v891_v10 }
 0x175   :  { %v966_v41 = vpop.f32.mrf.mxu0 }
 0x176   :  { %10796 = vtanh.f32 %v965_v48  ;;  %v967_v43 = vadd.f32 %v966_v41, %v895_v47  ;;  %v1046_v47 = vpop.trf.xlu0 }
 0x178   :  { %10798 = vtanh.f32 %v967_v43 }
 0x17a   :  { %v1047_v16 = vpop.trf.xlu0 }
 0x183   :  { %v10797_v23 = vpop.eup %10796 }
 0x184   :  { %v996_v10 = vmul.f32 %v10797_v23, %v11900_v17 }
 0x185   :  { %v10799_v21 = vpop.eup %10798 }
 0x186   :  { %v973_v20 = vcombine.low %v10797_v23, %v10799_v21  ;;  %v997_v48 = vmul.f32 %v10799_v21, %v11900_v17 }
 0x188   :  { %v980_v41 = vrot.slane %v973_v20, %v11903_v45  ;;  %v1000_v43 = vcombine.low %v996_v10, %v997_v48  ;;  %v1048_v10 = vpop.trf.xlu0 }
 0x18a   :  { %v987_v52 = vrot.slane %v980_v41, %v11903_v45  ;;  %v1007_v11 = vrot.slane %v1000_v43, %v11903_v45  ;;  %v16063_v43 = vmov 0.0  }
 0x18c   :  { %993 = vst.msk [vmem:[#allocation16] ss:$8 sm:$0x3] %vm11909_vm0, %v987_v52  ;;  %v1014_v23 = vrot.slane %v1007_v11, %v11903_v45  ;;  %2017 = vst.msk [vmem:[#allocation2] ss:$8 sm:$0x3] %vm11909_vm0, %v987_v52  ;;  %v1049_v52 = vpop.trf.xlu0 }
 0x18e   :  { %1016 = vst.msk [vmem:[#allocation3] ss:$8 sm:$0x3] %vm11909_vm0, %v1014_v23 }
 0x190   :  { %v1050_v11 = vpop.trf.xlu0 }
 0x193   :  { %v2224_v18 = vld [vmem:[#allocation2] sm:$0xff] }
 0x194   :  { %v2019_v21 = vld [vmem:[#allocation2] ss:$8 sm:$0x3]  ;;  %2228 = vxpose.xlu1.b32.start.end [1/1] (short) %v2224_v18, 128  ;;  %v1051_v23 = vpop.trf.xlu0 }
 0x195   :  { %v2094_v20 = vrot.slane %v2019_v21, %v11817_v5  ;;  %v1021_v48 = vld [vmem:[#allocation3 + $0x8] sm:$0xff]  ;;  %v1020_v41 = vld [vmem:[#allocation3] sm:$0xff] }
 0x196   :  { %1213 = vmatprep.subr.mxu1 %v1021_v48 }
 0x197   :  { %2172 = vmatprep.mubr.f32.mxu0 %v2094_v20  ;;  %1214 = vmatpush1.msra.mxu1 %v1020_v41 }
 0x198   :  { %10527 = vmatmul.mubr.msk.f32.vlgmr.msra.gmra.mxu1 %vm1086_vm1, %v1038_v3  ;;  %v1052_v3 = vpop.trf.xlu0 }
 0x199   :  { %1253 = vmatprep.mubr.f32.mxu1 %v16063_v43 }
 0x19c   :  { %10528 = vmatmul.mubr.msk.f32.gmra.mxu1 %vm1086_vm1, %v1039_v54  ;;  %v1053_v54 = vpop.trf.xlu0 }
 0x19d   :  { %1259 = vmatprep.mubr.f32.mxu1 %v16063_v43 }
 0x1a0   :  { %10529 = vmatmul.mubr.msk.f32.gmra.mxu1 %vm1086_vm1, %v1040_v15  ;;  %v1070_v15 = vpop.trf.xlu0 }
 0x1a1   :  { %1265 = vmatprep.mubr.f32.mxu1 %v16063_v43 }
 0x1a4   :  { %10530 = vmatmul.mubr.msk.f32.gmra.mxu1 %vm1086_vm1, %v1041_v13  ;;  %v1071_v13 = vpop.trf.xlu0 }
 0x1a5   :  { %1271 = vmatprep.mubr.f32.mxu1 %v16063_v43 }
 0x1a8   :  { %10531 = vmatmul.mubr.msk.f32.gmra.mxu1 %vm1086_vm1, %v1042_v39  ;;  %v1072_v39 = vpop.trf.xlu0 }
 0x1a9   :  { %1277 = vmatprep.mubr.f32.mxu1 %v16063_v43 }
 0x1ac   :  { %10532 = vmatmul.mubr.msk.f32.gmra.mxu1 %vm1086_vm1, %v1043_v24 }
 0x1ad   :  { %1283 = vmatprep.mubr.f32.mxu1 %v16063_v43 }
 0x1b0   :  { %10533 = vmatmul.mubr.msk.f32.gmra.mxu1 %vm1086_vm1, %v1044_v19  ;;  %v2225_v19 = vld [vmem:[#allocation2 + $0x8] sm:$0xff] }
 0x1b1   :  { %1289 = vmatprep.mubr.f32.mxu1 %v16063_v43 }
 0x1b4   :  { %10534 = vmatmul.mubr.msk.f32.gmra.mxu1 %vm1086_vm1, %v1045_v49  ;;  %v1073_v49 = vpop.trf.xlu0 }
 0x1b5   :  { %1295 = vmatprep.mubr.f32.mxu1 %v16063_v43 }
 0x1b8   :  { %10535 = vmatmul.mubr.msk.f32.gmra.mxu1 %vm1086_vm1, %v1046_v47  ;;  %v1074_v24 = vpop.trf.xlu0 }
 0x1b9   :  { %1301 = vmatprep.mubr.f32.mxu1 %v16063_v43 }
 0x1bc   :  { %10536 = vmatmul.mubr.msk.f32.gmra.mxu1 %vm1086_vm1, %v1047_v16  ;;  %v1075_v47 = vpop.trf.xlu0 }
 0x1bd   :  { %1307 = vmatprep.mubr.f32.mxu1 %v16063_v43 }
 0x1c0   :  { %10537 = vmatmul.mubr.msk.f32.gmra.mxu1 %vm1086_vm1, %v1048_v10  ;;  %v1076_v16 = vpop.trf.xlu0 }
 0x1c1   :  { %1313 = vmatprep.mubr.f32.mxu1 %v16063_v43 }
 0x1c4   :  { %10538 = vmatmul.mubr.msk.f32.gmra.mxu1 %vm1086_vm1, %v1049_v52  ;;  %v1077_v18 = vpop.trf.xlu0 }
 0x1c5   :  { %1319 = vmatprep.mubr.f32.mxu1 %v16063_v43 }
 0x1c8   :  { %10539 = vmatmul.mubr.msk.f32.gmra.mxu1 %vm1086_vm1, %v1050_v11  ;;  %v1078_v21 = vpop.trf.xlu0 }
 0x1c9   :  { %1325 = vmatprep.mubr.f32.mxu1 %v16063_v43 }
 0x1cc   :  { %10540 = vmatmul.mubr.msk.f32.gmra.mxu1 %vm1086_vm1, %v1051_v23  ;;  %v1079_v10 = vpop.trf.xlu0 }
 0x1cd   :  { %1331 = vmatprep.mubr.f32.mxu1 %v16063_v43 }
 0x1d0   :  { %10541 = vmatmul.mubr.msk.f32.gmra.mxu1 %vm1086_vm1, %v1052_v3  ;;  %v1080_v20 = vpop.trf.xlu0  ;;  %v11987_v3 = vstv %s10526_s3 }
 0x1d1   :  { %2260 = vxpose.xlu1.b32.start.end [1/1] (short) %v2225_v19, 128  ;;  %1337 = vmatprep.mubr.f32.mxu1 %v16063_v43 }
 0x1d4   :  { %10542 = vmatmul.mubr.msk.f32.gmra.mxu1 %vm1086_vm1, %v1053_v54  ;;  %v1081_v48 = vpop.trf.xlu0  ;;  %v1505_v54 = vmul.f32 %v11987_v3, %v11800_v22 }
 0x1d5   :  { %1343 = vmatprep.mubr.f32.mxu1 %v16063_v43 }
 0x1d8   :  { %10543 = vmatmul.mubr.msk.f32.gmra.mxu1 %vm1086_vm1, %v1070_v15  ;;  %v1082_v41 = vpop.trf.xlu0  ;;  %v1506_v15 = vmul.f32 %v11987_v3, %v11795_v38  ;;  %v1509_v38 = vmul.f32 %v11987_v3, %v11777_v7 }
 0x1d9   :  { %1349 = vmatprep.mubr.f32.mxu1 %v16063_v43 }
 0x1dc   :  { %10544 = vmatmul.mubr.msk.f32.gmra.mxu1 %vm1086_vm1, %v1071_v13  ;;  %v1083_v52 = vpop.trf.xlu0 }
 0x1dd   :  { %1355 = vmatprep.mubr.f32.mxu1 %v16063_v43 }
 0x1e0   :  { %10545 = vmatmul.mubr.msk.f32.gmra.mxu1 %vm1086_vm1, %v1072_v39  ;;  %v1084_v11 = vpop.trf.xlu0 }
 0x1e1   :  { %1361 = vmatprep.mubr.f32.mxu1 %v16063_v43 }
 0x1e4   :  { %10546 = vmatmul.mubr.msk.f32.gmra.mxu1 %vm1086_vm1, %v1073_v49  ;;  %v1085_v23 = vpop.trf.xlu0  ;;  %v1507_v49 = vmul.f32 %v11987_v3, %v11790_v40 }
 0x1e5   :  { %1367 = vmatprep.mubr.f32.mxu1 %v16063_v43 }
 0x1e8   :  { %10547 = vmatmul.mubr.msk.f32.gmra.mxu1 %vm1086_vm1, %v1074_v24 }
 0x1e9   :  { %1373 = vmatprep.mubr.f32.mxu1 %v16063_v43 }
 0x1ec   :  { %10548 = vmatmul.mubr.msk.f32.gmra.mxu1 %vm1086_vm1, %v1075_v47  ;;  %v1508_v47 = vmul.f32 %v11987_v3, %v11784_v12 }
 0x1ed   :  { %1379 = vmatprep.mubr.f32.mxu1 %v16063_v43 }
 0x1f0   :  { %10549 = vmatmul.mubr.msk.f32.gmra.mxu1 %vm1086_vm1, %v1076_v16 }
 0x1f1   :  { %1385 = vmatprep.mubr.f32.mxu1 %v16063_v43 }
 0x1f4   :  { %10550 = vmatmul.mubr.msk.f32.gmra.mxu1 %vm1086_vm1, %v1077_v18 }
 0x1f5   :  { %1391 = vmatprep.mubr.f32.mxu1 %v16063_v43 }
 0x1f8   :  { %10551 = vmatmul.mubr.msk.f32.gmra.mxu1 %vm1086_vm1, %v1078_v21  ;;  %v1510_v21 = vmul.f32 %v11987_v3, %v11772_v35 }
 0x1f9   :  { %1397 = vmatprep.mubr.f32.mxu1 %v16063_v43 }
 0x1fc   :  { %10552 = vmatmul.mubr.msk.f32.gmra.mxu1 %vm1086_vm1, %v1079_v10 }
 0x1fd   :  { %1403 = vmatprep.mubr.f32.mxu1 %v16063_v43 }
 0x200   :  { %10553 = vmatmul.mubr.msk.f32.gmra.mxu1 %vm1086_vm1, %v1080_v20  ;;  %v1511_v20 = vmul.f32 %v11987_v3, %v11767_v1 }
 0x201   :  { %1409 = vmatprep.mubr.f32.mxu1 %v16063_v43 }
 0x204   :  { %10554 = vmatmul.mubr.msk.f32.gmra.mxu1 %vm1086_vm1, %v1081_v48 }
 0x205   :  { %1415 = vmatprep.mubr.f32.mxu1 %v16063_v43 }
 0x208   :  { %10555 = vmatmul.mubr.msk.f32.gmra.mxu1 %vm1086_vm1, %v1082_v41  ;;  %v1512_v41 = vmul.f32 %v11987_v3, %v11762_v4 }
 0x209   :  { %1421 = vmatprep.mubr.f32.mxu1 %v16063_v43 }
 0x20c   :  { %10556 = vmatmul.mubr.msk.f32.gmra.mxu1 %vm1086_vm1, %v1083_v52 }
 0x20d   :  { %1427 = vmatprep.mubr.f32.mxu1 %v16063_v43 }
 0x210   :  { %10557 = vmatmul.mubr.msk.f32.gmra.mxu1 %vm1086_vm1, %v1084_v11  ;;  %v1513_v11 = vmul.f32 %v11987_v3, %v11757_v6 }
 0x211   :  { %1433 = vmatprep.mubr.f32.mxu1 %v16063_v43 }
 0x214   :  { %10558 = vmatmul.mubr.msk.f32.gmra.mxu1 %vm1086_vm1, %v1085_v23 }
 0x215   :  { %2548 = vmatprep.mubr.f32.mxu1 %v16063_v43 }
 0x258   :  { %v1249_v13 = vpop.f32.mrf.mxu1 }
 0x259   :  { %v11993_v39 = vadd.f32 %v1505_v54, %v1249_v13  ;;  %v1514_v54 = vmul.f32 %v11987_v3, %v11752_v61  ;;  %v1515_v13 = vmul.f32 %v11987_v3, %v11747_v63 }
 0x25a   :  { %v1251_v24 = vpop.f32.mrf.mxu1 }
 0x25b   :  { %1633 = vst [vmem:[#allocation4] sm:$0xff] %v11993_v39  ;;  %v11998_v19 = vadd.f32 %v1506_v15, %v1251_v24  ;;  %v1516_v24 = vmul.f32 %v11987_v3, %v11742_v36 }
 0x25c   :  { %v1255_v16 = vpop.f32.mrf.mxu1 }
 0x25d   :  { %1634 = vst [vmem:[#allocation4 + $0x8] sm:$0xff] %v11998_v19  ;;  %v12003_v22 = vadd.f32 %v1507_v49, %v1255_v16  ;;  %v1517_v16 = vmul.f32 %v11987_v3, %v11737_v8 }
 0x25e   :  { %v1257_v18 = vpop.f32.mrf.mxu1 }
 0x25f   :  { %1635 = vst [vmem:[#allocation4 + $0x10] sm:$0xff] %v12003_v22  ;;  %v12008_v40 = vadd.f32 %v1508_v47, %v1257_v18  ;;  %v1518_v18 = vmul.f32 %v11987_v3, %v11732_v0 }
 0x260   :  { %v1261_v10 = vpop.f32.mrf.mxu1 }
 0x261   :  { %1636 = vst [vmem:[#allocation4 + $0x18] sm:$0xff] %v12008_v40  ;;  %v12013_v12 = vadd.f32 %v1509_v38, %v1261_v10  ;;  %v1519_v10 = vmul.f32 %v11987_v3, %v11727_v34 }
 0x262   :  { %v1263_v48 = vpop.f32.mrf.mxu1 }
 0x263   :  { %1637 = vst [vmem:[#allocation4 + $0x20] sm:$0xff] %v12013_v12  ;;  %v12018_v7 = vadd.f32 %v1510_v21, %v1263_v48  ;;  %v1520_v48 = vmul.f32 %v11987_v3, %v11722_v32 }
 0x264   :  { %v1267_v52 = vpop.f32.mrf.mxu1 }
 0x265   :  { %1638 = vst [vmem:[#allocation4 + $0x28] sm:$0xff] %v12018_v7  ;;  %v12023_v35 = vadd.f32 %v1511_v20, %v1267_v52  ;;  %v1521_v52 = vmul.f32 %v11987_v3, %v11717_v2 }
 0x266   :  { %v1269_v23 = vpop.f32.mrf.mxu1 }
 0x267   :  { %1639 = vst [vmem:[#allocation4 + $0x30] sm:$0xff] %v12023_v35  ;;  %v12028_v1 = vadd.f32 %v1512_v41, %v1269_v23  ;;  %v1522_v23 = vmul.f32 %v11987_v3, %v11712_v37 }
 0x268   :  { %v1273_v15 = vpop.f32.mrf.mxu1 }
 0x269   :  { %1640 = vst [vmem:[#allocation4 + $0x38] sm:$0xff] %v12028_v1  ;;  %v12033_v4 = vadd.f32 %v1513_v11, %v1273_v15  ;;  %v1523_v15 = vmul.f32 %v11987_v3, %v11707_v9 }
 0x26a   :  { %v1275_v49 = vpop.f32.mrf.mxu1 }
 0x26b   :  { %1641 = vst [vmem:[#allocation4 + $0x40] sm:$0xff] %v12033_v4  ;;  %v12038_v6 = vadd.f32 %v1514_v54, %v1275_v49  ;;  %v1524_v49 = vmul.f32 %v11987_v3, %v11702_v33 }
 0x26c   :  { %v1279_v47 = vpop.f32.mrf.mxu1 }
 0x26d   :  { %1642 = vst [vmem:[#allocation4 + $0x48] sm:$0xff] %v12038_v6  ;;  %v12043_v61 = vadd.f32 %v1515_v13, %v1279_v47  ;;  %v1525_v47 = vmul.f32 %v11987_v3, %v11698_v58 }
 0x26e   :  { %v1281_v38 = vpop.f32.mrf.mxu1 }
 0x26f   :  { %1643 = vst [vmem:[#allocation4 + $0x50] sm:$0xff] %v12043_v61  ;;  %v12048_v63 = vadd.f32 %v1516_v24, %v1281_v38  ;;  %v1462_v38 = vld [vmem:[#allocation4 + $0xb0] sm:$0xff] }
 0x270   :  { %v1285_v21 = vpop.f32.mrf.mxu1 }
 0x271   :  { %1644 = vst [vmem:[#allocation4 + $0x58] sm:$0xff] %v12048_v63  ;;  %v12053_v36 = vadd.f32 %v1517_v16, %v1285_v21 }
 0x272   :  { %v1287_v20 = vpop.f32.mrf.mxu1 }
 0x273   :  { %1645 = vst [vmem:[#allocation4 + $0x60] sm:$0xff] %v12053_v36  ;;  %v12058_v8 = vadd.f32 %v1518_v18, %v1287_v20  ;;  %v1526_v18 = vmul.f32 %v11987_v3, %v11694_v60  ;;  %v1527_v20 = vmul.f32 %v11987_v3, %v1462_v38 }
 0x274   :  { %v1291_v41 = vpop.f32.mrf.mxu1 }
 0x275   :  { %1646 = vst [vmem:[#allocation4 + $0x68] sm:$0xff] %v12058_v8  ;;  %v12063_v0 = vadd.f32 %v1519_v10, %v1291_v41  ;;  %v1463_v10 = vld [vmem:[#allocation4 + $0xb8] sm:$0xff]  ;;  %v1464_v41 = vld [vmem:[#allocation4 + $0xc0] sm:$0xff] }
 0x276   :  { %v1293_v11 = vpop.f32.mrf.mxu1 }
 0x277   :  { %1647 = vst [vmem:[#allocation4 + $0x70] sm:$0xff] %v12063_v0  ;;  %v12068_v34 = vadd.f32 %v1520_v48, %v1293_v11 }
 0x278   :  { %v1297_v54 = vpop.f32.mrf.mxu1 }
 0x279   :  { %1648 = vst [vmem:[#allocation4 + $0x78] sm:$0xff] %v12068_v34  ;;  %v12073_v32 = vadd.f32 %v1521_v52, %v1297_v54  ;;  %v1528_v52 = vmul.f32 %v11987_v3, %v1463_v10  ;;  %v1529_v54 = vmul.f32 %v11987_v3, %v1464_v41  ;;  %v1468_v10 = vld [vmem:[#allocation4 + $0xe0] sm:$0xff] }
 0x27a   :  { %v1299_v13 = vpop.f32.mrf.mxu1 }
 0x27b   :  { %1649 = vst [vmem:[#allocation4 + $0x80] sm:$0xff] %v12073_v32  ;;  %v12078_v2 = vadd.f32 %v1522_v23, %v1299_v13  ;;  %v1465_v23 = vld [vmem:[#allocation4 + $0xc8] sm:$0xff]  ;;  %v1466_v13 = vld [vmem:[#allocation4 + $0xd0] sm:$0xff] }
 0x27c   :  { %v1303_v24 = vpop.f32.mrf.mxu1 }
 0x27d   :  { %1650 = vst [vmem:[#allocation4 + $0x88] sm:$0xff] %v12078_v2  ;;  %v12083_v37 = vadd.f32 %v1523_v15, %v1303_v24  ;;  %v1530_v24 = vmul.f32 %v11987_v3, %v1465_v23  ;;  %v1470_v23 = vld [vmem:[#allocation4 + $0xf0] sm:$0xff] }
 0x27e   :  { %v1305_v16 = vpop.f32.mrf.mxu1 }
 0x27f   :  { %1651 = vst [vmem:[#allocation4 + $0x90] sm:$0xff] %v12083_v37  ;;  %v12088_v9 = vadd.f32 %v1524_v49, %v1305_v16  ;;  %v1467_v16 = vld [vmem:[#allocation4 + $0xd8] sm:$0xff] }
 0x280   :  { %v1309_v21 = vpop.f32.mrf.mxu1 }
 0x281   :  { %1652 = vst [vmem:[#allocation4 + $0x98] sm:$0xff] %v12088_v9  ;;  %v12093_v33 = vadd.f32 %v1525_v47, %v1309_v21 }
 0x282   :  { %v1311_v48 = vpop.f32.mrf.mxu1 }
 0x283   :  { %1653 = vst [vmem:[#allocation4 + $0xa0] sm:$0xff] %v12093_v33  ;;  %v12097_v58 = vadd.f32 %v1526_v18, %v1311_v48  ;;  %v1531_v18 = vmul.f32 %v11987_v3, %v1466_v13  ;;  %v1532_v48 = vmul.f32 %v11987_v3, %v1467_v16  ;;  %v1471_v13 = vld [vmem:[#allocation4 + $0xf8] sm:$0xff] }
 0x284   :  { %v1315_v11 = vpop.f32.mrf.mxu1  ;;  %v1536_v5 = vmul.f32 %v11987_v3, %v1471_v13 }
 0x285   :  { %1654 = vst [vmem:[#allocation4 + $0xa8] sm:$0xff] %v12097_v58  ;;  %v12101_v60 = vadd.f32 %v1527_v20, %v1315_v11  ;;  %v1469_v11 = vld [vmem:[#allocation4 + $0xe8] sm:$0xff] }
 0x286   :  { %v1317_v15 = vpop.f32.mrf.mxu1 }
 0x287   :  { %1655 = vst [vmem:[#allocation4 + $0xb0] sm:$0xff] %v12101_v60  ;;  %v1592_v49 = vadd.f32 %v1528_v52, %v1317_v15  ;;  %v1533_v52 = vmul.f32 %v11987_v3, %v1468_v10 }
 0x288   :  { %v1321_v47 = vpop.f32.mrf.mxu1 }
 0x289   :  { %1656 = vst [vmem:[#allocation4 + $0xb8] sm:$0xff] %v1592_v49  ;;  %v1593_v38 = vadd.f32 %v1529_v54, %v1321_v47  ;;  %v1534_v54 = vmul.f32 %v11987_v3, %v1469_v11 }
 0x28a   :  { %v1323_v21 = vpop.f32.mrf.mxu1 }
 0x28b   :  { %1657 = vst [vmem:[#allocation4 + $0xc0] sm:$0xff] %v1593_v38  ;;  %v1594_v20 = vadd.f32 %v1530_v24, %v1323_v21  ;;  %v1535_v24 = vmul.f32 %v11987_v3, %v1470_v23 }
 0x28c   :  { %v1327_v41 = vpop.f32.mrf.mxu1 }
 0x28d   :  { %1658 = vst [vmem:[#allocation4 + $0xc8] sm:$0xff] %v1594_v20  ;;  %v1595_v27 = vadd.f32 %v1531_v18, %v1327_v41 }
 0x28e   :  { %v1329_v15 = vpop.f32.mrf.mxu1 }
 0x28f   :  { %1659 = vst [vmem:[#allocation4 + $0xd0] sm:$0xff] %v1595_v27  ;;  %v1596_v45 = vadd.f32 %v1532_v48, %v1329_v15  ;;  %v16064_v15 = vld [vmem:[#allocation126_spill] sm:$0xff] }
 0x290   :  { %v1333_v47 = vpop.f32.mrf.mxu1 }
 0x291   :  { %1660 = vst [vmem:[#allocation4 + $0xd8] sm:$0xff] %v1596_v45  ;;  %v1597_v17 = vadd.f32 %v1533_v52, %v1333_v47  ;;  %v16065_v52 = vld [vmem:[#allocation128_spill] sm:$0xff]  ;;  %v16066_v47 = vld [vmem:[#allocation125_spill] sm:$0xff]  ;;  %v1852_v13 = vmul.f32 %v1596_v45, %v11500_v59  ;;  %v1848_v45 = vmul.f32 %v1592_v49, %v11480_v55 }
 0x292   :  { %v1335_v21 = vpop.f32.mrf.mxu1 }
 0x293   :  { %1661 = vst [vmem:[#allocation4 + $0xe0] sm:$0xff] %v1597_v17  ;;  %v1598_v16 = vadd.f32 %v1534_v54, %v1335_v21  ;;  %v1853_v51 = vmul.f32 %v1597_v17, %v16066_v47  ;;  %v16067_v21 = vld [vmem:[#allocation123_spill] sm:$0xff] }
 0x294   :  { %v1339_v18 = vpop.f32.mrf.mxu1 }
 0x295   :  { %1662 = vst [vmem:[#allocation4 + $0xe8] sm:$0xff] %v1598_v16  ;;  %v1599_v10 = vadd.f32 %v1535_v24, %v1339_v18  ;;  %v1854_v26 = vmul.f32 %v1598_v16, %v16064_v15  ;;  %v1851_v18 = vmul.f32 %v1595_v27, %v16067_v21  ;;  %v1917_v17 = vadd.f32 %v1853_v51, %v11185_v28  ;;  %v16068_v27 = vld [vmem:[#allocation60_spill] sm:$0xff]  ;;  %v16070_v21 = vld [vmem:[#allocation59_spill] sm:$0xff]  ;;  %v16072_v51 = vld [vmem:[#allocation58_spill] sm:$0xff] }
 0x296   :  { %v1341_v41 = vpop.f32.mrf.mxu1 }
 0x297   :  { %1663 = vst [vmem:[#allocation4 + $0xf0] sm:$0xff] %v1599_v10  ;;  %v1600_v43 = vadd.f32 %v1536_v5, %v1341_v41  ;;  %v1855_v48 = vmul.f32 %v1599_v10, %v11515_v62  ;;  %v1850_v41 = vmul.f32 %v1594_v20, %v11490_v57  ;;  %v1918_v16 = vadd.f32 %v1854_v26, %v11190_v29  ;;  %v16071_v26 = vld [vmem:[#allocation118_spill] sm:$0xff]  ;;  %v16124_v29 = vld [vmem:[#allocation96_spill] sm:$0xff] }
 0x298   :  { %v12113_v11 = vpop.f32.mrf.mxu1  ;;  %v1915_v20 = vadd.f32 %v1851_v18, %v16070_v21  ;;  %v16076_v21 = vld [vmem:[#allocation56_spill] sm:$0xff] }
 0x299   :  { %1664 = vst [vmem:[#allocation4 + $0xf8] sm:$0xff] %v1600_v43  ;;  %v1856_v23 = vmul.f32 %v1600_v43, %v16065_v52  ;;  %v1919_v5 = vadd.f32 %v1855_v48, %v11195_v30  ;;  %v1849_v43 = vmul.f32 %v1593_v38, %v11485_v56  ;;  %v16069_v48 = vld [vmem:[#allocation119_spill] sm:$0xff]  ;;  %v1846_v38 = vmul.f32 %v12097_v58, %v16071_v26 }
 0x29a   :  { %v12118_v54 = vpop.f32.mrf.mxu1  ;;  %v1847_v30 = vmul.f32 %v12101_v60, %v16069_v48  ;;  %v1914_v28 = vadd.f32 %v1850_v41, %v16072_v51  ;;  %v16075_v60 = vld [vmem:[#allocation116_spill] sm:$0xff]  ;;  %v16077_v48 = vld [vmem:[#allocation115_spill] sm:$0xff] }
 0x29b   :  { %v1920_v24 = vadd.f32 %v1856_v23, %v11200_v31  ;;  %v1916_v23 = vadd.f32 %v1852_v13, %v16068_v27  ;;  %v1844_v18 = vmul.f32 %v12088_v9, %v16075_v60  ;;  %v1843_v58 = vmul.f32 %v12083_v37, %v16077_v48  ;;  %v16083_v37 = vld [vmem:[#allocation112_spill] sm:$0xff]  ;;  %v16085_v48 = vld [vmem:[#allocation111_spill] sm:$0xff]  ;;  %v16122_v27 = vld [vmem:[#allocation157_spill] sm:$0xff] }
 0x29c   :  { %v12124_v10 = vpop.f32.mrf.mxu1  ;;  %v1486_v31 = vld [vmem:[#allocation4 + $0x170] sm:$0xff] }
 0x29d   :  { %2108 = vmatprep.subr.mxu0 %v1920_v24 }
 0x29e   :  { %v12130_v47 = vpop.f32.mrf.mxu1  ;;  %2109 = vmatpush1.msra.mxu0 %v1919_v5  ;;  %v16073_v5 = vld [vmem:[#allocation117_spill] sm:$0xff] }
 0x29f   :  { %2110 = vmatprep.subr.mxu0 %v1918_v16  ;;  %v1845_v49 = vmul.f32 %v12093_v33, %v16073_v5  ;;  %v16074_v16 = vld [vmem:[#allocation57_spill] sm:$0xff]  ;;  %v16079_v33 = vld [vmem:[#allocation114_spill] sm:$0xff] }
 0x2a0   :  { %v12137_v24 = vpop.f32.mrf.mxu1  ;;  %2111 = vmatpush1.msra.mxu0 %v1917_v17  ;;  %v1913_v55 = vadd.f32 %v1849_v43, %v16074_v16  ;;  %v1912_v17 = vadd.f32 %v1848_v45, %v16076_v21  ;;  %v1842_v43 = vmul.f32 %v12078_v2, %v16079_v33  ;;  %v16080_v16 = vld [vmem:[#allocation54_spill] sm:$0xff]  ;;  %v16081_v5 = vld [vmem:[#allocation113_spill] sm:$0xff]  ;;  %v1839_v2 = vmul.f32 %v12063_v0, %v16085_v48  ;;  %v16091_v0 = vld [vmem:[#allocation108_spill] sm:$0xff] }
 0x2a1   :  { %2112 = vmatprep.subr.mxu0 %v1916_v23  ;;  %v16078_v23 = vld [vmem:[#allocation55_spill] sm:$0xff]  ;;  %v1841_v9 = vmul.f32 %v12073_v32, %v16081_v5  ;;  %v16087_v32 = vld [vmem:[#allocation110_spill] sm:$0xff]  ;;  %v16089_v5 = vld [vmem:[#allocation109_spill] sm:$0xff] }
 0x2a2   :  { %v12145_v13 = vpop.f32.mrf.mxu1  ;;  %2113 = vmatpush1.msra.mxu0 %v1915_v20  ;;  %v1911_v26 = vadd.f32 %v1847_v30, %v16078_v23  ;;  %v1910_v20 = vadd.f32 %v1846_v38, %v16080_v16  ;;  %v1840_v30 = vmul.f32 %v12068_v34, %v16083_v37  ;;  %v16084_v23 = vld [vmem:[#allocation52_spill] sm:$0xff]  ;;  %v1837_v34 = vmul.f32 %v12053_v36, %v16089_v5  ;;  %v16093_v48 = vld [vmem:[#allocation107_spill] sm:$0xff]  ;;  %v16095_v36 = vld [vmem:[#allocation106_spill] sm:$0xff] }
 0x2a3   :  { %2114 = vmatprep.subr.mxu0 %v1914_v28  ;;  %v16082_v28 = vld [vmem:[#allocation53_spill] sm:$0xff]  ;;  %v16120_v21 = vld [vmem:[#allocation158_spill] sm:$0xff] }
 0x2a4   :  { %v12153_v41 = vpop.f32.mrf.mxu1  ;;  %2115 = vmatpush1.msra.mxu0 %v1913_v55  ;;  %v1909_v60 = vadd.f32 %v1845_v49, %v16082_v28  ;;  %v1908_v55 = vadd.f32 %v1844_v18, %v16084_v23  ;;  %v1838_v49 = vmul.f32 %v12058_v8, %v16087_v32  ;;  %v16088_v28 = vld [vmem:[#allocation50_spill] sm:$0xff]  ;;  %v1835_v8 = vmul.f32 %v12043_v61, %v16093_v48  ;;  %v16097_v5 = vld [vmem:[#allocation105_spill] sm:$0xff]  ;;  %v16099_v61 = vld [vmem:[#allocation104_spill] sm:$0xff] }
 0x2a5   :  { %2116 = vmatprep.subr.mxu0 %v1912_v17  ;;  %v16086_v17 = vld [vmem:[#allocation51_spill] sm:$0xff] }
 0x2a6   :  { %v12161_v45 = vpop.f32.mrf.mxu1  ;;  %2117 = vmatpush1.msra.mxu0 %v1911_v26  ;;  %v1907_v33 = vadd.f32 %v1843_v58, %v16086_v17  ;;  %v1906_v26 = vadd.f32 %v1842_v43, %v16088_v28  ;;  %v1836_v58 = vmul.f32 %v12048_v63, %v16091_v0  ;;  %v16092_v17 = vld [vmem:[#allocation48_spill] sm:$0xff]  ;;  %v1833_v63 = vmul.f32 %v12033_v4, %v16097_v5  ;;  %v16101_v48 = vld [vmem:[#allocation103_spill] sm:$0xff]  ;;  %v16103_v4 = vld [vmem:[#allocation102_spill] sm:$0xff] }
 0x2a7   :  { %2118 = vmatprep.subr.mxu0 %v1910_v20  ;;  %v16090_v20 = vld [vmem:[#allocation49_spill] sm:$0xff] }
 0x2a8   :  { %v12169_v38 = vpop.f32.mrf.mxu1  ;;  %2119 = vmatpush1.msra.mxu0 %v1909_v60  ;;  %v1905_v37 = vadd.f32 %v1841_v9, %v16090_v20  ;;  %v1904_v60 = vadd.f32 %v1840_v30, %v16092_v17  ;;  %v1834_v9 = vmul.f32 %v12038_v6, %v16095_v36  ;;  %v16096_v20 = vld [vmem:[#allocation46_spill] sm:$0xff]  ;;  %v1831_v6 = vmul.f32 %v12023_v35, %v16101_v48  ;;  %v16105_v5 = vld [vmem:[#allocation101_spill] sm:$0xff]  ;;  %v16107_v35 = vld [vmem:[#allocation100_spill] sm:$0xff] }
 0x2a9   :  { %2120 = vmatprep.subr.mxu0 %v1908_v55  ;;  %v16094_v55 = vld [vmem:[#allocation47_spill] sm:$0xff] }
 0x2aa   :  { %v12177_v18 = vpop.f32.mrf.mxu1  ;;  %2121 = vmatpush1.msra.mxu0 %v1907_v33  ;;  %v1903_v32 = vadd.f32 %v1839_v2, %v16094_v55  ;;  %v1902_v33 = vadd.f32 %v1838_v49, %v16096_v20  ;;  %v1832_v2 = vmul.f32 %v12028_v1, %v16099_v61  ;;  %v16100_v55 = vld [vmem:[#allocation44_spill] sm:$0xff]  ;;  %v1829_v1 = vmul.f32 %v12013_v12, %v16105_v5  ;;  %v16109_v48 = vld [vmem:[#allocation99_spill] sm:$0xff]  ;;  %v16111_v12 = vld [vmem:[#allocation98_spill] sm:$0xff] }
 0x2ab   :  { %2122 = vmatprep.subr.mxu0 %v1906_v26  ;;  %v16098_v26 = vld [vmem:[#allocation45_spill] sm:$0xff] }
 0x2ac   :  { %v12185_v43 = vpop.f32.mrf.mxu1  ;;  %2123 = vmatpush1.msra.mxu0 %v1905_v37  ;;  %v1901_v0 = vadd.f32 %v1837_v34, %v16098_v26  ;;  %v1900_v37 = vadd.f32 %v1836_v58, %v16100_v55  ;;  %v1830_v34 = vmul.f32 %v12018_v7, %v16103_v4  ;;  %v16104_v26 = vld [vmem:[#allocation42_spill] sm:$0xff]  ;;  %v1827_v7 = vmul.f32 %v12003_v22, %v16109_v48  ;;  %v16113_v5 = vld [vmem:[#allocation97_spill] sm:$0xff]  ;;  %v16115_v22 = vld [vmem:[#allocation36_spill] sm:$0xff] }
 0x2ad   :  { %2124 = vmatprep.subr.mxu0 %v1904_v60  ;;  %v16102_v60 = vld [vmem:[#allocation43_spill] sm:$0xff]  ;;  %v1501_v55 = vld [vmem:[#allocation4 + $0x1e8] sm:$0xff]  ;;  %v1502_v20 = vld [vmem:[#allocation4 + $0x1f0] sm:$0xff] }
 0x2ae   :  { %v12193_v30 = vpop.f32.mrf.mxu1  ;;  %2125 = vmatpush1.msra.mxu0 %v1903_v32  ;;  %v1899_v36 = vadd.f32 %v1835_v8, %v16102_v60  ;;  %v1898_v32 = vadd.f32 %v1834_v9, %v16104_v26  ;;  %v1828_v8 = vmul.f32 %v12008_v40, %v16107_v35  ;;  %v16108_v60 = vld [vmem:[#allocation40_spill] sm:$0xff]  ;;  %v1825_v40 = vmul.f32 %v11993_v39, %v16113_v5 }
 0x2af   :  { %2126 = vmatprep.subr.mxu0 %v1902_v33  ;;  %v16106_v33 = vld [vmem:[#allocation41_spill] sm:$0xff] }
 0x2b0   :  { %v12201_v49 = vpop.f32.mrf.mxu1  ;;  %2127 = vmatpush1.msra.mxu0 %v1901_v0  ;;  %v1897_v61 = vadd.f32 %v1833_v63, %v16106_v33  ;;  %v1896_v0 = vadd.f32 %v1832_v2, %v16108_v60  ;;  %v1826_v63 = vmul.f32 %v11998_v19, %v16111_v12  ;;  %v16112_v33 = vld [vmem:[#allocation38_spill] sm:$0xff] }
 0x2b1   :  { %2128 = vmatprep.subr.mxu0 %v1900_v37  ;;  %v16110_v37 = vld [vmem:[#allocation39_spill] sm:$0xff]  ;;  %v1491_v19 = vld [vmem:[#allocation4 + $0x198] sm:$0xff] }
 0x2b2   :  { %v12209_v58 = vpop.f32.mrf.mxu1  ;;  %2129 = vmatpush1.msra.mxu0 %v1899_v36  ;;  %v1895_v4 = vadd.f32 %v1831_v6, %v16110_v37  ;;  %v1894_v36 = vadd.f32 %v1830_v34, %v16112_v33  ;;  %v1892_v6 = vadd.f32 %v1828_v8, %v16115_v22  ;;  %v16116_v37 = vld [vmem:[#allocation35_spill] sm:$0xff]  ;;  %v16118_v33 = vld [vmem:[#allocation33_spill] sm:$0xff]  ;;  %v1493_v8 = vld [vmem:[#allocation4 + $0x1a8] sm:$0xff] }
 0x2b3   :  { %2130 = vmatprep.subr.mxu0 %v1898_v32  ;;  %v16114_v32 = vld [vmem:[#allocation37_spill] sm:$0xff]  ;;  %v1891_v48 = vadd.f32 %v1827_v7, %v16116_v37  ;;  %v1889_v12 = vadd.f32 %v1825_v40, %v16118_v33  ;;  %v1495_v33 = vld [vmem:[#allocation4 + $0x1b8] sm:$0xff] }
 0x2b4   :  { %v12217_v9 = vpop.f32.mrf.mxu1  ;;  %2131 = vmatpush1.msra.mxu0 %v1897_v61  ;;  %v1893_v35 = vadd.f32 %v1829_v1, %v16114_v32  ;;  %v1492_v1 = vld [vmem:[#allocation4 + $0x1a0] sm:$0xff]  ;;  %v1494_v37 = vld [vmem:[#allocation4 + $0x1b0] sm:$0xff] }
 0x2b5   :  { %2132 = vmatprep.subr.mxu0 %v1896_v0  ;;  %v16117_v0 = vld [vmem:[#allocation34_spill] sm:$0xff]  ;;  %v1557_v7 = vmul.f32 %v11987_v3, %v1492_v1  ;;  %v1560_v1 = vmul.f32 %v11987_v3, %v1495_v33 }
 0x2b6   :  { %v12225_v2 = vpop.f32.mrf.mxu1  ;;  %2133 = vmatpush1.msra.mxu0 %v1895_v4  ;;  %v1890_v34 = vadd.f32 %v1826_v63, %v16117_v0  ;;  %v1556_v4 = vmul.f32 %v11987_v3, %v1491_v19  ;;  %v1558_v63 = vmul.f32 %v11987_v3, %v1493_v8  ;;  %v1559_v19 = vmul.f32 %v11987_v3, %v1494_v37  ;;  %v1496_v0 = vld [vmem:[#allocation4 + $0x1c0] sm:$0xff] }
 0x2b7   :  { %2134 = vmatprep.subr.mxu0 %v1894_v36  ;;  %v1561_v22 = vmul.f32 %v11987_v3, %v1496_v0 }
 0x2b8   :  { %v12229_v61 = vpop.f32.mrf.mxu1  ;;  %2135 = vmatpush1.msra.mxu0 %v1893_v35 }
 0x2b9   :  { %2136 = vmatprep.subr.mxu0 %v1892_v6 }
 0x2ba   :  { %v12233_v39 = vpop.f32.mrf.mxu1  ;;  %2137 = vmatpush1.msra.mxu0 %v1891_v48 }
 0x2bb   :  { %2138 = vmatprep.subr.mxu0 %v1890_v34 }
 0x2bc   :  { %v12236_v36 = vpop.f32.mrf.mxu1  ;;  %2139 = vmatpush1.msra.mxu0 %v1889_v12 }
 0x2be   :  { %v1401_v35 = vpop.f32.mrf.mxu1 }
 0x2bf   :  { %v12239_v6 = vadd.f32 %v1556_v4, %v1401_v35  ;;  %v1497_v35 = vld [vmem:[#allocation4 + $0x1c8] sm:$0xff] }
 0x2c0   :  { %v1405_v40 = vpop.f32.mrf.mxu1  ;;  %v1562_v32 = vmul.f32 %v11987_v3, %v1497_v35 }
 0x2c1   :  { %1684 = vst [vmem:[#allocation4 + $0x198] sm:$0xff] %v12239_v6  ;;  %v12243_v48 = vadd.f32 %v1557_v7, %v1405_v40  ;;  %v1498_v40 = vld [vmem:[#allocation4 + $0x1d0] sm:$0xff] }
 0x2c2   :  { %v1407_v34 = vpop.f32.mrf.mxu1  ;;  %v1563_v5 = vmul.f32 %v11987_v3, %v1498_v40  ;;  %v1503_v40 = vld [vmem:[#allocation4 + $0x1f8] sm:$0xff] }
 0x2c3   :  { %1685 = vst [vmem:[#allocation4 + $0x1a0] sm:$0xff] %v12243_v48  ;;  %v12247_v12 = vadd.f32 %v1558_v63, %v1407_v34  ;;  %v1499_v34 = vld [vmem:[#allocation4 + $0x1d8] sm:$0xff]  ;;  %v1568_v23 = vmul.f32 %v11987_v3, %v1503_v40 }
 0x2c4   :  { %v1411_v4 = vpop.f32.mrf.mxu1  ;;  %v1564_v0 = vmul.f32 %v11987_v3, %v1499_v34 }
 0x2c5   :  { %1686 = vst [vmem:[#allocation4 + $0x1a8] sm:$0xff] %v12247_v12  ;;  %v12251_v8 = vadd.f32 %v1559_v19, %v1411_v4  ;;  %v1500_v19 = vld [vmem:[#allocation4 + $0x1e0] sm:$0xff] }
 0x2c6   :  { %v1413_v7 = vpop.f32.mrf.mxu1 }
 0x2c7   :  { %1687 = vst [vmem:[#allocation4 + $0x1b0] sm:$0xff] %v12251_v8  ;;  %v12255_v37 = vadd.f32 %v1560_v1, %v1413_v7  ;;  %v1565_v7 = vmul.f32 %v11987_v3, %v1500_v19 }
 0x2c8   :  { %v1417_v63 = vpop.f32.mrf.mxu1 }
 0x2c9   :  { %1688 = vst [vmem:[#allocation4 + $0x1b8] sm:$0xff] %v12255_v37  ;;  %v1625_v33 = vadd.f32 %v1561_v22, %v1417_v63  ;;  %v1566_v22 = vmul.f32 %v11987_v3, %v1501_v55  ;;  %v1490_v55 = vld [vmem:[#allocation4 + $0x190] sm:$0xff] }
 0x2ca   :  { %v1419_v60 = vpop.f32.mrf.mxu1 }
 0x2cb   :  { %1689 = vst [vmem:[#allocation4 + $0x1c0] sm:$0xff] %v1625_v33  ;;  %v1626_v4 = vadd.f32 %v1562_v32, %v1419_v60  ;;  %v1567_v60 = vmul.f32 %v11987_v3, %v1502_v20  ;;  %v1489_v20 = vld [vmem:[#allocation4 + $0x188] sm:$0xff] }
 0x2cc   :  { %v1423_v26 = vpop.f32.mrf.mxu1 }
 0x2cd   :  { %1690 = vst [vmem:[#allocation4 + $0x1c8] sm:$0xff] %v1626_v4  ;;  %v1627_v1 = vadd.f32 %v1563_v5, %v1423_v26 }
 0x2ce   :  { %v1425_v35 = vpop.f32.mrf.mxu1 }
 0x2cf   :  { %1691 = vst [vmem:[#allocation4 + $0x1d0] sm:$0xff] %v1627_v1  ;;  %v1628_v17 = vadd.f32 %v1564_v0, %v1425_v35  ;;  %v16119_v0 = vld [vmem:[#allocation159_spill] sm:$0xff] }
 0x2d0   :  { %v1429_v63 = vpop.f32.mrf.mxu1 }
 0x2d1   :  { %1692 = vst [vmem:[#allocation4 + $0x1d8] sm:$0xff] %v1628_v17  ;;  %v1629_v28 = vadd.f32 %v1565_v7, %v1429_v63  ;;  %v16121_v7 = vld [vmem:[#allocation160_spill] sm:$0xff] }
 0x2d2   :  { %v1431_v32 = vpop.f32.mrf.mxu1 }
 0x2d3   :  { %1693 = vst [vmem:[#allocation4 + $0x1e0] sm:$0xff] %v1629_v28  ;;  %v1630_v34 = vadd.f32 %v1566_v22, %v1431_v32  ;;  %v1885_v56 = vmul.f32 %v1629_v28, %v16122_v27  ;;  %v1488_v22 = vld [vmem:[#allocation4 + $0x180] sm:$0xff]  ;;  %v16123_v32 = vld [vmem:[#allocation156_spill] sm:$0xff] }
 0x2d4   :  { %v1435_v5 = vpop.f32.mrf.mxu1  ;;  %v1884_v40 = vmul.f32 %v1628_v17, %v16123_v32  ;;  %v1485_v27 = vld [vmem:[#allocation4 + $0x168] sm:$0xff]  ;;  %v1553_v17 = vmul.f32 %v11987_v3, %v1488_v22  ;;  %v16129_v32 = vld [vmem:[#allocation153_spill] sm:$0xff]  ;;  %v16133_v22 = vld [vmem:[#allocation151_spill] sm:$0xff] }
 0x2d5   :  { %1694 = vst [vmem:[#allocation4 + $0x1e8] sm:$0xff] %v1630_v34  ;;  %v1631_v26 = vadd.f32 %v1567_v60, %v1435_v5  ;;  %v1886_v51 = vmul.f32 %v1630_v34, %v16120_v21  ;;  %v1487_v60 = vld [vmem:[#allocation4 + $0x178] sm:$0xff]  ;;  %v1555_v5 = vmul.f32 %v11987_v3, %v1490_v55  ;;  %v1554_v34 = vmul.f32 %v11987_v3, %v1489_v20  ;;  %v1484_v55 = vld [vmem:[#allocation4 + $0x160] sm:$0xff]  ;;  %v16132_v20 = vld [vmem:[#allocation92_spill] sm:$0xff] }
 0x2d6   :  { %v1437_v19 = vpop.f32.mrf.mxu1  ;;  %v16127_v21 = vld [vmem:[#allocation154_spill] sm:$0xff] }
 0x2d7   :  { %1695 = vst [vmem:[#allocation4 + $0x1f0] sm:$0xff] %v1631_v26  ;;  %v1632_v16 = vadd.f32 %v1568_v23, %v1437_v19  ;;  %v1887_v35 = vmul.f32 %v1631_v26, %v16119_v0  ;;  %v16125_v23 = vld [vmem:[#allocation155_spill] sm:$0xff] }
 0x2d8   :  { %v1883_v19 = vmul.f32 %v1627_v1, %v16125_v23  ;;  %v16126_v26 = vld [vmem:[#allocation95_spill] sm:$0xff]  ;;  %v1552_v1 = vmul.f32 %v11987_v3, %v1487_v60  ;;  %v12293_v60 = vadd.f32 %v1554_v34, %v12233_v39 }
 0x2d9   :  { %1696 = vst [vmem:[#allocation4 + $0x1f8] sm:$0xff] %v1632_v16  ;;  %v1888_v63 = vmul.f32 %v1632_v16, %v16121_v7  ;;  %v1951_v0 = vadd.f32 %v1887_v35, %v16126_v26  ;;  %v1882_v16 = vmul.f32 %v1626_v4, %v16127_v21  ;;  %v16128_v7 = vld [vmem:[#allocation94_spill] sm:$0xff]  ;;  %v16131_v35 = vld [vmem:[#allocation152_spill] sm:$0xff]  ;;  %v1948_v4 = vadd.f32 %v1884_v40, %v16132_v20 }
 0x2da   :  { %v1950_v28 = vadd.f32 %v1886_v51, %v16128_v7  ;;  %v1880_v26 = vmul.f32 %v12255_v37, %v16131_v35  ;;  %v12286_v51 = vadd.f32 %v1555_v5, %v12236_v36  ;;  %v16135_v37 = vld [vmem:[#allocation150_spill] sm:$0xff]  ;;  %v1549_v36 = vmul.f32 %v11987_v3, %v1484_v55  ;;  %v16140_v55 = vld [vmem:[#allocation88_spill] sm:$0xff] }
 0x2db   :  { %v1952_v57 = vadd.f32 %v1888_v63, %v16124_v29  ;;  %v1881_v63 = vmul.f32 %v1625_v33, %v16129_v32  ;;  %v16130_v29 = vld [vmem:[#allocation93_spill] sm:$0xff]  ;;  %v1879_v33 = vmul.f32 %v12251_v8, %v16133_v22  ;;  %v16134_v32 = vld [vmem:[#allocation91_spill] sm:$0xff]  ;;  %v16136_v40 = vld [vmem:[#allocation90_spill] sm:$0xff]  ;;  %v12300_v5 = vadd.f32 %v1553_v17, %v12229_v61 }
 0x2dc   :  { %v1949_v59 = vadd.f32 %v1885_v56, %v16130_v29  ;;  %v1947_v56 = vadd.f32 %v1883_v19, %v16134_v32  ;;  %v16137_v8 = vld [vmem:[#allocation149_spill] sm:$0xff]  ;;  %v12307_v34 = vadd.f32 %v1552_v1, %v12225_v2  ;;  %v10830_v2 = vld [vmem:[#allocation4 + $0x148] sm:$0xff] }
 0x2dd   :  { %2140 = vmatprep.subr.mxu0 %v1952_v57  ;;  %v1551_v57 = vmul.f32 %v11987_v3, %v1486_v31  ;;  %v1946_v31 = vadd.f32 %v1882_v16, %v16136_v40  ;;  %v1877_v19 = vmul.f32 %v12243_v48, %v16137_v8  ;;  %v10829_v61 = vld [vmem:[#allocation4 + $0x150] sm:$0xff]  ;;  %v1546_v1 = vmul.f32 %v10830_v2, %v11987_v3  ;;  %v16179_v8 = vld [vmem:[#allocation163_spill] sm:$0xff]  ;;  %v16180_v22 = vld [vmem:[#allocation164_spill] sm:$0xff] }
 0x2de   :  { %2141 = vmatpush2.msra.mxu0 %v1951_v0  ;;  %v1550_v0 = vmul.f32 %v11987_v3, %v1485_v27  ;;  %v10828_v27 = vld [vmem:[#allocation4 + $0x158] sm:$0xff]  ;;  %v1547_v17 = vmul.f32 %v10829_v61, %v11987_v3 }
 0x2df   :  { %2142 = vmatprep.subr.mxu0 %v1950_v28  ;;  %v1878_v28 = vmul.f32 %v12247_v12, %v16135_v37  ;;  %v1548_v39 = vmul.f32 %v10828_v27, %v11987_v3  ;;  %v16139_v12 = vld [vmem:[#allocation148_spill] sm:$0xff]  ;;  %v12314_v48 = vadd.f32 %v1551_v57, %v12217_v9  ;;  %v16144_v61 = vld [vmem:[#allocation86_spill] sm:$0xff]  ;;  %v10831_v9 = vld [vmem:[#allocation4 + $0x140] sm:$0xff] }
 0x2e0   :  { %2143 = vmatpush2.msra.mxu0 %v1949_v59  ;;  %v16138_v59 = vld [vmem:[#allocation89_spill] sm:$0xff]  ;;  %v1876_v16 = vmul.f32 %v12239_v6, %v16139_v12  ;;  %v12321_v6 = vadd.f32 %v1550_v0, %v12209_v58  ;;  %v1545_v57 = vmul.f32 %v10831_v9, %v11987_v3  ;;  %v10832_v58 = vld [vmem:[#allocation4 + $0x138] sm:$0xff]  ;;  %v16148_v9 = vld [vmem:[#allocation84_spill] sm:$0xff] }
 0x2e1   :  { %2144 = vmatprep.subr.mxu0 %v1948_v4  ;;  %v1945_v32 = vadd.f32 %v1881_v63, %v16138_v59  ;;  %v1944_v4 = vadd.f32 %v1880_v26, %v16140_v55  ;;  %v16141_v63 = vld [vmem:[#allocation147_spill] sm:$0xff]  ;;  %v1942_v55 = vadd.f32 %v1878_v28, %v16144_v61  ;;  %v1544_v0 = vmul.f32 %v10832_v58, %v11987_v3 }
 0x2e2   :  { %2145 = vmatpush2.msra.mxu0 %v1947_v56  ;;  %v1875_v56 = vmul.f32 %v12286_v51, %v16141_v63  ;;  %v16142_v59 = vld [vmem:[#allocation87_spill] sm:$0xff]  ;;  %v12328_v63 = vadd.f32 %v1549_v36, %v12201_v49  ;;  %v1940_v61 = vadd.f32 %v1876_v16, %v16148_v9  ;;  %v10833_v49 = vld [vmem:[#allocation4 + $0x130] sm:$0xff] }
 0x2e3   :  { %2146 = vmatprep.subr.mxu0 %v1946_v31  ;;  %v1943_v27 = vadd.f32 %v1879_v33, %v16142_v59  ;;  %v16143_v31 = vld [vmem:[#allocation146_spill] sm:$0xff]  ;;  %v16145_v33 = vld [vmem:[#allocation145_spill] sm:$0xff]  ;;  %v1543_v36 = vmul.f32 %v10833_v49, %v11987_v3 }
 0x2e4   :  { %2147 = vmatpush2.msra.mxu0 %v1945_v32  ;;  %v1874_v26 = vmul.f32 %v12293_v60, %v16143_v31  ;;  %v1873_v32 = vmul.f32 %v12300_v5, %v16145_v33  ;;  %v16146_v59 = vld [vmem:[#allocation85_spill] sm:$0xff]  ;;  %v12335_v31 = vadd.f32 %v1548_v39, %v12193_v30  ;;  %v12342_v33 = vadd.f32 %v1547_v17, %v12185_v43  ;;  %v10834_v30 = vld [vmem:[#allocation4 + $0x128] sm:$0xff]  ;;  %v16152_v49 = vld [vmem:[#allocation82_spill] sm:$0xff] }
 0x2e5   :  { %2148 = vmatprep.subr.mxu0 %v1944_v4  ;;  %v1941_v2 = vadd.f32 %v1877_v19, %v16146_v59  ;;  %v16147_v4 = vld [vmem:[#allocation144_spill] sm:$0xff]  ;;  %v16149_v19 = vld [vmem:[#allocation143_spill] sm:$0xff]  ;;  %v1542_v39 = vmul.f32 %v10834_v30, %v11987_v3 }
 0x2e6   :  { %2149 = vmatpush2.msra.mxu0 %v1943_v27  ;;  %v1872_v28 = vmul.f32 %v12307_v34, %v16147_v4  ;;  %v1871_v27 = vmul.f32 %v12314_v48, %v16149_v19  ;;  %v16150_v59 = vld [vmem:[#allocation83_spill] sm:$0xff]  ;;  %v12349_v4 = vadd.f32 %v1546_v1, %v12177_v18  ;;  %v1938_v9 = vadd.f32 %v1874_v26, %v16152_v49  ;;  %v10836_v18 = vld [vmem:[#allocation4 + $0x118] sm:$0xff] }
 0x2e7   :  { %2150 = vmatprep.subr.mxu0 %v1942_v55  ;;  %v1939_v58 = vadd.f32 %v1875_v56, %v16150_v59  ;;  %v16151_v55 = vld [vmem:[#allocation142_spill] sm:$0xff]  ;;  %v10835_v43 = vld [vmem:[#allocation4 + $0x120] sm:$0xff]  ;;  %v12356_v19 = vadd.f32 %v1545_v57, %v12169_v38  ;;  %v16153_v56 = vld [vmem:[#allocation141_spill] sm:$0xff]  ;;  %v1540_v1 = vmul.f32 %v10836_v18, %v11987_v3 }
 0x2e8   :  { %2151 = vmatpush2.msra.mxu0 %v1941_v2  ;;  %v1870_v16 = vmul.f32 %v12321_v6, %v16151_v55  ;;  %v1541_v17 = vmul.f32 %v10835_v43, %v11987_v3  ;;  %v1869_v2 = vmul.f32 %v12328_v63, %v16153_v56  ;;  %v16154_v59 = vld [vmem:[#allocation81_spill] sm:$0xff]  ;;  %v12363_v55 = vadd.f32 %v1544_v0, %v12161_v45  ;;  %v16156_v43 = vld [vmem:[#allocation80_spill] sm:$0xff] }
 0x2e9   :  { %2152 = vmatprep.subr.mxu0 %v1940_v61  ;;  %v1937_v30 = vadd.f32 %v1873_v32, %v16154_v59  ;;  %v16155_v61 = vld [vmem:[#allocation140_spill] sm:$0xff]  ;;  %v1936_v49 = vadd.f32 %v1872_v28, %v16156_v43  ;;  %v10837_v38 = vld [vmem:[#allocation4 + $0x110] sm:$0xff]  ;;  %v12370_v56 = vadd.f32 %v1543_v36, %v12153_v41  ;;  %v16157_v32 = vld [vmem:[#allocation139_spill] sm:$0xff] }
 0x2ea   :  { %2153 = vmatpush2.msra.mxu0 %v1939_v58  ;;  %v1868_v26 = vmul.f32 %v12335_v31, %v16155_v61  ;;  %v1539_v57 = vmul.f32 %v10837_v38, %v11987_v3  ;;  %v1867_v58 = vmul.f32 %v12342_v33, %v16157_v32  ;;  %v16158_v59 = vld [vmem:[#allocation79_spill] sm:$0xff]  ;;  %v10838_v45 = vld [vmem:[#allocation4 + $0x108] sm:$0xff]  ;;  %v12377_v61 = vadd.f32 %v1542_v39, %v12145_v13  ;;  %v16160_v38 = vld [vmem:[#allocation78_spill] sm:$0xff] }
 0x2eb   :  { %2154 = vmatprep.subr.mxu0 %v1938_v9  ;;  %v1935_v18 = vadd.f32 %v1871_v27, %v16158_v59  ;;  %v1538_v0 = vmul.f32 %v10838_v45, %v11987_v3  ;;  %v16159_v9 = vld [vmem:[#allocation138_spill] sm:$0xff]  ;;  %v1934_v43 = vadd.f32 %v1870_v16, %v16160_v38  ;;  %v10839_v41 = vld [vmem:[#allocation4 + $0x100] sm:$0xff]  ;;  %v12384_v32 = vadd.f32 %v1541_v17, %v12137_v24  ;;  %v16161_v27 = vld [vmem:[#allocation137_spill] sm:$0xff] }
 0x2ec   :  { %2155 = vmatpush2.msra.mxu0 %v1937_v30  ;;  %v1866_v28 = vmul.f32 %v12349_v4, %v16159_v9  ;;  %v1537_v36 = vmul.f32 %v10839_v41, %v11987_v3  ;;  %v1865_v30 = vmul.f32 %v12356_v19, %v16161_v27  ;;  %v16162_v59 = vld [vmem:[#allocation77_spill] sm:$0xff]  ;;  %v12390_v13 = vadd.f32 %v1540_v1, %v12130_v47  ;;  %v16163_v39 = vld [vmem:[#allocation136_spill] sm:$0xff]  ;;  %v16165_v24 = vld [vmem:[#allocation135_spill] sm:$0xff] }
 0x2ed   :  { %2156 = vmatprep.subr.mxu0 %v1936_v49  ;;  %v1933_v45 = vadd.f32 %v1869_v2, %v16162_v59  ;;  %v1864_v49 = vmul.f32 %v12363_v55, %v16163_v39  ;;  %v16164_v16 = vld [vmem:[#allocation76_spill] sm:$0xff]  ;;  %v12396_v41 = vadd.f32 %v1539_v57, %v12124_v10  ;;  %v1863_v17 = vmul.f32 %v12370_v56, %v16165_v24  ;;  %v16166_v9 = vld [vmem:[#allocation75_spill] sm:$0xff]  ;;  %v16167_v47 = vld [vmem:[#allocation134_spill] sm:$0xff] }
 0x2ee   :  { %2157 = vmatpush2.msra.mxu0 %v1935_v18  ;;  %v1932_v38 = vadd.f32 %v1868_v26, %v16164_v16  ;;  %v1931_v27 = vadd.f32 %v1867_v58, %v16166_v9  ;;  %v12402_v2 = vadd.f32 %v1538_v0, %v12118_v54  ;;  %v1862_v1 = vmul.f32 %v12377_v61, %v16167_v47  ;;  %v16168_v18 = vld [vmem:[#allocation74_spill] sm:$0xff]  ;;  %v16169_v57 = vld [vmem:[#allocation73_spill] sm:$0xff]  ;;  %v16170_v54 = vld [vmem:[#allocation72_spill] sm:$0xff] }
 0x2ef   :  { %2158 = vmatprep.subr.mxu0 %v1934_v43  ;;  %v1930_v43 = vadd.f32 %v1866_v28, %v16168_v18  ;;  %v12408_v26 = vadd.f32 %v1537_v36, %v12113_v11  ;;  %v1861_v10 = vmul.f32 %v12384_v32, %v16044_v46  ;;  %v1929_v24 = vadd.f32 %v1865_v30, %v16169_v57  ;;  %v16171_v30 = vld [vmem:[#allocation69_spill] sm:$0xff] }
 0x2f0   :  { %2159 = vmatpush2.msra.mxu0 %v1933_v45  ;;  %v1860_v58 = vmul.f32 %v12390_v13, %v16046_v42  ;;  %v1928_v0 = vadd.f32 %v1864_v49, %v16170_v54  ;;  %v1927_v28 = vadd.f32 %v1863_v17, %v16047_v50  ;;  %v1858_v11 = vmul.f32 %v12402_v2, %v16050_v44  ;;  %v16172_v49 = vld [vmem:[#allocation68_spill] sm:$0xff]  ;;  %v16173_v54 = vld [vmem:[#allocation67_spill] sm:$0xff]  ;;  %v16175_v50 = vld [vmem:[#allocation65_spill] sm:$0xff] }
 0x2f1   :  { %2160 = vmatprep.subr.mxu0 %v1932_v38  ;;  %v1859_v38 = vmul.f32 %v12396_v41, %v16048_v53  ;;  %v1926_v36 = vadd.f32 %v1862_v1, %v16049_v14  ;;  %v1925_v45 = vadd.f32 %v1861_v10, %v16171_v30  ;;  %v10840_v1 = vld [vmem:[#allocation2] ss:$8 sm:$0x3]  ;;  %v16177_v10 = vmov 0.0  }
 0x2f2   :  { %2161 = vmatpush2.msra.mxu0 %v1931_v27  ;;  %v1857_v27 = vmul.f32 %v12408_v26, %v16052_v25  ;;  %v16178_v25 = vld [vmem:[#allocation161_spill] sm:$0xff] }
 0x2f3   :  { %2162 = vmatprep.subr.mxu0 %v1930_v43  ;;  %v1924_v43 = vadd.f32 %v1860_v58, %v16172_v49  ;;  %v1923_v53 = vadd.f32 %v1859_v38, %v16173_v54 }
 0x2f4   :  { %2163 = vmatpush2.msra.mxu0 %v1929_v24  ;;  %v16174_v24 = vld [vmem:[#allocation66_spill] sm:$0xff]  ;;  %v1921_v44 = vadd.f32 %v1857_v27, %v16175_v50 }
 0x2f5   :  { %2164 = vmatprep.subr.mxu0 %v1928_v0  ;;  %v1922_v17 = vadd.f32 %v1858_v11, %v16174_v24  ;;  %v16176_v0 = vld [vmem:[#allocation162_spill] sm:$0xff]  ;;  %v2085_v24 = vld [vmem:[#allocation13 + $0x1] ss:$8 sm:$0x3] }
 0x2f6   :  { %2165 = vmatpush2.msra.mxu0 %v1927_v28  ;;  %v2090_v14 = vrot.slane %v10840_v1, %v16176_v0  ;;  %v2244_v28 = vpop.trf.xlu1  ;;  %v2101_v54 = vrot.slane %v2085_v24, %v16176_v0  ;;  %v2105_v42 = vrot.slane %v2085_v24, %v16178_v25 }
 0x2f7   :  { %2166 = vmatprep.subr.mxu0 %v1926_v36 }
 0x2f8   :  { %2167 = vmatpush2.msra.mxu0 %v1925_v45 }
 0x2f9   :  { %2168 = vmatprep.subr.mxu0 %v1924_v43 }
 0x2fa   :  { %2169 = vmatpush2.msra.mxu0 %v1923_v53  ;;  %v2245_v36 = vpop.trf.xlu1 }
 0x2fb   :  { %2170 = vmatprep.subr.mxu0 %v1922_v17 }
 0x2fc   :  { %2171 = vmatpush2.msra.mxu0 %v1921_v44 }
 0x2fd   :  { %2173 = vmatmul.mubr.f32.vlgmr.msra.gmra.mxu0 %v2090_v14 }
 0x2fe   :  { %2452 = vmatprep.mubr.f32.mxu0 %v16177_v10  ;;  %v2246_v58 = vpop.trf.xlu1 }
 0x302   :  { %v12431_v49 = vpop.trf.xlu1 }
 0x306   :  { %v12433_v38 = vpop.trf.xlu1 }
 0x30a   :  { %v12435_v45 = vpop.trf.xlu1 }
 0x30e   :  { %v12437_v11 = vpop.trf.xlu1 }
 0x312   :  { %v12439_v53 = vpop.trf.xlu1 }
 0x316   :  { %v12441_v27 = vpop.trf.xlu1 }
 0x31a   :  { %v12443_v43 = vpop.trf.xlu1 }
 0x31e   :  { %v12445_v14 = vpop.trf.xlu1 }
 0x322   :  { %v12447_v44 = vpop.trf.xlu1 }
 0x326   :  { %v12449_v17 = vpop.trf.xlu1 }
 0x32a   :  { %v12451_v1 = vpop.trf.xlu1 }
 0x32e   :  { %v12453_v50 = vpop.trf.xlu1 }
 0x332   :  { %v12456_v30 = vpop.trf.xlu1 }
 0x336   :  { %v2276_v9 = vpop.trf.xlu1 }
 0x33a   :  { %v2277_v16 = vpop.trf.xlu1 }
 0x33e   :  { %v2278_v59 = vpop.trf.xlu1 }
 0x342   :  { %v2279_v24 = vpop.trf.xlu1 }
 0x3bd   :  { %v2174_v57 = vpop.f32.mrf.mxu0 }
 0x3be   :  { %v2175_v46 = vadd.f32 %v2174_v57, %v2101_v54 }
 0x3bf   :  { %v2176_v18 = vpop.f32.mrf.mxu0 }
 0x3c0   :  { %10800 = vtanh.f32 %v2175_v46  ;;  %v2177_v47 = vadd.f32 %v2176_v18, %v2105_v42 }
 0x3c2   :  { %10802 = vtanh.f32 %v2177_v47 }
 0x3cd   :  { %v10801_v39 = vpop.eup %10800 }
 0x3ce   :  { %v2202_v40 = vmul.f32 %v10801_v39, %v16179_v8 }
 0x3cf   :  { %v10803_v12 = vpop.eup %10802 }
 0x3d0   :  { %v2183_v37 = vcombine.low %v10801_v39, %v10803_v12  ;;  %v2203_v0 = vmul.f32 %v10803_v12, %v16179_v8  ;;  %v2280_v12 = vpop.trf.xlu1 }
 0x3d2   :  { %v2190_v20 = vrot.slane %v2183_v37, %v16180_v22  ;;  %v2206_v35 = vcombine.low %v2202_v40, %v2203_v0 }
 0x3d4   :  { %v2197_v57 = vrot.slane %v2190_v20, %v16180_v22  ;;  %v2213_v46 = vrot.slane %v2206_v35, %v16180_v22  ;;  %v2281_v18 = vpop.trf.xlu1 }
 0x3d6   :  { %2200 = vst.msk [vmem:[#allocation16 + $0x1] ss:$8 sm:$0x3] %vm11909_vm0, %v2197_v57  ;;  %v2220_v47 = vrot.slane %v2213_v46, %v16180_v22  ;;  %3221 = vst.msk [vmem:[#allocation2] ss:$8 sm:$0x3] %vm11909_vm0, %v2197_v57 }
 0x3d8   :  { %2222 = vst.msk [vmem:[#allocation3] ss:$8 sm:$0x3] %vm11909_vm0, %v2220_v47  ;;  %v2282_v35 = vpop.trf.xlu1  ;;  %v2648_v47 = vld [vmem:[#allocation4 + $0x18] sm:$0xff] }
 0x3dd   :  { %v3429_v39 = vld [vmem:[#allocation2 + $0x8] sm:$0xff]  ;;  %v3428_v37 = vld [vmem:[#allocation2] sm:$0xff] }
 0x3de   :  { %3464 = vxpose.xlu1.b32.start.end [1/1] (short) %v3429_v39, 128  ;;  %3432 = vxpose.xlu0.b32.start.end [1/1] (short) %v3428_v37, 128 }
 0x3df   :  { %v2227_v40 = vld [vmem:[#allocation3 + $0x8] sm:$0xff]  ;;  %v2226_v20 = vld [vmem:[#allocation3] sm:$0xff] }
 0x3e0   :  { %2418 = vmatprep.subr.mxu0 %v2227_v40  ;;  %10787 = vmatprep.subr.mxu1 %v2227_v40 }
 0x3e1   :  { %2419 = vmatpush1.msra.mxu0 %v2226_v20  ;;  %10788 = vmatpush1.msra.mxu1 %v2226_v20  ;;  %v2743_v20 = vmul.f32 %v12396_v41, %v11987_v3 }
 0x3e2   :  { %10559 = vmatmul.mubr.msk.f32.vlgmr.msra.gmra.mxu0 %vm1086_vm1, %v2244_v28  ;;  %10575 = vmatmul.mubr.msk.f32.vlgmr.msra.gmra.mxu1 %vm1086_vm1, %v2276_v9  ;;  %v2283_v9 = vpop.trf.xlu1 }
 0x3e3   :  { %2458 = vmatprep.mubr.f32.mxu0 %v16177_v10  ;;  %2554 = vmatprep.mubr.f32.mxu1 %v16177_v10 }
 0x3e6   :  { %10560 = vmatmul.mubr.msk.f32.gmra.mxu0 %vm1086_vm1, %v2245_v36  ;;  %10576 = vmatmul.mubr.msk.f32.gmra.mxu1 %vm1086_vm1, %v2277_v16  ;;  %v2284_v16 = vpop.trf.xlu1 }
 0x3e7   :  { %2464 = vmatprep.mubr.f32.mxu0 %v16177_v10  ;;  %2560 = vmatprep.mubr.f32.mxu1 %v16177_v10 }
 0x3ea   :  { %10561 = vmatmul.mubr.msk.f32.gmra.mxu0 %vm1086_vm1, %v2246_v58  ;;  %10577 = vmatmul.mubr.msk.f32.gmra.mxu1 %vm1086_vm1, %v2278_v59  ;;  %v2285_v59 = vpop.trf.xlu1  ;;  %v12541_v58 = vld [vmem:[#allocation2] ss:$8 sm:$0x3] }
 0x3eb   :  { %2470 = vmatprep.mubr.f32.mxu0 %v16177_v10  ;;  %2566 = vmatprep.mubr.f32.mxu1 %v16177_v10  ;;  %16182 = vst [vmem:[#allocation166_spill] sm:$0xff] %v12541_v58 }
 0x3ee   :  { %10562 = vmatmul.mubr.msk.f32.gmra.mxu0 %vm1086_vm1, %v12431_v49  ;;  %10578 = vmatmul.mubr.msk.f32.gmra.mxu1 %vm1086_vm1, %v2279_v24  ;;  %v2286_v54 = vpop.trf.xlu1  ;;  %v2647_v24 = vld [vmem:[#allocation4 + $0x10] sm:$0xff] }
 0x3ef   :  { %2476 = vmatprep.mubr.f32.mxu0 %v16177_v10  ;;  %2572 = vmatprep.mubr.f32.mxu1 %v16177_v10  ;;  %v2711_v37 = vmul.f32 %v2647_v24, %v11987_v3 }
 0x3f2   :  { %10563 = vmatmul.mubr.msk.f32.gmra.mxu0 %vm1086_vm1, %v12433_v38  ;;  %10579 = vmatmul.mubr.msk.f32.gmra.mxu1 %vm1086_vm1, %v2280_v12  ;;  %v2287_v49 = vpop.trf.xlu1 }
 0x3f3   :  { %2482 = vmatprep.mubr.f32.mxu0 %v16177_v10  ;;  %2578 = vmatprep.mubr.f32.mxu1 %v16177_v10 }
 0x3f6   :  { %10564 = vmatmul.mubr.msk.f32.gmra.mxu0 %vm1086_vm1, %v12435_v45  ;;  %10580 = vmatmul.mubr.msk.f32.gmra.mxu1 %vm1086_vm1, %v2281_v18  ;;  %v2288_v0 = vpop.trf.xlu1  ;;  %v3298_v45 = vrot.slane %v12541_v58, %v16178_v25  ;;  %v2712_v18 = vmul.f32 %v2648_v47, %v11987_v3  ;;  %v2747_v47 = vmul.f32 %v12370_v56, %v11987_v3 }
 0x3f7   :  { %2488 = vmatprep.mubr.f32.mxu0 %v16177_v10  ;;  %2584 = vmatprep.mubr.f32.mxu1 %v16177_v10 }
 0x3fa   :  { %10565 = vmatmul.mubr.msk.f32.gmra.mxu0 %vm1086_vm1, %v12437_v11  ;;  %10581 = vmatmul.mubr.msk.f32.gmra.mxu1 %vm1086_vm1, %v2282_v35  ;;  %v2289_v28 = vpop.trf.xlu1  ;;  %v2645_v11 = vld [vmem:[#allocation4] sm:$0xff]  ;;  %v2744_v35 = vmul.f32 %v12390_v13, %v11987_v3 }
 0x3fb   :  { %2494 = vmatprep.mubr.f32.mxu0 %v16177_v10  ;;  %2590 = vmatprep.mubr.f32.mxu1 %v16177_v10 }
 0x3fe   :  { %10566 = vmatmul.mubr.msk.f32.gmra.mxu0 %vm1086_vm1, %v12439_v53  ;;  %10582 = vmatmul.mubr.msk.f32.gmra.mxu1 %vm1086_vm1, %v2283_v9  ;;  %v2290_v36 = vpop.trf.xlu1  ;;  %v2709_v53 = vmul.f32 %v2645_v11, %v11987_v3 }
 0x3ff   :  { %2500 = vmatprep.mubr.f32.mxu0 %v16177_v10  ;;  %2596 = vmatprep.mubr.f32.mxu1 %v16177_v10 }
 0x402   :  { %10567 = vmatmul.mubr.msk.f32.gmra.mxu0 %vm1086_vm1, %v12441_v27  ;;  %10583 = vmatmul.mubr.msk.f32.gmra.mxu1 %vm1086_vm1, %v2284_v16  ;;  %v2291_v38 = vpop.trf.xlu1  ;;  %v2741_v27 = vmul.f32 %v12408_v26, %v11987_v3 }
 0x403   :  { %2506 = vmatprep.mubr.f32.mxu0 %v16177_v10  ;;  %2602 = vmatprep.mubr.f32.mxu1 %v16177_v10 }
 0x406   :  { %10568 = vmatmul.mubr.msk.f32.gmra.mxu0 %vm1086_vm1, %v12443_v43  ;;  %10584 = vmatmul.mubr.msk.f32.gmra.mxu1 %vm1086_vm1, %v2285_v59 }
 0x407   :  { %2512 = vmatprep.mubr.f32.mxu0 %v16177_v10  ;;  %2608 = vmatprep.mubr.f32.mxu1 %v16177_v10 }
 0x40a   :  { %10569 = vmatmul.mubr.msk.f32.gmra.mxu0 %vm1086_vm1, %v12445_v14  ;;  %10585 = vmatmul.mubr.msk.f32.gmra.mxu1 %vm1086_vm1, %v2286_v54 }
 0x40b   :  { %2518 = vmatprep.mubr.f32.mxu0 %v16177_v10  ;;  %2614 = vmatprep.mubr.f32.mxu1 %v16177_v10 }
 0x40e   :  { %10570 = vmatmul.mubr.msk.f32.gmra.mxu0 %vm1086_vm1, %v12447_v44  ;;  %10586 = vmatmul.mubr.msk.f32.gmra.mxu1 %vm1086_vm1, %v2287_v49  ;;  %v2650_v49 = vld [vmem:[#allocation4 + $0x28] sm:$0xff] }
 0x40f   :  { %2524 = vmatprep.mubr.f32.mxu0 %v16177_v10  ;;  %2620 = vmatprep.mubr.f32.mxu1 %v16177_v10 }
 0x412   :  { %10571 = vmatmul.mubr.msk.f32.gmra.mxu0 %vm1086_vm1, %v12449_v17  ;;  %10587 = vmatmul.mubr.msk.f32.gmra.mxu1 %vm1086_vm1, %v2288_v0 }
 0x413   :  { %2530 = vmatprep.mubr.f32.mxu0 %v16177_v10  ;;  %2626 = vmatprep.mubr.f32.mxu1 %v16177_v10 }
 0x416   :  { %10572 = vmatmul.mubr.msk.f32.gmra.mxu0 %vm1086_vm1, %v12451_v1  ;;  %10588 = vmatmul.mubr.msk.f32.gmra.mxu1 %vm1086_vm1, %v2289_v28 }
 0x417   :  { %2536 = vmatprep.mubr.f32.mxu0 %v16177_v10  ;;  %2632 = vmatprep.mubr.f32.mxu1 %v16177_v10 }
 0x41a   :  { %10573 = vmatmul.mubr.msk.f32.gmra.mxu0 %vm1086_vm1, %v12453_v50  ;;  %10589 = vmatmul.mubr.msk.f32.gmra.mxu1 %vm1086_vm1, %v2290_v36  ;;  %v2646_v50 = vld [vmem:[#allocation4 + $0x8] sm:$0xff]  ;;  %v2745_v36 = vmul.f32 %v12384_v32, %v11987_v3  ;;  %v2651_v32 = vld [vmem:[#allocation4 + $0x30] sm:$0xff] }
 0x41b   :  { %2542 = vmatprep.mubr.f32.mxu0 %v16177_v10  ;;  %2638 = vmatprep.mubr.f32.mxu1 %v16177_v10  ;;  %v2710_v1 = vmul.f32 %v2646_v50, %v11987_v3  ;;  %v2714_v50 = vmul.f32 %v2650_v49, %v11987_v3  ;;  %v2749_v49 = vmul.f32 %v12356_v19, %v11987_v3  ;;  %v2655_v19 = vld [vmem:[#allocation4 + $0x50] sm:$0xff]  ;;  %v2701_v10 = vld [vmem:[#allocation4 + $0x1c0] sm:$0xff] }
 0x41e   :  { %10574 = vmatmul.mubr.msk.f32.gmra.mxu0 %vm1086_vm1, %v12456_v30  ;;  %10590 = vmatmul.mubr.msk.f32.gmra.mxu1 %vm1086_vm1, %v2291_v38  ;;  %v2742_v30 = vmul.f32 %v12402_v2, %v11987_v3  ;;  %v2649_v2 = vld [vmem:[#allocation4 + $0x20] sm:$0xff] }
 0x41f   :  { %3376 = vmatprep.mubr.f32.mxu0 %v3298_v45  ;;  %v2713_v28 = vmul.f32 %v2649_v2, %v11987_v3 }
 0x4a2   :  { %v2454_v43 = vpop.f32.mrf.mxu0  ;;  %v2550_v14 = vpop.f32.mrf.mxu1 }
 0x4a3   :  { %v12553_v44 = vadd.f32 %v2709_v53, %v2454_v43  ;;  %v12555_v17 = vadd.f32 %v2741_v27, %v2550_v14  ;;  %v2746_v53 = vmul.f32 %v12377_v61, %v11987_v3  ;;  %v2652_v14 = vld [vmem:[#allocation4 + $0x38] sm:$0xff]  ;;  %v2653_v61 = vld [vmem:[#allocation4 + $0x40] sm:$0xff] }
 0x4a4   :  { %v2456_v57 = vpop.f32.mrf.mxu0  ;;  %v2552_v46 = vpop.f32.mrf.mxu1 }
 0x4a5   :  { %16183 = vst [vmem:[#allocation167_spill] sm:$0xff] %v12555_v17  ;;  %2837 = vst [vmem:[#allocation4] sm:$0xff] %v12553_v44  ;;  %v12562_v26 = vadd.f32 %v2710_v1, %v2456_v57  ;;  %v12564_v12 = vadd.f32 %v2742_v30, %v2552_v46  ;;  %v2715_v57 = vmul.f32 %v2651_v32, %v11987_v3 }
 0x4a6   :  { %2869 = vst [vmem:[#allocation4 + $0x100] sm:$0xff] %v12555_v17  ;;  %v2460_v39 = vpop.f32.mrf.mxu0  ;;  %v2556_v40 = vpop.f32.mrf.mxu1  ;;  %v2702_v17 = vld [vmem:[#allocation4 + $0x1c8] sm:$0xff] }
 0x4a7   :  { %16184 = vst [vmem:[#allocation168_spill] sm:$0xff] %v12564_v12  ;;  %2838 = vst [vmem:[#allocation4 + $0x8] sm:$0xff] %v12562_v26  ;;  %v12574_v9 = vadd.f32 %v2711_v37, %v2460_v39  ;;  %v12576_v16 = vadd.f32 %v2743_v20, %v2556_v40  ;;  %v2716_v39 = vmul.f32 %v2652_v14, %v11987_v3 }
 0x4a8   :  { %2870 = vst [vmem:[#allocation4 + $0x108] sm:$0xff] %v12564_v12  ;;  %v2462_v59 = vpop.f32.mrf.mxu0  ;;  %v2558_v54 = vpop.f32.mrf.mxu1  ;;  %v2748_v37 = vmul.f32 %v12363_v55, %v11987_v3 }
 0x4a9   :  { %16185 = vst [vmem:[#allocation169_spill] sm:$0xff] %v12576_v16  ;;  %v12578_v0 = vadd.f32 %v2712_v18, %v2462_v59  ;;  %v12580_v41 = vadd.f32 %v2744_v35, %v2558_v54  ;;  %2839 = vst [vmem:[#allocation4 + $0x10] sm:$0xff] %v12574_v9  ;;  %v2654_v35 = vld [vmem:[#allocation4 + $0x48] sm:$0xff]  ;;  %v2717_v54 = vmul.f32 %v2653_v61, %v11987_v3 }
 0x4aa   :  { %2871 = vst [vmem:[#allocation4 + $0x110] sm:$0xff] %v12576_v16  ;;  %v2466_v13 = vpop.f32.mrf.mxu0  ;;  %v2562_v38 = vpop.f32.mrf.mxu1 }
 0x4ab   :  { %16186 = vst [vmem:[#allocation170_spill] sm:$0xff] %v12580_v41  ;;  %2840 = vst [vmem:[#allocation4 + $0x18] sm:$0xff] %v12578_v0  ;;  %v12589_v45 = vadd.f32 %v2713_v28, %v2466_v13  ;;  %v12591_v11 = vadd.f32 %v2745_v36, %v2562_v38  ;;  %v2718_v38 = vmul.f32 %v2654_v35, %v11987_v3 }
 0x4ac   :  { %2872 = vst [vmem:[#allocation4 + $0x118] sm:$0xff] %v12580_v41  ;;  %v2468_v27 = vpop.f32.mrf.mxu0  ;;  %v2564_v43 = vpop.f32.mrf.mxu1 }
 0x4ad   :  { %16187 = vst [vmem:[#allocation171_spill] sm:$0xff] %v12591_v11  ;;  %2841 = vst [vmem:[#allocation4 + $0x20] sm:$0xff] %v12589_v45  ;;  %v12598_v1 = vadd.f32 %v2714_v50, %v2468_v27  ;;  %v12600_v30 = vadd.f32 %v2746_v53, %v2564_v43  ;;  %v2750_v50 = vmul.f32 %v12349_v4, %v11987_v3  ;;  %v2656_v27 = vld [vmem:[#allocation4 + $0x58] sm:$0xff]  ;;  %v2657_v4 = vld [vmem:[#allocation4 + $0x60] sm:$0xff] }
 0x4ae   :  { %2873 = vst [vmem:[#allocation4 + $0x120] sm:$0xff] %v12591_v11  ;;  %v2472_v24 = vpop.f32.mrf.mxu0  ;;  %v2568_v46 = vpop.f32.mrf.mxu1  ;;  %v2720_v61 = vmul.f32 %v2656_v27, %v11987_v3  ;;  %v2704_v11 = vld [vmem:[#allocation4 + $0x1d8] sm:$0xff] }
 0x4af   :  { %16188 = vst [vmem:[#allocation172_spill] sm:$0xff] %v12600_v30  ;;  %2842 = vst [vmem:[#allocation4 + $0x28] sm:$0xff] %v12598_v1  ;;  %v12610_v40 = vadd.f32 %v2715_v57, %v2472_v24  ;;  %v12612_v20 = vadd.f32 %v2747_v47, %v2568_v46  ;;  %v2719_v57 = vmul.f32 %v2655_v19, %v11987_v3 }
 0x4b0   :  { %2874 = vst [vmem:[#allocation4 + $0x128] sm:$0xff] %v12600_v30  ;;  %v2474_v2 = vpop.f32.mrf.mxu0  ;;  %v2570_v18 = vpop.f32.mrf.mxu1  ;;  %v2751_v47 = vmul.f32 %v12342_v33, %v11987_v3 }
 0x4b1   :  { %16189 = vst [vmem:[#allocation173_spill] sm:$0xff] %v12612_v20  ;;  %v12614_v59 = vadd.f32 %v2716_v39, %v2474_v2  ;;  %v12616_v56 = vadd.f32 %v2748_v37, %v2570_v18  ;;  %2843 = vst [vmem:[#allocation4 + $0x30] sm:$0xff] %v12610_v40  ;;  %v2752_v39 = vmul.f32 %v12335_v31, %v11987_v3 }
 0x4b2   :  { %2875 = vst [vmem:[#allocation4 + $0x130] sm:$0xff] %v12612_v20  ;;  %v2478_v55 = vpop.f32.mrf.mxu0  ;;  %v2574_v28 = vpop.f32.mrf.mxu1  ;;  %v2705_v20 = vld [vmem:[#allocation4 + $0x1e0] sm:$0xff] }
 0x4b3   :  { %16190 = vst [vmem:[#allocation174_spill] sm:$0xff] %v12616_v56  ;;  %2844 = vst [vmem:[#allocation4 + $0x38] sm:$0xff] %v12614_v59  ;;  %v12625_v36 = vadd.f32 %v2717_v54, %v2478_v55  ;;  %v12627_v13 = vadd.f32 %v2749_v49, %v2574_v28  ;;  %v2658_v54 = vld [vmem:[#allocation4 + $0x68] sm:$0xff]  ;;  %v2721_v55 = vmul.f32 %v2657_v4, %v11987_v3 }
 0x4b4   :  { %2876 = vst [vmem:[#allocation4 + $0x138] sm:$0xff] %v12616_v56  ;;  %v2480_v53 = vpop.f32.mrf.mxu0  ;;  %v2576_v32 = vpop.f32.mrf.mxu1  ;;  %v2753_v28 = vmul.f32 %v12328_v63, %v11987_v3  ;;  %v2659_v63 = vld [vmem:[#allocation4 + $0x70] sm:$0xff] }
 0x4b5   :  { %16191 = vst [vmem:[#allocation175_spill] sm:$0xff] %v12627_v13  ;;  %2845 = vst [vmem:[#allocation4 + $0x40] sm:$0xff] %v12625_v36  ;;  %v12634_v43 = vadd.f32 %v2718_v38, %v2480_v53  ;;  %v12636_v14 = vadd.f32 %v2750_v50, %v2576_v32  ;;  %v2722_v53 = vmul.f32 %v2658_v54, %v11987_v3 }
 0x4b6   :  { %2877 = vst [vmem:[#allocation4 + $0x140] sm:$0xff] %v12627_v13  ;;  %v2484_v24 = vpop.f32.mrf.mxu0  ;;  %v2580_v46 = vpop.f32.mrf.mxu1  ;;  %v2754_v32 = vmul.f32 %v12321_v6, %v11987_v3  ;;  %v2661_v6 = vld [vmem:[#allocation4 + $0x80] sm:$0xff]  ;;  %v2756_v54 = vmul.f32 %v12307_v34, %v11987_v3  ;;  %v2706_v13 = vld [vmem:[#allocation4 + $0x1e8] sm:$0xff] }
 0x4b7   :  { %16192 = vst [vmem:[#allocation176_spill] sm:$0xff] %v12636_v14  ;;  %2846 = vst [vmem:[#allocation4 + $0x48] sm:$0xff] %v12634_v43  ;;  %v12646_v37 = vadd.f32 %v2719_v57, %v2484_v24  ;;  %v12648_v2 = vadd.f32 %v2751_v47, %v2580_v46  ;;  %v2660_v57 = vld [vmem:[#allocation4 + $0x78] sm:$0xff] }
 0x4b8   :  { %2878 = vst [vmem:[#allocation4 + $0x148] sm:$0xff] %v12636_v14  ;;  %v2486_v18 = vpop.f32.mrf.mxu0  ;;  %v2582_v35 = vpop.f32.mrf.mxu1 }
 0x4b9   :  { %16193 = vst [vmem:[#allocation177_spill] sm:$0xff] %v12648_v2  ;;  %v12650_v49 = vadd.f32 %v2720_v61, %v2486_v18  ;;  %v12652_v33 = vadd.f32 %v2752_v39, %v2582_v35  ;;  %2847 = vst [vmem:[#allocation4 + $0x50] sm:$0xff] %v12646_v37  ;;  %v2723_v61 = vmul.f32 %v2659_v63, %v11987_v3 }
 0x4ba   :  { %2879 = vst [vmem:[#allocation4 + $0x150] sm:$0xff] %v12648_v2  ;;  %v2490_v31 = vpop.f32.mrf.mxu0  ;;  %v2586_v38 = vpop.f32.mrf.mxu1  ;;  %v2755_v18 = vmul.f32 %v12314_v48, %v11987_v3  ;;  %v2724_v35 = vmul.f32 %v2660_v57, %v11987_v3  ;;  %v2725_v63 = vmul.f32 %v2661_v6, %v11987_v3  ;;  %v2769_v2 = vmul.f32 %v2705_v20, %v11987_v3  ;;  %v2671_v20 = vld [vmem:[#allocation4 + $0xd0] sm:$0xff] }
 0x4bb   :  { %16194 = vst [vmem:[#allocation178_spill] sm:$0xff] %v12652_v33  ;;  %2848 = vst [vmem:[#allocation4 + $0x58] sm:$0xff] %v12650_v49  ;;  %v12661_v50 = vadd.f32 %v2721_v55, %v2490_v31  ;;  %v12663_v19 = vadd.f32 %v2753_v28, %v2586_v38 }
 0x4bc   :  { %2880 = vst [vmem:[#allocation4 + $0x158] sm:$0xff] %v12652_v33  ;;  %v2492_v27 = vpop.f32.mrf.mxu0  ;;  %v2588_v24 = vpop.f32.mrf.mxu1  ;;  %v2674_v33 = vld [vmem:[#allocation4 + $0xe8] sm:$0xff] }
 0x4bd   :  { %16195 = vst [vmem:[#allocation179_spill] sm:$0xff] %v12663_v19  ;;  %2849 = vst [vmem:[#allocation4 + $0x60] sm:$0xff] %v12661_v50  ;;  %v12670_v46 = vadd.f32 %v2722_v53, %v2492_v27  ;;  %v12672_v47 = vadd.f32 %v2754_v32, %v2588_v24  ;;  %v2662_v53 = vld [vmem:[#allocation4 + $0x88] sm:$0xff]  ;;  %v2757_v27 = vmul.f32 %v12300_v5, %v11987_v3  ;;  %v2663_v5 = vld [vmem:[#allocation4 + $0x90] sm:$0xff] }
 0x4be   :  { %2881 = vst [vmem:[#allocation4 + $0x160] sm:$0xff] %v12663_v19  ;;  %v2496_v4 = vpop.f32.mrf.mxu0  ;;  %v2592_v39 = vpop.f32.mrf.mxu1 }
 0x4bf   :  { %16196 = vst [vmem:[#allocation180_spill] sm:$0xff] %v12672_v47  ;;  %2850 = vst [vmem:[#allocation4 + $0x68] sm:$0xff] %v12670_v46  ;;  %v12682_v55 = vadd.f32 %v2723_v61, %v2496_v4  ;;  %v12684_v28 = vadd.f32 %v2755_v18, %v2592_v39  ;;  %v2726_v61 = vmul.f32 %v2662_v53, %v11987_v3 }
 0x4c0   :  { %2882 = vst [vmem:[#allocation4 + $0x168] sm:$0xff] %v12672_v47  ;;  %v2498_v31 = vpop.f32.mrf.mxu0  ;;  %v2594_v38 = vpop.f32.mrf.mxu1  ;;  %v2758_v39 = vmul.f32 %v12293_v60, %v11987_v3  ;;  %v2759_v60 = vmul.f32 %v12286_v51, %v11987_v3  ;;  %v2672_v47 = vld [vmem:[#allocation4 + $0xd8] sm:$0xff] }
 0x4c1   :  { %16197 = vst [vmem:[#allocation181_spill] sm:$0xff] %v12684_v28  ;;  %v12686_v32 = vadd.f32 %v2724_v35, %v2498_v31  ;;  %v12688_v48 = vadd.f32 %v2756_v54, %v2594_v38  ;;  %2851 = vst [vmem:[#allocation4 + $0x70] sm:$0xff] %v12682_v55  ;;  %v2664_v35 = vld [vmem:[#allocation4 + $0x98] sm:$0xff] }
 0x4c2   :  { %2883 = vst [vmem:[#allocation4 + $0x170] sm:$0xff] %v12684_v28  ;;  %v2502_v34 = vpop.f32.mrf.mxu0  ;;  %v2598_v24 = vpop.f32.mrf.mxu1  ;;  %v2696_v54 = vld [vmem:[#allocation4 + $0x198] sm:$0xff] }
 0x4c3   :  { %16198 = vst [vmem:[#allocation182_spill] sm:$0xff] %v12688_v48  ;;  %2852 = vst [vmem:[#allocation4 + $0x78] sm:$0xff] %v12686_v32  ;;  %v12697_v57 = vadd.f32 %v2725_v63, %v2502_v34  ;;  %v12699_v4 = vadd.f32 %v2757_v27, %v2598_v24  ;;  %v2727_v27 = vmul.f32 %v2663_v5, %v11987_v3  ;;  %v2697_v34 = vld [vmem:[#allocation4 + $0x1a0] sm:$0xff]  ;;  %v2698_v5 = vld [vmem:[#allocation4 + $0x1a8] sm:$0xff] }
 0x4c4   :  { %2884 = vst [vmem:[#allocation4 + $0x178] sm:$0xff] %v12688_v48  ;;  %v2504_v18 = vpop.f32.mrf.mxu0  ;;  %v2600_v6 = vpop.f32.mrf.mxu1  ;;  %v2728_v24 = vmul.f32 %v2664_v35, %v11987_v3  ;;  %v2760_v42 = vmul.f32 %v2696_v54, %v11987_v3  ;;  %v2761_v51 = vmul.f32 %v2697_v34, %v11987_v3  ;;  %v2700_v34 = vld [vmem:[#allocation4 + $0x1b8] sm:$0xff] }
 0x4c5   :  { %16199 = vst [vmem:[#allocation183_spill] sm:$0xff] %v12699_v4  ;;  %2853 = vst [vmem:[#allocation4 + $0x80] sm:$0xff] %v12697_v57  ;;  %v12706_v31 = vadd.f32 %v2726_v61, %v2504_v18  ;;  %v12708_v38 = vadd.f32 %v2758_v39, %v2600_v6  ;;  %v2708_v48 = vld [vmem:[#allocation4 + $0x1f8] sm:$0xff] }
 0x4c6   :  { %2885 = vst [vmem:[#allocation4 + $0x180] sm:$0xff] %v12699_v4  ;;  %v2508_v63 = vpop.f32.mrf.mxu0  ;;  %v2604_v53 = vpop.f32.mrf.mxu1  ;;  %v2738_v4 = vmul.f32 %v2674_v33, %v11987_v3 }
 0x4c7   :  { %16200 = vst [vmem:[#allocation184_spill] sm:$0xff] %v12708_v38  ;;  %2854 = vst [vmem:[#allocation4 + $0x88] sm:$0xff] %v12706_v31  ;;  %v12717_v61 = vadd.f32 %v2727_v27, %v2508_v63  ;;  %v12719_v39 = vadd.f32 %v2759_v60, %v2604_v53  ;;  %v2762_v27 = vmul.f32 %v2698_v5, %v11987_v3  ;;  %v2699_v53 = vld [vmem:[#allocation4 + $0x1b0] sm:$0xff] }
 0x4c8   :  { %2886 = vst [vmem:[#allocation4 + $0x188] sm:$0xff] %v12708_v38  ;;  %v2510_v18 = vpop.f32.mrf.mxu0  ;;  %v2606_v6 = vpop.f32.mrf.mxu1  ;;  %v2763_v25 = vmul.f32 %v2699_v53, %v11987_v3 }
 0x4c9   :  { %16201 = vst [vmem:[#allocation185_spill] sm:$0xff] %v12719_v39  ;;  %v12721_v22 = vadd.f32 %v2728_v24, %v2510_v18  ;;  %v12723_v8 = vadd.f32 %v2760_v42, %v2606_v6  ;;  %2855 = vst [vmem:[#allocation4 + $0x90] sm:$0xff] %v12717_v61 }
 0x4ca   :  { %2887 = vst [vmem:[#allocation4 + $0x190] sm:$0xff] %v12719_v39  ;;  %v12728_v35 = vpop.f32.mrf.mxu0  ;;  %v2610_v54 = vpop.f32.mrf.mxu1  ;;  %v2670_v39 = vld [vmem:[#allocation4 + $0xc8] sm:$0xff] }
 0x4cb   :  { %16202 = vst [vmem:[#allocation186_spill] sm:$0xff] %v12723_v8  ;;  %2856 = vst [vmem:[#allocation4 + $0x98] sm:$0xff] %v12721_v22  ;;  %v12732_v63 = vadd.f32 %v2761_v51, %v2610_v54  ;;  %v2764_v51 = vmul.f32 %v2700_v34, %v11987_v3  ;;  %v2703_v34 = vld [vmem:[#allocation4 + $0x1d0] sm:$0xff] }
 0x4cc   :  { %2888 = vst [vmem:[#allocation4 + $0x198] sm:$0xff] %v12723_v8  ;;  %v12735_v42 = vpop.f32.mrf.mxu0  ;;  %v2612_v60 = vpop.f32.mrf.mxu1  ;;  %v2767_v30 = vmul.f32 %v2703_v34, %v11987_v3  ;;  %v2673_v34 = vld [vmem:[#allocation4 + $0xe0] sm:$0xff] }
 0x4cd   :  { %16203 = vst [vmem:[#allocation187_spill] sm:$0xff] %v12732_v63  ;;  %2889 = vst [vmem:[#allocation4 + $0x1a0] sm:$0xff] %v12732_v63  ;;  %v12738_v24 = vadd.f32 %v2762_v27, %v2612_v60  ;;  %v2765_v27 = vmul.f32 %v2701_v10, %v11987_v3 }
 0x4ce   :  { %v12740_v18 = vpop.f32.mrf.mxu0  ;;  %v2616_v6 = vpop.f32.mrf.mxu1 }
 0x4cf   :  { %16204 = vst [vmem:[#allocation188_spill] sm:$0xff] %v12738_v24  ;;  %2890 = vst [vmem:[#allocation4 + $0x1a8] sm:$0xff] %v12738_v24  ;;  %v12745_v5 = vadd.f32 %v2763_v25, %v2616_v6  ;;  %v2766_v25 = vmul.f32 %v2702_v17, %v11987_v3  ;;  %v2669_v24 = vld [vmem:[#allocation4 + $0xc0] sm:$0xff] }
 0x4d0   :  { %v12747_v54 = vpop.f32.mrf.mxu0  ;;  %v2618_v58 = vpop.f32.mrf.mxu1 }
 0x4d1   :  { %16205 = vst [vmem:[#allocation189_spill] sm:$0xff] %v12745_v5  ;;  %v12749_v12 = vadd.f32 %v2764_v51, %v2618_v58  ;;  %2891 = vst [vmem:[#allocation4 + $0x1b0] sm:$0xff] %v12745_v5  ;;  %v2736_v5 = vmul.f32 %v2672_v47, %v11987_v3  ;;  %v2667_v47 = vld [vmem:[#allocation4 + $0xb0] sm:$0xff] }
 0x4d2   :  { %v12753_v60 = vpop.f32.mrf.mxu0  ;;  %v2622_v53 = vpop.f32.mrf.mxu1 }
 0x4d3   :  { %16206 = vst [vmem:[#allocation190_spill] sm:$0xff] %v12749_v12  ;;  %2892 = vst [vmem:[#allocation4 + $0x1b8] sm:$0xff] %v12749_v12  ;;  %v12756_v16 = vadd.f32 %v2765_v27, %v2622_v53  ;;  %v2768_v27 = vmul.f32 %v2704_v11, %v11987_v3  ;;  %v2770_v11 = vmul.f32 %v2706_v13, %v11987_v3 }
 0x4d4   :  { %v12759_v6 = vpop.f32.mrf.mxu0  ;;  %v2624_v41 = vpop.f32.mrf.mxu1 }
 0x4d5   :  { %16207 = vst [vmem:[#allocation191_spill] sm:$0xff] %v12756_v16  ;;  %2893 = vst [vmem:[#allocation4 + $0x1c0] sm:$0xff] %v12756_v16  ;;  %v12762_v58 = vadd.f32 %v2766_v25, %v2624_v41 }
 0x4d6   :  { %v2532_v10 = vpop.f32.mrf.mxu0  ;;  %v2628_v51 = vpop.f32.mrf.mxu1 }
 0x4d7   :  { %16208 = vst [vmem:[#allocation192_spill] sm:$0xff] %v12762_v58  ;;  %2894 = vst [vmem:[#allocation4 + $0x1c8] sm:$0xff] %v12762_v58  ;;  %v12767_v53 = vadd.f32 %v2767_v30, %v2628_v51  ;;  %v2675_v30 = vld [vmem:[#allocation4 + $0xf0] sm:$0xff] }
 0x4d8   :  { %v2534_v17 = vpop.f32.mrf.mxu0  ;;  %v2630_v56 = vpop.f32.mrf.mxu1  ;;  %v2707_v51 = vld [vmem:[#allocation4 + $0x1f0] sm:$0xff]  ;;  %v2739_v13 = vmul.f32 %v2675_v30, %v11987_v3 }
 0x4d9   :  { %v12769_v14 = vadd.f32 %v2768_v27, %v2630_v56  ;;  %2895 = vst [vmem:[#allocation4 + $0x1d0] sm:$0xff] %v12767_v53  ;;  %v2676_v27 = vld [vmem:[#allocation4 + $0xf8] sm:$0xff]  ;;  %v2771_v63 = vmul.f32 %v2707_v51, %v11987_v3 }
 0x4da   :  { %v2538_v41 = vpop.f32.mrf.mxu0  ;;  %v2634_v25 = vpop.f32.mrf.mxu1  ;;  %v2740_v33 = vmul.f32 %v2676_v27, %v11987_v3 }
 0x4db   :  { %2896 = vst [vmem:[#allocation4 + $0x1d8] sm:$0xff] %v12769_v14  ;;  %v12774_v19 = vadd.f32 %v2769_v2, %v2634_v25  ;;  %v2737_v2 = vmul.f32 %v2673_v34, %v11987_v3  ;;  %v2735_v34 = vmul.f32 %v2671_v20, %v11987_v3  ;;  %v2733_v20 = vmul.f32 %v2669_v24, %v11987_v3 }
 0x4dc   :  { %v2540_v28 = vpop.f32.mrf.mxu0  ;;  %v2636_v56 = vpop.f32.mrf.mxu1  ;;  %v2731_v24 = vmul.f32 %v2667_v47, %v11987_v3 }
 0x4dd   :  { %2897 = vst [vmem:[#allocation4 + $0x1e0] sm:$0xff] %v12774_v19  ;;  %v12779_v38 = vadd.f32 %v2770_v11, %v2636_v56  ;;  %v12785_v12 = vadd.f32 %v2738_v4, %v2540_v28  ;;  %v2772_v11 = vmul.f32 %v2708_v48, %v11987_v3  ;;  %v2668_v56 = vld [vmem:[#allocation4 + $0xb8] sm:$0xff]  ;;  %v12791_v29 = vadd.f32 %v2737_v2, %v2538_v41  ;;  %v2666_v48 = vld [vmem:[#allocation4 + $0xa8] sm:$0xff] }
 0x4de   :  { %v2544_v25 = vpop.f32.mrf.mxu0  ;;  %v2640_v8 = vpop.f32.mrf.mxu1  ;;  %v2734_v28 = vmul.f32 %v2670_v39, %v11987_v3  ;;  %v12798_v4 = vadd.f32 %v2736_v5, %v2534_v17  ;;  %v12805_v41 = vadd.f32 %v2735_v34, %v2532_v10  ;;  %v2732_v2 = vmul.f32 %v2668_v56, %v11987_v3  ;;  %v16209_v17 = vld [vmem:[#allocation125_spill] sm:$0xff]  ;;  %v16211_v56 = vld [vmem:[#allocation64_spill] sm:$0xff] }
 0x4df   :  { %2898 = vst [vmem:[#allocation4 + $0x1e8] sm:$0xff] %v12779_v38  ;;  %v12793_v30 = vadd.f32 %v2739_v13, %v2544_v25  ;;  %v12795_v16 = vadd.f32 %v2771_v63, %v2640_v8  ;;  %v2665_v63 = vld [vmem:[#allocation4 + $0xa0] sm:$0xff]  ;;  %v12821_v10 = vadd.f32 %v2733_v20, %v12753_v60  ;;  %v3057_v25 = vmul.f32 %v12791_v29, %v16209_v17 }
 0x4e0   :  { %v2546_v51 = vpop.f32.mrf.mxu0  ;;  %v2642_v7 = vpop.f32.mrf.mxu1  ;;  %v12812_v39 = vadd.f32 %v2734_v28, %v12759_v6  ;;  %v2730_v13 = vmul.f32 %v2666_v48, %v11987_v3  ;;  %v12827_v6 = vadd.f32 %v2732_v2, %v12747_v54  ;;  %v12834_v47 = vadd.f32 %v2731_v24, %v12740_v18  ;;  %v16212_v60 = vld [vmem:[#allocation123_spill] sm:$0xff]  ;;  %v16214_v54 = vld [vmem:[#allocation122_spill] sm:$0xff]  ;;  %v16217_v24 = vld [vmem:[#allocation61_spill] sm:$0xff] }
 0x4e1   :  { %v12800_v58 = vadd.f32 %v2740_v33, %v2546_v51  ;;  %v12802_v27 = vadd.f32 %v2772_v11, %v2642_v7  ;;  %v3059_v8 = vmul.f32 %v12793_v30, %v11515_v62  ;;  %2899 = vst [vmem:[#allocation4 + $0x1f0] sm:$0xff] %v12795_v16  ;;  %v3058_v7 = vmul.f32 %v12785_v12, %v16064_v15  ;;  %v16210_v33 = vld [vmem:[#allocation124_spill] sm:$0xff]  ;;  %v16213_v20 = vld [vmem:[#allocation63_spill] sm:$0xff] }
 0x4e2   :  { %v3056_v11 = vmul.f32 %v12798_v4, %v16210_v33  ;;  %v2729_v51 = vmul.f32 %v2665_v63, %v11987_v3  ;;  %v3055_v28 = vmul.f32 %v12805_v41, %v16212_v60  ;;  %v12840_v48 = vadd.f32 %v2730_v13, %v12735_v42  ;;  %v16215_v33 = vld [vmem:[#allocation62_spill] sm:$0xff]  ;;  %v16216_v63 = vld [vmem:[#allocation121_spill] sm:$0xff]  ;;  %v16218_v60 = vld [vmem:[#allocation120_spill] sm:$0xff] }
 0x4e3   :  { %v3060_v5 = vmul.f32 %v12800_v58, %v16065_v52  ;;  %2900 = vst [vmem:[#allocation4 + $0x1f8] sm:$0xff] %v12802_v27  ;;  %v3123_v17 = vadd.f32 %v3059_v8, %v16213_v20  ;;  %v3054_v2 = vmul.f32 %v12812_v39, %v16214_v54  ;;  %v3122_v52 = vadd.f32 %v3058_v7, %v16215_v33  ;;  %v16219_v42 = vld [vmem:[#allocation60_spill] sm:$0xff]  ;;  %v16220_v20 = vld [vmem:[#allocation119_spill] sm:$0xff] }
 0x4e4   :  { %v3053_v18 = vmul.f32 %v12821_v10, %v16216_v63  ;;  %v3052_v8 = vmul.f32 %v12827_v6, %v16218_v60  ;;  %v3120_v13 = vadd.f32 %v3056_v11, %v16219_v42  ;;  %v16221_v54 = vld [vmem:[#allocation59_spill] sm:$0xff]  ;;  %v16223_v63 = vld [vmem:[#allocation58_spill] sm:$0xff] }
 0x4e5   :  { %v3124_v34 = vadd.f32 %v3060_v5, %v16211_v56  ;;  %v12846_v5 = vadd.f32 %v2729_v51, %v12728_v35  ;;  %v3121_v56 = vadd.f32 %v3057_v25, %v16217_v24  ;;  %v3119_v7 = vadd.f32 %v3055_v28, %v16221_v54  ;;  %v16222_v35 = vld [vmem:[#allocation118_spill] sm:$0xff]  ;;  %v16224_v25 = vld [vmem:[#allocation117_spill] sm:$0xff]  ;;  %v16228_v28 = vld [vmem:[#allocation115_spill] sm:$0xff] }
 0x4e6   :  { %v3050_v51 = vmul.f32 %v12840_v48, %v16222_v35  ;;  %v3118_v33 = vadd.f32 %v3054_v2, %v16223_v63  ;;  %v16225_v24 = vld [vmem:[#allocation57_spill] sm:$0xff]  ;;  %v16229_v54 = vld [vmem:[#allocation55_spill] sm:$0xff] }
 0x4e7   :  { %3312 = vmatprep.subr.mxu0 %v3124_v34  ;;  %v3051_v34 = vmul.f32 %v12834_v47, %v16220_v20  ;;  %v3117_v60 = vadd.f32 %v3053_v18, %v16225_v24  ;;  %v16227_v20 = vld [vmem:[#allocation56_spill] sm:$0xff]  ;;  %v16232_v18 = vld [vmem:[#allocation113_spill] sm:$0xff] }
 0x4e8   :  { %3313 = vmatpush1.msra.mxu0 %v3123_v17  ;;  %v3049_v17 = vmul.f32 %v12846_v5, %v16224_v25  ;;  %v3116_v42 = vadd.f32 %v3052_v8, %v16227_v20  ;;  %v16231_v25 = vld [vmem:[#allocation54_spill] sm:$0xff]  ;;  %v16233_v24 = vld [vmem:[#allocation53_spill] sm:$0xff] }
 0x4e9   :  { %3314 = vmatprep.subr.mxu0 %v3122_v52  ;;  %v16226_v52 = vld [vmem:[#allocation116_spill] sm:$0xff]  ;;  %v3115_v35 = vadd.f32 %v3051_v34, %v16229_v54  ;;  %v3114_v63 = vadd.f32 %v3050_v51, %v16231_v25  ;;  %v16236_v34 = vld [vmem:[#allocation111_spill] sm:$0xff] }
 0x4ea   :  { %3315 = vmatpush1.msra.mxu0 %v3121_v56  ;;  %v3048_v11 = vmul.f32 %v12721_v22, %v16226_v52  ;;  %v3047_v56 = vmul.f32 %v12717_v61, %v16228_v28  ;;  %v3113_v22 = vadd.f32 %v3049_v17, %v16233_v24  ;;  %v16235_v61 = vld [vmem:[#allocation52_spill] sm:$0xff]  ;;  %v16237_v54 = vld [vmem:[#allocation51_spill] sm:$0xff]  ;;  %v16240_v17 = vld [vmem:[#allocation109_spill] sm:$0xff] }
 0x4eb   :  { %3316 = vmatprep.subr.mxu0 %v3120_v13  ;;  %v16230_v13 = vld [vmem:[#allocation114_spill] sm:$0xff]  ;;  %v16241_v24 = vld [vmem:[#allocation49_spill] sm:$0xff] }
 0x4ec   :  { %3317 = vmatpush1.msra.mxu0 %v3119_v7  ;;  %v3046_v2 = vmul.f32 %v12706_v31, %v16230_v13  ;;  %v3045_v7 = vmul.f32 %v12697_v57, %v16232_v18  ;;  %v3112_v28 = vadd.f32 %v3048_v11, %v16235_v61  ;;  %v3111_v31 = vadd.f32 %v3047_v56, %v16237_v54  ;;  %v16239_v57 = vld [vmem:[#allocation50_spill] sm:$0xff]  ;;  %v16244_v56 = vld [vmem:[#allocation107_spill] sm:$0xff] }
 0x4ed   :  { %3318 = vmatprep.subr.mxu0 %v3118_v33  ;;  %v16234_v33 = vld [vmem:[#allocation112_spill] sm:$0xff]  ;;  %v16245_v54 = vld [vmem:[#allocation47_spill] sm:$0xff] }
 0x4ee   :  { %3319 = vmatpush1.msra.mxu0 %v3117_v60  ;;  %v3044_v8 = vmul.f32 %v12686_v32, %v16234_v33  ;;  %v3043_v60 = vmul.f32 %v12682_v55, %v16236_v34  ;;  %v3110_v18 = vadd.f32 %v3046_v2, %v16239_v57  ;;  %v3109_v32 = vadd.f32 %v3045_v7, %v16241_v24  ;;  %v16243_v55 = vld [vmem:[#allocation48_spill] sm:$0xff]  ;;  %v16248_v7 = vld [vmem:[#allocation105_spill] sm:$0xff] }
 0x4ef   :  { %3320 = vmatprep.subr.mxu0 %v3116_v42  ;;  %v16238_v42 = vld [vmem:[#allocation110_spill] sm:$0xff]  ;;  %v16249_v24 = vld [vmem:[#allocation45_spill] sm:$0xff] }
 0x4f0   :  { %3321 = vmatpush1.msra.mxu0 %v3115_v35  ;;  %v3042_v51 = vmul.f32 %v12670_v46, %v16238_v42  ;;  %v3041_v35 = vmul.f32 %v12661_v50, %v16240_v17  ;;  %v3108_v34 = vadd.f32 %v3044_v8, %v16243_v55  ;;  %v3107_v46 = vadd.f32 %v3043_v60, %v16245_v54  ;;  %v16247_v50 = vld [vmem:[#allocation46_spill] sm:$0xff]  ;;  %v16252_v60 = vld [vmem:[#allocation103_spill] sm:$0xff] }
 0x4f1   :  { %3322 = vmatprep.subr.mxu0 %v3114_v63  ;;  %v16242_v63 = vld [vmem:[#allocation108_spill] sm:$0xff]  ;;  %v16253_v54 = vld [vmem:[#allocation43_spill] sm:$0xff] }
 0x4f2   :  { %3323 = vmatpush1.msra.mxu0 %v3113_v22  ;;  %v3040_v11 = vmul.f32 %v12650_v49, %v16242_v63  ;;  %v3039_v22 = vmul.f32 %v12646_v37, %v16244_v56  ;;  %v3106_v17 = vadd.f32 %v3042_v51, %v16247_v50  ;;  %v3105_v49 = vadd.f32 %v3041_v35, %v16249_v24  ;;  %v16251_v37 = vld [vmem:[#allocation44_spill] sm:$0xff]  ;;  %v16256_v35 = vld [vmem:[#allocation101_spill] sm:$0xff] }
 0x4f3   :  { %3324 = vmatprep.subr.mxu0 %v3112_v28  ;;  %v16246_v28 = vld [vmem:[#allocation106_spill] sm:$0xff]  ;;  %v16257_v24 = vld [vmem:[#allocation41_spill] sm:$0xff] }
 0x4f4   :  { %3325 = vmatpush1.msra.mxu0 %v3111_v31  ;;  %v3038_v2 = vmul.f32 %v12634_v43, %v16246_v28  ;;  %v3037_v31 = vmul.f32 %v12625_v36, %v16248_v7  ;;  %v3104_v56 = vadd.f32 %v3040_v11, %v16251_v37  ;;  %v3103_v43 = vadd.f32 %v3039_v22, %v16253_v54  ;;  %v16255_v36 = vld [vmem:[#allocation42_spill] sm:$0xff]  ;;  %v16260_v22 = vld [vmem:[#allocation99_spill] sm:$0xff] }
 0x4f5   :  { %3326 = vmatprep.subr.mxu0 %v3110_v18  ;;  %v16250_v18 = vld [vmem:[#allocation104_spill] sm:$0xff]  ;;  %v16261_v54 = vld [vmem:[#allocation39_spill] sm:$0xff] }
 0x4f6   :  { %3327 = vmatpush1.msra.mxu0 %v3109_v32  ;;  %v3036_v8 = vmul.f32 %v12614_v59, %v16250_v18  ;;  %v3035_v32 = vmul.f32 %v12610_v40, %v16252_v60  ;;  %v3102_v7 = vadd.f32 %v3038_v2, %v16255_v36  ;;  %v3101_v59 = vadd.f32 %v3037_v31, %v16257_v24  ;;  %v16259_v40 = vld [vmem:[#allocation40_spill] sm:$0xff]  ;;  %v16264_v31 = vld [vmem:[#allocation97_spill] sm:$0xff] }
 0x4f7   :  { %3328 = vmatprep.subr.mxu0 %v3108_v34  ;;  %v16254_v34 = vld [vmem:[#allocation102_spill] sm:$0xff]  ;;  %v16265_v24 = vld [vmem:[#allocation37_spill] sm:$0xff] }
 0x4f8   :  { %3329 = vmatpush1.msra.mxu0 %v3107_v46  ;;  %v3034_v51 = vmul.f32 %v12598_v1, %v16254_v34  ;;  %v3033_v46 = vmul.f32 %v12589_v45, %v16256_v35  ;;  %v3100_v60 = vadd.f32 %v3036_v8, %v16259_v40  ;;  %v3099_v1 = vadd.f32 %v3035_v32, %v16261_v54  ;;  %v16263_v45 = vld [vmem:[#allocation38_spill] sm:$0xff]  ;;  %v16268_v32 = vld [vmem:[#allocation35_spill] sm:$0xff] }
 0x4f9   :  { %3330 = vmatprep.subr.mxu0 %v3106_v17  ;;  %v16258_v17 = vld [vmem:[#allocation100_spill] sm:$0xff]  ;;  %v16269_v54 = vld [vmem:[#allocation159_spill] sm:$0xff] }
 0x4fa   :  { %3331 = vmatpush1.msra.mxu0 %v3105_v49  ;;  %v3032_v11 = vmul.f32 %v12578_v0, %v16258_v17  ;;  %v3031_v49 = vmul.f32 %v12574_v9, %v16260_v22  ;;  %v3098_v35 = vadd.f32 %v3034_v51, %v16263_v45  ;;  %v3097_v0 = vadd.f32 %v3033_v46, %v16265_v24  ;;  %v16267_v9 = vld [vmem:[#allocation36_spill] sm:$0xff]  ;;  %v16272_v46 = vld [vmem:[#allocation33_spill] sm:$0xff]  ;;  %v3884_v17 = vld [vmem:[#allocation4 + $0x118] sm:$0xff] }
 0x4fb   :  { %3332 = vmatprep.subr.mxu0 %v3104_v56  ;;  %v16262_v56 = vld [vmem:[#allocation98_spill] sm:$0xff]  ;;  %v16273_v24 = vld [vmem:[#allocation157_spill] sm:$0xff] }
 0x4fc   :  { %3333 = vmatpush1.msra.mxu0 %v3103_v43  ;;  %v3030_v2 = vmul.f32 %v12562_v26, %v16262_v56  ;;  %v3029_v43 = vmul.f32 %v12553_v44, %v16264_v31  ;;  %v3096_v22 = vadd.f32 %v3032_v11, %v16267_v9  ;;  %v3091_v26 = vmul.f32 %v12795_v16, %v16269_v54  ;;  %v16271_v44 = vld [vmem:[#allocation34_spill] sm:$0xff]  ;;  %v16281_v54 = vld [vmem:[#allocation93_spill] sm:$0xff] }
 0x4fd   :  { %3334 = vmatprep.subr.mxu0 %v3102_v7  ;;  %v16266_v7 = vld [vmem:[#allocation160_spill] sm:$0xff]  ;;  %v3087_v16 = vmul.f32 %v12767_v53, %v16125_v23 }
 0x4fe   :  { %3335 = vmatpush1.msra.mxu0 %v3101_v59  ;;  %v3092_v8 = vmul.f32 %v12802_v27, %v16266_v7  ;;  %v3095_v59 = vadd.f32 %v3031_v49, %v16268_v32  ;;  %v3094_v31 = vadd.f32 %v3030_v2, %v16271_v44  ;;  %v3089_v27 = vmul.f32 %v12774_v19, %v16273_v24  ;;  %v16275_v49 = vld [vmem:[#allocation96_spill] sm:$0xff]  ;;  %v16279_v19 = vld [vmem:[#allocation153_spill] sm:$0xff] }
 0x4ff   :  { %3336 = vmatprep.subr.mxu0 %v3100_v60  ;;  %v16270_v60 = vld [vmem:[#allocation158_spill] sm:$0xff]  ;;  %v16284_v53 = vld [vmem:[#allocation92_spill] sm:$0xff] }
 0x500   :  { %3337 = vmatpush1.msra.mxu0 %v3099_v1  ;;  %v3090_v51 = vmul.f32 %v12779_v38, %v16270_v60  ;;  %v3093_v1 = vadd.f32 %v3029_v43, %v16272_v46  ;;  %v3156_v7 = vadd.f32 %v3092_v8, %v16275_v49  ;;  %v16278_v43 = vld [vmem:[#allocation94_spill] sm:$0xff] }
 0x501   :  { %3338 = vmatprep.subr.mxu0 %v3098_v35  ;;  %v16274_v35 = vld [vmem:[#allocation156_spill] sm:$0xff]  ;;  %v16283_v8 = vld [vmem:[#allocation190_spill] sm:$0xff] }
 0x502   :  { %3339 = vmatpush1.msra.mxu0 %v3097_v0  ;;  %v3088_v11 = vmul.f32 %v12769_v14, %v16274_v35  ;;  %v16276_v0 = vld [vmem:[#allocation95_spill] sm:$0xff]  ;;  %v3154_v60 = vadd.f32 %v3090_v51, %v16278_v43  ;;  %v3153_v14 = vadd.f32 %v3089_v27, %v16281_v54  ;;  %v16289_v51 = vld [vmem:[#allocation188_spill] sm:$0xff]  ;;  %v16291_v27 = vld [vmem:[#allocation149_spill] sm:$0xff] }
 0x503   :  { %3340 = vmatprep.subr.mxu0 %v3096_v22  ;;  %v3155_v38 = vadd.f32 %v3091_v26, %v16276_v0  ;;  %v16277_v22 = vld [vmem:[#allocation192_spill] sm:$0xff]  ;;  %v16285_v26 = vld [vmem:[#allocation151_spill] sm:$0xff] }
 0x504   :  { %3341 = vmatpush1.msra.mxu0 %v3095_v59  ;;  %v3086_v2 = vmul.f32 %v16277_v22, %v16127_v21  ;;  %v16280_v59 = vld [vmem:[#allocation191_spill] sm:$0xff]  ;;  %v3152_v23 = vadd.f32 %v3088_v11, %v16284_v53  ;;  %v16293_v21 = vld [vmem:[#allocation89_spill] sm:$0xff]  ;;  %v16295_v11 = vld [vmem:[#allocation186_spill] sm:$0xff] }
 0x505   :  { %3342 = vmatprep.subr.mxu0 %v3094_v31  ;;  %v3085_v24 = vmul.f32 %v16280_v59, %v16279_v19  ;;  %v16282_v31 = vld [vmem:[#allocation152_spill] sm:$0xff]  ;;  %v16287_v35 = vld [vmem:[#allocation91_spill] sm:$0xff]  ;;  %v16290_v59 = vld [vmem:[#allocation90_spill] sm:$0xff] }
 0x506   :  { %3343 = vmatpush1.msra.mxu0 %v3093_v1  ;;  %v3084_v49 = vmul.f32 %v16283_v8, %v16282_v31  ;;  %v16286_v1 = vld [vmem:[#allocation189_spill] sm:$0xff]  ;;  %v3151_v22 = vadd.f32 %v3087_v16, %v16287_v35  ;;  %v3150_v19 = vadd.f32 %v3086_v2, %v16290_v59  ;;  %v16297_v16 = vld [vmem:[#allocation147_spill] sm:$0xff]  ;;  %v16301_v2 = vld [vmem:[#allocation184_spill] sm:$0xff] }
 0x507   :  { %3344 = vmatprep.subr.mxu0 %v3156_v7  ;;  %v3083_v0 = vmul.f32 %v16286_v1, %v16285_v26  ;;  %v16288_v7 = vld [vmem:[#allocation150_spill] sm:$0xff]  ;;  %v3149_v8 = vadd.f32 %v3085_v24, %v16293_v21  ;;  %v16296_v1 = vld [vmem:[#allocation88_spill] sm:$0xff]  ;;  %v16299_v31 = vld [vmem:[#allocation87_spill] sm:$0xff] }
 0x508   :  { %3345 = vmatpush2.msra.mxu0 %v3155_v38  ;;  %v3082_v43 = vmul.f32 %v16289_v51, %v16288_v7  ;;  %v16292_v38 = vld [vmem:[#allocation187_spill] sm:$0xff]  ;;  %v3148_v26 = vadd.f32 %v3084_v49, %v16296_v1  ;;  %v16303_v24 = vld [vmem:[#allocation145_spill] sm:$0xff]  ;;  %v16307_v49 = vld [vmem:[#allocation182_spill] sm:$0xff] }
 0x509   :  { %3346 = vmatprep.subr.mxu0 %v3154_v60  ;;  %v3081_v54 = vmul.f32 %v16292_v38, %v16291_v27  ;;  %v16294_v60 = vld [vmem:[#allocation148_spill] sm:$0xff]  ;;  %v3147_v51 = vadd.f32 %v3083_v0, %v16299_v31  ;;  %v16302_v38 = vld [vmem:[#allocation86_spill] sm:$0xff]  ;;  %v16305_v7 = vld [vmem:[#allocation85_spill] sm:$0xff] }
 0x50a   :  { %3347 = vmatpush2.msra.mxu0 %v3153_v14  ;;  %v3080_v53 = vmul.f32 %v16295_v11, %v16294_v60  ;;  %v16298_v14 = vld [vmem:[#allocation185_spill] sm:$0xff]  ;;  %v3146_v27 = vadd.f32 %v3082_v43, %v16302_v38  ;;  %v16309_v0 = vld [vmem:[#allocation143_spill] sm:$0xff]  ;;  %v16313_v43 = vld [vmem:[#allocation180_spill] sm:$0xff] }
 0x50b   :  { %3348 = vmatprep.subr.mxu0 %v3152_v23  ;;  %v3079_v35 = vmul.f32 %v16298_v14, %v16297_v16  ;;  %v16300_v23 = vld [vmem:[#allocation146_spill] sm:$0xff]  ;;  %v3145_v11 = vadd.f32 %v3081_v54, %v16305_v7  ;;  %v16308_v14 = vld [vmem:[#allocation84_spill] sm:$0xff]  ;;  %v16311_v60 = vld [vmem:[#allocation83_spill] sm:$0xff] }
 0x50c   :  { %3349 = vmatpush2.msra.mxu0 %v3151_v22  ;;  %v3078_v59 = vmul.f32 %v16301_v2, %v16300_v23  ;;  %v16304_v22 = vld [vmem:[#allocation183_spill] sm:$0xff]  ;;  %v3144_v16 = vadd.f32 %v3080_v53, %v16308_v14  ;;  %v16315_v54 = vld [vmem:[#allocation141_spill] sm:$0xff]  ;;  %v16319_v53 = vld [vmem:[#allocation178_spill] sm:$0xff] }
 0x50d   :  { %3350 = vmatprep.subr.mxu0 %v3150_v19  ;;  %v3077_v21 = vmul.f32 %v16304_v22, %v16303_v24  ;;  %v16306_v19 = vld [vmem:[#allocation144_spill] sm:$0xff]  ;;  %v3143_v2 = vadd.f32 %v3079_v35, %v16311_v60  ;;  %v16314_v22 = vld [vmem:[#allocation82_spill] sm:$0xff]  ;;  %v16317_v23 = vld [vmem:[#allocation81_spill] sm:$0xff] }
 0x50e   :  { %3351 = vmatpush2.msra.mxu0 %v3149_v8  ;;  %v3076_v1 = vmul.f32 %v16307_v49, %v16306_v19  ;;  %v16310_v8 = vld [vmem:[#allocation181_spill] sm:$0xff]  ;;  %v3142_v24 = vadd.f32 %v3078_v59, %v16314_v22  ;;  %v16321_v35 = vld [vmem:[#allocation139_spill] sm:$0xff]  ;;  %v16325_v59 = vld [vmem:[#allocation176_spill] sm:$0xff] }
 0x50f   :  { %3352 = vmatprep.subr.mxu0 %v3148_v26  ;;  %v3075_v31 = vmul.f32 %v16310_v8, %v16309_v0  ;;  %v16312_v26 = vld [vmem:[#allocation142_spill] sm:$0xff]  ;;  %v3141_v49 = vadd.f32 %v3077_v21, %v16317_v23  ;;  %v16320_v8 = vld [vmem:[#allocation80_spill] sm:$0xff]  ;;  %v16323_v19 = vld [vmem:[#allocation79_spill] sm:$0xff] }
 0x510   :  { %3353 = vmatpush2.msra.mxu0 %v3147_v51  ;;  %v3074_v38 = vmul.f32 %v16313_v43, %v16312_v26  ;;  %v16316_v51 = vld [vmem:[#allocation179_spill] sm:$0xff]  ;;  %v3140_v0 = vadd.f32 %v3076_v1, %v16320_v8  ;;  %v16327_v21 = vld [vmem:[#allocation137_spill] sm:$0xff]  ;;  %v16331_v1 = vld [vmem:[#allocation174_spill] sm:$0xff] }
 0x511   :  { %3354 = vmatprep.subr.mxu0 %v3146_v27  ;;  %v3073_v7 = vmul.f32 %v16316_v51, %v16315_v54  ;;  %v16318_v27 = vld [vmem:[#allocation140_spill] sm:$0xff]  ;;  %v3139_v43 = vadd.f32 %v3075_v31, %v16323_v19  ;;  %v16326_v51 = vld [vmem:[#allocation78_spill] sm:$0xff]  ;;  %v16329_v26 = vld [vmem:[#allocation77_spill] sm:$0xff] }
 0x512   :  { %3355 = vmatpush2.msra.mxu0 %v3145_v11  ;;  %v3072_v14 = vmul.f32 %v16319_v53, %v16318_v27  ;;  %v16322_v11 = vld [vmem:[#allocation177_spill] sm:$0xff]  ;;  %v3138_v54 = vadd.f32 %v3074_v38, %v16326_v51  ;;  %v16333_v31 = vld [vmem:[#allocation135_spill] sm:$0xff]  ;;  %v16337_v38 = vld [vmem:[#allocation172_spill] sm:$0xff] }
 0x513   :  { %3356 = vmatprep.subr.mxu0 %v3144_v16  ;;  %v3071_v60 = vmul.f32 %v16322_v11, %v16321_v35  ;;  %v16324_v16 = vld [vmem:[#allocation138_spill] sm:$0xff]  ;;  %v3137_v53 = vadd.f32 %v3073_v7, %v16329_v26  ;;  %v16332_v11 = vld [vmem:[#allocation76_spill] sm:$0xff]  ;;  %v16335_v27 = vld [vmem:[#allocation75_spill] sm:$0xff] }
 0x514   :  { %3357 = vmatpush2.msra.mxu0 %v3143_v2  ;;  %v3070_v22 = vmul.f32 %v16325_v59, %v16324_v16  ;;  %v16328_v2 = vld [vmem:[#allocation175_spill] sm:$0xff]  ;;  %v3136_v35 = vadd.f32 %v3072_v14, %v16332_v11  ;;  %v16339_v7 = vld [vmem:[#allocation133_spill] sm:$0xff]  ;;  %v16343_v14 = vld [vmem:[#allocation170_spill] sm:$0xff] }
 0x515   :  { %3358 = vmatprep.subr.mxu0 %v3142_v24  ;;  %v3069_v23 = vmul.f32 %v16328_v2, %v16327_v21  ;;  %v16330_v24 = vld [vmem:[#allocation136_spill] sm:$0xff]  ;;  %v3135_v59 = vadd.f32 %v3071_v60, %v16335_v27  ;;  %v16338_v2 = vld [vmem:[#allocation74_spill] sm:$0xff]  ;;  %v16341_v16 = vld [vmem:[#allocation73_spill] sm:$0xff] }
 0x516   :  { %3359 = vmatpush2.msra.mxu0 %v3141_v49  ;;  %v3068_v8 = vmul.f32 %v16331_v1, %v16330_v24  ;;  %v16334_v49 = vld [vmem:[#allocation173_spill] sm:$0xff]  ;;  %v3134_v21 = vadd.f32 %v3070_v22, %v16338_v2  ;;  %v16345_v60 = vld [vmem:[#allocation131_spill] sm:$0xff]  ;;  %v16349_v22 = vld [vmem:[#allocation168_spill] sm:$0xff] }
 0x517   :  { %3360 = vmatprep.subr.mxu0 %v3140_v0  ;;  %v3067_v19 = vmul.f32 %v16334_v49, %v16333_v31  ;;  %v16336_v0 = vld [vmem:[#allocation134_spill] sm:$0xff]  ;;  %v3133_v1 = vadd.f32 %v3069_v23, %v16341_v16  ;;  %v16344_v49 = vld [vmem:[#allocation72_spill] sm:$0xff]  ;;  %v16347_v24 = vld [vmem:[#allocation71_spill] sm:$0xff] }
 0x518   :  { %3361 = vmatpush2.msra.mxu0 %v3139_v43  ;;  %v3066_v51 = vmul.f32 %v16337_v38, %v16336_v0  ;;  %v16340_v43 = vld [vmem:[#allocation171_spill] sm:$0xff]  ;;  %v3132_v31 = vadd.f32 %v3068_v8, %v16344_v49  ;;  %v16351_v23 = vld [vmem:[#allocation129_spill] sm:$0xff]  ;;  %v16354_v8 = vld [vmem:[#allocation68_spill] sm:$0xff] }
 0x519   :  { %3362 = vmatprep.subr.mxu0 %v3138_v54  ;;  %v3065_v26 = vmul.f32 %v16340_v43, %v16339_v7  ;;  %v16342_v54 = vld [vmem:[#allocation132_spill] sm:$0xff]  ;;  %v3131_v38 = vadd.f32 %v3067_v19, %v16347_v24  ;;  %v16350_v43 = vld [vmem:[#allocation70_spill] sm:$0xff]  ;;  %v16353_v0 = vld [vmem:[#allocation69_spill] sm:$0xff] }
 0x51a   :  { %3363 = vmatpush2.msra.mxu0 %v3137_v53  ;;  %v3064_v11 = vmul.f32 %v16343_v14, %v16342_v54  ;;  %v16346_v53 = vld [vmem:[#allocation169_spill] sm:$0xff]  ;;  %v3130_v7 = vadd.f32 %v3066_v51, %v16350_v43  ;;  %v16355_v49 = vld [vmem:[#allocation67_spill] sm:$0xff]  ;;  %v16356_v19 = vld [vmem:[#allocation66_spill] sm:$0xff] }
 0x51b   :  { %3364 = vmatprep.subr.mxu0 %v3136_v35  ;;  %v3063_v27 = vmul.f32 %v16346_v53, %v16345_v60  ;;  %v16348_v35 = vld [vmem:[#allocation130_spill] sm:$0xff]  ;;  %v3129_v14 = vadd.f32 %v3065_v26, %v16353_v0  ;;  %v16357_v24 = vld [vmem:[#allocation65_spill] sm:$0xff]  ;;  %v16360_v26 = vmov 0.0  }
 0x51c   :  { %3365 = vmatpush2.msra.mxu0 %v3135_v59  ;;  %v3062_v2 = vmul.f32 %v16349_v22, %v16348_v35  ;;  %v16352_v59 = vld [vmem:[#allocation167_spill] sm:$0xff]  ;;  %v16358_v51 = vld [vmem:[#allocation162_spill] sm:$0xff] }
 0x51d   :  { %3366 = vmatprep.subr.mxu0 %v3134_v21  ;;  %v3061_v16 = vmul.f32 %v16352_v59, %v16351_v23  ;;  %v3128_v21 = vadd.f32 %v3064_v11, %v16354_v8  ;;  %v3127_v53 = vadd.f32 %v3063_v27, %v16355_v49  ;;  %v16363_v8 = vld [vmem:[#allocation164_spill] sm:$0xff] }
 0x51e   :  { %3367 = vmatpush2.msra.mxu0 %v3133_v1  ;;  %v3126_v1 = vadd.f32 %v3062_v2, %v16356_v19 }
 0x51f   :  { %3368 = vmatprep.subr.mxu0 %v3132_v31  ;;  %v3125_v22 = vadd.f32 %v3061_v16, %v16357_v24  ;;  %v16359_v31 = vld [vmem:[#allocation166_spill] sm:$0xff]  ;;  %v3448_v16 = vpop.trf.xlu0 }
 0x520   :  { %3369 = vmatpush2.msra.mxu0 %v3131_v38  ;;  %v3294_v43 = vrot.slane %v16359_v31, %v16358_v51  ;;  %v16361_v38 = vld [vmem:[#allocation161_spill] sm:$0xff] }
 0x521   :  { %3370 = vmatprep.subr.mxu0 %v3130_v7  ;;  %v3289_v7 = vld [vmem:[#allocation13 + $0x2] ss:$8 sm:$0x3] }
 0x522   :  { %3371 = vmatpush2.msra.mxu0 %v3129_v14  ;;  %v3305_v11 = vrot.slane %v3289_v7, %v16358_v51  ;;  %v3309_v27 = vrot.slane %v3289_v7, %v16361_v38 }
 0x523   :  { %3372 = vmatprep.subr.mxu0 %v3128_v21 }
 0x524   :  { %3373 = vmatpush2.msra.mxu0 %v3127_v53  ;;  %v3449_v53 = vpop.trf.xlu0 }
 0x525   :  { %3374 = vmatprep.subr.mxu0 %v3126_v1 }
 0x526   :  { %3375 = vmatpush2.msra.mxu0 %v3125_v22  ;;  %v16362_v22 = vld [vmem:[#allocation163_spill] sm:$0xff] }
 0x527   :  { %3377 = vmatmul.mubr.f32.vlgmr.msra.gmra.mxu0 %v3294_v43 }
 0x528   :  { %3656 = vmatprep.mubr.f32.mxu0 %v16360_v26  ;;  %v3450_v24 = vpop.trf.xlu0 }
 0x52c   :  { %v3451_v7 = vpop.trf.xlu0 }
 0x5e7   :  { %v3378_v59 = vpop.f32.mrf.mxu0 }
 0x5e8   :  { %v3379_v14 = vadd.f32 %v3378_v59, %v3305_v11 }
 0x5e9   :  { %v3380_v21 = vpop.f32.mrf.mxu0 }
 0x5ea   :  { %10804 = vtanh.f32 %v3379_v14  ;;  %v3381_v2 = vadd.f32 %v3380_v21, %v3309_v27  ;;  %v3452_v21 = vpop.trf.xlu0 }
 0x5ec   :  { %10806 = vtanh.f32 %v3381_v2 }
 0x5f7   :  { %v10805_v1 = vpop.eup %10804 }
 0x5f8   :  { %v3406_v43 = vmul.f32 %v10805_v1, %v16362_v22 }
 0x5f9   :  { %v10807_v31 = vpop.eup %10806 }
 0x5fa   :  { %v3387_v19 = vcombine.low %v10805_v1, %v10807_v31  ;;  %v3407_v49 = vmul.f32 %v10807_v31, %v16362_v22  ;;  %v3453_v31 = vpop.trf.xlu0 }
 0x5fc   :  { %v3394_v51 = vrot.slane %v3387_v19, %v16363_v8  ;;  %v3410_v0 = vcombine.low %v3406_v43, %v3407_v49 }
 0x5fe   :  { %v3401_v11 = vrot.slane %v3394_v51, %v16363_v8  ;;  %v3417_v59 = vrot.slane %v3410_v0, %v16363_v8  ;;  %v3454_v43 = vpop.trf.xlu0 }
 0x600   :  { %3404 = vst.msk [vmem:[#allocation16 + $0x2] ss:$8 sm:$0x3] %vm11909_vm0, %v3401_v11  ;;  %v3424_v14 = vrot.slane %v3417_v59, %v16363_v8  ;;  %4425 = vst.msk [vmem:[#allocation2] ss:$8 sm:$0x3] %vm11909_vm0, %v3401_v11 }
 0x602   :  { %3426 = vst.msk [vmem:[#allocation3] ss:$8 sm:$0x3] %vm11909_vm0, %v3424_v14  ;;  %v3455_v11 = vpop.trf.xlu0 }
 0x606   :  { %v3456_v59 = vpop.trf.xlu0 }
 0x607   :  { %v4633_v2 = vld [vmem:[#allocation2 + $0x8] sm:$0xff]  ;;  %v4632_v19 = vld [vmem:[#allocation2] sm:$0xff] }
 0x608   :  { %v4427_v49 = vld [vmem:[#allocation2] ss:$8 sm:$0x3]  ;;  %4668 = vxpose.xlu1.b32.start.end [1/1] (short) %v4633_v2, 128  ;;  %4636 = vxpose.xlu0.b32.start.end [1/1] (short) %v4632_v19, 128 }
 0x609   :  { %v4502_v51 = vrot.slane %v4427_v49, %v16361_v38  ;;  %v3431_v0 = vld [vmem:[#allocation3 + $0x8] sm:$0xff]  ;;  %v3430_v1 = vld [vmem:[#allocation3] sm:$0xff] }
 0x60a   :  { %3622 = vmatprep.subr.mxu0 %v3431_v0 }
 0x60b   :  { %4580 = vmatprep.mubr.f32.mxu1 %v4502_v51  ;;  %3623 = vmatpush1.msra.mxu0 %v3430_v1 }
 0x60c   :  { %10591 = vmatmul.mubr.msk.f32.vlgmr.msra.gmra.mxu0 %vm1086_vm1, %v3448_v16  ;;  %v3457_v16 = vpop.trf.xlu0 }
 0x60d   :  { %3662 = vmatprep.mubr.f32.mxu0 %v16360_v26 }
 0x610   :  { %10592 = vmatmul.mubr.msk.f32.gmra.mxu0 %vm1086_vm1, %v3449_v53  ;;  %v3480_v53 = vpop.trf.xlu1 }
 0x611   :  { %3668 = vmatprep.mubr.f32.mxu0 %v16360_v26 }
 0x614   :  { %10593 = vmatmul.mubr.msk.f32.gmra.mxu0 %vm1086_vm1, %v3450_v24  ;;  %v3458_v24 = vpop.trf.xlu0  ;;  %v3481_v14 = vpop.trf.xlu1 }
 0x615   :  { %3674 = vmatprep.mubr.f32.mxu0 %v16360_v26 }
 0x618   :  { %10594 = vmatmul.mubr.msk.f32.gmra.mxu0 %vm1086_vm1, %v3451_v7  ;;  %v3459_v7 = vpop.trf.xlu0  ;;  %v3482_v2 = vpop.trf.xlu1 }
 0x619   :  { %3680 = vmatprep.mubr.f32.mxu0 %v16360_v26 }
 0x61c   :  { %10595 = vmatmul.mubr.msk.f32.gmra.mxu0 %vm1086_vm1, %v3452_v21  ;;  %v3460_v21 = vpop.trf.xlu0  ;;  %v3483_v49 = vpop.trf.xlu1 }
 0x61d   :  { %3686 = vmatprep.mubr.f32.mxu0 %v16360_v26 }
 0x620   :  { %10596 = vmatmul.mubr.msk.f32.gmra.mxu0 %vm1086_vm1, %v3453_v31  ;;  %v3461_v19 = vpop.trf.xlu0  ;;  %v3484_v0 = vpop.trf.xlu1 }
 0x621   :  { %3692 = vmatprep.mubr.f32.mxu0 %v16360_v26 }
 0x624   :  { %10597 = vmatmul.mubr.msk.f32.gmra.mxu0 %vm1086_vm1, %v3454_v43  ;;  %v3462_v51 = vpop.trf.xlu0  ;;  %v3485_v31 = vpop.trf.xlu1 }
 0x625   :  { %3698 = vmatprep.mubr.f32.mxu0 %v16360_v26 }
 0x628   :  { %10598 = vmatmul.mubr.msk.f32.gmra.mxu0 %vm1086_vm1, %v3455_v11  ;;  %v3463_v1 = vpop.trf.xlu0  ;;  %v3486_v43 = vpop.trf.xlu1 }
 0x629   :  { %3704 = vmatprep.mubr.f32.mxu0 %v16360_v26 }
 0x62c   :  { %10599 = vmatmul.mubr.msk.f32.gmra.mxu0 %vm1086_vm1, %v3456_v59  ;;  %v3487_v11 = vpop.trf.xlu1 }
 0x62d   :  { %3710 = vmatprep.mubr.f32.mxu0 %v16360_v26 }
 0x630   :  { %10600 = vmatmul.mubr.msk.f32.gmra.mxu0 %vm1086_vm1, %v3457_v16  ;;  %v3488_v59 = vpop.trf.xlu1 }
 0x631   :  { %3716 = vmatprep.mubr.f32.mxu0 %v16360_v26 }
 0x634   :  { %10601 = vmatmul.mubr.msk.f32.gmra.mxu0 %vm1086_vm1, %v3458_v24  ;;  %v3489_v16 = vpop.trf.xlu1 }
 0x635   :  { %3722 = vmatprep.mubr.f32.mxu0 %v16360_v26 }
 0x638   :  { %10602 = vmatmul.mubr.msk.f32.gmra.mxu0 %vm1086_vm1, %v3459_v7  ;;  %v3490_v24 = vpop.trf.xlu1 }
 0x639   :  { %3728 = vmatprep.mubr.f32.mxu0 %v16360_v26 }
 0x63c   :  { %10603 = vmatmul.mubr.msk.f32.gmra.mxu0 %vm1086_vm1, %v3460_v21 }
 0x63d   :  { %3734 = vmatprep.mubr.f32.mxu0 %v16360_v26 }
 0x640   :  { %10604 = vmatmul.mubr.msk.f32.gmra.mxu0 %vm1086_vm1, %v3461_v19  ;;  %v3849_v19 = vld [vmem:[#allocation4] sm:$0xff] }
 0x641   :  { %3740 = vmatprep.mubr.f32.mxu0 %v16360_v26 }
 0x644   :  { %10605 = vmatmul.mubr.msk.f32.gmra.mxu0 %vm1086_vm1, %v3462_v51  ;;  %v3913_v51 = vmul.f32 %v3849_v19, %v11987_v3  ;;  %v3854_v19 = vld [vmem:[#allocation4 + $0x28] sm:$0xff] }
 0x645   :  { %3746 = vmatprep.mubr.f32.mxu0 %v16360_v26 }
 0x648   :  { %10606 = vmatmul.mubr.msk.f32.gmra.mxu0 %vm1086_vm1, %v3463_v1  ;;  %v3851_v1 = vld [vmem:[#allocation4 + $0x10] sm:$0xff] }
 0x649   :  { %3752 = vmatprep.mubr.f32.mxu0 %v16360_v26 }
 0x64c   :  { %10607 = vmatmul.mubr.msk.f32.gmra.mxu0 %vm1086_vm1, %v3480_v53  ;;  %v3491_v53 = vpop.trf.xlu1 }
 0x64d   :  { %3758 = vmatprep.mubr.f32.mxu0 %v16360_v26 }
 0x650   :  { %10608 = vmatmul.mubr.msk.f32.gmra.mxu0 %vm1086_vm1, %v3481_v14  ;;  %v3492_v7 = vpop.trf.xlu1 }
 0x651   :  { %3764 = vmatprep.mubr.f32.mxu0 %v16360_v26 }
 0x654   :  { %10609 = vmatmul.mubr.msk.f32.gmra.mxu0 %vm1086_vm1, %v3482_v2  ;;  %v3493_v14 = vpop.trf.xlu1 }
 0x655   :  { %3770 = vmatprep.mubr.f32.mxu0 %v16360_v26 }
 0x658   :  { %10610 = vmatmul.mubr.msk.f32.gmra.mxu0 %vm1086_vm1, %v3483_v49  ;;  %v3494_v21 = vpop.trf.xlu1  ;;  %v3850_v49 = vld [vmem:[#allocation4 + $0x8] sm:$0xff] }
 0x659   :  { %3776 = vmatprep.mubr.f32.mxu0 %v16360_v26 }
 0x65c   :  { %10611 = vmatmul.mubr.msk.f32.gmra.mxu0 %vm1086_vm1, %v3484_v0  ;;  %v3495_v2 = vpop.trf.xlu1 }
 0x65d   :  { %3782 = vmatprep.mubr.f32.mxu0 %v16360_v26 }
 0x660   :  { %10612 = vmatmul.mubr.msk.f32.gmra.mxu0 %vm1086_vm1, %v3485_v31 }
 0x661   :  { %3788 = vmatprep.mubr.f32.mxu0 %v16360_v26 }
 0x664   :  { %10613 = vmatmul.mubr.msk.f32.gmra.mxu0 %vm1086_vm1, %v3486_v43  ;;  %v3914_v43 = vmul.f32 %v3850_v49, %v11987_v3 }
 0x665   :  { %3794 = vmatprep.mubr.f32.mxu0 %v16360_v26 }
 0x668   :  { %10614 = vmatmul.mubr.msk.f32.gmra.mxu0 %vm1086_vm1, %v3487_v11 }
 0x669   :  { %3800 = vmatprep.mubr.f32.mxu0 %v16360_v26 }
 0x66c   :  { %10615 = vmatmul.mubr.msk.f32.gmra.mxu0 %vm1086_vm1, %v3488_v59  ;;  %v3852_v59 = vld [vmem:[#allocation4 + $0x18] sm:$0xff] }
 0x66d   :  { %3806 = vmatprep.mubr.f32.mxu0 %v16360_v26 }
 0x670   :  { %10616 = vmatmul.mubr.msk.f32.gmra.mxu0 %vm1086_vm1, %v3489_v16 }
 0x671   :  { %3812 = vmatprep.mubr.f32.mxu0 %v16360_v26 }
 0x674   :  { %10617 = vmatmul.mubr.msk.f32.gmra.mxu0 %vm1086_vm1, %v3490_v24  ;;  %v3915_v24 = vmul.f32 %v3851_v1, %v11987_v3 }
 0x675   :  { %3818 = vmatprep.mubr.f32.mxu0 %v16360_v26 }
 0x678   :  { %10618 = vmatmul.mubr.msk.f32.gmra.mxu0 %vm1086_vm1, %v3491_v53 }
 0x679   :  { %3824 = vmatprep.mubr.f32.mxu0 %v16360_v26 }
 0x67c   :  { %10619 = vmatmul.mubr.msk.f32.gmra.mxu0 %vm1086_vm1, %v3492_v7  ;;  %v3853_v7 = vld [vmem:[#allocation4 + $0x20] sm:$0xff] }
 0x67d   :  { %3830 = vmatprep.mubr.f32.mxu0 %v16360_v26 }
 0x680   :  { %10620 = vmatmul.mubr.msk.f32.gmra.mxu0 %vm1086_vm1, %v3493_v14 }
 0x681   :  { %3836 = vmatprep.mubr.f32.mxu0 %v16360_v26 }
 0x684   :  { %10621 = vmatmul.mubr.msk.f32.gmra.mxu0 %vm1086_vm1, %v3494_v21  ;;  %v3916_v21 = vmul.f32 %v3852_v59, %v11987_v3 }
 0x685   :  { %3842 = vmatprep.mubr.f32.mxu0 %v16360_v26 }
 0x688   :  { %10622 = vmatmul.mubr.msk.f32.gmra.mxu0 %vm1086_vm1, %v3495_v2 }
 0x6cc   :  { %v3658_v0 = vpop.f32.mrf.mxu0 }
 0x6cd   :  { %v13105_v31 = vadd.f32 %v3913_v51, %v3658_v0  ;;  %v3917_v51 = vmul.f32 %v3853_v7, %v11987_v3 }
 0x6ce   :  { %v3660_v11 = vpop.f32.mrf.mxu0 }
 0x6cf   :  { %16365 = vst [vmem:[#allocation192_spill] sm:$0xff] %v13105_v31  ;;  %4041 = vst [vmem:[#allocation4] sm:$0xff] %v13105_v31  ;;  %v13109_v16 = vadd.f32 %v3914_v43, %v3660_v11  ;;  %v3855_v43 = vld [vmem:[#allocation4 + $0x30] sm:$0xff]  ;;  %v3918_v11 = vmul.f32 %v3854_v19, %v11987_v3 }
 0x6d0   :  { %v3664_v53 = vpop.f32.mrf.mxu0  ;;  %v3919_v27 = vmul.f32 %v3855_v43, %v11987_v3 }
 0x6d1   :  { %16366 = vst [vmem:[#allocation191_spill] sm:$0xff] %v13109_v16  ;;  %4042 = vst [vmem:[#allocation4 + $0x8] sm:$0xff] %v13109_v16  ;;  %v13113_v14 = vadd.f32 %v3915_v24, %v3664_v53  ;;  %v3856_v53 = vld [vmem:[#allocation4 + $0x38] sm:$0xff] }
 0x6d2   :  { %v3666_v2 = vpop.f32.mrf.mxu0  ;;  %v3920_v8 = vmul.f32 %v3856_v53, %v11987_v3 }
 0x6d3   :  { %16367 = vst [vmem:[#allocation190_spill] sm:$0xff] %v13113_v14  ;;  %4043 = vst [vmem:[#allocation4 + $0x10] sm:$0xff] %v13113_v14  ;;  %v13117_v49 = vadd.f32 %v3916_v21, %v3666_v2  ;;  %v3857_v2 = vld [vmem:[#allocation4 + $0x40] sm:$0xff] }
 0x6d4   :  { %v3670_v0 = vpop.f32.mrf.mxu0  ;;  %v3921_v22 = vmul.f32 %v3857_v2, %v11987_v3 }
 0x6d5   :  { %16368 = vst [vmem:[#allocation189_spill] sm:$0xff] %v13117_v49  ;;  %4044 = vst [vmem:[#allocation4 + $0x18] sm:$0xff] %v13117_v49  ;;  %v13121_v1 = vadd.f32 %v3917_v51, %v3670_v0  ;;  %v3858_v0 = vld [vmem:[#allocation4 + $0x48] sm:$0xff] }
 0x6d6   :  { %v3672_v24 = vpop.f32.mrf.mxu0  ;;  %v3922_v38 = vmul.f32 %v3858_v0, %v11987_v3 }
 0x6d7   :  { %16369 = vst [vmem:[#allocation188_spill] sm:$0xff] %v13121_v1  ;;  %4045 = vst [vmem:[#allocation4 + $0x20] sm:$0xff] %v13121_v1  ;;  %v13125_v59 = vadd.f32 %v3918_v11, %v3672_v24  ;;  %v3859_v24 = vld [vmem:[#allocation4 + $0x50] sm:$0xff]  ;;  %v16376_v1 = vld [vmem:[#allocation122_spill] sm:$0xff] }
 0x6d8   :  { %v3676_v21 = vpop.f32.mrf.mxu0  ;;  %v3923_v26 = vmul.f32 %v3859_v24, %v11987_v3 }
 0x6d9   :  { %4046 = vst [vmem:[#allocation4 + $0x28] sm:$0xff] %v13125_v59  ;;  %v13129_v7 = vadd.f32 %v3919_v27, %v3676_v21  ;;  %v3860_v21 = vld [vmem:[#allocation4 + $0x58] sm:$0xff] }
 0x6da   :  { %v3678_v51 = vpop.f32.mrf.mxu0  ;;  %v3924_v23 = vmul.f32 %v3860_v21, %v11987_v3 }
 0x6db   :  { %4047 = vst [vmem:[#allocation4 + $0x30] sm:$0xff] %v13129_v7  ;;  %v13133_v19 = vadd.f32 %v3920_v8, %v3678_v51  ;;  %v3861_v51 = vld [vmem:[#allocation4 + $0x60] sm:$0xff] }
 0x6dc   :  { %v3682_v11 = vpop.f32.mrf.mxu0  ;;  %v3925_v35 = vmul.f32 %v3861_v51, %v11987_v3 }
 0x6dd   :  { %4048 = vst [vmem:[#allocation4 + $0x38] sm:$0xff] %v13133_v19  ;;  %v13137_v43 = vadd.f32 %v3921_v22, %v3682_v11  ;;  %v3862_v11 = vld [vmem:[#allocation4 + $0x68] sm:$0xff] }
 0x6de   :  { %v3684_v27 = vpop.f32.mrf.mxu0  ;;  %v3926_v60 = vmul.f32 %v3862_v11, %v11987_v3 }
 0x6df   :  { %4049 = vst [vmem:[#allocation4 + $0x40] sm:$0xff] %v13137_v43  ;;  %v13141_v53 = vadd.f32 %v3922_v38, %v3684_v27  ;;  %v3863_v27 = vld [vmem:[#allocation4 + $0x70] sm:$0xff] }
 0x6e0   :  { %v3688_v8 = vpop.f32.mrf.mxu0  ;;  %v3927_v54 = vmul.f32 %v3863_v27, %v11987_v3 }
 0x6e1   :  { %4050 = vst [vmem:[#allocation4 + $0x48] sm:$0xff] %v13141_v53  ;;  %v13145_v2 = vadd.f32 %v3923_v26, %v3688_v8  ;;  %v3864_v8 = vld [vmem:[#allocation4 + $0x78] sm:$0xff] }
 0x6e2   :  { %v3690_v22 = vpop.f32.mrf.mxu0  ;;  %v3928_v46 = vmul.f32 %v3864_v8, %v11987_v3 }
 0x6e3   :  { %4051 = vst [vmem:[#allocation4 + $0x50] sm:$0xff] %v13145_v2  ;;  %v13149_v0 = vadd.f32 %v3924_v23, %v3690_v22  ;;  %v3865_v22 = vld [vmem:[#allocation4 + $0x80] sm:$0xff] }
 0x6e4   :  { %v3694_v38 = vpop.f32.mrf.mxu0  ;;  %v3929_v44 = vmul.f32 %v3865_v22, %v11987_v3 }
 0x6e5   :  { %4052 = vst [vmem:[#allocation4 + $0x58] sm:$0xff] %v13149_v0  ;;  %v13153_v24 = vadd.f32 %v3925_v35, %v3694_v38  ;;  %v3866_v38 = vld [vmem:[#allocation4 + $0x88] sm:$0xff] }
 0x6e6   :  { %v3696_v26 = vpop.f32.mrf.mxu0  ;;  %v3930_v32 = vmul.f32 %v3866_v38, %v11987_v3  ;;  %v3933_v38 = vmul.f32 %v12846_v5, %v11987_v3 }
 0x6e7   :  { %4053 = vst [vmem:[#allocation4 + $0x60] sm:$0xff] %v13153_v24  ;;  %v13157_v21 = vadd.f32 %v3926_v60, %v3696_v26  ;;  %v3867_v26 = vld [vmem:[#allocation4 + $0x90] sm:$0xff] }
 0x6e8   :  { %v3700_v23 = vpop.f32.mrf.mxu0  ;;  %v3931_v9 = vmul.f32 %v3867_v26, %v11987_v3  ;;  %v3934_v26 = vmul.f32 %v12840_v48, %v11987_v3 }
 0x6e9   :  { %4054 = vst [vmem:[#allocation4 + $0x68] sm:$0xff] %v13157_v21  ;;  %v13161_v51 = vadd.f32 %v3927_v54, %v3700_v23  ;;  %v3868_v23 = vld [vmem:[#allocation4 + $0x98] sm:$0xff] }
 0x6ea   :  { %v3702_v35 = vpop.f32.mrf.mxu0 }
 0x6eb   :  { %4055 = vst [vmem:[#allocation4 + $0x70] sm:$0xff] %v13161_v51  ;;  %v13165_v11 = vadd.f32 %v3928_v46, %v3702_v35  ;;  %v3932_v35 = vmul.f32 %v3868_v23, %v11987_v3 }
 0x6ec   :  { %v3706_v60 = vpop.f32.mrf.mxu0 }
 0x6ed   :  { %4056 = vst [vmem:[#allocation4 + $0x78] sm:$0xff] %v13165_v11  ;;  %v13169_v27 = vadd.f32 %v3929_v44, %v3706_v60 }
 0x6ee   :  { %v3708_v54 = vpop.f32.mrf.mxu0 }
 0x6ef   :  { %4057 = vst [vmem:[#allocation4 + $0x80] sm:$0xff] %v13169_v27  ;;  %v13173_v8 = vadd.f32 %v3930_v32, %v3708_v54 }
 0x6f0   :  { %v3712_v46 = vpop.f32.mrf.mxu0 }
 0x6f1   :  { %4058 = vst [vmem:[#allocation4 + $0x88] sm:$0xff] %v13173_v8  ;;  %v13177_v22 = vadd.f32 %v3931_v9, %v3712_v46  ;;  %v3936_v46 = vmul.f32 %v12827_v6, %v11987_v3  ;;  %v3939_v6 = vmul.f32 %v12805_v41, %v11987_v3 }
 0x6f2   :  { %v3714_v31 = vpop.f32.mrf.mxu0 }
 0x6f3   :  { %4059 = vst [vmem:[#allocation4 + $0x90] sm:$0xff] %v13177_v22  ;;  %v13181_v44 = vadd.f32 %v3932_v35, %v3714_v31  ;;  %v3935_v31 = vmul.f32 %v12834_v47, %v11987_v3 }
 0x6f4   :  { %v3718_v60 = vpop.f32.mrf.mxu0 }
 0x6f5   :  { %4060 = vst [vmem:[#allocation4 + $0x98] sm:$0xff] %v13181_v44  ;;  %v13186_v32 = vadd.f32 %v3933_v38, %v3718_v60  ;;  %v3937_v38 = vmul.f32 %v12821_v10, %v11987_v3 }
 0x6f6   :  { %v3720_v9 = vpop.f32.mrf.mxu0 }
 0x6f7   :  { %4061 = vst [vmem:[#allocation4 + $0xa0] sm:$0xff] %v13186_v32  ;;  %v13191_v54 = vadd.f32 %v3934_v26, %v3720_v9  ;;  %v3938_v26 = vmul.f32 %v12812_v39, %v11987_v3 }
 0x6f8   :  { %v3724_v23 = vpop.f32.mrf.mxu0 }
 0x6f9   :  { %4062 = vst [vmem:[#allocation4 + $0xa8] sm:$0xff] %v13191_v54  ;;  %v13196_v5 = vadd.f32 %v3935_v31, %v3724_v23 }
 0x6fa   :  { %v3726_v35 = vpop.f32.mrf.mxu0 }
 0x6fb   :  { %4063 = vst [vmem:[#allocation4 + $0xb0] sm:$0xff] %v13196_v5  ;;  %v13201_v48 = vadd.f32 %v3936_v46, %v3726_v35  ;;  %v3940_v35 = vmul.f32 %v12798_v4, %v11987_v3  ;;  %v3881_v4 = vld [vmem:[#allocation4 + $0x100] sm:$0xff] }
 0x6fc   :  { %v3730_v60 = vpop.f32.mrf.mxu0 }
 0x6fd   :  { %4064 = vst [vmem:[#allocation4 + $0xb8] sm:$0xff] %v13201_v48  ;;  %v4001_v47 = vadd.f32 %v3937_v38, %v3730_v60  ;;  %v3941_v38 = vmul.f32 %v12791_v29, %v11987_v3 }
 0x6fe   :  { %v3732_v9 = vpop.f32.mrf.mxu0 }
 0x6ff   :  { %4065 = vst [vmem:[#allocation4 + $0xc0] sm:$0xff] %v4001_v47  ;;  %v4002_v31 = vadd.f32 %v3938_v26, %v3732_v9  ;;  %v3942_v26 = vmul.f32 %v12785_v12, %v11987_v3 }
 0x700   :  { %v3736_v23 = vpop.f32.mrf.mxu0 }
 0x701   :  { %4066 = vst [vmem:[#allocation4 + $0xc8] sm:$0xff] %v4002_v31  ;;  %v4003_v46 = vadd.f32 %v3939_v6, %v3736_v23  ;;  %v3943_v6 = vmul.f32 %v12793_v30, %v11987_v3  ;;  %v16370_v30 = vld [vmem:[#allocation128_spill] sm:$0xff] }
 0x702   :  { %v3738_v10 = vpop.f32.mrf.mxu0 }
 0x703   :  { %4067 = vst [vmem:[#allocation4 + $0xd0] sm:$0xff] %v4003_v46  ;;  %v4004_v45 = vadd.f32 %v3940_v35, %v3738_v10  ;;  %v3944_v35 = vmul.f32 %v12800_v58, %v11987_v3  ;;  %v3882_v10 = vld [vmem:[#allocation4 + $0x108] sm:$0xff]  ;;  %v16371_v58 = vld [vmem:[#allocation125_spill] sm:$0xff] }
 0x704   :  { %v3742_v60 = vpop.f32.mrf.mxu0 }
 0x705   :  { %4068 = vst [vmem:[#allocation4 + $0xd8] sm:$0xff] %v4004_v45  ;;  %v4005_v39 = vadd.f32 %v3941_v38, %v3742_v60  ;;  %v3945_v60 = vmul.f32 %v3881_v4, %v11987_v3 }
 0x706   :  { %v3744_v9 = vpop.f32.mrf.mxu0 }
 0x707   :  { %4069 = vst [vmem:[#allocation4 + $0xe0] sm:$0xff] %v4005_v39  ;;  %v4006_v41 = vadd.f32 %v3942_v26, %v3744_v9  ;;  %v3883_v26 = vld [vmem:[#allocation4 + $0x110] sm:$0xff] }
 0x708   :  { %v3748_v23 = vpop.f32.mrf.mxu0  ;;  %v3947_v4 = vmul.f32 %v3883_v26, %v11987_v3  ;;  %v16378_v26 = vld [vmem:[#allocation121_spill] sm:$0xff] }
 0x709   :  { %4070 = vst [vmem:[#allocation4 + $0xe8] sm:$0xff] %v4006_v41  ;;  %v4007_v16 = vadd.f32 %v3943_v6, %v3748_v23  ;;  %v4262_v9 = vmul.f32 %v4006_v41, %v16064_v15  ;;  %v3946_v6 = vmul.f32 %v3882_v10, %v11987_v3  ;;  %v4261_v23 = vmul.f32 %v4005_v39, %v16371_v58  ;;  %v16373_v41 = vld [vmem:[#allocation64_spill] sm:$0xff]  ;;  %v3885_v10 = vld [vmem:[#allocation4 + $0x120] sm:$0xff] }
 0x70a   :  { %v3750_v29 = vpop.f32.mrf.mxu0  ;;  %v4258_v39 = vmul.f32 %v4002_v31, %v16376_v1 }
 0x70b   :  { %4071 = vst [vmem:[#allocation4 + $0xf0] sm:$0xff] %v4007_v16  ;;  %v4008_v38 = vadd.f32 %v3944_v35, %v3750_v29  ;;  %v4263_v12 = vmul.f32 %v4007_v16, %v11515_v62  ;;  %v16372_v35 = vld [vmem:[#allocation124_spill] sm:$0xff]  ;;  %v16374_v62 = vld [vmem:[#allocation123_spill] sm:$0xff] }
 0x70c   :  { %v3754_v56 = vpop.f32.mrf.mxu0  ;;  %v4260_v29 = vmul.f32 %v4004_v45, %v16372_v35  ;;  %v3948_v45 = vmul.f32 %v3884_v17, %v11987_v3  ;;  %v4257_v35 = vmul.f32 %v4001_v47, %v16378_v26  ;;  %v16381_v17 = vld [vmem:[#allocation60_spill] sm:$0xff]  ;;  %v16384_v26 = vld [vmem:[#allocation118_spill] sm:$0xff] }
 0x70d   :  { %4072 = vst [vmem:[#allocation4 + $0xf8] sm:$0xff] %v4008_v38  ;;  %v4264_v14 = vmul.f32 %v4008_v38, %v16370_v30  ;;  %v13224_v40 = vadd.f32 %v3945_v60, %v3754_v56  ;;  %v4259_v38 = vmul.f32 %v4003_v46, %v16374_v62  ;;  %v16375_v56 = vld [vmem:[#allocation63_spill] sm:$0xff] }
 0x70e   :  { %v3756_v49 = vpop.f32.mrf.mxu0  ;;  %v4327_v60 = vadd.f32 %v4263_v12, %v16375_v56  ;;  %v3886_v12 = vld [vmem:[#allocation4 + $0x128] sm:$0xff] }
 0x70f   :  { %4073 = vst [vmem:[#allocation4 + $0x100] sm:$0xff] %v13224_v40  ;;  %v13230_v16 = vadd.f32 %v3946_v6, %v3756_v49  ;;  %v4328_v15 = vadd.f32 %v4264_v14, %v16373_v41  ;;  %v16377_v49 = vld [vmem:[#allocation62_spill] sm:$0xff]  ;;  %v16379_v14 = vld [vmem:[#allocation61_spill] sm:$0xff]  ;;  %v16380_v56 = vld [vmem:[#allocation120_spill] sm:$0xff] }
 0x710   :  { %v3760_v30 = vpop.f32.mrf.mxu0  ;;  %v4326_v6 = vadd.f32 %v4262_v9, %v16377_v49  ;;  %v4325_v41 = vadd.f32 %v4261_v23, %v16379_v14  ;;  %v4256_v62 = vmul.f32 %v13201_v48, %v16380_v56  ;;  %v16382_v9 = vld [vmem:[#allocation119_spill] sm:$0xff]  ;;  %v4254_v48 = vmul.f32 %v13191_v54, %v16384_v26 }
 0x711   :  { %4074 = vst [vmem:[#allocation4 + $0x108] sm:$0xff] %v13230_v16  ;;  %v13238_v58 = vadd.f32 %v3947_v4, %v3760_v30  ;;  %4516 = vmatprep.subr.mxu1 %v4328_v15  ;;  %v3949_v15 = vmul.f32 %v3885_v10, %v11987_v3  ;;  %v4324_v30 = vadd.f32 %v4260_v29, %v16381_v17  ;;  %v16383_v4 = vld [vmem:[#allocation59_spill] sm:$0xff] }
 0x712   :  { %v3762_v46 = vpop.f32.mrf.mxu0  ;;  %4517 = vmatpush1.msra.mxu1 %v4327_v60  ;;  %v4255_v47 = vmul.f32 %v13196_v5, %v16382_v9  ;;  %v4323_v23 = vadd.f32 %v4259_v38, %v16383_v4  ;;  %v3887_v60 = vld [vmem:[#allocation4 + $0x130] sm:$0xff]  ;;  %v3950_v10 = vmul.f32 %v3886_v12, %v11987_v3  ;;  %v4252_v54 = vmul.f32 %v13181_v44, %v16226_v52 }
 0x713   :  { %4075 = vst [vmem:[#allocation4 + $0x110] sm:$0xff] %v13238_v58  ;;  %v13247_v31 = vadd.f32 %v3948_v45, %v3762_v46  ;;  %4518 = vmatprep.subr.mxu1 %v4326_v6  ;;  %v16385_v6 = vld [vmem:[#allocation58_spill] sm:$0xff]  ;;  %v16386_v46 = vld [vmem:[#allocation117_spill] sm:$0xff]  ;;  %v3951_v12 = vmul.f32 %v3887_v60, %v11987_v3  ;;  %v4250_v44 = vmul.f32 %v13173_v8, %v16230_v13 }
 0x714   :  { %v3766_v14 = vpop.f32.mrf.mxu0  ;;  %4519 = vmatpush1.msra.mxu1 %v4325_v41  ;;  %v4322_v29 = vadd.f32 %v4258_v39, %v16385_v6  ;;  %v4253_v5 = vmul.f32 %v13186_v32, %v16386_v46  ;;  %v16387_v9 = vld [vmem:[#allocation57_spill] sm:$0xff]  ;;  %v3888_v41 = vld [vmem:[#allocation4 + $0x138] sm:$0xff]  ;;  %v4320_v39 = vadd.f32 %v4256_v62, %v16227_v20  ;;  %v4318_v62 = vadd.f32 %v4254_v48, %v16231_v25 }
 0x715   :  { %4076 = vst [vmem:[#allocation4 + $0x118] sm:$0xff] %v13247_v31  ;;  %v13257_v45 = vadd.f32 %v3949_v15, %v3766_v14  ;;  %4520 = vmatprep.subr.mxu1 %v4324_v30  ;;  %v4321_v38 = vadd.f32 %v4257_v35, %v16387_v9  ;;  %v16388_v15 = vld [vmem:[#allocation115_spill] sm:$0xff]  ;;  %v3952_v60 = vmul.f32 %v3888_v41, %v11987_v3 }
 0x716   :  { %v3768_v4 = vpop.f32.mrf.mxu0  ;;  %4521 = vmatpush1.msra.mxu1 %v4323_v23  ;;  %v4251_v32 = vmul.f32 %v13177_v22, %v16388_v15  ;;  %v16389_v30 = vld [vmem:[#allocation55_spill] sm:$0xff]  ;;  %v4248_v8 = vmul.f32 %v13165_v11, %v16234_v33  ;;  %v4316_v48 = vadd.f32 %v4252_v54, %v16235_v61  ;;  %v4246_v11 = vmul.f32 %v13157_v21, %v16238_v42  ;;  %v16424_v42 = vld [vmem:[#allocation157_spill] sm:$0xff] }
 0x717   :  { %4077 = vst [vmem:[#allocation4 + $0x120] sm:$0xff] %v13257_v45  ;;  %v13267_v14 = vadd.f32 %v3950_v10, %v3768_v4  ;;  %4522 = vmatprep.subr.mxu1 %v4322_v29  ;;  %v4319_v35 = vadd.f32 %v4255_v47, %v16389_v30  ;;  %v3889_v23 = vld [vmem:[#allocation4 + $0x140] sm:$0xff]  ;;  %v16390_v10 = vld [vmem:[#allocation113_spill] sm:$0xff]  ;;  %v4314_v54 = vadd.f32 %v4250_v44, %v16239_v57  ;;  %v16422_v57 = vld [vmem:[#allocation158_spill] sm:$0xff] }
 0x718   :  { %v3772_v9 = vpop.f32.mrf.mxu0  ;;  %4523 = vmatpush1.msra.mxu1 %v4321_v38  ;;  %v4249_v22 = vmul.f32 %v13169_v27, %v16390_v10  ;;  %v16391_v29 = vld [vmem:[#allocation53_spill] sm:$0xff]  ;;  %v3890_v38 = vld [vmem:[#allocation4 + $0x148] sm:$0xff]  ;;  %v3953_v41 = vmul.f32 %v3889_v23, %v11987_v3  ;;  %v4244_v21 = vmul.f32 %v13149_v0, %v16242_v63  ;;  %v4312_v44 = vadd.f32 %v4248_v8, %v16243_v55  ;;  %v16427_v33 = vld [vmem:[#allocation155_spill] sm:$0xff] }
 0x719   :  { %4078 = vst [vmem:[#allocation4 + $0x128] sm:$0xff] %v13267_v14  ;;  %v13277_v4 = vadd.f32 %v3951_v12, %v3772_v9  ;;  %4524 = vmatprep.subr.mxu1 %v4320_v39  ;;  %v4317_v47 = vadd.f32 %v4253_v5, %v16391_v29  ;;  %v16392_v12 = vld [vmem:[#allocation111_spill] sm:$0xff]  ;;  %v3954_v23 = vmul.f32 %v3890_v38, %v11987_v3  ;;  %v16429_v10 = vld [vmem:[#allocation154_spill] sm:$0xff] }
 0x71a   :  { %v3774_v30 = vpop.f32.mrf.mxu0  ;;  %4525 = vmatpush1.msra.mxu1 %v4319_v35  ;;  %v4247_v27 = vmul.f32 %v13161_v51, %v16392_v12  ;;  %v16393_v39 = vld [vmem:[#allocation51_spill] sm:$0xff]  ;;  %v3891_v35 = vld [vmem:[#allocation4 + $0x150] sm:$0xff]  ;;  %v4242_v0 = vmul.f32 %v13141_v53, %v16246_v28  ;;  %v4310_v8 = vadd.f32 %v4246_v11, %v16247_v50  ;;  %v4240_v53 = vmul.f32 %v13133_v19, %v16250_v18 }
 0x71b   :  { %4079 = vst [vmem:[#allocation4 + $0x130] sm:$0xff] %v13277_v4  ;;  %v13287_v9 = vadd.f32 %v3952_v60, %v3774_v30  ;;  %4526 = vmatprep.subr.mxu1 %v4318_v62  ;;  %v4315_v5 = vadd.f32 %v4251_v32, %v16393_v39  ;;  %v16394_v60 = vld [vmem:[#allocation109_spill] sm:$0xff]  ;;  %v3955_v38 = vmul.f32 %v3891_v35, %v11987_v3 }
 0x71c   :  { %v3778_v29 = vpop.f32.mrf.mxu0  ;;  %4527 = vmatpush1.msra.mxu1 %v4317_v47  ;;  %v4245_v51 = vmul.f32 %v13153_v24, %v16394_v60  ;;  %v16395_v62 = vld [vmem:[#allocation49_spill] sm:$0xff]  ;;  %v3892_v47 = vld [vmem:[#allocation4 + $0x158] sm:$0xff]  ;;  %v4308_v11 = vadd.f32 %v4244_v21, %v16251_v37  ;;  %v4238_v19 = vmul.f32 %v13125_v59, %v16254_v34  ;;  %v4306_v21 = vadd.f32 %v4242_v0, %v16255_v36  ;;  %v16405_v37 = vld [vmem:[#allocation100_spill] sm:$0xff] }
 0x71d   :  { %4080 = vst [vmem:[#allocation4 + $0x138] sm:$0xff] %v13287_v9  ;;  %v13297_v30 = vadd.f32 %v3953_v41, %v3778_v29  ;;  %4528 = vmatprep.subr.mxu1 %v4316_v48  ;;  %v4313_v32 = vadd.f32 %v4249_v22, %v16395_v62  ;;  %v16396_v41 = vld [vmem:[#allocation107_spill] sm:$0xff]  ;;  %v3956_v35 = vmul.f32 %v3892_v47, %v11987_v3  ;;  %v16406_v18 = vld [vmem:[#allocation189_spill] sm:$0xff]  ;;  %v16409_v36 = vld [vmem:[#allocation190_spill] sm:$0xff] }
 0x71e   :  { %v3780_v39 = vpop.f32.mrf.mxu0  ;;  %4529 = vmatpush1.msra.mxu1 %v4315_v5  ;;  %v4243_v24 = vmul.f32 %v13145_v2, %v16396_v41  ;;  %v16397_v48 = vld [vmem:[#allocation47_spill] sm:$0xff]  ;;  %v4236_v59 = vmul.f32 %v16406_v18, %v16405_v37  ;;  %v16411_v34 = vld [vmem:[#allocation98_spill] sm:$0xff] }
 0x71f   :  { %4081 = vst [vmem:[#allocation4 + $0x140] sm:$0xff] %v13297_v30  ;;  %v13307_v29 = vadd.f32 %v3954_v23, %v3780_v39  ;;  %4530 = vmatprep.subr.mxu1 %v4314_v54  ;;  %v4311_v22 = vadd.f32 %v4247_v27, %v16397_v48  ;;  %v3893_v5 = vld [vmem:[#allocation4 + $0x160] sm:$0xff]  ;;  %v16398_v23 = vld [vmem:[#allocation105_spill] sm:$0xff] }
 0x720   :  { %v3784_v62 = vpop.f32.mrf.mxu0  ;;  %4531 = vmatpush1.msra.mxu1 %v4313_v32  ;;  %v4241_v2 = vmul.f32 %v13137_v43, %v16398_v23  ;;  %v16399_v54 = vld [vmem:[#allocation45_spill] sm:$0xff]  ;;  %v3894_v32 = vld [vmem:[#allocation4 + $0x168] sm:$0xff]  ;;  %v3957_v47 = vmul.f32 %v3893_v5, %v11987_v3  ;;  %v16412_v23 = vld [vmem:[#allocation191_spill] sm:$0xff] }
 0x721   :  { %4082 = vst [vmem:[#allocation4 + $0x148] sm:$0xff] %v13307_v29  ;;  %v13317_v39 = vadd.f32 %v3955_v38, %v3784_v62  ;;  %4532 = vmatprep.subr.mxu1 %v4312_v44  ;;  %v4309_v27 = vadd.f32 %v4245_v51, %v16399_v54  ;;  %v16400_v38 = vld [vmem:[#allocation103_spill] sm:$0xff]  ;;  %v3958_v5 = vmul.f32 %v3894_v32, %v11987_v3 }
 0x722   :  { %v3786_v48 = vpop.f32.mrf.mxu0  ;;  %4533 = vmatpush1.msra.mxu1 %v4311_v22  ;;  %v4239_v43 = vmul.f32 %v13129_v7, %v16400_v38  ;;  %v16401_v44 = vld [vmem:[#allocation43_spill] sm:$0xff]  ;;  %v3895_v22 = vld [vmem:[#allocation4 + $0x170] sm:$0xff]  ;;  %v4234_v18 = vmul.f32 %v16412_v23, %v16411_v34 }
 0x723   :  { %4083 = vst [vmem:[#allocation4 + $0x150] sm:$0xff] %v13317_v39  ;;  %v13327_v62 = vadd.f32 %v3956_v35, %v3786_v48  ;;  %4534 = vmatprep.subr.mxu1 %v4310_v8  ;;  %v4307_v51 = vadd.f32 %v4243_v24, %v16401_v44  ;;  %v16402_v35 = vld [vmem:[#allocation101_spill] sm:$0xff]  ;;  %v16403_v8 = vld [vmem:[#allocation188_spill] sm:$0xff]  ;;  %v3959_v32 = vmul.f32 %v3895_v22, %v11987_v3 }
 0x724   :  { %v3790_v54 = vpop.f32.mrf.mxu0  ;;  %4535 = vmatpush1.msra.mxu1 %v4309_v27  ;;  %v4237_v7 = vmul.f32 %v16403_v8, %v16402_v35  ;;  %v16404_v38 = vld [vmem:[#allocation41_spill] sm:$0xff]  ;;  %v3896_v27 = vld [vmem:[#allocation4 + $0x178] sm:$0xff]  ;;  %v16410_v35 = vld [vmem:[#allocation39_spill] sm:$0xff] }
 0x725   :  { %4084 = vst [vmem:[#allocation4 + $0x158] sm:$0xff] %v13327_v62  ;;  %v13337_v48 = vadd.f32 %v3957_v47, %v3790_v54  ;;  %4536 = vmatprep.subr.mxu1 %v4308_v11  ;;  %v4305_v24 = vadd.f32 %v4241_v2, %v16404_v38  ;;  %v16407_v47 = vld [vmem:[#allocation40_spill] sm:$0xff]  ;;  %v16408_v11 = vld [vmem:[#allocation99_spill] sm:$0xff]  ;;  %v4303_v2 = vadd.f32 %v4239_v43, %v16410_v35 }
 0x726   :  { %v3792_v44 = vpop.f32.mrf.mxu0  ;;  %4537 = vmatpush1.msra.mxu1 %v4307_v51  ;;  %v4304_v0 = vadd.f32 %v4240_v53, %v16407_v47  ;;  %v4235_v8 = vmul.f32 %v16409_v36, %v16408_v11  ;;  %v3897_v51 = vld [vmem:[#allocation4 + $0x180] sm:$0xff]  ;;  %v3960_v22 = vmul.f32 %v3896_v27, %v11987_v3  ;;  %v16415_v47 = vld [vmem:[#allocation192_spill] sm:$0xff]  ;;  %v16416_v11 = vld [vmem:[#allocation37_spill] sm:$0xff] }
 0x727   :  { %4085 = vst [vmem:[#allocation4 + $0x160] sm:$0xff] %v13337_v48  ;;  %v13347_v54 = vadd.f32 %v3958_v5, %v3792_v44  ;;  %4538 = vmatprep.subr.mxu1 %v4306_v21  ;;  %v16413_v5 = vld [vmem:[#allocation38_spill] sm:$0xff]  ;;  %v16414_v21 = vld [vmem:[#allocation97_spill] sm:$0xff]  ;;  %v4301_v43 = vadd.f32 %v4237_v7, %v16416_v11  ;;  %v16418_v27 = vld [vmem:[#allocation35_spill] sm:$0xff] }
 0x728   :  { %v3796_v38 = vpop.f32.mrf.mxu0  ;;  %4539 = vmatpush1.msra.mxu1 %v4305_v24  ;;  %v4302_v53 = vadd.f32 %v4238_v19, %v16413_v5  ;;  %v4233_v36 = vmul.f32 %v16415_v47, %v16414_v21  ;;  %v3898_v24 = vld [vmem:[#allocation4 + $0x188] sm:$0xff]  ;;  %v4299_v34 = vadd.f32 %v4235_v8, %v16418_v27  ;;  %v3899_v5 = vld [vmem:[#allocation4 + $0x190] sm:$0xff]  ;;  %v3908_v21 = vld [vmem:[#allocation4 + $0x1d8] sm:$0xff] }
 0x729   :  { %4086 = vst [vmem:[#allocation4 + $0x168] sm:$0xff] %v13347_v54  ;;  %v13357_v44 = vadd.f32 %v3959_v32, %v3796_v38  ;;  %4540 = vmatprep.subr.mxu1 %v4304_v0  ;;  %v3961_v38 = vmul.f32 %v3897_v51, %v11987_v3  ;;  %v16417_v32 = vld [vmem:[#allocation36_spill] sm:$0xff]  ;;  %v3962_v47 = vmul.f32 %v3898_v24, %v11987_v3  ;;  %v3900_v51 = vld [vmem:[#allocation4 + $0x198] sm:$0xff] }
 0x72a   :  { %v3798_v35 = vpop.f32.mrf.mxu0  ;;  %4541 = vmatpush1.msra.mxu1 %v4303_v2  ;;  %v4300_v0 = vadd.f32 %v4236_v59, %v16417_v32  ;;  %v16419_v2 = vld [vmem:[#allocation34_spill] sm:$0xff]  ;;  %v3963_v8 = vmul.f32 %v3899_v5, %v11987_v3  ;;  %v3907_v32 = vld [vmem:[#allocation4 + $0x1d0] sm:$0xff] }
 0x72b   :  { %4087 = vst [vmem:[#allocation4 + $0x170] sm:$0xff] %v13357_v44  ;;  %v13365_v23 = vadd.f32 %v3960_v22, %v3798_v35  ;;  %4542 = vmatprep.subr.mxu1 %v4302_v53  ;;  %v4298_v35 = vadd.f32 %v4234_v18, %v16419_v2  ;;  %v16420_v22 = vld [vmem:[#allocation33_spill] sm:$0xff]  ;;  %v3964_v18 = vmul.f32 %v3900_v51, %v11987_v3 }
 0x72c   :  { %v3802_v19 = vpop.f32.mrf.mxu0  ;;  %4543 = vmatpush1.msra.mxu1 %v4301_v43  ;;  %v4297_v53 = vadd.f32 %v4233_v36, %v16420_v22 }
 0x72d   :  { %4088 = vst [vmem:[#allocation4 + $0x178] sm:$0xff] %v13365_v23  ;;  %v13371_v7 = vadd.f32 %v3961_v38, %v3802_v19  ;;  %4544 = vmatprep.subr.mxu1 %v4300_v0  ;;  %v3901_v38 = vld [vmem:[#allocation4 + $0x1a0] sm:$0xff]  ;;  %v3902_v0 = vld [vmem:[#allocation4 + $0x1a8] sm:$0xff] }
 0x72e   :  { %v3804_v11 = vpop.f32.mrf.mxu0  ;;  %4545 = vmatpush1.msra.mxu1 %v4299_v34 }
 0x72f   :  { %4089 = vst [vmem:[#allocation4 + $0x180] sm:$0xff] %v13371_v7  ;;  %v13377_v59 = vadd.f32 %v3962_v47, %v3804_v11  ;;  %4546 = vmatprep.subr.mxu1 %v4298_v35  ;;  %v3965_v11 = vmul.f32 %v3901_v38, %v11987_v3  ;;  %v3903_v47 = vld [vmem:[#allocation4 + $0x1b0] sm:$0xff]  ;;  %v3966_v35 = vmul.f32 %v3902_v0, %v11987_v3 }
 0x730   :  { %v3808_v43 = vpop.f32.mrf.mxu0  ;;  %4547 = vmatpush1.msra.mxu1 %v4297_v53 }
 0x731   :  { %4090 = vst [vmem:[#allocation4 + $0x188] sm:$0xff] %v13377_v59  ;;  %v13381_v24 = vadd.f32 %v3963_v8, %v3808_v43  ;;  %v3904_v8 = vld [vmem:[#allocation4 + $0x1b8] sm:$0xff]  ;;  %v3967_v43 = vmul.f32 %v3903_v47, %v11987_v3 }
 0x732   :  { %v3810_v36 = vpop.f32.mrf.mxu0  ;;  %v3968_v22 = vmul.f32 %v3904_v8, %v11987_v3  ;;  %v3909_v8 = vld [vmem:[#allocation4 + $0x1e0] sm:$0xff] }
 0x733   :  { %4091 = vst [vmem:[#allocation4 + $0x190] sm:$0xff] %v13381_v24  ;;  %v13385_v34 = vadd.f32 %v3964_v18, %v3810_v36  ;;  %v3905_v36 = vld [vmem:[#allocation4 + $0x1c0] sm:$0xff] }
 0x734   :  { %v3814_v19 = vpop.f32.mrf.mxu0  ;;  %v3969_v0 = vmul.f32 %v3905_v36, %v11987_v3  ;;  %v3910_v36 = vld [vmem:[#allocation4 + $0x1e8] sm:$0xff] }
 0x735   :  { %4092 = vst [vmem:[#allocation4 + $0x198] sm:$0xff] %v13385_v34  ;;  %v13389_v5 = vadd.f32 %v3965_v11, %v3814_v19  ;;  %v3906_v11 = vld [vmem:[#allocation4 + $0x1c8] sm:$0xff] }
 0x736   :  { %v3816_v53 = vpop.f32.mrf.mxu0 }
 0x737   :  { %4093 = vst [vmem:[#allocation4 + $0x1a0] sm:$0xff] %v13389_v5  ;;  %v13393_v51 = vadd.f32 %v3966_v35, %v3816_v53  ;;  %v3970_v53 = vmul.f32 %v3906_v11, %v11987_v3  ;;  %v3911_v11 = vld [vmem:[#allocation4 + $0x1f0] sm:$0xff] }
 0x738   :  { %v3820_v18 = vpop.f32.mrf.mxu0 }
 0x739   :  { %4094 = vst [vmem:[#allocation4 + $0x1a8] sm:$0xff] %v13393_v51  ;;  %v4031_v38 = vadd.f32 %v3967_v43, %v3820_v18  ;;  %v3971_v43 = vmul.f32 %v3907_v32, %v11987_v3  ;;  %v3912_v32 = vld [vmem:[#allocation4 + $0x1f8] sm:$0xff] }
 0x73a   :  { %v3822_v2 = vpop.f32.mrf.mxu0  ;;  %v3976_v63 = vmul.f32 %v3912_v32, %v11987_v3 }
 0x73b   :  { %4095 = vst [vmem:[#allocation4 + $0x1b0] sm:$0xff] %v4031_v38  ;;  %v4032_v19 = vadd.f32 %v3968_v22, %v3822_v2  ;;  %v3972_v2 = vmul.f32 %v3908_v21, %v11987_v3 }
 0x73c   :  { %v3826_v27 = vpop.f32.mrf.mxu0 }
 0x73d   :  { %4096 = vst [vmem:[#allocation4 + $0x1b8] sm:$0xff] %v4032_v19  ;;  %v4033_v35 = vadd.f32 %v3969_v0, %v3826_v27  ;;  %v3973_v27 = vmul.f32 %v3909_v8, %v11987_v3 }
 0x73e   :  { %v3828_v47 = vpop.f32.mrf.mxu0 }
 0x73f   :  { %4097 = vst [vmem:[#allocation4 + $0x1c0] sm:$0xff] %v4033_v35  ;;  %v4034_v37 = vadd.f32 %v3970_v53, %v3828_v47  ;;  %v3974_v53 = vmul.f32 %v3910_v36, %v11987_v3  ;;  %v16423_v36 = vld [vmem:[#allocation160_spill] sm:$0xff] }
 0x740   :  { %v3832_v18 = vpop.f32.mrf.mxu0 }
 0x741   :  { %4098 = vst [vmem:[#allocation4 + $0x1c8] sm:$0xff] %v4034_v37  ;;  %v4035_v50 = vadd.f32 %v3971_v43, %v3832_v18  ;;  %v3975_v43 = vmul.f32 %v3911_v11, %v11987_v3  ;;  %v16426_v11 = vld [vmem:[#allocation96_spill] sm:$0xff]  ;;  %v4290_v25 = vmul.f32 %v4034_v37, %v16429_v10  ;;  %v16438_v37 = vld [vmem:[#allocation90_spill] sm:$0xff] }
 0x742   :  { %v3834_v22 = vpop.f32.mrf.mxu0 }
 0x743   :  { %4099 = vst [vmem:[#allocation4 + $0x1d0] sm:$0xff] %v4035_v50  ;;  %v4036_v28 = vadd.f32 %v3972_v2, %v3834_v22  ;;  %v16421_v22 = vld [vmem:[#allocation159_spill] sm:$0xff] }
 0x744   :  { %v3838_v0 = vpop.f32.mrf.mxu0 }
 0x745   :  { %4100 = vst [vmem:[#allocation4 + $0x1d8] sm:$0xff] %v4036_v28  ;;  %v4037_v41 = vadd.f32 %v3973_v27, %v3838_v0 }
 0x746   :  { %v3840_v47 = vpop.f32.mrf.mxu0 }
 0x747   :  { %4101 = vst [vmem:[#allocation4 + $0x1e0] sm:$0xff] %v4037_v41  ;;  %v4038_v55 = vadd.f32 %v3974_v53, %v3840_v47  ;;  %v4293_v12 = vmul.f32 %v4037_v41, %v16424_v42  ;;  %v16425_v53 = vld [vmem:[#allocation156_spill] sm:$0xff]  ;;  %v5088_v42 = vld [vmem:[#allocation4 + $0x118] sm:$0xff] }
 0x748   :  { %v3844_v18 = vpop.f32.mrf.mxu0  ;;  %v4292_v47 = vmul.f32 %v4036_v28, %v16425_v53  ;;  %v16434_v28 = vld [vmem:[#allocation92_spill] sm:$0xff] }
 0x749   :  { %4102 = vst [vmem:[#allocation4 + $0x1e8] sm:$0xff] %v4038_v55  ;;  %v4039_v21 = vadd.f32 %v3975_v43, %v3844_v18  ;;  %v4294_v27 = vmul.f32 %v4038_v55, %v16422_v57  ;;  %v4291_v43 = vmul.f32 %v4035_v50, %v16427_v33  ;;  %v16428_v18 = vld [vmem:[#allocation95_spill] sm:$0xff]  ;;  %v16432_v57 = vld [vmem:[#allocation93_spill] sm:$0xff] }
 0x74a   :  { %v3846_v2 = vpop.f32.mrf.mxu0  ;;  %v4356_v53 = vadd.f32 %v4292_v47, %v16434_v28  ;;  %v16436_v50 = vld [vmem:[#allocation91_spill] sm:$0xff] }
 0x74b   :  { %4103 = vst [vmem:[#allocation4 + $0x1f0] sm:$0xff] %v4039_v21  ;;  %v4040_v8 = vadd.f32 %v3976_v63, %v3846_v2  ;;  %v4295_v60 = vmul.f32 %v4039_v21, %v16421_v22  ;;  %v16430_v63 = vld [vmem:[#allocation94_spill] sm:$0xff]  ;;  %v16431_v2 = vld [vmem:[#allocation153_spill] sm:$0xff]  ;;  %v4357_v22 = vadd.f32 %v4293_v12, %v16432_v57  ;;  %v4355_v33 = vadd.f32 %v4291_v43, %v16436_v50  ;;  %v16443_v43 = vld [vmem:[#allocation147_spill] sm:$0xff] }
 0x74c   :  { %v4358_v21 = vadd.f32 %v4294_v27, %v16430_v63  ;;  %v4289_v55 = vmul.f32 %v4033_v35, %v16431_v2  ;;  %v4354_v27 = vadd.f32 %v4290_v25, %v16438_v37  ;;  %v16439_v35 = vld [vmem:[#allocation149_spill] sm:$0xff]  ;;  %v16444_v50 = vld [vmem:[#allocation87_spill] sm:$0xff]  ;;  %v16492_v63 = vld [vmem:[#allocation126_spill] sm:$0xff] }
 0x74d   :  { %4104 = vst [vmem:[#allocation4 + $0x1f8] sm:$0xff] %v4040_v8  ;;  %v4296_v0 = vmul.f32 %v4040_v8, %v16423_v36  ;;  %v4359_v32 = vadd.f32 %v4295_v60, %v16428_v18  ;;  %v16433_v8 = vld [vmem:[#allocation152_spill] sm:$0xff]  ;;  %v16437_v60 = vld [vmem:[#allocation150_spill] sm:$0xff]  ;;  %v4285_v12 = vmul.f32 %v13389_v5, %v16439_v35  ;;  %v5087_v2 = vld [vmem:[#allocation4 + $0x110] sm:$0xff] }
 0x74e   :  { %v4288_v41 = vmul.f32 %v4032_v19, %v16433_v8  ;;  %v16441_v19 = vld [vmem:[#allocation148_spill] sm:$0xff]  ;;  %v16446_v5 = vld [vmem:[#allocation86_spill] sm:$0xff] }
 0x74f   :  { %v4360_v61 = vadd.f32 %v4296_v0, %v16426_v11  ;;  %v16435_v0 = vld [vmem:[#allocation151_spill] sm:$0xff]  ;;  %v4284_v47 = vmul.f32 %v13385_v34, %v16441_v19  ;;  %v5083_v19 = vld [vmem:[#allocation4 + $0xf0] sm:$0xff] }
 0x750   :  { %v4287_v11 = vmul.f32 %v4031_v38, %v16435_v0  ;;  %v16442_v38 = vld [vmem:[#allocation88_spill] sm:$0xff] }
 0x751   :  { %4548 = vmatprep.subr.mxu1 %v4360_v61  ;;  %v4286_v61 = vmul.f32 %v13393_v51, %v16437_v60 }
 0x752   :  { %4549 = vmatpush2.msra.mxu1 %v4359_v32  ;;  %v16440_v32 = vld [vmem:[#allocation89_spill] sm:$0xff]  ;;  %v4351_v51 = vadd.f32 %v4287_v11, %v16444_v50  ;;  %v16451_v11 = vld [vmem:[#allocation143_spill] sm:$0xff] }
 0x753   :  { %4550 = vmatprep.subr.mxu1 %v4358_v21  ;;  %v4353_v57 = vadd.f32 %v4289_v55, %v16440_v32  ;;  %v4352_v21 = vadd.f32 %v4288_v41, %v16442_v38  ;;  %v4350_v35 = vadd.f32 %v4286_v61, %v16446_v5  ;;  %v16447_v55 = vld [vmem:[#allocation145_spill] sm:$0xff]  ;;  %v16452_v50 = vld [vmem:[#allocation83_spill] sm:$0xff]  ;;  %v5082_v38 = vld [vmem:[#allocation4 + $0xe8] sm:$0xff] }
 0x754   :  { %4551 = vmatpush2.msra.mxu1 %v4357_v22  ;;  %v4283_v22 = vmul.f32 %v13381_v24, %v16443_v43  ;;  %v16448_v32 = vld [vmem:[#allocation85_spill] sm:$0xff]  ;;  %v16450_v24 = vld [vmem:[#allocation84_spill] sm:$0xff] }
 0x755   :  { %4552 = vmatprep.subr.mxu1 %v4356_v53  ;;  %v16445_v53 = vld [vmem:[#allocation146_spill] sm:$0xff]  ;;  %v4349_v34 = vadd.f32 %v4285_v12, %v16448_v32  ;;  %v4348_v43 = vadd.f32 %v4284_v47, %v16450_v24  ;;  %v16455_v12 = vld [vmem:[#allocation141_spill] sm:$0xff] }
 0x756   :  { %4553 = vmatpush2.msra.mxu1 %v4355_v33  ;;  %v4282_v25 = vmul.f32 %v13377_v59, %v16445_v53  ;;  %v4281_v33 = vmul.f32 %v13371_v7, %v16447_v55  ;;  %v4347_v59 = vadd.f32 %v4283_v22, %v16452_v50  ;;  %v16454_v7 = vld [vmem:[#allocation82_spill] sm:$0xff]  ;;  %v16456_v32 = vld [vmem:[#allocation81_spill] sm:$0xff]  ;;  %v16459_v22 = vld [vmem:[#allocation139_spill] sm:$0xff] }
 0x757   :  { %4554 = vmatprep.subr.mxu1 %v4354_v27  ;;  %v16449_v27 = vld [vmem:[#allocation144_spill] sm:$0xff]  ;;  %v16460_v50 = vld [vmem:[#allocation79_spill] sm:$0xff] }
 0x758   :  { %4555 = vmatpush2.msra.mxu1 %v4353_v57  ;;  %v4280_v41 = vmul.f32 %v13365_v23, %v16449_v27  ;;  %v4279_v57 = vmul.f32 %v13357_v44, %v16451_v11  ;;  %v4346_v55 = vadd.f32 %v4282_v25, %v16454_v7  ;;  %v4345_v23 = vadd.f32 %v4281_v33, %v16456_v32  ;;  %v16458_v44 = vld [vmem:[#allocation80_spill] sm:$0xff]  ;;  %v16463_v33 = vld [vmem:[#allocation137_spill] sm:$0xff] }
 0x759   :  { %4556 = vmatprep.subr.mxu1 %v4352_v21  ;;  %v16453_v21 = vld [vmem:[#allocation142_spill] sm:$0xff]  ;;  %v16464_v32 = vld [vmem:[#allocation77_spill] sm:$0xff] }
 0x75a   :  { %4557 = vmatpush2.msra.mxu1 %v4351_v51  ;;  %v4278_v61 = vmul.f32 %v13347_v54, %v16453_v21  ;;  %v4277_v51 = vmul.f32 %v13337_v48, %v16455_v12  ;;  %v4344_v11 = vadd.f32 %v4280_v41, %v16458_v44  ;;  %v4343_v54 = vadd.f32 %v4279_v57, %v16460_v50  ;;  %v16462_v48 = vld [vmem:[#allocation78_spill] sm:$0xff]  ;;  %v16467_v57 = vld [vmem:[#allocation135_spill] sm:$0xff] }
 0x75b   :  { %4558 = vmatprep.subr.mxu1 %v4350_v35  ;;  %v16457_v35 = vld [vmem:[#allocation140_spill] sm:$0xff]  ;;  %v16468_v50 = vld [vmem:[#allocation75_spill] sm:$0xff] }
 0x75c   :  { %4559 = vmatpush2.msra.mxu1 %v4349_v34  ;;  %v4276_v47 = vmul.f32 %v13327_v62, %v16457_v35  ;;  %v4275_v34 = vmul.f32 %v13317_v39, %v16459_v22  ;;  %v4342_v12 = vadd.f32 %v4278_v61, %v16462_v48  ;;  %v4341_v62 = vadd.f32 %v4277_v51, %v16464_v32  ;;  %v16466_v39 = vld [vmem:[#allocation76_spill] sm:$0xff]  ;;  %v16471_v51 = vld [vmem:[#allocation133_spill] sm:$0xff] }
 0x75d   :  { %4560 = vmatprep.subr.mxu1 %v4348_v43  ;;  %v16461_v43 = vld [vmem:[#allocation138_spill] sm:$0xff]  ;;  %v16472_v32 = vld [vmem:[#allocation73_spill] sm:$0xff] }
 0x75e   :  { %4561 = vmatpush2.msra.mxu1 %v4347_v59  ;;  %v4274_v25 = vmul.f32 %v13307_v29, %v16461_v43  ;;  %v4273_v59 = vmul.f32 %v13297_v30, %v16463_v33  ;;  %v4340_v22 = vadd.f32 %v4276_v47, %v16466_v39  ;;  %v4339_v29 = vadd.f32 %v4275_v34, %v16468_v50  ;;  %v16470_v30 = vld [vmem:[#allocation74_spill] sm:$0xff]  ;;  %v16475_v34 = vld [vmem:[#allocation131_spill] sm:$0xff] }
 0x75f   :  { %4562 = vmatprep.subr.mxu1 %v4346_v55  ;;  %v16465_v55 = vld [vmem:[#allocation136_spill] sm:$0xff]  ;;  %v16476_v50 = vld [vmem:[#allocation71_spill] sm:$0xff] }
 0x760   :  { %4563 = vmatpush2.msra.mxu1 %v4345_v23  ;;  %v4272_v41 = vmul.f32 %v13287_v9, %v16465_v55  ;;  %v4271_v23 = vmul.f32 %v13277_v4, %v16467_v57  ;;  %v4338_v33 = vadd.f32 %v4274_v25, %v16470_v30  ;;  %v4337_v9 = vadd.f32 %v4273_v59, %v16472_v32  ;;  %v16474_v4 = vld [vmem:[#allocation72_spill] sm:$0xff]  ;;  %v16479_v59 = vld [vmem:[#allocation129_spill] sm:$0xff] }
 0x761   :  { %4564 = vmatprep.subr.mxu1 %v4344_v11  ;;  %v16469_v11 = vld [vmem:[#allocation134_spill] sm:$0xff]  ;;  %v16480_v32 = vld [vmem:[#allocation69_spill] sm:$0xff] }
 0x762   :  { %4565 = vmatpush2.msra.mxu1 %v4343_v54  ;;  %v4270_v61 = vmul.f32 %v13267_v14, %v16469_v11  ;;  %v4269_v54 = vmul.f32 %v13257_v45, %v16471_v51  ;;  %v4336_v57 = vadd.f32 %v4272_v41, %v16474_v4  ;;  %v4335_v14 = vadd.f32 %v4271_v23, %v16476_v50  ;;  %v16478_v45 = vld [vmem:[#allocation70_spill] sm:$0xff]  ;;  %v16482_v4 = vld [vmem:[#allocation67_spill] sm:$0xff]  ;;  %v16484_v50 = vld [vmem:[#allocation65_spill] sm:$0xff] }
 0x763   :  { %4566 = vmatprep.subr.mxu1 %v4342_v12  ;;  %v16473_v12 = vld [vmem:[#allocation132_spill] sm:$0xff]  ;;  %v16483_v23 = vld [vmem:[#allocation66_spill] sm:$0xff] }
 0x764   :  { %4567 = vmatpush2.msra.mxu1 %v4341_v62  ;;  %v4268_v47 = vmul.f32 %v13247_v31, %v16473_v12  ;;  %v4267_v62 = vmul.f32 %v13238_v58, %v16475_v34  ;;  %v4334_v51 = vadd.f32 %v4270_v61, %v16478_v45  ;;  %v4333_v31 = vadd.f32 %v4269_v54, %v16480_v32  ;;  %v16485_v61 = vld [vmem:[#allocation162_spill] sm:$0xff] }
 0x765   :  { %4568 = vmatprep.subr.mxu1 %v4340_v22  ;;  %v16477_v22 = vld [vmem:[#allocation130_spill] sm:$0xff] }
 0x766   :  { %4569 = vmatpush2.msra.mxu1 %v4339_v29  ;;  %v4266_v25 = vmul.f32 %v13230_v16, %v16477_v22  ;;  %v4265_v29 = vmul.f32 %v13224_v40, %v16479_v59  ;;  %v4331_v58 = vadd.f32 %v4267_v62, %v16482_v4  ;;  %v16486_v40 = vmov 0.0  }
 0x767   :  { %4570 = vmatprep.subr.mxu1 %v4338_v33  ;;  %v16481_v33 = vld [vmem:[#allocation68_spill] sm:$0xff] }
 0x768   :  { %4571 = vmatpush2.msra.mxu1 %v4337_v9  ;;  %v4332_v41 = vadd.f32 %v4268_v47, %v16481_v33  ;;  %v4330_v9 = vadd.f32 %v4266_v25, %v16483_v23  ;;  %v4329_v16 = vadd.f32 %v4265_v29, %v16484_v50  ;;  %v16487_v47 = vld [vmem:[#allocation161_spill] sm:$0xff]  ;;  %v4652_v29 = vpop.trf.xlu0  ;;  %v16489_v33 = vld [vmem:[#allocation164_spill] sm:$0xff] }
 0x769   :  { %4572 = vmatprep.subr.mxu1 %v4336_v57  ;;  %v10841_v57 = vld [vmem:[#allocation2] ss:$8 sm:$0x3] }
 0x76a   :  { %4573 = vmatpush2.msra.mxu1 %v4335_v14  ;;  %v4498_v45 = vrot.slane %v10841_v57, %v16485_v61 }
 0x76b   :  { %4574 = vmatprep.subr.mxu1 %v4334_v51  ;;  %v4493_v51 = vld [vmem:[#allocation13 + $0x3] ss:$8 sm:$0x3] }
 0x76c   :  { %4575 = vmatpush2.msra.mxu1 %v4333_v31  ;;  %v4509_v54 = vrot.slane %v4493_v51, %v16485_v61  ;;  %v4513_v62 = vrot.slane %v4493_v51, %v16487_v47 }
 0x76d   :  { %4576 = vmatprep.subr.mxu1 %v4332_v41 }
 0x76e   :  { %4577 = vmatpush2.msra.mxu1 %v4331_v58  ;;  %v4653_v58 = vpop.trf.xlu0 }
 0x76f   :  { %4578 = vmatprep.subr.mxu1 %v4330_v9 }
 0x770   :  { %4579 = vmatpush2.msra.mxu1 %v4329_v16  ;;  %v16488_v16 = vld [vmem:[#allocation163_spill] sm:$0xff] }
 0x771   :  { %4581 = vmatmul.mubr.f32.vlgmr.msra.gmra.mxu1 %v4498_v45 }
 0x772   :  { %4860 = vmatprep.mubr.f32.mxu1 %v16486_v40  ;;  %v4654_v50 = vpop.trf.xlu0 }
 0x776   :  { %v4655_v51 = vpop.trf.xlu0 }
 0x831   :  { %v4582_v14 = vpop.f32.mrf.mxu1 }
 0x832   :  { %v4583_v31 = vadd.f32 %v4582_v14, %v4509_v54 }
 0x833   :  { %v4584_v41 = vpop.f32.mrf.mxu1 }
 0x834   :  { %10808 = vtanh.f32 %v4583_v31  ;;  %v4585_v25 = vadd.f32 %v4584_v41, %v4513_v62  ;;  %v4656_v41 = vpop.trf.xlu0 }
 0x836   :  { %10810 = vtanh.f32 %v4585_v25 }
 0x841   :  { %v10809_v9 = vpop.eup %10808 }
 0x842   :  { %v4610_v45 = vmul.f32 %v10809_v9, %v16488_v16 }
 0x843   :  { %v10811_v57 = vpop.eup %10810 }
 0x844   :  { %v4591_v23 = vcombine.low %v10809_v9, %v10811_v57  ;;  %v4611_v4 = vmul.f32 %v10811_v57, %v16488_v16  ;;  %v4657_v57 = vpop.trf.xlu0 }
 0x846   :  { %v4598_v61 = vrot.slane %v4591_v23, %v16489_v33  ;;  %v4614_v32 = vcombine.low %v4610_v45, %v4611_v4 }
 0x848   :  { %v4605_v54 = vrot.slane %v4598_v61, %v16489_v33  ;;  %v4621_v14 = vrot.slane %v4614_v32, %v16489_v33  ;;  %v4658_v45 = vpop.trf.xlu0 }
 0x84a   :  { %4608 = vst.msk [vmem:[#allocation16 + $0x3] ss:$8 sm:$0x3] %vm11909_vm0, %v4605_v54  ;;  %v4628_v31 = vrot.slane %v4621_v14, %v16489_v33  ;;  %5629 = vst.msk [vmem:[#allocation2] ss:$8 sm:$0x3] %vm11909_vm0, %v4605_v54 }
 0x84c   :  { %4630 = vst.msk [vmem:[#allocation3] ss:$8 sm:$0x3] %vm11909_vm0, %v4628_v31  ;;  %v4659_v54 = vpop.trf.xlu0 }
 0x850   :  { %v4660_v14 = vpop.trf.xlu0 }
 0x851   :  { %v5837_v25 = vld [vmem:[#allocation2 + $0x8] sm:$0xff]  ;;  %v5836_v23 = vld [vmem:[#allocation2] sm:$0xff] }
 0x852   :  { %v5631_v4 = vld [vmem:[#allocation2] ss:$8 sm:$0x3]  ;;  %5872 = vxpose.xlu1.b32.start.end [1/1] (short) %v5837_v25, 128  ;;  %5840 = vxpose.xlu0.b32.start.end [1/1] (short) %v5836_v23, 128 }
 0x853   :  { %v5706_v61 = vrot.slane %v5631_v4, %v16487_v47  ;;  %v4635_v32 = vld [vmem:[#allocation3 + $0x8] sm:$0xff]  ;;  %v4634_v9 = vld [vmem:[#allocation3] sm:$0xff] }
 0x854   :  { %4826 = vmatprep.subr.mxu1 %v4635_v32 }
 0x855   :  { %5784 = vmatprep.mubr.f32.mxu0 %v5706_v61  ;;  %4827 = vmatpush1.msra.mxu1 %v4634_v9 }
 0x856   :  { %10623 = vmatmul.mubr.msk.f32.vlgmr.msra.gmra.mxu1 %vm1086_vm1, %v4652_v29  ;;  %v4661_v29 = vpop.trf.xlu0 }
 0x857   :  { %4866 = vmatprep.mubr.f32.mxu1 %v16486_v40 }
 0x85a   :  { %10624 = vmatmul.mubr.msk.f32.gmra.mxu1 %vm1086_vm1, %v4653_v58  ;;  %v4684_v58 = vpop.trf.xlu1 }
 0x85b   :  { %4872 = vmatprep.mubr.f32.mxu1 %v16486_v40 }
 0x85e   :  { %10625 = vmatmul.mubr.msk.f32.gmra.mxu1 %vm1086_vm1, %v4654_v50  ;;  %v4662_v50 = vpop.trf.xlu0  ;;  %v4685_v31 = vpop.trf.xlu1 }
 0x85f   :  { %4878 = vmatprep.mubr.f32.mxu1 %v16486_v40 }
 0x862   :  { %10626 = vmatmul.mubr.msk.f32.gmra.mxu1 %vm1086_vm1, %v4655_v51  ;;  %v4663_v51 = vpop.trf.xlu0  ;;  %v4686_v25 = vpop.trf.xlu1 }
 0x863   :  { %4884 = vmatprep.mubr.f32.mxu1 %v16486_v40 }
 0x866   :  { %10627 = vmatmul.mubr.msk.f32.gmra.mxu1 %vm1086_vm1, %v4656_v41  ;;  %v4664_v41 = vpop.trf.xlu0  ;;  %v4687_v4 = vpop.trf.xlu1 }
 0x867   :  { %4890 = vmatprep.mubr.f32.mxu1 %v16486_v40 }
 0x86a   :  { %10628 = vmatmul.mubr.msk.f32.gmra.mxu1 %vm1086_vm1, %v4657_v57  ;;  %v4665_v23 = vpop.trf.xlu0  ;;  %v4688_v32 = vpop.trf.xlu1 }
 0x86b   :  { %4896 = vmatprep.mubr.f32.mxu1 %v16486_v40 }
 0x86e   :  { %10629 = vmatmul.mubr.msk.f32.gmra.mxu1 %vm1086_vm1, %v4658_v45  ;;  %v4666_v61 = vpop.trf.xlu0  ;;  %v4689_v57 = vpop.trf.xlu1 }
 0x86f   :  { %4902 = vmatprep.mubr.f32.mxu1 %v16486_v40 }
 0x872   :  { %10630 = vmatmul.mubr.msk.f32.gmra.mxu1 %vm1086_vm1, %v4659_v54  ;;  %v4667_v9 = vpop.trf.xlu0  ;;  %v4690_v45 = vpop.trf.xlu1 }
 0x873   :  { %4908 = vmatprep.mubr.f32.mxu1 %v16486_v40 }
 0x876   :  { %10631 = vmatmul.mubr.msk.f32.gmra.mxu1 %vm1086_vm1, %v4660_v14  ;;  %v4691_v54 = vpop.trf.xlu1 }
 0x877   :  { %4914 = vmatprep.mubr.f32.mxu1 %v16486_v40 }
 0x87a   :  { %10632 = vmatmul.mubr.msk.f32.gmra.mxu1 %vm1086_vm1, %v4661_v29  ;;  %v4692_v14 = vpop.trf.xlu1 }
 0x87b   :  { %4920 = vmatprep.mubr.f32.mxu1 %v16486_v40 }
 0x87e   :  { %10633 = vmatmul.mubr.msk.f32.gmra.mxu1 %vm1086_vm1, %v4662_v50  ;;  %v4693_v29 = vpop.trf.xlu1 }
 0x87f   :  { %4926 = vmatprep.mubr.f32.mxu1 %v16486_v40 }
 0x882   :  { %10634 = vmatmul.mubr.msk.f32.gmra.mxu1 %vm1086_vm1, %v4663_v51  ;;  %v4694_v50 = vpop.trf.xlu1 }
 0x883   :  { %4932 = vmatprep.mubr.f32.mxu1 %v16486_v40 }
 0x886   :  { %10635 = vmatmul.mubr.msk.f32.gmra.mxu1 %vm1086_vm1, %v4664_v41 }
 0x887   :  { %4938 = vmatprep.mubr.f32.mxu1 %v16486_v40 }
 0x88a   :  { %10636 = vmatmul.mubr.msk.f32.gmra.mxu1 %vm1086_vm1, %v4665_v23  ;;  %v5053_v23 = vld [vmem:[#allocation4] sm:$0xff] }
 0x88b   :  { %4944 = vmatprep.mubr.f32.mxu1 %v16486_v40 }
 0x88e   :  { %10637 = vmatmul.mubr.msk.f32.gmra.mxu1 %vm1086_vm1, %v4666_v61  ;;  %v5117_v61 = vmul.f32 %v5053_v23, %v11987_v3  ;;  %v5058_v23 = vld [vmem:[#allocation4 + $0x28] sm:$0xff] }
 0x88f   :  { %4950 = vmatprep.mubr.f32.mxu1 %v16486_v40 }
 0x892   :  { %10638 = vmatmul.mubr.msk.f32.gmra.mxu1 %vm1086_vm1, %v4667_v9  ;;  %v5055_v9 = vld [vmem:[#allocation4 + $0x10] sm:$0xff] }
 0x893   :  { %4956 = vmatprep.mubr.f32.mxu1 %v16486_v40 }
 0x896   :  { %10639 = vmatmul.mubr.msk.f32.gmra.mxu1 %vm1086_vm1, %v4684_v58  ;;  %v4695_v58 = vpop.trf.xlu1 }
 0x897   :  { %4962 = vmatprep.mubr.f32.mxu1 %v16486_v40 }
 0x89a   :  { %10640 = vmatmul.mubr.msk.f32.gmra.mxu1 %vm1086_vm1, %v4685_v31  ;;  %v4696_v51 = vpop.trf.xlu1 }
 0x89b   :  { %4968 = vmatprep.mubr.f32.mxu1 %v16486_v40 }
 0x89e   :  { %10641 = vmatmul.mubr.msk.f32.gmra.mxu1 %vm1086_vm1, %v4686_v25  ;;  %v4697_v31 = vpop.trf.xlu1 }
 0x89f   :  { %4974 = vmatprep.mubr.f32.mxu1 %v16486_v40 }
 0x8a2   :  { %10642 = vmatmul.mubr.msk.f32.gmra.mxu1 %vm1086_vm1, %v4687_v4  ;;  %v4698_v41 = vpop.trf.xlu1  ;;  %v5054_v4 = vld [vmem:[#allocation4 + $0x8] sm:$0xff] }
 0x8a3   :  { %4980 = vmatprep.mubr.f32.mxu1 %v16486_v40 }
 0x8a6   :  { %10643 = vmatmul.mubr.msk.f32.gmra.mxu1 %vm1086_vm1, %v4688_v32  ;;  %v4699_v25 = vpop.trf.xlu1 }
 0x8a7   :  { %4986 = vmatprep.mubr.f32.mxu1 %v16486_v40 }
 0x8aa   :  { %10644 = vmatmul.mubr.msk.f32.gmra.mxu1 %vm1086_vm1, %v4689_v57 }
 0x8ab   :  { %4992 = vmatprep.mubr.f32.mxu1 %v16486_v40 }
 0x8ae   :  { %10645 = vmatmul.mubr.msk.f32.gmra.mxu1 %vm1086_vm1, %v4690_v45  ;;  %v5118_v45 = vmul.f32 %v5054_v4, %v11987_v3 }
 0x8af   :  { %4998 = vmatprep.mubr.f32.mxu1 %v16486_v40 }
 0x8b2   :  { %10646 = vmatmul.mubr.msk.f32.gmra.mxu1 %vm1086_vm1, %v4691_v54 }
 0x8b3   :  { %5004 = vmatprep.mubr.f32.mxu1 %v16486_v40 }
 0x8b6   :  { %10647 = vmatmul.mubr.msk.f32.gmra.mxu1 %vm1086_vm1, %v4692_v14  ;;  %v5056_v14 = vld [vmem:[#allocation4 + $0x18] sm:$0xff] }
 0x8b7   :  { %5010 = vmatprep.mubr.f32.mxu1 %v16486_v40 }
 0x8ba   :  { %10648 = vmatmul.mubr.msk.f32.gmra.mxu1 %vm1086_vm1, %v4693_v29 }
 0x8bb   :  { %5016 = vmatprep.mubr.f32.mxu1 %v16486_v40 }
 0x8be   :  { %10649 = vmatmul.mubr.msk.f32.gmra.mxu1 %vm1086_vm1, %v4694_v50  ;;  %v5119_v50 = vmul.f32 %v5055_v9, %v11987_v3 }
 0x8bf   :  { %5022 = vmatprep.mubr.f32.mxu1 %v16486_v40 }
 0x8c2   :  { %10650 = vmatmul.mubr.msk.f32.gmra.mxu1 %vm1086_vm1, %v4695_v58 }
 0x8c3   :  { %5028 = vmatprep.mubr.f32.mxu1 %v16486_v40 }
 0x8c6   :  { %10651 = vmatmul.mubr.msk.f32.gmra.mxu1 %vm1086_vm1, %v4696_v51  ;;  %v5057_v51 = vld [vmem:[#allocation4 + $0x20] sm:$0xff] }
 0x8c7   :  { %5034 = vmatprep.mubr.f32.mxu1 %v16486_v40 }
 0x8ca   :  { %10652 = vmatmul.mubr.msk.f32.gmra.mxu1 %vm1086_vm1, %v4697_v31 }
 0x8cb   :  { %5040 = vmatprep.mubr.f32.mxu1 %v16486_v40 }
 0x8ce   :  { %10653 = vmatmul.mubr.msk.f32.gmra.mxu1 %vm1086_vm1, %v4698_v41  ;;  %v5120_v41 = vmul.f32 %v5056_v14, %v11987_v3 }
 0x8cf   :  { %5046 = vmatprep.mubr.f32.mxu1 %v16486_v40 }
 0x8d2   :  { %10654 = vmatmul.mubr.msk.f32.gmra.mxu1 %vm1086_vm1, %v4699_v25 }
 0x916   :  { %v4862_v32 = vpop.f32.mrf.mxu1 }
 0x917   :  { %v13573_v57 = vadd.f32 %v5117_v61, %v4862_v32  ;;  %v5121_v61 = vmul.f32 %v5057_v51, %v11987_v3 }
 0x918   :  { %v4864_v54 = vpop.f32.mrf.mxu1 }
 0x919   :  { %5245 = vst [vmem:[#allocation4] sm:$0xff] %v13573_v57  ;;  %v13577_v29 = vadd.f32 %v5118_v45, %v4864_v54  ;;  %v5059_v45 = vld [vmem:[#allocation4 + $0x30] sm:$0xff]  ;;  %v5122_v54 = vmul.f32 %v5058_v23, %v11987_v3 }
 0x91a   :  { %v4868_v58 = vpop.f32.mrf.mxu1  ;;  %v5123_v62 = vmul.f32 %v5059_v45, %v11987_v3 }
 0x91b   :  { %5246 = vst [vmem:[#allocation4 + $0x8] sm:$0xff] %v13577_v29  ;;  %v13581_v31 = vadd.f32 %v5119_v50, %v4868_v58  ;;  %v5060_v58 = vld [vmem:[#allocation4 + $0x38] sm:$0xff] }
 0x91c   :  { %v4870_v25 = vpop.f32.mrf.mxu1  ;;  %v5124_v33 = vmul.f32 %v5060_v58, %v11987_v3 }
 0x91d   :  { %5247 = vst [vmem:[#allocation4 + $0x10] sm:$0xff] %v13581_v31  ;;  %v13585_v4 = vadd.f32 %v5120_v41, %v4870_v25  ;;  %v5061_v25 = vld [vmem:[#allocation4 + $0x40] sm:$0xff] }
 0x91e   :  { %v4874_v32 = vpop.f32.mrf.mxu1  ;;  %v5125_v16 = vmul.f32 %v5061_v25, %v11987_v3 }
 0x91f   :  { %5248 = vst [vmem:[#allocation4 + $0x18] sm:$0xff] %v13585_v4  ;;  %v13589_v9 = vadd.f32 %v5121_v61, %v4874_v32  ;;  %v5062_v32 = vld [vmem:[#allocation4 + $0x48] sm:$0xff] }
 0x920   :  { %v4876_v50 = vpop.f32.mrf.mxu1  ;;  %v5126_v47 = vmul.f32 %v5062_v32, %v11987_v3 }
 0x921   :  { %5249 = vst [vmem:[#allocation4 + $0x20] sm:$0xff] %v13589_v9  ;;  %v13593_v14 = vadd.f32 %v5122_v54, %v4876_v50  ;;  %v5063_v50 = vld [vmem:[#allocation4 + $0x50] sm:$0xff] }
 0x922   :  { %v4880_v41 = vpop.f32.mrf.mxu1  ;;  %v5127_v40 = vmul.f32 %v5063_v50, %v11987_v3 }
 0x923   :  { %5250 = vst [vmem:[#allocation4 + $0x28] sm:$0xff] %v13593_v14  ;;  %v13597_v51 = vadd.f32 %v5123_v62, %v4880_v41  ;;  %v5064_v41 = vld [vmem:[#allocation4 + $0x58] sm:$0xff] }
 0x924   :  { %v4882_v61 = vpop.f32.mrf.mxu1  ;;  %v5128_v59 = vmul.f32 %v5064_v41, %v11987_v3 }
 0x925   :  { %5251 = vst [vmem:[#allocation4 + $0x30] sm:$0xff] %v13597_v51  ;;  %v13601_v23 = vadd.f32 %v5124_v33, %v4882_v61  ;;  %v5065_v61 = vld [vmem:[#allocation4 + $0x60] sm:$0xff] }
 0x926   :  { %v4886_v54 = vpop.f32.mrf.mxu1  ;;  %v5129_v22 = vmul.f32 %v5065_v61, %v11987_v3 }
 0x927   :  { %5252 = vst [vmem:[#allocation4 + $0x38] sm:$0xff] %v13601_v23  ;;  %v13605_v45 = vadd.f32 %v5125_v16, %v4886_v54  ;;  %v5066_v54 = vld [vmem:[#allocation4 + $0x68] sm:$0xff] }
 0x928   :  { %v4888_v62 = vpop.f32.mrf.mxu1  ;;  %v5130_v34 = vmul.f32 %v5066_v54, %v11987_v3 }
 0x929   :  { %5253 = vst [vmem:[#allocation4 + $0x40] sm:$0xff] %v13605_v45  ;;  %v13609_v58 = vadd.f32 %v5126_v47, %v4888_v62  ;;  %v5067_v62 = vld [vmem:[#allocation4 + $0x70] sm:$0xff] }
 0x92a   :  { %v4892_v33 = vpop.f32.mrf.mxu1  ;;  %v5131_v12 = vmul.f32 %v5067_v62, %v11987_v3 }
 0x92b   :  { %5254 = vst [vmem:[#allocation4 + $0x48] sm:$0xff] %v13609_v58  ;;  %v13613_v25 = vadd.f32 %v5127_v40, %v4892_v33  ;;  %v5068_v33 = vld [vmem:[#allocation4 + $0x78] sm:$0xff] }
 0x92c   :  { %v4894_v16 = vpop.f32.mrf.mxu1  ;;  %v5132_v30 = vmul.f32 %v5068_v33, %v11987_v3 }
 0x92d   :  { %5255 = vst [vmem:[#allocation4 + $0x50] sm:$0xff] %v13613_v25  ;;  %v13617_v32 = vadd.f32 %v5128_v59, %v4894_v16  ;;  %v5069_v16 = vld [vmem:[#allocation4 + $0x80] sm:$0xff] }
 0x92e   :  { %v4898_v47 = vpop.f32.mrf.mxu1  ;;  %v5133_v11 = vmul.f32 %v5069_v16, %v11987_v3 }
 0x92f   :  { %5256 = vst [vmem:[#allocation4 + $0x58] sm:$0xff] %v13617_v32  ;;  %v13621_v50 = vadd.f32 %v5129_v22, %v4898_v47  ;;  %v5070_v47 = vld [vmem:[#allocation4 + $0x88] sm:$0xff] }
 0x930   :  { %v4900_v40 = vpop.f32.mrf.mxu1  ;;  %v5134_v39 = vmul.f32 %v5070_v47, %v11987_v3 }
 0x931   :  { %5257 = vst [vmem:[#allocation4 + $0x60] sm:$0xff] %v13621_v50  ;;  %v13625_v41 = vadd.f32 %v5130_v34, %v4900_v40  ;;  %v5071_v40 = vld [vmem:[#allocation4 + $0x90] sm:$0xff] }
 0x932   :  { %v4904_v59 = vpop.f32.mrf.mxu1  ;;  %v5135_v55 = vmul.f32 %v5071_v40, %v11987_v3 }
 0x933   :  { %5258 = vst [vmem:[#allocation4 + $0x68] sm:$0xff] %v13625_v41  ;;  %v13629_v61 = vadd.f32 %v5131_v12, %v4904_v59  ;;  %v5072_v59 = vld [vmem:[#allocation4 + $0x98] sm:$0xff] }
 0x934   :  { %v4906_v22 = vpop.f32.mrf.mxu1  ;;  %v5136_v48 = vmul.f32 %v5072_v59, %v11987_v3 }
 0x935   :  { %5259 = vst [vmem:[#allocation4 + $0x70] sm:$0xff] %v13629_v61  ;;  %v13633_v54 = vadd.f32 %v5132_v30, %v4906_v22  ;;  %v5073_v22 = vld [vmem:[#allocation4 + $0xa0] sm:$0xff] }
 0x936   :  { %v4910_v34 = vpop.f32.mrf.mxu1  ;;  %v5137_v43 = vmul.f32 %v5073_v22, %v11987_v3 }
 0x937   :  { %5260 = vst [vmem:[#allocation4 + $0x78] sm:$0xff] %v13633_v54  ;;  %v13637_v62 = vadd.f32 %v5133_v11, %v4910_v34  ;;  %v5074_v34 = vld [vmem:[#allocation4 + $0xa8] sm:$0xff] }
 0x938   :  { %v4912_v12 = vpop.f32.mrf.mxu1  ;;  %v5138_v44 = vmul.f32 %v5074_v34, %v11987_v3 }
 0x939   :  { %5261 = vst [vmem:[#allocation4 + $0x80] sm:$0xff] %v13637_v62  ;;  %v13641_v33 = vadd.f32 %v5134_v39, %v4912_v12  ;;  %v5075_v12 = vld [vmem:[#allocation4 + $0xb0] sm:$0xff] }
 0x93a   :  { %v4916_v30 = vpop.f32.mrf.mxu1  ;;  %v5139_v35 = vmul.f32 %v5075_v12, %v11987_v3 }
 0x93b   :  { %5262 = vst [vmem:[#allocation4 + $0x88] sm:$0xff] %v13641_v33  ;;  %v13645_v16 = vadd.f32 %v5135_v55, %v4916_v30  ;;  %v5076_v30 = vld [vmem:[#allocation4 + $0xb8] sm:$0xff] }
 0x93c   :  { %v4918_v11 = vpop.f32.mrf.mxu1  ;;  %v5140_v7 = vmul.f32 %v5076_v30, %v11987_v3 }
 0x93d   :  { %5263 = vst [vmem:[#allocation4 + $0x90] sm:$0xff] %v13645_v16  ;;  %v13649_v47 = vadd.f32 %v5136_v48, %v4918_v11  ;;  %v5077_v11 = vld [vmem:[#allocation4 + $0xc0] sm:$0xff] }
 0x93e   :  { %v4922_v39 = vpop.f32.mrf.mxu1  ;;  %v5141_v21 = vmul.f32 %v5077_v11, %v11987_v3 }
 0x93f   :  { %5264 = vst [vmem:[#allocation4 + $0x98] sm:$0xff] %v13649_v47  ;;  %v13653_v40 = vadd.f32 %v5137_v43, %v4922_v39  ;;  %v5078_v39 = vld [vmem:[#allocation4 + $0xc8] sm:$0xff] }
 0x940   :  { %v4924_v55 = vpop.f32.mrf.mxu1  ;;  %v5142_v24 = vmul.f32 %v5078_v39, %v11987_v3 }
 0x941   :  { %5265 = vst [vmem:[#allocation4 + $0xa0] sm:$0xff] %v13653_v40  ;;  %v13657_v59 = vadd.f32 %v5138_v44, %v4924_v55  ;;  %v5079_v55 = vld [vmem:[#allocation4 + $0xd0] sm:$0xff] }
 0x942   :  { %v4928_v48 = vpop.f32.mrf.mxu1  ;;  %v5143_v27 = vmul.f32 %v5079_v55, %v11987_v3  ;;  %v5084_v55 = vld [vmem:[#allocation4 + $0xf8] sm:$0xff] }
 0x943   :  { %5266 = vst [vmem:[#allocation4 + $0xa8] sm:$0xff] %v13657_v59  ;;  %v13661_v22 = vadd.f32 %v5139_v35, %v4928_v48  ;;  %v5080_v48 = vld [vmem:[#allocation4 + $0xd8] sm:$0xff] }
 0x944   :  { %v4930_v43 = vpop.f32.mrf.mxu1  ;;  %v5144_v11 = vmul.f32 %v5080_v48, %v11987_v3  ;;  %v5085_v48 = vld [vmem:[#allocation4 + $0x100] sm:$0xff] }
 0x945   :  { %5267 = vst [vmem:[#allocation4 + $0xb0] sm:$0xff] %v13661_v22  ;;  %v13665_v34 = vadd.f32 %v5140_v7, %v4930_v43  ;;  %v5081_v7 = vld [vmem:[#allocation4 + $0xe0] sm:$0xff] }
 0x946   :  { %v4934_v44 = vpop.f32.mrf.mxu1 }
 0x947   :  { %5268 = vst [vmem:[#allocation4 + $0xb8] sm:$0xff] %v13665_v34  ;;  %v13669_v12 = vadd.f32 %v5141_v21, %v4934_v44  ;;  %v5145_v44 = vmul.f32 %v5081_v7, %v11987_v3  ;;  %v5086_v7 = vld [vmem:[#allocation4 + $0x108] sm:$0xff] }
 0x948   :  { %v4936_v35 = vpop.f32.mrf.mxu1 }
 0x949   :  { %5269 = vst [vmem:[#allocation4 + $0xc0] sm:$0xff] %v13669_v12  ;;  %v5206_v30 = vadd.f32 %v5142_v24, %v4936_v35  ;;  %v5146_v24 = vmul.f32 %v5082_v38, %v11987_v3 }
 0x94a   :  { %v4940_v5 = vpop.f32.mrf.mxu1 }
 0x94b   :  { %5270 = vst [vmem:[#allocation4 + $0xc8] sm:$0xff] %v5206_v30  ;;  %v5207_v43 = vadd.f32 %v5143_v27, %v4940_v5  ;;  %v5147_v5 = vmul.f32 %v5083_v19, %v11987_v3  ;;  %v16493_v19 = vld [vmem:[#allocation128_spill] sm:$0xff] }
 0x94c   :  { %v4942_v53 = vpop.f32.mrf.mxu1 }
 0x94d   :  { %5271 = vst [vmem:[#allocation4 + $0xd0] sm:$0xff] %v5207_v43  ;;  %v5208_v21 = vadd.f32 %v5144_v11, %v4942_v53  ;;  %v5148_v53 = vmul.f32 %v5084_v55, %v11987_v3  ;;  %v16494_v55 = vld [vmem:[#allocation125_spill] sm:$0xff] }
 0x94e   :  { %v4946_v39 = vpop.f32.mrf.mxu1 }
 0x94f   :  { %5272 = vst [vmem:[#allocation4 + $0xd8] sm:$0xff] %v5208_v21  ;;  %v5209_v37 = vadd.f32 %v5145_v44, %v4946_v39  ;;  %v5149_v44 = vmul.f32 %v5085_v48, %v11987_v3  ;;  %v16491_v39 = vld [vmem:[#allocation127_spill] sm:$0xff]  ;;  %v5151_v48 = vmul.f32 %v5087_v2, %v11987_v3  ;;  %v16499_v2 = vld [vmem:[#allocation121_spill] sm:$0xff] }
 0x950   :  { %v4948_v35 = vpop.f32.mrf.mxu1 }
 0x951   :  { %5273 = vst [vmem:[#allocation4 + $0xe0] sm:$0xff] %v5209_v37  ;;  %v5210_v60 = vadd.f32 %v5146_v24, %v4948_v35 }
 0x952   :  { %v4952_v27 = vpop.f32.mrf.mxu1 }
 0x953   :  { %5274 = vst [vmem:[#allocation4 + $0xe8] sm:$0xff] %v5210_v60  ;;  %v5211_v0 = vadd.f32 %v5147_v5, %v4952_v27  ;;  %v5466_v24 = vmul.f32 %v5210_v60, %v16492_v63  ;;  %v5150_v5 = vmul.f32 %v5086_v7, %v11987_v3  ;;  %v5465_v27 = vmul.f32 %v5209_v37, %v16494_v55  ;;  %v16496_v60 = vld [vmem:[#allocation64_spill] sm:$0xff]  ;;  %v5089_v7 = vld [vmem:[#allocation4 + $0x120] sm:$0xff] }
 0x954   :  { %v4954_v11 = vpop.f32.mrf.mxu1  ;;  %v5462_v37 = vmul.f32 %v5206_v30, %v16376_v1  ;;  %v5460_v30 = vmul.f32 %v13665_v34, %v16380_v56  ;;  %v5458_v34 = vmul.f32 %v13657_v59, %v16384_v26  ;;  %v5456_v59 = vmul.f32 %v13649_v47, %v16226_v52 }
 0x955   :  { %5275 = vst [vmem:[#allocation4 + $0xf0] sm:$0xff] %v5211_v0  ;;  %v5212_v28 = vadd.f32 %v5148_v53, %v4954_v11  ;;  %v5467_v38 = vmul.f32 %v5211_v0, %v16491_v39  ;;  %v16495_v53 = vld [vmem:[#allocation124_spill] sm:$0xff]  ;;  %v16497_v39 = vld [vmem:[#allocation123_spill] sm:$0xff]  ;;  %v5454_v47 = vmul.f32 %v13641_v33, %v16230_v13 }
 0x956   :  { %v4958_v8 = vpop.f32.mrf.mxu1  ;;  %v5464_v11 = vmul.f32 %v5208_v21, %v16495_v53  ;;  %v5530_v21 = vadd.f32 %v5466_v24, %v16377_v49  ;;  %v16501_v24 = vld [vmem:[#allocation119_spill] sm:$0xff] }
 0x957   :  { %5276 = vst [vmem:[#allocation4 + $0xf8] sm:$0xff] %v5212_v28  ;;  %v5468_v35 = vmul.f32 %v5212_v28, %v16493_v19  ;;  %v13683_v10 = vadd.f32 %v5149_v44, %v4958_v8  ;;  %v5463_v28 = vmul.f32 %v5207_v43, %v16497_v39  ;;  %v16498_v8 = vld [vmem:[#allocation63_spill] sm:$0xff] }
 0x958   :  { %v4960_v18 = vpop.f32.mrf.mxu1  ;;  %v5531_v44 = vadd.f32 %v5467_v38, %v16498_v8  ;;  %v5090_v38 = vld [vmem:[#allocation4 + $0x128] sm:$0xff] }
 0x959   :  { %5277 = vst [vmem:[#allocation4 + $0x100] sm:$0xff] %v13683_v10  ;;  %v13689_v0 = vadd.f32 %v5150_v5, %v4960_v18  ;;  %v5532_v63 = vadd.f32 %v5468_v35, %v16496_v60  ;;  %v5152_v18 = vmul.f32 %v5088_v42, %v11987_v3  ;;  %v5461_v35 = vmul.f32 %v13669_v12, %v16499_v2  ;;  %v16500_v5 = vld [vmem:[#allocation61_spill] sm:$0xff] }
 0x95a   :  { %v4964_v19 = vpop.f32.mrf.mxu1  ;;  %v5529_v43 = vadd.f32 %v5465_v27, %v16500_v5  ;;  %v5153_v42 = vmul.f32 %v5089_v7, %v11987_v3  ;;  %v5459_v12 = vmul.f32 %v13661_v22, %v16501_v24  ;;  %v5154_v7 = vmul.f32 %v5090_v38, %v11987_v3 }
 0x95b   :  { %5278 = vst [vmem:[#allocation4 + $0x108] sm:$0xff] %v13689_v0  ;;  %v13697_v55 = vadd.f32 %v5151_v48, %v4964_v19  ;;  %5720 = vmatprep.subr.mxu0 %v5532_v63  ;;  %v5528_v63 = vadd.f32 %v5464_v11, %v16381_v17  ;;  %v16502_v48 = vld [vmem:[#allocation59_spill] sm:$0xff]  ;;  %v5526_v11 = vadd.f32 %v5462_v37, %v16385_v6 }
 0x95c   :  { %v4966_v39 = vpop.f32.mrf.mxu1  ;;  %5721 = vmatpush1.msra.mxu0 %v5531_v44  ;;  %v5527_v27 = vadd.f32 %v5463_v28, %v16502_v48  ;;  %v5091_v44 = vld [vmem:[#allocation4 + $0x130] sm:$0xff]  ;;  %v5457_v22 = vmul.f32 %v13653_v40, %v16386_v46  ;;  %v5524_v37 = vadd.f32 %v5460_v30, %v16227_v20  ;;  %v5455_v40 = vmul.f32 %v13645_v16, %v16388_v15  ;;  %v16508_v20 = vld [vmem:[#allocation112_spill] sm:$0xff]  ;;  %v16551_v46 = vld [vmem:[#allocation154_spill] sm:$0xff] }
 0x95d   :  { %5279 = vst [vmem:[#allocation4 + $0x110] sm:$0xff] %v13697_v55  ;;  %v13707_v19 = vadd.f32 %v5152_v18, %v4966_v39  ;;  %5722 = vmatprep.subr.mxu0 %v5530_v21  ;;  %v16503_v18 = vld [vmem:[#allocation57_spill] sm:$0xff]  ;;  %v5155_v38 = vmul.f32 %v5091_v44, %v11987_v3  ;;  %v5452_v33 = vmul.f32 %v13633_v54, %v16508_v20  ;;  %v16545_v20 = vld [vmem:[#allocation158_spill] sm:$0xff] }
 0x95e   :  { %v4970_v5 = vpop.f32.mrf.mxu1  ;;  %5723 = vmatpush1.msra.mxu0 %v5529_v43  ;;  %v5525_v28 = vadd.f32 %v5461_v35, %v16503_v18  ;;  %v5092_v43 = vld [vmem:[#allocation4 + $0x138] sm:$0xff]  ;;  %v16507_v15 = vld [vmem:[#allocation53_spill] sm:$0xff]  ;;  %v16549_v18 = vld [vmem:[#allocation155_spill] sm:$0xff] }
 0x95f   :  { %5280 = vst [vmem:[#allocation4 + $0x118] sm:$0xff] %v13707_v19  ;;  %v13717_v39 = vadd.f32 %v5153_v42, %v4970_v5  ;;  %5724 = vmatprep.subr.mxu0 %v5528_v63  ;;  %v16504_v42 = vld [vmem:[#allocation55_spill] sm:$0xff]  ;;  %v5156_v44 = vmul.f32 %v5092_v43, %v11987_v3 }
 0x960   :  { %v4972_v21 = vpop.f32.mrf.mxu1  ;;  %5725 = vmatpush1.msra.mxu0 %v5527_v27  ;;  %v5523_v35 = vadd.f32 %v5459_v12, %v16504_v42  ;;  %v5093_v27 = vld [vmem:[#allocation4 + $0x140] sm:$0xff]  ;;  %v5521_v12 = vadd.f32 %v5457_v22, %v16507_v15 }
 0x961   :  { %5281 = vst [vmem:[#allocation4 + $0x120] sm:$0xff] %v13717_v39  ;;  %v13727_v5 = vadd.f32 %v5154_v7, %v4972_v21  ;;  %5726 = vmatprep.subr.mxu0 %v5526_v11  ;;  %v16505_v11 = vld [vmem:[#allocation54_spill] sm:$0xff]  ;;  %v16506_v21 = vld [vmem:[#allocation113_spill] sm:$0xff]  ;;  %v5157_v43 = vmul.f32 %v5093_v27, %v11987_v3 }
 0x962   :  { %v4976_v63 = vpop.f32.mrf.mxu1  ;;  %5727 = vmatpush1.msra.mxu0 %v5525_v28  ;;  %v5522_v30 = vadd.f32 %v5458_v34, %v16505_v11  ;;  %v5453_v16 = vmul.f32 %v13637_v62, %v16506_v21  ;;  %v5094_v28 = vld [vmem:[#allocation4 + $0x148] sm:$0xff]  ;;  %v16511_v21 = vld [vmem:[#allocation51_spill] sm:$0xff]  ;;  %v16512_v11 = vld [vmem:[#allocation110_spill] sm:$0xff] }
 0x963   :  { %5282 = vst [vmem:[#allocation4 + $0x128] sm:$0xff] %v13727_v5  ;;  %v13737_v7 = vadd.f32 %v5155_v38, %v4976_v63  ;;  %5728 = vmatprep.subr.mxu0 %v5524_v37  ;;  %v16509_v37 = vld [vmem:[#allocation52_spill] sm:$0xff]  ;;  %v16510_v63 = vld [vmem:[#allocation111_spill] sm:$0xff]  ;;  %v5519_v22 = vadd.f32 %v5455_v40, %v16511_v21  ;;  %v5450_v54 = vmul.f32 %v13625_v41, %v16512_v11 }
 0x964   :  { %v4978_v42 = vpop.f32.mrf.mxu1  ;;  %5729 = vmatpush1.msra.mxu0 %v5523_v35  ;;  %v5520_v34 = vadd.f32 %v5456_v59, %v16509_v37  ;;  %v5451_v62 = vmul.f32 %v13629_v61, %v16510_v63  ;;  %v5095_v35 = vld [vmem:[#allocation4 + $0x150] sm:$0xff]  ;;  %v5158_v27 = vmul.f32 %v5094_v28, %v11987_v3  ;;  %v16516_v37 = vld [vmem:[#allocation108_spill] sm:$0xff] }
 0x965   :  { %5283 = vst [vmem:[#allocation4 + $0x130] sm:$0xff] %v13737_v7  ;;  %v13747_v38 = vadd.f32 %v5156_v44, %v4978_v42  ;;  %5730 = vmatprep.subr.mxu0 %v5522_v30  ;;  %v16513_v44 = vld [vmem:[#allocation50_spill] sm:$0xff]  ;;  %v16514_v30 = vld [vmem:[#allocation109_spill] sm:$0xff]  ;;  %v5448_v41 = vmul.f32 %v13617_v32, %v16516_v37  ;;  %v5159_v28 = vmul.f32 %v5095_v35, %v11987_v3 }
 0x966   :  { %v4982_v15 = vpop.f32.mrf.mxu1  ;;  %5731 = vmatpush1.msra.mxu0 %v5521_v12  ;;  %v5518_v59 = vadd.f32 %v5454_v47, %v16513_v44  ;;  %v5449_v61 = vmul.f32 %v13621_v50, %v16514_v30  ;;  %v16515_v63 = vld [vmem:[#allocation49_spill] sm:$0xff]  ;;  %v5096_v12 = vld [vmem:[#allocation4 + $0x158] sm:$0xff]  ;;  %v16519_v30 = vld [vmem:[#allocation47_spill] sm:$0xff] }
 0x967   :  { %5284 = vst [vmem:[#allocation4 + $0x138] sm:$0xff] %v13747_v38  ;;  %v13757_v42 = vadd.f32 %v5157_v43, %v4982_v15  ;;  %5732 = vmatprep.subr.mxu0 %v5520_v34  ;;  %v5517_v40 = vadd.f32 %v5453_v16, %v16515_v63  ;;  %v16517_v43 = vld [vmem:[#allocation48_spill] sm:$0xff]  ;;  %v16518_v34 = vld [vmem:[#allocation107_spill] sm:$0xff]  ;;  %v5515_v16 = vadd.f32 %v5451_v62, %v16519_v30  ;;  %v16520_v44 = vld [vmem:[#allocation106_spill] sm:$0xff] }
 0x968   :  { %v4984_v21 = vpop.f32.mrf.mxu1  ;;  %5733 = vmatpush1.msra.mxu0 %v5519_v22  ;;  %v5516_v47 = vadd.f32 %v5452_v33, %v16517_v43  ;;  %v5447_v50 = vmul.f32 %v13613_v25, %v16518_v34  ;;  %v5097_v22 = vld [vmem:[#allocation4 + $0x160] sm:$0xff]  ;;  %v5446_v32 = vmul.f32 %v13609_v58, %v16520_v44  ;;  %v5160_v35 = vmul.f32 %v5096_v12, %v11987_v3  ;;  %v16523_v34 = vld [vmem:[#allocation45_spill] sm:$0xff]  ;;  %v16524_v43 = vld [vmem:[#allocation104_spill] sm:$0xff] }
 0x969   :  { %5285 = vst [vmem:[#allocation4 + $0x140] sm:$0xff] %v13757_v42  ;;  %v13767_v15 = vadd.f32 %v5158_v27, %v4984_v21  ;;  %5734 = vmatprep.subr.mxu0 %v5518_v59  ;;  %v16521_v27 = vld [vmem:[#allocation46_spill] sm:$0xff]  ;;  %v16522_v59 = vld [vmem:[#allocation105_spill] sm:$0xff]  ;;  %v5513_v62 = vadd.f32 %v5449_v61, %v16523_v34  ;;  %v5444_v58 = vmul.f32 %v13601_v23, %v16524_v43 }
 0x96a   :  { %v4988_v63 = vpop.f32.mrf.mxu1  ;;  %5735 = vmatpush1.msra.mxu0 %v5517_v40  ;;  %v5514_v33 = vadd.f32 %v5450_v54, %v16521_v27  ;;  %v5445_v25 = vmul.f32 %v13605_v45, %v16522_v59  ;;  %v5098_v40 = vld [vmem:[#allocation4 + $0x168] sm:$0xff]  ;;  %v5161_v12 = vmul.f32 %v5097_v22, %v11987_v3  ;;  %v16527_v59 = vld [vmem:[#allocation43_spill] sm:$0xff]  ;;  %v16528_v27 = vld [vmem:[#allocation102_spill] sm:$0xff] }
 0x96b   :  { %5286 = vst [vmem:[#allocation4 + $0x148] sm:$0xff] %v13767_v15  ;;  %v13777_v21 = vadd.f32 %v5159_v28, %v4988_v63  ;;  %5736 = vmatprep.subr.mxu0 %v5516_v47  ;;  %v16525_v28 = vld [vmem:[#allocation44_spill] sm:$0xff]  ;;  %v16526_v47 = vld [vmem:[#allocation103_spill] sm:$0xff]  ;;  %v5511_v61 = vadd.f32 %v5447_v50, %v16527_v59  ;;  %v5442_v23 = vmul.f32 %v13593_v14, %v16528_v27 }
 0x96c   :  { %v4990_v30 = vpop.f32.mrf.mxu1  ;;  %5737 = vmatpush1.msra.mxu0 %v5515_v16  ;;  %v5512_v54 = vadd.f32 %v5448_v41, %v16525_v28  ;;  %v5443_v45 = vmul.f32 %v13597_v51, %v16526_v47  ;;  %v5099_v16 = vld [vmem:[#allocation4 + $0x170] sm:$0xff]  ;;  %v5162_v22 = vmul.f32 %v5098_v40, %v11987_v3  ;;  %v16532_v28 = vld [vmem:[#allocation100_spill] sm:$0xff] }
 0x96d   :  { %5287 = vst [vmem:[#allocation4 + $0x150] sm:$0xff] %v13777_v21  ;;  %v13787_v63 = vadd.f32 %v5160_v35, %v4990_v30  ;;  %5738 = vmatprep.subr.mxu0 %v5514_v33  ;;  %v16529_v35 = vld [vmem:[#allocation42_spill] sm:$0xff]  ;;  %v16530_v33 = vld [vmem:[#allocation101_spill] sm:$0xff]  ;;  %v5440_v14 = vmul.f32 %v13585_v4, %v16532_v28  ;;  %v5163_v40 = vmul.f32 %v5099_v16, %v11987_v3 }
 0x96e   :  { %v4994_v34 = vpop.f32.mrf.mxu1  ;;  %5739 = vmatpush1.msra.mxu0 %v5513_v62  ;;  %v5510_v41 = vadd.f32 %v5446_v32, %v16529_v35  ;;  %v5441_v51 = vmul.f32 %v13589_v9, %v16530_v33  ;;  %v16531_v47 = vld [vmem:[#allocation41_spill] sm:$0xff]  ;;  %v5100_v62 = vld [vmem:[#allocation4 + $0x178] sm:$0xff]  ;;  %v16535_v33 = vld [vmem:[#allocation39_spill] sm:$0xff] }
 0x96f   :  { %5288 = vst [vmem:[#allocation4 + $0x158] sm:$0xff] %v13787_v63  ;;  %v13797_v30 = vadd.f32 %v5161_v12, %v4994_v34  ;;  %5740 = vmatprep.subr.mxu0 %v5512_v54  ;;  %v5509_v50 = vadd.f32 %v5445_v25, %v16531_v47  ;;  %v16533_v12 = vld [vmem:[#allocation40_spill] sm:$0xff]  ;;  %v16534_v54 = vld [vmem:[#allocation99_spill] sm:$0xff]  ;;  %v5507_v25 = vadd.f32 %v5443_v45, %v16535_v33  ;;  %v16536_v35 = vld [vmem:[#allocation98_spill] sm:$0xff] }
 0x970   :  { %v4996_v59 = vpop.f32.mrf.mxu1  ;;  %5741 = vmatpush1.msra.mxu0 %v5511_v61  ;;  %v5508_v32 = vadd.f32 %v5444_v58, %v16533_v12  ;;  %v5439_v9 = vmul.f32 %v13581_v31, %v16534_v54  ;;  %v5101_v61 = vld [vmem:[#allocation4 + $0x180] sm:$0xff]  ;;  %v5438_v4 = vmul.f32 %v13577_v29, %v16536_v35  ;;  %v5164_v16 = vmul.f32 %v5100_v62, %v11987_v3  ;;  %v16539_v54 = vld [vmem:[#allocation37_spill] sm:$0xff] }
 0x971   :  { %5289 = vst [vmem:[#allocation4 + $0x160] sm:$0xff] %v13797_v30  ;;  %v13807_v34 = vadd.f32 %v5162_v22, %v4996_v59  ;;  %5742 = vmatprep.subr.mxu0 %v5510_v41  ;;  %v16537_v22 = vld [vmem:[#allocation38_spill] sm:$0xff]  ;;  %v16538_v41 = vld [vmem:[#allocation97_spill] sm:$0xff]  ;;  %v5505_v45 = vadd.f32 %v5441_v51, %v16539_v54  ;;  %v16541_v62 = vld [vmem:[#allocation35_spill] sm:$0xff] }
 0x972   :  { %v5000_v47 = vpop.f32.mrf.mxu1  ;;  %5743 = vmatpush1.msra.mxu0 %v5509_v50  ;;  %v5506_v58 = vadd.f32 %v5442_v23, %v16537_v22  ;;  %v5437_v31 = vmul.f32 %v13573_v57, %v16538_v41  ;;  %v5102_v50 = vld [vmem:[#allocation4 + $0x188] sm:$0xff]  ;;  %v5503_v35 = vadd.f32 %v5439_v9, %v16541_v62  ;;  %v5103_v22 = vld [vmem:[#allocation4 + $0x190] sm:$0xff]  ;;  %v5112_v41 = vld [vmem:[#allocation4 + $0x1d8] sm:$0xff] }
 0x973   :  { %5290 = vst [vmem:[#allocation4 + $0x168] sm:$0xff] %v13807_v34  ;;  %v13817_v59 = vadd.f32 %v5163_v40, %v5000_v47  ;;  %5744 = vmatprep.subr.mxu0 %v5508_v32  ;;  %v5165_v47 = vmul.f32 %v5101_v61, %v11987_v3  ;;  %v16540_v40 = vld [vmem:[#allocation36_spill] sm:$0xff]  ;;  %v5166_v51 = vmul.f32 %v5102_v50, %v11987_v3  ;;  %v5104_v61 = vld [vmem:[#allocation4 + $0x198] sm:$0xff] }
 0x974   :  { %v5002_v33 = vpop.f32.mrf.mxu1  ;;  %5745 = vmatpush1.msra.mxu0 %v5507_v25  ;;  %v5504_v32 = vadd.f32 %v5440_v14, %v16540_v40  ;;  %v16542_v25 = vld [vmem:[#allocation34_spill] sm:$0xff]  ;;  %v5167_v9 = vmul.f32 %v5103_v22, %v11987_v3  ;;  %v5111_v40 = vld [vmem:[#allocation4 + $0x1d0] sm:$0xff] }
 0x975   :  { %5291 = vst [vmem:[#allocation4 + $0x170] sm:$0xff] %v13817_v59  ;;  %v13825_v29 = vadd.f32 %v5164_v16, %v5002_v33  ;;  %5746 = vmatprep.subr.mxu0 %v5506_v58  ;;  %v5502_v33 = vadd.f32 %v5438_v4, %v16542_v25  ;;  %v16543_v16 = vld [vmem:[#allocation33_spill] sm:$0xff]  ;;  %v5168_v4 = vmul.f32 %v5104_v61, %v11987_v3 }
 0x976   :  { %v5006_v23 = vpop.f32.mrf.mxu1  ;;  %5747 = vmatpush1.msra.mxu0 %v5505_v45  ;;  %v5501_v58 = vadd.f32 %v5437_v31, %v16543_v16 }
 0x977   :  { %5292 = vst [vmem:[#allocation4 + $0x178] sm:$0xff] %v13825_v29  ;;  %v13831_v57 = vadd.f32 %v5165_v47, %v5006_v23  ;;  %5748 = vmatprep.subr.mxu0 %v5504_v32  ;;  %v5105_v47 = vld [vmem:[#allocation4 + $0x1a0] sm:$0xff]  ;;  %v5106_v32 = vld [vmem:[#allocation4 + $0x1a8] sm:$0xff] }
 0x978   :  { %v5008_v54 = vpop.f32.mrf.mxu1  ;;  %5749 = vmatpush1.msra.mxu0 %v5503_v35 }
 0x979   :  { %5293 = vst [vmem:[#allocation4 + $0x180] sm:$0xff] %v13831_v57  ;;  %v13837_v14 = vadd.f32 %v5166_v51, %v5008_v54  ;;  %5750 = vmatprep.subr.mxu0 %v5502_v33  ;;  %v5169_v54 = vmul.f32 %v5105_v47, %v11987_v3  ;;  %v5107_v51 = vld [vmem:[#allocation4 + $0x1b0] sm:$0xff]  ;;  %v5170_v33 = vmul.f32 %v5106_v32, %v11987_v3 }
 0x97a   :  { %v5012_v45 = vpop.f32.mrf.mxu1  ;;  %5751 = vmatpush1.msra.mxu0 %v5501_v58 }
 0x97b   :  { %5294 = vst [vmem:[#allocation4 + $0x188] sm:$0xff] %v13837_v14  ;;  %v13841_v50 = vadd.f32 %v5167_v9, %v5012_v45  ;;  %v5108_v9 = vld [vmem:[#allocation4 + $0x1b8] sm:$0xff]  ;;  %v5171_v45 = vmul.f32 %v5107_v51, %v11987_v3 }
 0x97c   :  { %v5014_v31 = vpop.f32.mrf.mxu1  ;;  %v5172_v16 = vmul.f32 %v5108_v9, %v11987_v3  ;;  %v5113_v9 = vld [vmem:[#allocation4 + $0x1e0] sm:$0xff] }
 0x97d   :  { %5295 = vst [vmem:[#allocation4 + $0x190] sm:$0xff] %v13841_v50  ;;  %v13845_v35 = vadd.f32 %v5168_v4, %v5014_v31  ;;  %v5109_v31 = vld [vmem:[#allocation4 + $0x1c0] sm:$0xff] }
 0x97e   :  { %v5018_v23 = vpop.f32.mrf.mxu1  ;;  %v5173_v32 = vmul.f32 %v5109_v31, %v11987_v3  ;;  %v5114_v31 = vld [vmem:[#allocation4 + $0x1e8] sm:$0xff] }
 0x97f   :  { %5296 = vst [vmem:[#allocation4 + $0x198] sm:$0xff] %v13845_v35  ;;  %v13849_v22 = vadd.f32 %v5169_v54, %v5018_v23  ;;  %v5110_v54 = vld [vmem:[#allocation4 + $0x1c8] sm:$0xff] }
 0x980   :  { %v5020_v58 = vpop.f32.mrf.mxu1 }
 0x981   :  { %5297 = vst [vmem:[#allocation4 + $0x1a0] sm:$0xff] %v13849_v22  ;;  %v13853_v61 = vadd.f32 %v5170_v33, %v5020_v58  ;;  %v5174_v58 = vmul.f32 %v5110_v54, %v11987_v3  ;;  %v5115_v54 = vld [vmem:[#allocation4 + $0x1f0] sm:$0xff] }
 0x982   :  { %v5024_v4 = vpop.f32.mrf.mxu1 }
 0x983   :  { %5298 = vst [vmem:[#allocation4 + $0x1a8] sm:$0xff] %v13853_v61  ;;  %v5235_v47 = vadd.f32 %v5171_v45, %v5024_v4  ;;  %v5175_v45 = vmul.f32 %v5111_v40, %v11987_v3  ;;  %v5116_v40 = vld [vmem:[#allocation4 + $0x1f8] sm:$0xff] }
 0x984   :  { %v5026_v25 = vpop.f32.mrf.mxu1  ;;  %v5180_v37 = vmul.f32 %v5116_v40, %v11987_v3 }
 0x985   :  { %5299 = vst [vmem:[#allocation4 + $0x1b0] sm:$0xff] %v5235_v47  ;;  %v5236_v23 = vadd.f32 %v5172_v16, %v5026_v25  ;;  %v5176_v25 = vmul.f32 %v5112_v41, %v11987_v3 }
 0x986   :  { %v5030_v62 = vpop.f32.mrf.mxu1 }
 0x987   :  { %5300 = vst [vmem:[#allocation4 + $0x1b8] sm:$0xff] %v5236_v23  ;;  %v5237_v33 = vadd.f32 %v5173_v32, %v5030_v62  ;;  %v5177_v62 = vmul.f32 %v5113_v9, %v11987_v3 }
 0x988   :  { %v5032_v51 = vpop.f32.mrf.mxu1 }
 0x989   :  { %5301 = vst [vmem:[#allocation4 + $0x1c0] sm:$0xff] %v5237_v33  ;;  %v5238_v12 = vadd.f32 %v5174_v58, %v5032_v51  ;;  %v5178_v58 = vmul.f32 %v5114_v31, %v11987_v3 }
 0x98a   :  { %v5036_v4 = vpop.f32.mrf.mxu1 }
 0x98b   :  { %5302 = vst [vmem:[#allocation4 + $0x1c8] sm:$0xff] %v5238_v12  ;;  %v5239_v28 = vadd.f32 %v5175_v45, %v5036_v4  ;;  %v5179_v45 = vmul.f32 %v5115_v54, %v11987_v3  ;;  %v16548_v54 = vld [vmem:[#allocation96_spill] sm:$0xff]  ;;  %v5494_v6 = vmul.f32 %v5238_v12, %v16551_v46  ;;  %v16560_v12 = vld [vmem:[#allocation90_spill] sm:$0xff] }
 0x98c   :  { %v5038_v16 = vpop.f32.mrf.mxu1 }
 0x98d   :  { %5303 = vst [vmem:[#allocation4 + $0x1d0] sm:$0xff] %v5239_v28  ;;  %v5240_v27 = vadd.f32 %v5176_v25, %v5038_v16  ;;  %v16544_v16 = vld [vmem:[#allocation159_spill] sm:$0xff] }
 0x98e   :  { %v5042_v32 = vpop.f32.mrf.mxu1 }
 0x98f   :  { %5304 = vst [vmem:[#allocation4 + $0x1d8] sm:$0xff] %v5240_v27  ;;  %v5241_v43 = vadd.f32 %v5177_v62, %v5042_v32  ;;  %v16546_v32 = vld [vmem:[#allocation157_spill] sm:$0xff] }
 0x990   :  { %v5044_v51 = vpop.f32.mrf.mxu1 }
 0x991   :  { %5305 = vst [vmem:[#allocation4 + $0x1e0] sm:$0xff] %v5241_v43  ;;  %v5242_v44 = vadd.f32 %v5178_v58, %v5044_v51  ;;  %v5497_v13 = vmul.f32 %v5241_v43, %v16546_v32  ;;  %v16547_v58 = vld [vmem:[#allocation156_spill] sm:$0xff]  ;;  %v6292_v32 = vld [vmem:[#allocation4 + $0x118] sm:$0xff] }
 0x992   :  { %v5048_v4 = vpop.f32.mrf.mxu1  ;;  %v5496_v51 = vmul.f32 %v5240_v27, %v16547_v58  ;;  %v16556_v27 = vld [vmem:[#allocation92_spill] sm:$0xff] }
 0x993   :  { %5306 = vst [vmem:[#allocation4 + $0x1e8] sm:$0xff] %v5242_v44  ;;  %v5243_v41 = vadd.f32 %v5179_v45, %v5048_v4  ;;  %v5498_v62 = vmul.f32 %v5242_v44, %v16545_v20  ;;  %v5495_v45 = vmul.f32 %v5239_v28, %v16549_v18  ;;  %v16550_v4 = vld [vmem:[#allocation95_spill] sm:$0xff]  ;;  %v16554_v20 = vld [vmem:[#allocation93_spill] sm:$0xff] }
 0x994   :  { %v5050_v25 = vpop.f32.mrf.mxu1  ;;  %v5560_v58 = vadd.f32 %v5496_v51, %v16556_v27  ;;  %v16558_v28 = vld [vmem:[#allocation91_spill] sm:$0xff] }
 0x995   :  { %5307 = vst [vmem:[#allocation4 + $0x1f0] sm:$0xff] %v5243_v41  ;;  %v5244_v9 = vadd.f32 %v5180_v37, %v5050_v25  ;;  %v5499_v11 = vmul.f32 %v5243_v41, %v16544_v16  ;;  %v16552_v37 = vld [vmem:[#allocation94_spill] sm:$0xff]  ;;  %v16553_v25 = vld [vmem:[#allocation153_spill] sm:$0xff]  ;;  %v5561_v16 = vadd.f32 %v5497_v13, %v16554_v20  ;;  %v5559_v18 = vadd.f32 %v5495_v45, %v16558_v28  ;;  %v16565_v45 = vld [vmem:[#allocation147_spill] sm:$0xff] }
 0x996   :  { %v5562_v41 = vadd.f32 %v5498_v62, %v16552_v37  ;;  %v5493_v44 = vmul.f32 %v5237_v33, %v16553_v25  ;;  %v5558_v62 = vadd.f32 %v5494_v6, %v16560_v12  ;;  %v16561_v33 = vld [vmem:[#allocation149_spill] sm:$0xff]  ;;  %v16566_v28 = vld [vmem:[#allocation87_spill] sm:$0xff]  ;;  %v16614_v37 = vld [vmem:[#allocation126_spill] sm:$0xff] }
 0x997   :  { %5308 = vst [vmem:[#allocation4 + $0x1f8] sm:$0xff] %v5244_v9  ;;  %v5500_v31 = vmul.f32 %v5244_v9, %v16423_v36  ;;  %v5563_v40 = vadd.f32 %v5499_v11, %v16550_v4  ;;  %v16555_v9 = vld [vmem:[#allocation152_spill] sm:$0xff]  ;;  %v16559_v11 = vld [vmem:[#allocation150_spill] sm:$0xff]  ;;  %v5489_v13 = vmul.f32 %v13849_v22, %v16561_v33  ;;  %v6291_v25 = vld [vmem:[#allocation4 + $0x110] sm:$0xff] }
 0x998   :  { %v5492_v43 = vmul.f32 %v5236_v23, %v16555_v9  ;;  %v16563_v23 = vld [vmem:[#allocation148_spill] sm:$0xff]  ;;  %v16568_v22 = vld [vmem:[#allocation86_spill] sm:$0xff] }
 0x999   :  { %v5564_v52 = vadd.f32 %v5500_v31, %v16548_v54  ;;  %v16557_v31 = vld [vmem:[#allocation151_spill] sm:$0xff]  ;;  %v5488_v51 = vmul.f32 %v13845_v35, %v16563_v23  ;;  %v6287_v23 = vld [vmem:[#allocation4 + $0xf0] sm:$0xff] }
 0x99a   :  { %v5491_v54 = vmul.f32 %v5235_v47, %v16557_v31  ;;  %v16564_v47 = vld [vmem:[#allocation88_spill] sm:$0xff] }
 0x99b   :  { %5752 = vmatprep.subr.mxu0 %v5564_v52  ;;  %v5490_v52 = vmul.f32 %v13853_v61, %v16559_v11 }
 0x99c   :  { %5753 = vmatpush2.msra.mxu0 %v5563_v40  ;;  %v16562_v40 = vld [vmem:[#allocation89_spill] sm:$0xff]  ;;  %v5555_v61 = vadd.f32 %v5491_v54, %v16566_v28  ;;  %v16573_v54 = vld [vmem:[#allocation143_spill] sm:$0xff] }
 0x99d   :  { %5754 = vmatprep.subr.mxu0 %v5562_v41  ;;  %v5557_v20 = vadd.f32 %v5493_v44, %v16562_v40  ;;  %v5556_v41 = vadd.f32 %v5492_v43, %v16564_v47  ;;  %v5554_v33 = vadd.f32 %v5490_v52, %v16568_v22  ;;  %v16569_v44 = vld [vmem:[#allocation145_spill] sm:$0xff]  ;;  %v16574_v28 = vld [vmem:[#allocation83_spill] sm:$0xff]  ;;  %v6286_v47 = vld [vmem:[#allocation4 + $0xe8] sm:$0xff] }
 0x99e   :  { %5755 = vmatpush2.msra.mxu0 %v5561_v16  ;;  %v5487_v16 = vmul.f32 %v13841_v50, %v16565_v45  ;;  %v16570_v40 = vld [vmem:[#allocation85_spill] sm:$0xff]  ;;  %v16572_v50 = vld [vmem:[#allocation84_spill] sm:$0xff] }
 0x99f   :  { %5756 = vmatprep.subr.mxu0 %v5560_v58  ;;  %v16567_v58 = vld [vmem:[#allocation146_spill] sm:$0xff]  ;;  %v5553_v35 = vadd.f32 %v5489_v13, %v16570_v40  ;;  %v5552_v45 = vadd.f32 %v5488_v51, %v16572_v50  ;;  %v16577_v13 = vld [vmem:[#allocation141_spill] sm:$0xff] }
 0x9a0   :  { %5757 = vmatpush2.msra.mxu0 %v5559_v18  ;;  %v5486_v6 = vmul.f32 %v13837_v14, %v16567_v58  ;;  %v5485_v18 = vmul.f32 %v13831_v57, %v16569_v44  ;;  %v5551_v14 = vadd.f32 %v5487_v16, %v16574_v28  ;;  %v16576_v57 = vld [vmem:[#allocation82_spill] sm:$0xff]  ;;  %v16578_v40 = vld [vmem:[#allocation81_spill] sm:$0xff]  ;;  %v16581_v16 = vld [vmem:[#allocation139_spill] sm:$0xff] }
 0x9a1   :  { %5758 = vmatprep.subr.mxu0 %v5558_v62  ;;  %v16571_v62 = vld [vmem:[#allocation144_spill] sm:$0xff]  ;;  %v16582_v28 = vld [vmem:[#allocation79_spill] sm:$0xff] }
 0x9a2   :  { %5759 = vmatpush2.msra.mxu0 %v5557_v20  ;;  %v5484_v43 = vmul.f32 %v13825_v29, %v16571_v62  ;;  %v5483_v20 = vmul.f32 %v13817_v59, %v16573_v54  ;;  %v5550_v44 = vadd.f32 %v5486_v6, %v16576_v57  ;;  %v5549_v29 = vadd.f32 %v5485_v18, %v16578_v40  ;;  %v16580_v59 = vld [vmem:[#allocation80_spill] sm:$0xff]  ;;  %v16585_v18 = vld [vmem:[#allocation137_spill] sm:$0xff] }
 0x9a3   :  { %5760 = vmatprep.subr.mxu0 %v5556_v41  ;;  %v16575_v41 = vld [vmem:[#allocation142_spill] sm:$0xff]  ;;  %v16586_v40 = vld [vmem:[#allocation77_spill] sm:$0xff] }
 0x9a4   :  { %5761 = vmatpush2.msra.mxu0 %v5555_v61  ;;  %v5482_v52 = vmul.f32 %v13807_v34, %v16575_v41  ;;  %v5481_v61 = vmul.f32 %v13797_v30, %v16577_v13  ;;  %v5548_v54 = vadd.f32 %v5484_v43, %v16580_v59  ;;  %v5547_v34 = vadd.f32 %v5483_v20, %v16582_v28  ;;  %v16584_v30 = vld [vmem:[#allocation78_spill] sm:$0xff]  ;;  %v16589_v20 = vld [vmem:[#allocation135_spill] sm:$0xff] }
 0x9a5   :  { %5762 = vmatprep.subr.mxu0 %v5554_v33  ;;  %v16579_v33 = vld [vmem:[#allocation140_spill] sm:$0xff]  ;;  %v16590_v28 = vld [vmem:[#allocation75_spill] sm:$0xff] }
 0x9a6   :  { %5763 = vmatpush2.msra.mxu0 %v5553_v35  ;;  %v5480_v51 = vmul.f32 %v13787_v63, %v16579_v33  ;;  %v5479_v35 = vmul.f32 %v13777_v21, %v16581_v16  ;;  %v5546_v13 = vadd.f32 %v5482_v52, %v16584_v30  ;;  %v5545_v63 = vadd.f32 %v5481_v61, %v16586_v40  ;;  %v16588_v21 = vld [vmem:[#allocation76_spill] sm:$0xff]  ;;  %v16593_v61 = vld [vmem:[#allocation133_spill] sm:$0xff] }
 0x9a7   :  { %5764 = vmatprep.subr.mxu0 %v5552_v45  ;;  %v16583_v45 = vld [vmem:[#allocation138_spill] sm:$0xff]  ;;  %v16594_v40 = vld [vmem:[#allocation73_spill] sm:$0xff] }
 0x9a8   :  { %5765 = vmatpush2.msra.mxu0 %v5551_v14  ;;  %v5478_v6 = vmul.f32 %v13767_v15, %v16583_v45  ;;  %v5477_v14 = vmul.f32 %v13757_v42, %v16585_v18  ;;  %v5544_v16 = vadd.f32 %v5480_v51, %v16588_v21  ;;  %v5543_v15 = vadd.f32 %v5479_v35, %v16590_v28  ;;  %v16592_v42 = vld [vmem:[#allocation74_spill] sm:$0xff]  ;;  %v16597_v35 = vld [vmem:[#allocation131_spill] sm:$0xff] }
 0x9a9   :  { %5766 = vmatprep.subr.mxu0 %v5550_v44  ;;  %v16587_v44 = vld [vmem:[#allocation136_spill] sm:$0xff]  ;;  %v16598_v28 = vld [vmem:[#allocation71_spill] sm:$0xff] }
 0x9aa   :  { %5767 = vmatpush2.msra.mxu0 %v5549_v29  ;;  %v5476_v43 = vmul.f32 %v13747_v38, %v16587_v44  ;;  %v5475_v29 = vmul.f32 %v13737_v7, %v16589_v20  ;;  %v5542_v18 = vadd.f32 %v5478_v6, %v16592_v42  ;;  %v5541_v38 = vadd.f32 %v5477_v14, %v16594_v40  ;;  %v16596_v7 = vld [vmem:[#allocation72_spill] sm:$0xff]  ;;  %v16601_v14 = vld [vmem:[#allocation129_spill] sm:$0xff] }
 0x9ab   :  { %5768 = vmatprep.subr.mxu0 %v5548_v54  ;;  %v16591_v54 = vld [vmem:[#allocation134_spill] sm:$0xff]  ;;  %v16602_v40 = vld [vmem:[#allocation69_spill] sm:$0xff] }
 0x9ac   :  { %5769 = vmatpush2.msra.mxu0 %v5547_v34  ;;  %v5474_v52 = vmul.f32 %v13727_v5, %v16591_v54  ;;  %v5473_v34 = vmul.f32 %v13717_v39, %v16593_v61  ;;  %v5540_v20 = vadd.f32 %v5476_v43, %v16596_v7  ;;  %v5539_v5 = vadd.f32 %v5475_v29, %v16598_v28  ;;  %v16600_v39 = vld [vmem:[#allocation70_spill] sm:$0xff]  ;;  %v16604_v7 = vld [vmem:[#allocation67_spill] sm:$0xff]  ;;  %v16606_v28 = vld [vmem:[#allocation65_spill] sm:$0xff] }
 0x9ad   :  { %5770 = vmatprep.subr.mxu0 %v5546_v13  ;;  %v16595_v13 = vld [vmem:[#allocation132_spill] sm:$0xff]  ;;  %v16605_v29 = vld [vmem:[#allocation66_spill] sm:$0xff] }
 0x9ae   :  { %5771 = vmatpush2.msra.mxu0 %v5545_v63  ;;  %v5472_v51 = vmul.f32 %v13707_v19, %v16595_v13  ;;  %v5471_v63 = vmul.f32 %v13697_v55, %v16597_v35  ;;  %v5538_v61 = vadd.f32 %v5474_v52, %v16600_v39  ;;  %v5537_v19 = vadd.f32 %v5473_v34, %v16602_v40  ;;  %v16607_v52 = vld [vmem:[#allocation162_spill] sm:$0xff] }
 0x9af   :  { %5772 = vmatprep.subr.mxu0 %v5544_v16  ;;  %v16599_v16 = vld [vmem:[#allocation130_spill] sm:$0xff] }
 0x9b0   :  { %5773 = vmatpush2.msra.mxu0 %v5543_v15  ;;  %v5470_v6 = vmul.f32 %v13689_v0, %v16599_v16  ;;  %v5469_v15 = vmul.f32 %v13683_v10, %v16601_v14  ;;  %v5535_v55 = vadd.f32 %v5471_v63, %v16604_v7  ;;  %v16608_v10 = vmov 0.0  }
 0x9b1   :  { %5774 = vmatprep.subr.mxu0 %v5542_v18  ;;  %v16603_v18 = vld [vmem:[#allocation68_spill] sm:$0xff] }
 0x9b2   :  { %5775 = vmatpush2.msra.mxu0 %v5541_v38  ;;  %v5536_v43 = vadd.f32 %v5472_v51, %v16603_v18  ;;  %v5534_v38 = vadd.f32 %v5470_v6, %v16605_v29  ;;  %v5533_v0 = vadd.f32 %v5469_v15, %v16606_v28  ;;  %v16609_v51 = vld [vmem:[#allocation161_spill] sm:$0xff]  ;;  %v5856_v15 = vpop.trf.xlu0  ;;  %v16611_v18 = vld [vmem:[#allocation164_spill] sm:$0xff] }
 0x9b3   :  { %5776 = vmatprep.subr.mxu0 %v5540_v20  ;;  %v10842_v20 = vld [vmem:[#allocation2] ss:$8 sm:$0x3] }
 0x9b4   :  { %5777 = vmatpush2.msra.mxu0 %v5539_v5  ;;  %v5702_v39 = vrot.slane %v10842_v20, %v16607_v52 }
 0x9b5   :  { %5778 = vmatprep.subr.mxu0 %v5538_v61  ;;  %v5697_v61 = vld [vmem:[#allocation13 + $0x4] ss:$8 sm:$0x3] }
 0x9b6   :  { %5779 = vmatpush2.msra.mxu0 %v5537_v19  ;;  %v5713_v34 = vrot.slane %v5697_v61, %v16607_v52  ;;  %v5717_v63 = vrot.slane %v5697_v61, %v16609_v51 }
 0x9b7   :  { %5780 = vmatprep.subr.mxu0 %v5536_v43 }
 0x9b8   :  { %5781 = vmatpush2.msra.mxu0 %v5535_v55  ;;  %v5857_v55 = vpop.trf.xlu0 }
 0x9b9   :  { %5782 = vmatprep.subr.mxu0 %v5534_v38 }
 0x9ba   :  { %5783 = vmatpush2.msra.mxu0 %v5533_v0  ;;  %v16610_v0 = vld [vmem:[#allocation163_spill] sm:$0xff] }
 0x9bb   :  { %5785 = vmatmul.mubr.f32.vlgmr.msra.gmra.mxu0 %v5702_v39 }
 0x9bc   :  { %6064 = vmatprep.mubr.f32.mxu0 %v16608_v10  ;;  %v5858_v28 = vpop.trf.xlu0 }
 0x9c0   :  { %v5859_v61 = vpop.trf.xlu0 }
 0xa7b   :  { %v5786_v5 = vpop.f32.mrf.mxu0 }
 0xa7c   :  { %v5787_v19 = vadd.f32 %v5786_v5, %v5713_v34 }
 0xa7d   :  { %v5788_v43 = vpop.f32.mrf.mxu0 }
 0xa7e   :  { %10812 = vtanh.f32 %v5787_v19  ;;  %v5789_v6 = vadd.f32 %v5788_v43, %v5717_v63  ;;  %v5860_v43 = vpop.trf.xlu0 }
 0xa80   :  { %10814 = vtanh.f32 %v5789_v6 }
 0xa8b   :  { %v10813_v38 = vpop.eup %10812 }
 0xa8c   :  { %v5814_v39 = vmul.f32 %v10813_v38, %v16610_v0 }
 0xa8d   :  { %v10815_v20 = vpop.eup %10814 }
 0xa8e   :  { %v5795_v29 = vcombine.low %v10813_v38, %v10815_v20  ;;  %v5815_v7 = vmul.f32 %v10815_v20, %v16610_v0  ;;  %v5861_v20 = vpop.trf.xlu0 }
 0xa90   :  { %v5802_v52 = vrot.slane %v5795_v29, %v16611_v18  ;;  %v5818_v40 = vcombine.low %v5814_v39, %v5815_v7 }
 0xa92   :  { %v5809_v34 = vrot.slane %v5802_v52, %v16611_v18  ;;  %v5825_v5 = vrot.slane %v5818_v40, %v16611_v18  ;;  %v5862_v39 = vpop.trf.xlu0 }
 0xa94   :  { %5812 = vst.msk [vmem:[#allocation16 + $0x4] ss:$8 sm:$0x3] %vm11909_vm0, %v5809_v34  ;;  %v5832_v19 = vrot.slane %v5825_v5, %v16611_v18  ;;  %6833 = vst.msk [vmem:[#allocation2] ss:$8 sm:$0x3] %vm11909_vm0, %v5809_v34 }
 0xa96   :  { %5834 = vst.msk [vmem:[#allocation3] ss:$8 sm:$0x3] %vm11909_vm0, %v5832_v19  ;;  %v5863_v34 = vpop.trf.xlu0 }
 0xa9a   :  { %v5864_v5 = vpop.trf.xlu0 }
 0xa9b   :  { %v7041_v6 = vld [vmem:[#allocation2 + $0x8] sm:$0xff]  ;;  %v7040_v29 = vld [vmem:[#allocation2] sm:$0xff] }
 0xa9c   :  { %v6835_v7 = vld [vmem:[#allocation2] ss:$8 sm:$0x3]  ;;  %7076 = vxpose.xlu1.b32.start.end [1/1] (short) %v7041_v6, 128  ;;  %7044 = vxpose.xlu0.b32.start.end [1/1] (short) %v7040_v29, 128 }
 0xa9d   :  { %v6910_v52 = vrot.slane %v6835_v7, %v16609_v51  ;;  %v5839_v40 = vld [vmem:[#allocation3 + $0x8] sm:$0xff]  ;;  %v5838_v38 = vld [vmem:[#allocation3] sm:$0xff] }
 0xa9e   :  { %6030 = vmatprep.subr.mxu0 %v5839_v40 }
 0xa9f   :  { %6988 = vmatprep.mubr.f32.mxu1 %v6910_v52  ;;  %6031 = vmatpush1.msra.mxu0 %v5838_v38 }
 0xaa0   :  { %10655 = vmatmul.mubr.msk.f32.vlgmr.msra.gmra.mxu0 %vm1086_vm1, %v5856_v15  ;;  %v5865_v15 = vpop.trf.xlu0 }
 0xaa1   :  { %6070 = vmatprep.mubr.f32.mxu0 %v16608_v10 }
 0xaa4   :  { %10656 = vmatmul.mubr.msk.f32.gmra.mxu0 %vm1086_vm1, %v5857_v55  ;;  %v5888_v55 = vpop.trf.xlu1 }
 0xaa5   :  { %6076 = vmatprep.mubr.f32.mxu0 %v16608_v10 }
 0xaa8   :  { %10657 = vmatmul.mubr.msk.f32.gmra.mxu0 %vm1086_vm1, %v5858_v28  ;;  %v5866_v28 = vpop.trf.xlu0  ;;  %v5889_v19 = vpop.trf.xlu1 }
 0xaa9   :  { %6082 = vmatprep.mubr.f32.mxu0 %v16608_v10 }
 0xaac   :  { %10658 = vmatmul.mubr.msk.f32.gmra.mxu0 %vm1086_vm1, %v5859_v61  ;;  %v5867_v61 = vpop.trf.xlu0  ;;  %v5890_v6 = vpop.trf.xlu1 }
 0xaad   :  { %6088 = vmatprep.mubr.f32.mxu0 %v16608_v10 }
 0xab0   :  { %10659 = vmatmul.mubr.msk.f32.gmra.mxu0 %vm1086_vm1, %v5860_v43  ;;  %v5868_v43 = vpop.trf.xlu0  ;;  %v5891_v7 = vpop.trf.xlu1 }
 0xab1   :  { %6094 = vmatprep.mubr.f32.mxu0 %v16608_v10 }
 0xab4   :  { %10660 = vmatmul.mubr.msk.f32.gmra.mxu0 %vm1086_vm1, %v5861_v20  ;;  %v5869_v29 = vpop.trf.xlu0  ;;  %v5892_v40 = vpop.trf.xlu1 }
 0xab5   :  { %6100 = vmatprep.mubr.f32.mxu0 %v16608_v10 }
 0xab8   :  { %10661 = vmatmul.mubr.msk.f32.gmra.mxu0 %vm1086_vm1, %v5862_v39  ;;  %v5870_v52 = vpop.trf.xlu0  ;;  %v5893_v20 = vpop.trf.xlu1 }
 0xab9   :  { %6106 = vmatprep.mubr.f32.mxu0 %v16608_v10 }
 0xabc   :  { %10662 = vmatmul.mubr.msk.f32.gmra.mxu0 %vm1086_vm1, %v5863_v34  ;;  %v5871_v38 = vpop.trf.xlu0  ;;  %v5894_v39 = vpop.trf.xlu1 }
 0xabd   :  { %6112 = vmatprep.mubr.f32.mxu0 %v16608_v10 }
 0xac0   :  { %10663 = vmatmul.mubr.msk.f32.gmra.mxu0 %vm1086_vm1, %v5864_v5  ;;  %v5895_v34 = vpop.trf.xlu1 }
 0xac1   :  { %6118 = vmatprep.mubr.f32.mxu0 %v16608_v10 }
 0xac4   :  { %10664 = vmatmul.mubr.msk.f32.gmra.mxu0 %vm1086_vm1, %v5865_v15  ;;  %v5896_v5 = vpop.trf.xlu1 }
 0xac5   :  { %6124 = vmatprep.mubr.f32.mxu0 %v16608_v10 }
 0xac8   :  { %10665 = vmatmul.mubr.msk.f32.gmra.mxu0 %vm1086_vm1, %v5866_v28  ;;  %v5897_v15 = vpop.trf.xlu1 }
 0xac9   :  { %6130 = vmatprep.mubr.f32.mxu0 %v16608_v10 }
 0xacc   :  { %10666 = vmatmul.mubr.msk.f32.gmra.mxu0 %vm1086_vm1, %v5867_v61  ;;  %v5898_v28 = vpop.trf.xlu1 }
 0xacd   :  { %6136 = vmatprep.mubr.f32.mxu0 %v16608_v10 }
 0xad0   :  { %10667 = vmatmul.mubr.msk.f32.gmra.mxu0 %vm1086_vm1, %v5868_v43 }
 0xad1   :  { %6142 = vmatprep.mubr.f32.mxu0 %v16608_v10 }
 0xad4   :  { %10668 = vmatmul.mubr.msk.f32.gmra.mxu0 %vm1086_vm1, %v5869_v29  ;;  %v6257_v29 = vld [vmem:[#allocation4] sm:$0xff] }
 0xad5   :  { %6148 = vmatprep.mubr.f32.mxu0 %v16608_v10 }
 0xad8   :  { %10669 = vmatmul.mubr.msk.f32.gmra.mxu0 %vm1086_vm1, %v5870_v52  ;;  %v6321_v52 = vmul.f32 %v6257_v29, %v11987_v3  ;;  %v6262_v29 = vld [vmem:[#allocation4 + $0x28] sm:$0xff] }
 0xad9   :  { %6154 = vmatprep.mubr.f32.mxu0 %v16608_v10 }
 0xadc   :  { %10670 = vmatmul.mubr.msk.f32.gmra.mxu0 %vm1086_vm1, %v5871_v38  ;;  %v6259_v38 = vld [vmem:[#allocation4 + $0x10] sm:$0xff] }
 0xadd   :  { %6160 = vmatprep.mubr.f32.mxu0 %v16608_v10 }
 0xae0   :  { %10671 = vmatmul.mubr.msk.f32.gmra.mxu0 %vm1086_vm1, %v5888_v55  ;;  %v5899_v55 = vpop.trf.xlu1 }
 0xae1   :  { %6166 = vmatprep.mubr.f32.mxu0 %v16608_v10 }
 0xae4   :  { %10672 = vmatmul.mubr.msk.f32.gmra.mxu0 %vm1086_vm1, %v5889_v19  ;;  %v5900_v61 = vpop.trf.xlu1 }
 0xae5   :  { %6172 = vmatprep.mubr.f32.mxu0 %v16608_v10 }
 0xae8   :  { %10673 = vmatmul.mubr.msk.f32.gmra.mxu0 %vm1086_vm1, %v5890_v6  ;;  %v5901_v19 = vpop.trf.xlu1 }
 0xae9   :  { %6178 = vmatprep.mubr.f32.mxu0 %v16608_v10 }
 0xaec   :  { %10674 = vmatmul.mubr.msk.f32.gmra.mxu0 %vm1086_vm1, %v5891_v7  ;;  %v5902_v43 = vpop.trf.xlu1  ;;  %v6258_v7 = vld [vmem:[#allocation4 + $0x8] sm:$0xff] }
 0xaed   :  { %6184 = vmatprep.mubr.f32.mxu0 %v16608_v10 }
 0xaf0   :  { %10675 = vmatmul.mubr.msk.f32.gmra.mxu0 %vm1086_vm1, %v5892_v40  ;;  %v5903_v6 = vpop.trf.xlu1 }
 0xaf1   :  { %6190 = vmatprep.mubr.f32.mxu0 %v16608_v10 }
 0xaf4   :  { %10676 = vmatmul.mubr.msk.f32.gmra.mxu0 %vm1086_vm1, %v5893_v20 }
 0xaf5   :  { %6196 = vmatprep.mubr.f32.mxu0 %v16608_v10 }
 0xaf8   :  { %10677 = vmatmul.mubr.msk.f32.gmra.mxu0 %vm1086_vm1, %v5894_v39  ;;  %v6322_v39 = vmul.f32 %v6258_v7, %v11987_v3 }
 0xaf9   :  { %6202 = vmatprep.mubr.f32.mxu0 %v16608_v10 }
 0xafc   :  { %10678 = vmatmul.mubr.msk.f32.gmra.mxu0 %vm1086_vm1, %v5895_v34 }
 0xafd   :  { %6208 = vmatprep.mubr.f32.mxu0 %v16608_v10 }
 0xb00   :  { %10679 = vmatmul.mubr.msk.f32.gmra.mxu0 %vm1086_vm1, %v5896_v5  ;;  %v6260_v5 = vld [vmem:[#allocation4 + $0x18] sm:$0xff] }
 0xb01   :  { %6214 = vmatprep.mubr.f32.mxu0 %v16608_v10 }
 0xb04   :  { %10680 = vmatmul.mubr.msk.f32.gmra.mxu0 %vm1086_vm1, %v5897_v15 }
 0xb05   :  { %6220 = vmatprep.mubr.f32.mxu0 %v16608_v10 }
 0xb08   :  { %10681 = vmatmul.mubr.msk.f32.gmra.mxu0 %vm1086_vm1, %v5898_v28  ;;  %v6323_v28 = vmul.f32 %v6259_v38, %v11987_v3 }
 0xb09   :  { %6226 = vmatprep.mubr.f32.mxu0 %v16608_v10 }
 0xb0c   :  { %10682 = vmatmul.mubr.msk.f32.gmra.mxu0 %vm1086_vm1, %v5899_v55 }
 0xb0d   :  { %6232 = vmatprep.mubr.f32.mxu0 %v16608_v10 }
 0xb10   :  { %10683 = vmatmul.mubr.msk.f32.gmra.mxu0 %vm1086_vm1, %v5900_v61  ;;  %v6261_v61 = vld [vmem:[#allocation4 + $0x20] sm:$0xff] }
 0xb11   :  { %6238 = vmatprep.mubr.f32.mxu0 %v16608_v10 }
 0xb14   :  { %10684 = vmatmul.mubr.msk.f32.gmra.mxu0 %vm1086_vm1, %v5901_v19 }
 0xb15   :  { %6244 = vmatprep.mubr.f32.mxu0 %v16608_v10 }
 0xb18   :  { %10685 = vmatmul.mubr.msk.f32.gmra.mxu0 %vm1086_vm1, %v5902_v43  ;;  %v6324_v43 = vmul.f32 %v6260_v5, %v11987_v3 }
 0xb19   :  { %6250 = vmatprep.mubr.f32.mxu0 %v16608_v10 }
 0xb1c   :  { %10686 = vmatmul.mubr.msk.f32.gmra.mxu0 %vm1086_vm1, %v5903_v6 }
 0xb60   :  { %v6066_v40 = vpop.f32.mrf.mxu0 }
 0xb61   :  { %v14033_v20 = vadd.f32 %v6321_v52, %v6066_v40  ;;  %v6325_v52 = vmul.f32 %v6261_v61, %v11987_v3 }
 0xb62   :  { %v6068_v34 = vpop.f32.mrf.mxu0 }
 0xb63   :  { %6449 = vst [vmem:[#allocation4] sm:$0xff] %v14033_v20  ;;  %v14037_v15 = vadd.f32 %v6322_v39, %v6068_v34  ;;  %v6263_v39 = vld [vmem:[#allocation4 + $0x30] sm:$0xff]  ;;  %v6326_v34 = vmul.f32 %v6262_v29, %v11987_v3 }
 0xb64   :  { %v6072_v55 = vpop.f32.mrf.mxu0  ;;  %v6327_v63 = vmul.f32 %v6263_v39, %v11987_v3 }
 0xb65   :  { %6450 = vst [vmem:[#allocation4 + $0x8] sm:$0xff] %v14037_v15  ;;  %v14041_v19 = vadd.f32 %v6323_v28, %v6072_v55  ;;  %v6264_v55 = vld [vmem:[#allocation4 + $0x38] sm:$0xff] }
 0xb66   :  { %v6074_v6 = vpop.f32.mrf.mxu0  ;;  %v6328_v18 = vmul.f32 %v6264_v55, %v11987_v3 }
 0xb67   :  { %6451 = vst [vmem:[#allocation4 + $0x10] sm:$0xff] %v14041_v19  ;;  %v14045_v7 = vadd.f32 %v6324_v43, %v6074_v6  ;;  %v6265_v6 = vld [vmem:[#allocation4 + $0x40] sm:$0xff] }
 0xb68   :  { %v6078_v40 = vpop.f32.mrf.mxu0  ;;  %v6329_v0 = vmul.f32 %v6265_v6, %v11987_v3 }
 0xb69   :  { %6452 = vst [vmem:[#allocation4 + $0x18] sm:$0xff] %v14045_v7  ;;  %v14049_v38 = vadd.f32 %v6325_v52, %v6078_v40  ;;  %v6266_v40 = vld [vmem:[#allocation4 + $0x48] sm:$0xff] }
 0xb6a   :  { %v6080_v28 = vpop.f32.mrf.mxu0  ;;  %v6330_v51 = vmul.f32 %v6266_v40, %v11987_v3 }
 0xb6b   :  { %6453 = vst [vmem:[#allocation4 + $0x20] sm:$0xff] %v14049_v38  ;;  %v14053_v5 = vadd.f32 %v6326_v34, %v6080_v28  ;;  %v6267_v28 = vld [vmem:[#allocation4 + $0x50] sm:$0xff] }
 0xb6c   :  { %v6084_v43 = vpop.f32.mrf.mxu0  ;;  %v6331_v10 = vmul.f32 %v6267_v28, %v11987_v3 }
 0xb6d   :  { %6454 = vst [vmem:[#allocation4 + $0x28] sm:$0xff] %v14053_v5  ;;  %v14057_v61 = vadd.f32 %v6327_v63, %v6084_v43  ;;  %v6268_v43 = vld [vmem:[#allocation4 + $0x58] sm:$0xff] }
 0xb6e   :  { %v6086_v52 = vpop.f32.mrf.mxu0  ;;  %v6332_v14 = vmul.f32 %v6268_v43, %v11987_v3 }
 0xb6f   :  { %6455 = vst [vmem:[#allocation4 + $0x30] sm:$0xff] %v14057_v61  ;;  %v14061_v29 = vadd.f32 %v6328_v18, %v6086_v52  ;;  %v6269_v52 = vld [vmem:[#allocation4 + $0x60] sm:$0xff] }
 0xb70   :  { %v6090_v34 = vpop.f32.mrf.mxu0  ;;  %v6333_v16 = vmul.f32 %v6269_v52, %v11987_v3 }
 0xb71   :  { %6456 = vst [vmem:[#allocation4 + $0x38] sm:$0xff] %v14061_v29  ;;  %v14065_v39 = vadd.f32 %v6329_v0, %v6090_v34  ;;  %v6270_v34 = vld [vmem:[#allocation4 + $0x68] sm:$0xff] }
 0xb72   :  { %v6092_v63 = vpop.f32.mrf.mxu0  ;;  %v6334_v35 = vmul.f32 %v6270_v34, %v11987_v3 }
 0xb73   :  { %6457 = vst [vmem:[#allocation4 + $0x40] sm:$0xff] %v14065_v39  ;;  %v14069_v55 = vadd.f32 %v6330_v51, %v6092_v63  ;;  %v6271_v63 = vld [vmem:[#allocation4 + $0x70] sm:$0xff] }
 0xb74   :  { %v6096_v18 = vpop.f32.mrf.mxu0  ;;  %v6335_v13 = vmul.f32 %v6271_v63, %v11987_v3 }
 0xb75   :  { %6458 = vst [vmem:[#allocation4 + $0x48] sm:$0xff] %v14069_v55  ;;  %v14073_v6 = vadd.f32 %v6331_v10, %v6096_v18  ;;  %v6272_v18 = vld [vmem:[#allocation4 + $0x78] sm:$0xff] }
 0xb76   :  { %v6098_v0 = vpop.f32.mrf.mxu0  ;;  %v6336_v42 = vmul.f32 %v6272_v18, %v11987_v3 }
 0xb77   :  { %6459 = vst [vmem:[#allocation4 + $0x50] sm:$0xff] %v14073_v6  ;;  %v14077_v40 = vadd.f32 %v6332_v14, %v6098_v0  ;;  %v6273_v0 = vld [vmem:[#allocation4 + $0x80] sm:$0xff] }
 0xb78   :  { %v6102_v51 = vpop.f32.mrf.mxu0  ;;  %v6337_v54 = vmul.f32 %v6273_v0, %v11987_v3 }
 0xb79   :  { %6460 = vst [vmem:[#allocation4 + $0x58] sm:$0xff] %v14077_v40  ;;  %v14081_v28 = vadd.f32 %v6333_v16, %v6102_v51  ;;  %v6274_v51 = vld [vmem:[#allocation4 + $0x88] sm:$0xff] }
 0xb7a   :  { %v6104_v10 = vpop.f32.mrf.mxu0  ;;  %v6338_v21 = vmul.f32 %v6274_v51, %v11987_v3 }
 0xb7b   :  { %6461 = vst [vmem:[#allocation4 + $0x60] sm:$0xff] %v14081_v28  ;;  %v14085_v43 = vadd.f32 %v6334_v35, %v6104_v10  ;;  %v6275_v10 = vld [vmem:[#allocation4 + $0x90] sm:$0xff] }
 0xb7c   :  { %v6108_v14 = vpop.f32.mrf.mxu0  ;;  %v6339_v44 = vmul.f32 %v6275_v10, %v11987_v3 }
 0xb7d   :  { %6462 = vst [vmem:[#allocation4 + $0x68] sm:$0xff] %v14085_v43  ;;  %v14089_v52 = vadd.f32 %v6335_v13, %v6108_v14  ;;  %v6276_v14 = vld [vmem:[#allocation4 + $0x98] sm:$0xff] }
 0xb7e   :  { %v6110_v16 = vpop.f32.mrf.mxu0  ;;  %v6340_v30 = vmul.f32 %v6276_v14, %v11987_v3 }
 0xb7f   :  { %6463 = vst [vmem:[#allocation4 + $0x70] sm:$0xff] %v14089_v52  ;;  %v14093_v34 = vadd.f32 %v6336_v42, %v6110_v16  ;;  %v6277_v16 = vld [vmem:[#allocation4 + $0xa0] sm:$0xff] }
 0xb80   :  { %v6114_v35 = vpop.f32.mrf.mxu0  ;;  %v6341_v45 = vmul.f32 %v6277_v16, %v11987_v3 }
 0xb81   :  { %6464 = vst [vmem:[#allocation4 + $0x78] sm:$0xff] %v14093_v34  ;;  %v14097_v63 = vadd.f32 %v6337_v54, %v6114_v35  ;;  %v6278_v35 = vld [vmem:[#allocation4 + $0xa8] sm:$0xff] }
 0xb82   :  { %v6116_v13 = vpop.f32.mrf.mxu0  ;;  %v6342_v59 = vmul.f32 %v6278_v35, %v11987_v3 }
 0xb83   :  { %6465 = vst [vmem:[#allocation4 + $0x80] sm:$0xff] %v14097_v63  ;;  %v14101_v18 = vadd.f32 %v6338_v21, %v6116_v13  ;;  %v6279_v13 = vld [vmem:[#allocation4 + $0xb0] sm:$0xff] }
 0xb84   :  { %v6120_v42 = vpop.f32.mrf.mxu0  ;;  %v6343_v33 = vmul.f32 %v6279_v13, %v11987_v3 }
 0xb85   :  { %6466 = vst [vmem:[#allocation4 + $0x88] sm:$0xff] %v14101_v18  ;;  %v14105_v0 = vadd.f32 %v6339_v44, %v6120_v42  ;;  %v6280_v42 = vld [vmem:[#allocation4 + $0xb8] sm:$0xff] }
 0xb86   :  { %v6122_v54 = vpop.f32.mrf.mxu0  ;;  %v6344_v57 = vmul.f32 %v6280_v42, %v11987_v3 }
 0xb87   :  { %6467 = vst [vmem:[#allocation4 + $0x90] sm:$0xff] %v14105_v0  ;;  %v14109_v51 = vadd.f32 %v6340_v30, %v6122_v54  ;;  %v6281_v54 = vld [vmem:[#allocation4 + $0xc0] sm:$0xff] }
 0xb88   :  { %v6126_v21 = vpop.f32.mrf.mxu0  ;;  %v6345_v41 = vmul.f32 %v6281_v54, %v11987_v3 }
 0xb89   :  { %6468 = vst [vmem:[#allocation4 + $0x98] sm:$0xff] %v14109_v51  ;;  %v14113_v10 = vadd.f32 %v6341_v45, %v6126_v21  ;;  %v6282_v21 = vld [vmem:[#allocation4 + $0xc8] sm:$0xff] }
 0xb8a   :  { %v6128_v44 = vpop.f32.mrf.mxu0  ;;  %v6346_v50 = vmul.f32 %v6282_v21, %v11987_v3 }
 0xb8b   :  { %6469 = vst [vmem:[#allocation4 + $0xa0] sm:$0xff] %v14113_v10  ;;  %v14117_v14 = vadd.f32 %v6342_v59, %v6128_v44  ;;  %v6283_v44 = vld [vmem:[#allocation4 + $0xd0] sm:$0xff] }
 0xb8c   :  { %v6132_v30 = vpop.f32.mrf.mxu0  ;;  %v6347_v62 = vmul.f32 %v6283_v44, %v11987_v3  ;;  %v6288_v44 = vld [vmem:[#allocation4 + $0xf8] sm:$0xff] }
 0xb8d   :  { %6470 = vst [vmem:[#allocation4 + $0xa8] sm:$0xff] %v14117_v14  ;;  %v14121_v16 = vadd.f32 %v6343_v33, %v6132_v30  ;;  %v6284_v30 = vld [vmem:[#allocation4 + $0xd8] sm:$0xff] }
 0xb8e   :  { %v6134_v45 = vpop.f32.mrf.mxu0  ;;  %v6348_v54 = vmul.f32 %v6284_v30, %v11987_v3  ;;  %v6289_v30 = vld [vmem:[#allocation4 + $0x100] sm:$0xff] }
 0xb8f   :  { %6471 = vst [vmem:[#allocation4 + $0xb0] sm:$0xff] %v14121_v16  ;;  %v14125_v35 = vadd.f32 %v6344_v57, %v6134_v45  ;;  %v6285_v57 = vld [vmem:[#allocation4 + $0xe0] sm:$0xff] }
 0xb90   :  { %v6138_v59 = vpop.f32.mrf.mxu0 }
 0xb91   :  { %6472 = vst [vmem:[#allocation4 + $0xb8] sm:$0xff] %v14125_v35  ;;  %v14129_v13 = vadd.f32 %v6345_v41, %v6138_v59  ;;  %v6349_v59 = vmul.f32 %v6285_v57, %v11987_v3  ;;  %v6290_v57 = vld [vmem:[#allocation4 + $0x108] sm:$0xff] }
 0xb92   :  { %v6140_v33 = vpop.f32.mrf.mxu0 }
 0xb93   :  { %6473 = vst [vmem:[#allocation4 + $0xc0] sm:$0xff] %v14129_v13  ;;  %v6410_v42 = vadd.f32 %v6346_v50, %v6140_v33  ;;  %v6350_v50 = vmul.f32 %v6286_v47, %v11987_v3 }
 0xb94   :  { %v6144_v22 = vpop.f32.mrf.mxu0 }
 0xb95   :  { %6474 = vst [vmem:[#allocation4 + $0xc8] sm:$0xff] %v6410_v42  ;;  %v6411_v45 = vadd.f32 %v6347_v62, %v6144_v22  ;;  %v6351_v22 = vmul.f32 %v6287_v23, %v11987_v3  ;;  %v16615_v23 = vld [vmem:[#allocation128_spill] sm:$0xff] }
 0xb96   :  { %v6146_v58 = vpop.f32.mrf.mxu0 }
 0xb97   :  { %6475 = vst [vmem:[#allocation4 + $0xd0] sm:$0xff] %v6411_v45  ;;  %v6412_v41 = vadd.f32 %v6348_v54, %v6146_v58  ;;  %v6352_v58 = vmul.f32 %v6288_v44, %v11987_v3  ;;  %v16616_v44 = vld [vmem:[#allocation125_spill] sm:$0xff] }
 0xb98   :  { %v6150_v21 = vpop.f32.mrf.mxu0 }
 0xb99   :  { %6476 = vst [vmem:[#allocation4 + $0xd8] sm:$0xff] %v6412_v41  ;;  %v6413_v12 = vadd.f32 %v6349_v59, %v6150_v21  ;;  %v6353_v59 = vmul.f32 %v6289_v30, %v11987_v3  ;;  %v16613_v21 = vld [vmem:[#allocation127_spill] sm:$0xff] }
 0xb9a   :  { %v6152_v33 = vpop.f32.mrf.mxu0 }
 0xb9b   :  { %6477 = vst [vmem:[#allocation4 + $0xe0] sm:$0xff] %v6413_v12  ;;  %v6414_v11 = vadd.f32 %v6350_v50, %v6152_v33 }
 0xb9c   :  { %v6156_v62 = vpop.f32.mrf.mxu0 }
 0xb9d   :  { %6478 = vst [vmem:[#allocation4 + $0xe8] sm:$0xff] %v6414_v11  ;;  %v6415_v31 = vadd.f32 %v6351_v22, %v6156_v62  ;;  %v6670_v50 = vmul.f32 %v6414_v11, %v16614_v37  ;;  %v6354_v22 = vmul.f32 %v6290_v57, %v11987_v3  ;;  %v6669_v62 = vmul.f32 %v6413_v12, %v16616_v44  ;;  %v6293_v57 = vld [vmem:[#allocation4 + $0x120] sm:$0xff] }
 0xb9e   :  { %v6158_v54 = vpop.f32.mrf.mxu0  ;;  %v6355_v11 = vmul.f32 %v6291_v25, %v11987_v3  ;;  %v6666_v12 = vmul.f32 %v6410_v42, %v16376_v1  ;;  %v6665_v25 = vmul.f32 %v14129_v13, %v16499_v2  ;;  %v6664_v42 = vmul.f32 %v14125_v35, %v16380_v56 }
 0xb9f   :  { %6479 = vst [vmem:[#allocation4 + $0xf0] sm:$0xff] %v6415_v31  ;;  %v6416_v27 = vadd.f32 %v6352_v58, %v6158_v54  ;;  %v6671_v47 = vmul.f32 %v6415_v31, %v16613_v21  ;;  %v6668_v58 = vmul.f32 %v6412_v41, %v16495_v53  ;;  %v16617_v54 = vld [vmem:[#allocation123_spill] sm:$0xff]  ;;  %v6734_v44 = vadd.f32 %v6670_v50, %v16377_v49 }
 0xba0   :  { %v6162_v9 = vpop.f32.mrf.mxu0  ;;  %v6663_v13 = vmul.f32 %v14121_v16, %v16501_v24  ;;  %v6662_v35 = vmul.f32 %v14117_v14, %v16384_v26  ;;  %v16622_v24 = vld [vmem:[#allocation116_spill] sm:$0xff] }
 0xba1   :  { %6480 = vst [vmem:[#allocation4 + $0xf8] sm:$0xff] %v6416_v27  ;;  %v6672_v33 = vmul.f32 %v6416_v27, %v16615_v23  ;;  %v14143_v46 = vadd.f32 %v6353_v59, %v6162_v9  ;;  %v6667_v27 = vmul.f32 %v6411_v45, %v16617_v54  ;;  %v6735_v9 = vadd.f32 %v6671_v47, %v16498_v8  ;;  %v6294_v47 = vld [vmem:[#allocation4 + $0x128] sm:$0xff] }
 0xba2   :  { %v6164_v4 = vpop.f32.mrf.mxu0  ;;  %v6732_v50 = vadd.f32 %v6668_v58, %v16381_v17  ;;  %v6660_v14 = vmul.f32 %v14109_v51, %v16622_v24  ;;  %v16623_v26 = vld [vmem:[#allocation56_spill] sm:$0xff]  ;;  %v16627_v24 = vld [vmem:[#allocation54_spill] sm:$0xff] }
 0xba3   :  { %v6736_v30 = vadd.f32 %v6672_v33, %v16496_v60  ;;  %6481 = vst [vmem:[#allocation4 + $0x100] sm:$0xff] %v14143_v46  ;;  %v14150_v31 = vadd.f32 %v6354_v22, %v6164_v4  ;;  %v6356_v4 = vmul.f32 %v6292_v32, %v11987_v3  ;;  %v16618_v33 = vld [vmem:[#allocation61_spill] sm:$0xff]  ;;  %v6357_v32 = vmul.f32 %v6293_v57, %v11987_v3  ;;  %v16673_v17 = vld [vmem:[#allocation154_spill] sm:$0xff] }
 0xba4   :  { %v6168_v59 = vpop.f32.mrf.mxu0  ;;  %v6733_v45 = vadd.f32 %v6669_v62, %v16618_v33  ;;  %v6731_v62 = vadd.f32 %v6667_v27, %v16502_v48  ;;  %v16620_v57 = vld [vmem:[#allocation117_spill] sm:$0xff] }
 0xba5   :  { %6482 = vst [vmem:[#allocation4 + $0x108] sm:$0xff] %v14150_v31  ;;  %v14158_v41 = vadd.f32 %v6355_v11, %v6168_v59  ;;  %6924 = vmatprep.subr.mxu1 %v6736_v30  ;;  %v16619_v59 = vld [vmem:[#allocation58_spill] sm:$0xff]  ;;  %v6661_v16 = vmul.f32 %v14113_v10, %v16620_v57 }
 0xba6   :  { %v6170_v22 = vpop.f32.mrf.mxu0  ;;  %6925 = vmatpush1.msra.mxu1 %v6735_v9  ;;  %v6295_v9 = vld [vmem:[#allocation4 + $0x130] sm:$0xff]  ;;  %v6730_v58 = vadd.f32 %v6666_v12, %v16619_v59  ;;  %v6728_v12 = vadd.f32 %v6664_v42, %v16623_v26  ;;  %v16626_v57 = vld [vmem:[#allocation114_spill] sm:$0xff]  ;;  %v6726_v42 = vadd.f32 %v6662_v35, %v16627_v24  ;;  %v16671_v59 = vld [vmem:[#allocation155_spill] sm:$0xff] }
 0xba7   :  { %6483 = vst [vmem:[#allocation4 + $0x110] sm:$0xff] %v14158_v41  ;;  %v14168_v11 = vadd.f32 %v6356_v4, %v6170_v22  ;;  %6926 = vmatprep.subr.mxu1 %v6734_v44  ;;  %v6358_v44 = vmul.f32 %v6294_v47, %v11987_v3  ;;  %v16621_v22 = vld [vmem:[#allocation57_spill] sm:$0xff]  ;;  %v6359_v47 = vmul.f32 %v6295_v9, %v11987_v3 }
 0xba8   :  { %v6174_v30 = vpop.f32.mrf.mxu0  ;;  %6927 = vmatpush1.msra.mxu1 %v6733_v45  ;;  %v6729_v27 = vadd.f32 %v6665_v25, %v16621_v22  ;;  %v6296_v45 = vld [vmem:[#allocation4 + $0x138] sm:$0xff]  ;;  %v6658_v51 = vmul.f32 %v14101_v18, %v16626_v57  ;;  %v16631_v57 = vld [vmem:[#allocation52_spill] sm:$0xff] }
 0xba9   :  { %6484 = vst [vmem:[#allocation4 + $0x118] sm:$0xff] %v14168_v11  ;;  %v14178_v4 = vadd.f32 %v6357_v32, %v6174_v30  ;;  %6928 = vmatprep.subr.mxu1 %v6732_v50  ;;  %v16624_v50 = vld [vmem:[#allocation115_spill] sm:$0xff]  ;;  %v6360_v9 = vmul.f32 %v6296_v45, %v11987_v3  ;;  %v6724_v35 = vadd.f32 %v6660_v14, %v16631_v57  ;;  %v16638_v57 = vld [vmem:[#allocation108_spill] sm:$0xff] }
 0xbaa   :  { %v6176_v48 = vpop.f32.mrf.mxu0  ;;  %6929 = vmatpush1.msra.mxu1 %v6731_v62  ;;  %v6659_v10 = vmul.f32 %v14105_v0, %v16624_v50  ;;  %v16625_v30 = vld [vmem:[#allocation55_spill] sm:$0xff]  ;;  %v16630_v50 = vld [vmem:[#allocation112_spill] sm:$0xff] }
 0xbab   :  { %6485 = vst [vmem:[#allocation4 + $0x120] sm:$0xff] %v14178_v4  ;;  %v14188_v32 = vadd.f32 %v6358_v44, %v6176_v48  ;;  %6930 = vmatprep.subr.mxu1 %v6730_v58  ;;  %v6727_v25 = vadd.f32 %v6663_v13, %v16625_v30  ;;  %v6297_v62 = vld [vmem:[#allocation4 + $0x140] sm:$0xff]  ;;  %v16628_v58 = vld [vmem:[#allocation113_spill] sm:$0xff]  ;;  %v6656_v18 = vmul.f32 %v14093_v34, %v16630_v50  ;;  %v16667_v50 = vld [vmem:[#allocation158_spill] sm:$0xff] }
 0xbac   :  { %v6180_v22 = vpop.f32.mrf.mxu0  ;;  %6931 = vmatpush1.msra.mxu1 %v6729_v27  ;;  %v6657_v0 = vmul.f32 %v14097_v63, %v16628_v58  ;;  %v16629_v44 = vld [vmem:[#allocation53_spill] sm:$0xff]  ;;  %v6298_v27 = vld [vmem:[#allocation4 + $0x148] sm:$0xff]  ;;  %v6361_v45 = vmul.f32 %v6297_v62, %v11987_v3  ;;  %v16634_v58 = vld [vmem:[#allocation110_spill] sm:$0xff] }
 0xbad   :  { %6486 = vst [vmem:[#allocation4 + $0x128] sm:$0xff] %v14188_v32  ;;  %v14198_v48 = vadd.f32 %v6359_v47, %v6180_v22  ;;  %6932 = vmatprep.subr.mxu1 %v6728_v12  ;;  %v6725_v13 = vadd.f32 %v6661_v16, %v16629_v44  ;;  %v16632_v12 = vld [vmem:[#allocation111_spill] sm:$0xff]  ;;  %v6654_v34 = vmul.f32 %v14085_v43, %v16634_v58 }
 0xbae   :  { %v6182_v30 = vpop.f32.mrf.mxu0  ;;  %6933 = vmatpush1.msra.mxu1 %v6727_v25  ;;  %v6655_v63 = vmul.f32 %v14089_v52, %v16632_v12  ;;  %v16633_v47 = vld [vmem:[#allocation51_spill] sm:$0xff]  ;;  %v6299_v25 = vld [vmem:[#allocation4 + $0x150] sm:$0xff]  ;;  %v6652_v43 = vmul.f32 %v14077_v40, %v16638_v57 }
 0xbaf   :  { %6487 = vst [vmem:[#allocation4 + $0x130] sm:$0xff] %v14198_v48  ;;  %v14208_v22 = vadd.f32 %v6360_v9, %v6182_v30  ;;  %6934 = vmatprep.subr.mxu1 %v6726_v42  ;;  %v6723_v16 = vadd.f32 %v6659_v10, %v16633_v47  ;;  %v6362_v30 = vmul.f32 %v6298_v27, %v11987_v3  ;;  %v16635_v42 = vld [vmem:[#allocation50_spill] sm:$0xff]  ;;  %v16636_v9 = vld [vmem:[#allocation109_spill] sm:$0xff] }
 0xbb0   :  { %v6186_v44 = vpop.f32.mrf.mxu0  ;;  %6935 = vmatpush1.msra.mxu1 %v6725_v13  ;;  %v6722_v62 = vadd.f32 %v6658_v51, %v16635_v42  ;;  %v6653_v52 = vmul.f32 %v14081_v28, %v16636_v9  ;;  %v16637_v12 = vld [vmem:[#allocation49_spill] sm:$0xff]  ;;  %v6300_v13 = vld [vmem:[#allocation4 + $0x158] sm:$0xff]  ;;  %v6363_v27 = vmul.f32 %v6299_v25, %v11987_v3  ;;  %v16641_v9 = vld [vmem:[#allocation47_spill] sm:$0xff] }
 0xbb1   :  { %6488 = vst [vmem:[#allocation4 + $0x138] sm:$0xff] %v14208_v22  ;;  %v14217_v14 = vadd.f32 %v6361_v45, %v6186_v44  ;;  %6936 = vmatprep.subr.mxu1 %v6724_v35  ;;  %v6721_v10 = vadd.f32 %v6657_v0, %v16637_v12  ;;  %v16639_v35 = vld [vmem:[#allocation48_spill] sm:$0xff]  ;;  %v16640_v45 = vld [vmem:[#allocation107_spill] sm:$0xff]  ;;  %v6719_v0 = vadd.f32 %v6655_v63, %v16641_v9  ;;  %v16642_v42 = vld [vmem:[#allocation106_spill] sm:$0xff] }
 0xbb2   :  { %v6188_v47 = vpop.f32.mrf.mxu0  ;;  %6937 = vmatpush1.msra.mxu1 %v6723_v16  ;;  %v6720_v51 = vadd.f32 %v6656_v18, %v16639_v35  ;;  %v6651_v28 = vmul.f32 %v14073_v6, %v16640_v45  ;;  %v6301_v16 = vld [vmem:[#allocation4 + $0x160] sm:$0xff]  ;;  %v6650_v40 = vmul.f32 %v14069_v55, %v16642_v42  ;;  %v6364_v25 = vmul.f32 %v6300_v13, %v11987_v3  ;;  %v16645_v45 = vld [vmem:[#allocation45_spill] sm:$0xff]  ;;  %v16646_v35 = vld [vmem:[#allocation104_spill] sm:$0xff] }
 0xbb3   :  { %6489 = vst [vmem:[#allocation4 + $0x140] sm:$0xff] %v14217_v14  ;;  %v14227_v44 = vadd.f32 %v6362_v30, %v6188_v47  ;;  %6938 = vmatprep.subr.mxu1 %v6722_v62  ;;  %v16643_v30 = vld [vmem:[#allocation46_spill] sm:$0xff]  ;;  %v16644_v62 = vld [vmem:[#allocation105_spill] sm:$0xff]  ;;  %v6717_v63 = vadd.f32 %v6653_v52, %v16645_v45  ;;  %v6648_v55 = vmul.f32 %v14061_v29, %v16646_v35 }
 0xbb4   :  { %v6192_v12 = vpop.f32.mrf.mxu0  ;;  %6939 = vmatpush1.msra.mxu1 %v6721_v10  ;;  %v6718_v18 = vadd.f32 %v6654_v34, %v16643_v30  ;;  %v6649_v6 = vmul.f32 %v14065_v39, %v16644_v62  ;;  %v6302_v10 = vld [vmem:[#allocation4 + $0x168] sm:$0xff]  ;;  %v6365_v13 = vmul.f32 %v6301_v16, %v11987_v3  ;;  %v16649_v62 = vld [vmem:[#allocation43_spill] sm:$0xff]  ;;  %v16650_v30 = vld [vmem:[#allocation102_spill] sm:$0xff] }
 0xbb5   :  { %6490 = vst [vmem:[#allocation4 + $0x148] sm:$0xff] %v14227_v44  ;;  %v14237_v47 = vadd.f32 %v6363_v27, %v6192_v12  ;;  %6940 = vmatprep.subr.mxu1 %v6720_v51  ;;  %v16647_v27 = vld [vmem:[#allocation44_spill] sm:$0xff]  ;;  %v16648_v51 = vld [vmem:[#allocation103_spill] sm:$0xff]  ;;  %v6715_v52 = vadd.f32 %v6651_v28, %v16649_v62  ;;  %v6646_v29 = vmul.f32 %v14053_v5, %v16650_v30 }
 0xbb6   :  { %v6194_v9 = vpop.f32.mrf.mxu0  ;;  %6941 = vmatpush1.msra.mxu1 %v6719_v0  ;;  %v6716_v34 = vadd.f32 %v6652_v43, %v16647_v27  ;;  %v6647_v39 = vmul.f32 %v14057_v61, %v16648_v51  ;;  %v6303_v0 = vld [vmem:[#allocation4 + $0x170] sm:$0xff]  ;;  %v6366_v16 = vmul.f32 %v6302_v10, %v11987_v3  ;;  %v16654_v27 = vld [vmem:[#allocation100_spill] sm:$0xff] }
 0xbb7   :  { %6491 = vst [vmem:[#allocation4 + $0x150] sm:$0xff] %v14237_v47  ;;  %v14247_v12 = vadd.f32 %v6364_v25, %v6194_v9  ;;  %6942 = vmatprep.subr.mxu1 %v6718_v18  ;;  %v16651_v25 = vld [vmem:[#allocation42_spill] sm:$0xff]  ;;  %v16652_v18 = vld [vmem:[#allocation101_spill] sm:$0xff]  ;;  %v6644_v5 = vmul.f32 %v14045_v7, %v16654_v27  ;;  %v6367_v10 = vmul.f32 %v6303_v0, %v11987_v3 }
 0xbb8   :  { %v6198_v45 = vpop.f32.mrf.mxu0  ;;  %6943 = vmatpush1.msra.mxu1 %v6717_v63  ;;  %v6714_v43 = vadd.f32 %v6650_v40, %v16651_v25  ;;  %v6645_v61 = vmul.f32 %v14049_v38, %v16652_v18  ;;  %v16653_v51 = vld [vmem:[#allocation41_spill] sm:$0xff]  ;;  %v6304_v63 = vld [vmem:[#allocation4 + $0x178] sm:$0xff]  ;;  %v16657_v18 = vld [vmem:[#allocation39_spill] sm:$0xff] }
 0xbb9   :  { %6492 = vst [vmem:[#allocation4 + $0x158] sm:$0xff] %v14247_v12  ;;  %v14257_v9 = vadd.f32 %v6365_v13, %v6198_v45  ;;  %6944 = vmatprep.subr.mxu1 %v6716_v34  ;;  %v6713_v28 = vadd.f32 %v6649_v6, %v16653_v51  ;;  %v16655_v13 = vld [vmem:[#allocation40_spill] sm:$0xff]  ;;  %v16656_v34 = vld [vmem:[#allocation99_spill] sm:$0xff]  ;;  %v6711_v6 = vadd.f32 %v6647_v39, %v16657_v18  ;;  %v16658_v25 = vld [vmem:[#allocation98_spill] sm:$0xff] }
 0xbba   :  { %v6200_v62 = vpop.f32.mrf.mxu0  ;;  %6945 = vmatpush1.msra.mxu1 %v6715_v52  ;;  %v6712_v40 = vadd.f32 %v6648_v55, %v16655_v13  ;;  %v6643_v38 = vmul.f32 %v14041_v19, %v16656_v34  ;;  %v6305_v52 = vld [vmem:[#allocation4 + $0x180] sm:$0xff]  ;;  %v6642_v7 = vmul.f32 %v14037_v15, %v16658_v25  ;;  %v6368_v0 = vmul.f32 %v6304_v63, %v11987_v3  ;;  %v16661_v34 = vld [vmem:[#allocation37_spill] sm:$0xff] }
 0xbbb   :  { %6493 = vst [vmem:[#allocation4 + $0x160] sm:$0xff] %v14257_v9  ;;  %v14267_v45 = vadd.f32 %v6366_v16, %v6200_v62  ;;  %6946 = vmatprep.subr.mxu1 %v6714_v43  ;;  %v16659_v16 = vld [vmem:[#allocation38_spill] sm:$0xff]  ;;  %v16660_v43 = vld [vmem:[#allocation97_spill] sm:$0xff]  ;;  %v6709_v39 = vadd.f32 %v6645_v61, %v16661_v34  ;;  %v16663_v63 = vld [vmem:[#allocation35_spill] sm:$0xff] }
 0xbbc   :  { %v6204_v51 = vpop.f32.mrf.mxu0  ;;  %6947 = vmatpush1.msra.mxu1 %v6713_v28  ;;  %v6710_v55 = vadd.f32 %v6646_v29, %v16659_v16  ;;  %v6641_v19 = vmul.f32 %v14033_v20, %v16660_v43  ;;  %v6306_v28 = vld [vmem:[#allocation4 + $0x188] sm:$0xff]  ;;  %v6707_v25 = vadd.f32 %v6643_v38, %v16663_v63  ;;  %v6307_v16 = vld [vmem:[#allocation4 + $0x190] sm:$0xff]  ;;  %v6316_v43 = vld [vmem:[#allocation4 + $0x1d8] sm:$0xff] }
 0xbbd   :  { %6494 = vst [vmem:[#allocation4 + $0x168] sm:$0xff] %v14267_v45  ;;  %v14277_v62 = vadd.f32 %v6367_v10, %v6204_v51  ;;  %6948 = vmatprep.subr.mxu1 %v6712_v40  ;;  %v6369_v51 = vmul.f32 %v6305_v52, %v11987_v3  ;;  %v16662_v10 = vld [vmem:[#allocation36_spill] sm:$0xff]  ;;  %v6370_v61 = vmul.f32 %v6306_v28, %v11987_v3  ;;  %v6308_v52 = vld [vmem:[#allocation4 + $0x198] sm:$0xff] }
 0xbbe   :  { %v6206_v18 = vpop.f32.mrf.mxu0  ;;  %6949 = vmatpush1.msra.mxu1 %v6711_v6  ;;  %v6708_v40 = vadd.f32 %v6644_v5, %v16662_v10  ;;  %v16664_v6 = vld [vmem:[#allocation34_spill] sm:$0xff]  ;;  %v6371_v38 = vmul.f32 %v6307_v16, %v11987_v3  ;;  %v6315_v10 = vld [vmem:[#allocation4 + $0x1d0] sm:$0xff] }
 0xbbf   :  { %6495 = vst [vmem:[#allocation4 + $0x170] sm:$0xff] %v14277_v62  ;;  %v14285_v15 = vadd.f32 %v6368_v0, %v6206_v18  ;;  %6950 = vmatprep.subr.mxu1 %v6710_v55  ;;  %v6706_v18 = vadd.f32 %v6642_v7, %v16664_v6  ;;  %v16665_v0 = vld [vmem:[#allocation33_spill] sm:$0xff]  ;;  %v6372_v7 = vmul.f32 %v6308_v52, %v11987_v3 }
 0xbc0   :  { %v6210_v29 = vpop.f32.mrf.mxu0  ;;  %6951 = vmatpush1.msra.mxu1 %v6709_v39  ;;  %v6705_v55 = vadd.f32 %v6641_v19, %v16665_v0 }
 0xbc1   :  { %6496 = vst [vmem:[#allocation4 + $0x178] sm:$0xff] %v14285_v15  ;;  %v14291_v20 = vadd.f32 %v6369_v51, %v6210_v29  ;;  %6952 = vmatprep.subr.mxu1 %v6708_v40  ;;  %v6309_v51 = vld [vmem:[#allocation4 + $0x1a0] sm:$0xff]  ;;  %v6310_v40 = vld [vmem:[#allocation4 + $0x1a8] sm:$0xff] }
 0xbc2   :  { %v6212_v34 = vpop.f32.mrf.mxu0  ;;  %6953 = vmatpush1.msra.mxu1 %v6707_v25 }
 0xbc3   :  { %6497 = vst [vmem:[#allocation4 + $0x180] sm:$0xff] %v14291_v20  ;;  %v14297_v5 = vadd.f32 %v6370_v61, %v6212_v34  ;;  %6954 = vmatprep.subr.mxu1 %v6706_v18  ;;  %v6373_v34 = vmul.f32 %v6309_v51, %v11987_v3  ;;  %v6311_v61 = vld [vmem:[#allocation4 + $0x1b0] sm:$0xff]  ;;  %v6374_v18 = vmul.f32 %v6310_v40, %v11987_v3 }
 0xbc4   :  { %v6216_v39 = vpop.f32.mrf.mxu0  ;;  %6955 = vmatpush1.msra.mxu1 %v6705_v55 }
 0xbc5   :  { %6498 = vst [vmem:[#allocation4 + $0x188] sm:$0xff] %v14297_v5  ;;  %v14301_v28 = vadd.f32 %v6371_v38, %v6216_v39  ;;  %v6312_v38 = vld [vmem:[#allocation4 + $0x1b8] sm:$0xff]  ;;  %v6375_v39 = vmul.f32 %v6311_v61, %v11987_v3 }
 0xbc6   :  { %v6218_v19 = vpop.f32.mrf.mxu0  ;;  %v6376_v0 = vmul.f32 %v6312_v38, %v11987_v3  ;;  %v6317_v38 = vld [vmem:[#allocation4 + $0x1e0] sm:$0xff] }
 0xbc7   :  { %6499 = vst [vmem:[#allocation4 + $0x190] sm:$0xff] %v14301_v28  ;;  %v14305_v25 = vadd.f32 %v6372_v7, %v6218_v19  ;;  %v6313_v19 = vld [vmem:[#allocation4 + $0x1c0] sm:$0xff] }
 0xbc8   :  { %v6222_v29 = vpop.f32.mrf.mxu0  ;;  %v6377_v40 = vmul.f32 %v6313_v19, %v11987_v3  ;;  %v6318_v19 = vld [vmem:[#allocation4 + $0x1e8] sm:$0xff] }
 0xbc9   :  { %6500 = vst [vmem:[#allocation4 + $0x198] sm:$0xff] %v14305_v25  ;;  %v14309_v16 = vadd.f32 %v6373_v34, %v6222_v29  ;;  %v6314_v34 = vld [vmem:[#allocation4 + $0x1c8] sm:$0xff] }
 0xbca   :  { %v6224_v55 = vpop.f32.mrf.mxu0 }
 0xbcb   :  { %6501 = vst [vmem:[#allocation4 + $0x1a0] sm:$0xff] %v14309_v16  ;;  %v14313_v52 = vadd.f32 %v6374_v18, %v6224_v55  ;;  %v6378_v55 = vmul.f32 %v6314_v34, %v11987_v3  ;;  %v6319_v34 = vld [vmem:[#allocation4 + $0x1f0] sm:$0xff] }
 0xbcc   :  { %v6228_v7 = vpop.f32.mrf.mxu0 }
 0xbcd   :  { %6502 = vst [vmem:[#allocation4 + $0x1a8] sm:$0xff] %v14313_v52  ;;  %v6439_v51 = vadd.f32 %v6375_v39, %v6228_v7  ;;  %v6379_v39 = vmul.f32 %v6315_v10, %v11987_v3  ;;  %v6320_v10 = vld [vmem:[#allocation4 + $0x1f8] sm:$0xff] }
 0xbce   :  { %v6230_v6 = vpop.f32.mrf.mxu0  ;;  %v6384_v57 = vmul.f32 %v6320_v10, %v11987_v3 }
 0xbcf   :  { %6503 = vst [vmem:[#allocation4 + $0x1b0] sm:$0xff] %v6439_v51  ;;  %v6440_v29 = vadd.f32 %v6376_v0, %v6230_v6  ;;  %v6380_v6 = vmul.f32 %v6316_v43, %v11987_v3 }
 0xbd0   :  { %v6234_v63 = vpop.f32.mrf.mxu0 }
 0xbd1   :  { %6504 = vst [vmem:[#allocation4 + $0x1b8] sm:$0xff] %v6440_v29  ;;  %v6441_v18 = vadd.f32 %v6377_v40, %v6234_v63  ;;  %v6381_v63 = vmul.f32 %v6317_v38, %v11987_v3 }
 0xbd2   :  { %v6236_v61 = vpop.f32.mrf.mxu0 }
 0xbd3   :  { %6505 = vst [vmem:[#allocation4 + $0x1c0] sm:$0xff] %v6441_v18  ;;  %v6442_v13 = vadd.f32 %v6378_v55, %v6236_v61  ;;  %v6382_v55 = vmul.f32 %v6318_v19, %v11987_v3 }
 0xbd4   :  { %v6240_v7 = vpop.f32.mrf.mxu0 }
 0xbd5   :  { %6506 = vst [vmem:[#allocation4 + $0x1c8] sm:$0xff] %v6442_v13  ;;  %v6443_v27 = vadd.f32 %v6379_v39, %v6240_v7  ;;  %v6383_v39 = vmul.f32 %v6319_v34, %v11987_v3  ;;  %v16670_v34 = vld [vmem:[#allocation96_spill] sm:$0xff]  ;;  %v6698_v56 = vmul.f32 %v6442_v13, %v16673_v17 }
 0xbd6   :  { %v6242_v0 = vpop.f32.mrf.mxu0 }
 0xbd7   :  { %6507 = vst [vmem:[#allocation4 + $0x1d0] sm:$0xff] %v6443_v27  ;;  %v6444_v30 = vadd.f32 %v6380_v6, %v6242_v0  ;;  %v16666_v0 = vld [vmem:[#allocation159_spill] sm:$0xff] }
 0xbd8   :  { %v6246_v40 = vpop.f32.mrf.mxu0 }
 0xbd9   :  { %6508 = vst [vmem:[#allocation4 + $0x1d8] sm:$0xff] %v6444_v30  ;;  %v6445_v35 = vadd.f32 %v6381_v63, %v6246_v40  ;;  %v16668_v40 = vld [vmem:[#allocation157_spill] sm:$0xff] }
 0xbda   :  { %v6248_v61 = vpop.f32.mrf.mxu0 }
 0xbdb   :  { %6509 = vst [vmem:[#allocation4 + $0x1e0] sm:$0xff] %v6445_v35  ;;  %v6446_v42 = vadd.f32 %v6382_v55, %v6248_v61  ;;  %v6701_v24 = vmul.f32 %v6445_v35, %v16668_v40  ;;  %v16669_v55 = vld [vmem:[#allocation156_spill] sm:$0xff] }
 0xbdc   :  { %v6252_v7 = vpop.f32.mrf.mxu0  ;;  %v6700_v61 = vmul.f32 %v6444_v30, %v16669_v55  ;;  %v16678_v40 = vld [vmem:[#allocation92_spill] sm:$0xff] }
 0xbdd   :  { %6510 = vst [vmem:[#allocation4 + $0x1e8] sm:$0xff] %v6446_v42  ;;  %v6447_v43 = vadd.f32 %v6383_v39, %v6252_v7  ;;  %v6702_v63 = vmul.f32 %v6446_v42, %v16667_v50  ;;  %v6699_v39 = vmul.f32 %v6443_v27, %v16671_v59  ;;  %v16672_v7 = vld [vmem:[#allocation95_spill] sm:$0xff]  ;;  %v16676_v50 = vld [vmem:[#allocation93_spill] sm:$0xff] }
 0xbde   :  { %v6254_v6 = vpop.f32.mrf.mxu0  ;;  %v6764_v30 = vadd.f32 %v6700_v61, %v16678_v40  ;;  %v16680_v27 = vld [vmem:[#allocation91_spill] sm:$0xff] }
 0xbdf   :  { %6511 = vst [vmem:[#allocation4 + $0x1f0] sm:$0xff] %v6447_v43  ;;  %v6448_v38 = vadd.f32 %v6384_v57, %v6254_v6  ;;  %v6703_v58 = vmul.f32 %v6447_v43, %v16666_v0  ;;  %v16674_v57 = vld [vmem:[#allocation94_spill] sm:$0xff]  ;;  %v16675_v43 = vld [vmem:[#allocation153_spill] sm:$0xff]  ;;  %v6765_v0 = vadd.f32 %v6701_v24, %v16676_v50  ;;  %v6763_v59 = vadd.f32 %v6699_v39, %v16680_v27  ;;  %v16687_v39 = vld [vmem:[#allocation147_spill] sm:$0xff] }
 0xbe0   :  { %v6766_v6 = vadd.f32 %v6702_v63, %v16674_v57  ;;  %v6697_v42 = vmul.f32 %v6441_v18, %v16675_v43  ;;  %v16682_v63 = vld [vmem:[#allocation90_spill] sm:$0xff]  ;;  %v16683_v18 = vld [vmem:[#allocation149_spill] sm:$0xff]  ;;  %v16688_v27 = vld [vmem:[#allocation87_spill] sm:$0xff] }
 0xbe1   :  { %6512 = vst [vmem:[#allocation4 + $0x1f8] sm:$0xff] %v6448_v38  ;;  %v6704_v19 = vmul.f32 %v6448_v38, %v16423_v36  ;;  %v6767_v10 = vadd.f32 %v6703_v58, %v16672_v7  ;;  %v16677_v38 = vld [vmem:[#allocation152_spill] sm:$0xff]  ;;  %v16681_v58 = vld [vmem:[#allocation150_spill] sm:$0xff]  ;;  %v6693_v24 = vmul.f32 %v14309_v16, %v16683_v18 }
 0xbe2   :  { %v6696_v35 = vmul.f32 %v6440_v29, %v16677_v38  ;;  %v6694_v13 = vmul.f32 %v14313_v52, %v16681_v58  ;;  %v16685_v29 = vld [vmem:[#allocation148_spill] sm:$0xff]  ;;  %v7495_v38 = vld [vmem:[#allocation4 + $0x110] sm:$0xff]  ;;  %v7496_v57 = vld [vmem:[#allocation4 + $0x118] sm:$0xff] }
 0xbe3   :  { %v6768_v26 = vadd.f32 %v6704_v19, %v16670_v34  ;;  %v16679_v19 = vld [vmem:[#allocation151_spill] sm:$0xff]  ;;  %v6692_v61 = vmul.f32 %v14305_v25, %v16685_v29  ;;  %v7491_v29 = vld [vmem:[#allocation4 + $0xf0] sm:$0xff] }
 0xbe4   :  { %v6695_v34 = vmul.f32 %v6439_v51, %v16679_v19 }
 0xbe5   :  { %6956 = vmatprep.subr.mxu1 %v6768_v26  ;;  %v6762_v26 = vadd.f32 %v6698_v56, %v16682_v63  ;;  %v16689_v56 = vld [vmem:[#allocation146_spill] sm:$0xff] }
 0xbe6   :  { %6957 = vmatpush2.msra.mxu1 %v6767_v10  ;;  %v16684_v10 = vld [vmem:[#allocation89_spill] sm:$0xff]  ;;  %v6759_v52 = vadd.f32 %v6695_v34, %v16688_v27  ;;  %v16690_v63 = vld [vmem:[#allocation86_spill] sm:$0xff]  ;;  %v16695_v34 = vld [vmem:[#allocation143_spill] sm:$0xff] }
 0xbe7   :  { %6958 = vmatprep.subr.mxu1 %v6766_v6  ;;  %v6761_v50 = vadd.f32 %v6697_v42, %v16684_v10  ;;  %v16686_v6 = vld [vmem:[#allocation88_spill] sm:$0xff]  ;;  %v6758_v16 = vadd.f32 %v6694_v13, %v16690_v63  ;;  %v16691_v42 = vld [vmem:[#allocation145_spill] sm:$0xff]  ;;  %v16696_v27 = vld [vmem:[#allocation83_spill] sm:$0xff] }
 0xbe8   :  { %6959 = vmatpush2.msra.mxu1 %v6765_v0  ;;  %v6760_v51 = vadd.f32 %v6696_v35, %v16686_v6  ;;  %v6691_v0 = vmul.f32 %v14301_v28, %v16687_v39  ;;  %v16692_v10 = vld [vmem:[#allocation85_spill] sm:$0xff]  ;;  %v16693_v35 = vld [vmem:[#allocation144_spill] sm:$0xff]  ;;  %v16697_v13 = vld [vmem:[#allocation142_spill] sm:$0xff] }
 0xbe9   :  { %6960 = vmatprep.subr.mxu1 %v6764_v30  ;;  %v6690_v30 = vmul.f32 %v14297_v5, %v16689_v56  ;;  %v6757_v25 = vadd.f32 %v6693_v24, %v16692_v10  ;;  %v16694_v6 = vld [vmem:[#allocation84_spill] sm:$0xff]  ;;  %v16698_v63 = vld [vmem:[#allocation82_spill] sm:$0xff]  ;;  %v16699_v24 = vld [vmem:[#allocation141_spill] sm:$0xff] }
 0xbea   :  { %6961 = vmatpush2.msra.mxu1 %v6763_v59  ;;  %v6689_v59 = vmul.f32 %v14291_v20, %v16691_v42  ;;  %v6756_v28 = vadd.f32 %v6692_v61, %v16694_v6  ;;  %v6755_v5 = vadd.f32 %v6691_v0, %v16696_v27  ;;  %v16700_v10 = vld [vmem:[#allocation81_spill] sm:$0xff]  ;;  %v16701_v61 = vld [vmem:[#allocation140_spill] sm:$0xff]  ;;  %v16703_v0 = vld [vmem:[#allocation139_spill] sm:$0xff] }
 0xbeb   :  { %6962 = vmatprep.subr.mxu1 %v6762_v26  ;;  %v6688_v26 = vmul.f32 %v14285_v15, %v16693_v35  ;;  %v6754_v20 = vadd.f32 %v6690_v30, %v16698_v63  ;;  %v16702_v6 = vld [vmem:[#allocation80_spill] sm:$0xff]  ;;  %v16704_v27 = vld [vmem:[#allocation79_spill] sm:$0xff]  ;;  %v16705_v30 = vld [vmem:[#allocation138_spill] sm:$0xff] }
 0xbec   :  { %6963 = vmatpush2.msra.mxu1 %v6761_v50  ;;  %v6687_v50 = vmul.f32 %v14277_v62, %v16695_v34  ;;  %v6753_v15 = vadd.f32 %v6689_v59, %v16700_v10  ;;  %v16706_v63 = vld [vmem:[#allocation78_spill] sm:$0xff]  ;;  %v16707_v59 = vld [vmem:[#allocation137_spill] sm:$0xff]  ;;  %v7490_v39 = vld [vmem:[#allocation4 + $0xe8] sm:$0xff] }
 0xbed   :  { %6964 = vmatprep.subr.mxu1 %v6760_v51  ;;  %v6686_v51 = vmul.f32 %v14267_v45, %v16697_v13  ;;  %v6752_v62 = vadd.f32 %v6688_v26, %v16702_v6  ;;  %v16708_v10 = vld [vmem:[#allocation77_spill] sm:$0xff]  ;;  %v16709_v26 = vld [vmem:[#allocation136_spill] sm:$0xff] }
 0xbee   :  { %6965 = vmatpush2.msra.mxu1 %v6759_v52  ;;  %v6685_v52 = vmul.f32 %v14257_v9, %v16699_v24  ;;  %v6751_v45 = vadd.f32 %v6687_v50, %v16704_v27  ;;  %v16710_v6 = vld [vmem:[#allocation76_spill] sm:$0xff]  ;;  %v16711_v50 = vld [vmem:[#allocation135_spill] sm:$0xff] }
 0xbef   :  { %6966 = vmatprep.subr.mxu1 %v6758_v16  ;;  %v6684_v16 = vmul.f32 %v14247_v12, %v16701_v61  ;;  %v6750_v9 = vadd.f32 %v6686_v51, %v16706_v63  ;;  %v16712_v27 = vld [vmem:[#allocation75_spill] sm:$0xff]  ;;  %v16713_v51 = vld [vmem:[#allocation134_spill] sm:$0xff] }
 0xbf0   :  { %6967 = vmatpush2.msra.mxu1 %v6757_v25  ;;  %v6683_v25 = vmul.f32 %v14237_v47, %v16703_v0  ;;  %v6749_v12 = vadd.f32 %v6685_v52, %v16708_v10  ;;  %v16714_v63 = vld [vmem:[#allocation74_spill] sm:$0xff]  ;;  %v16715_v52 = vld [vmem:[#allocation133_spill] sm:$0xff] }
 0xbf1   :  { %6968 = vmatprep.subr.mxu1 %v6756_v28  ;;  %v6682_v28 = vmul.f32 %v14227_v44, %v16705_v30  ;;  %v6748_v47 = vadd.f32 %v6684_v16, %v16710_v6  ;;  %v16716_v10 = vld [vmem:[#allocation73_spill] sm:$0xff]  ;;  %v16717_v16 = vld [vmem:[#allocation132_spill] sm:$0xff] }
 0xbf2   :  { %6969 = vmatpush2.msra.mxu1 %v6755_v5  ;;  %v6681_v5 = vmul.f32 %v14217_v14, %v16707_v59  ;;  %v6747_v44 = vadd.f32 %v6683_v25, %v16712_v27  ;;  %v16718_v6 = vld [vmem:[#allocation72_spill] sm:$0xff]  ;;  %v16719_v25 = vld [vmem:[#allocation131_spill] sm:$0xff] }
 0xbf3   :  { %6970 = vmatprep.subr.mxu1 %v6754_v20  ;;  %v6680_v20 = vmul.f32 %v14208_v22, %v16709_v26  ;;  %v6746_v14 = vadd.f32 %v6682_v28, %v16714_v63  ;;  %v16720_v27 = vld [vmem:[#allocation71_spill] sm:$0xff]  ;;  %v16721_v28 = vld [vmem:[#allocation130_spill] sm:$0xff] }
 0xbf4   :  { %6971 = vmatpush2.msra.mxu1 %v6753_v15  ;;  %v6679_v15 = vmul.f32 %v14198_v48, %v16711_v50  ;;  %v6745_v22 = vadd.f32 %v6681_v5, %v16716_v10  ;;  %v16722_v63 = vld [vmem:[#allocation70_spill] sm:$0xff]  ;;  %v16723_v5 = vld [vmem:[#allocation129_spill] sm:$0xff] }
 0xbf5   :  { %6972 = vmatprep.subr.mxu1 %v6752_v62  ;;  %v6678_v62 = vmul.f32 %v14188_v32, %v16713_v51  ;;  %v6744_v48 = vadd.f32 %v6680_v20, %v16718_v6  ;;  %v16724_v10 = vld [vmem:[#allocation69_spill] sm:$0xff]  ;;  %v16725_v20 = vld [vmem:[#allocation68_spill] sm:$0xff]  ;;  %v16726_v6 = vld [vmem:[#allocation67_spill] sm:$0xff] }
 0xbf6   :  { %6973 = vmatpush2.msra.mxu1 %v6751_v45  ;;  %v6677_v45 = vmul.f32 %v14178_v4, %v16715_v52  ;;  %v6743_v32 = vadd.f32 %v6679_v15, %v16720_v27  ;;  %v16727_v15 = vld [vmem:[#allocation66_spill] sm:$0xff]  ;;  %v16728_v27 = vld [vmem:[#allocation65_spill] sm:$0xff] }
 0xbf7   :  { %6974 = vmatprep.subr.mxu1 %v6750_v9  ;;  %v6676_v9 = vmul.f32 %v14168_v11, %v16717_v16  ;;  %v6742_v4 = vadd.f32 %v6678_v62, %v16722_v63  ;;  %v10843_v62 = vld [vmem:[#allocation2] ss:$8 sm:$0x3] }
 0xbf8   :  { %6975 = vmatpush2.msra.mxu1 %v6749_v12  ;;  %v6675_v12 = vmul.f32 %v14158_v41, %v16719_v25  ;;  %v6741_v11 = vadd.f32 %v6677_v45, %v16724_v10  ;;  %v6901_v45 = vld [vmem:[#allocation13 + $0x5] ss:$8 sm:$0x3] }
 0xbf9   :  { %6976 = vmatprep.subr.mxu1 %v6748_v47  ;;  %v6674_v47 = vmul.f32 %v14150_v31, %v16721_v28 }
 0xbfa   :  { %6977 = vmatpush2.msra.mxu1 %v6747_v44  ;;  %v6673_v44 = vmul.f32 %v14143_v46, %v16723_v5  ;;  %v6739_v41 = vadd.f32 %v6675_v12, %v16726_v6  ;;  %v16730_v46 = vmov 0.0  }
 0xbfb   :  { %6978 = vmatprep.subr.mxu1 %v6746_v14  ;;  %v6740_v14 = vadd.f32 %v6676_v9, %v16725_v20  ;;  %v16733_v20 = vld [vmem:[#allocation164_spill] sm:$0xff] }
 0xbfc   :  { %6979 = vmatpush2.msra.mxu1 %v6745_v22  ;;  %v6738_v22 = vadd.f32 %v6674_v47, %v16727_v15  ;;  %v6737_v31 = vadd.f32 %v6673_v44, %v16728_v27  ;;  %v7060_v44 = vpop.trf.xlu0 }
 0xbfd   :  { %6980 = vmatprep.subr.mxu1 %v6744_v48  ;;  %v16729_v48 = vld [vmem:[#allocation162_spill] sm:$0xff] }
 0xbfe   :  { %6981 = vmatpush2.msra.mxu1 %v6743_v32  ;;  %v6906_v63 = vrot.slane %v10843_v62, %v16729_v48  ;;  %v6917_v9 = vrot.slane %v6901_v45, %v16729_v48  ;;  %v16731_v32 = vld [vmem:[#allocation161_spill] sm:$0xff] }
 0xbff   :  { %6982 = vmatprep.subr.mxu1 %v6742_v4  ;;  %v6921_v12 = vrot.slane %v6901_v45, %v16731_v32 }
 0xc00   :  { %6983 = vmatpush2.msra.mxu1 %v6741_v11 }
 0xc01   :  { %6984 = vmatprep.subr.mxu1 %v6740_v14 }
 0xc02   :  { %6985 = vmatpush2.msra.mxu1 %v6739_v41  ;;  %v7061_v41 = vpop.trf.xlu0 }
 0xc03   :  { %6986 = vmatprep.subr.mxu1 %v6738_v22 }
 0xc04   :  { %6987 = vmatpush2.msra.mxu1 %v6737_v31  ;;  %v16732_v31 = vld [vmem:[#allocation163_spill] sm:$0xff] }
 0xc05   :  { %6989 = vmatmul.mubr.f32.vlgmr.msra.gmra.mxu1 %v6906_v63 }
 0xc06   :  { %7268 = vmatprep.mubr.f32.mxu1 %v16730_v46  ;;  %v7062_v62 = vpop.trf.xlu0 }
 0xc0a   :  { %v7063_v45 = vpop.trf.xlu0 }
 0xcc5   :  { %v6990_v4 = vpop.f32.mrf.mxu1 }
 0xcc6   :  { %v6991_v11 = vadd.f32 %v6990_v4, %v6917_v9 }
 0xcc7   :  { %v6992_v47 = vpop.f32.mrf.mxu1 }
 0xcc8   :  { %10816 = vtanh.f32 %v6991_v11  ;;  %v6993_v14 = vadd.f32 %v6992_v47, %v6921_v12 }
 0xcca   :  { %10818 = vtanh.f32 %v6993_v14 }
 0xcd5   :  { %v10817_v27 = vpop.eup %10816 }
 0xcd6   :  { %v7018_v63 = vmul.f32 %v10817_v27, %v16732_v31 }
 0xcd7   :  { %v10819_v22 = vpop.eup %10818 }
 0xcd8   :  { %v6999_v15 = vcombine.low %v10817_v27, %v10819_v22  ;;  %v7019_v6 = vmul.f32 %v10819_v22, %v16732_v31  ;;  %v7064_v27 = vpop.trf.xlu0 }
 0xcda   :  { %v7006_v48 = vrot.slane %v6999_v15, %v16733_v20  ;;  %v7022_v10 = vcombine.low %v7018_v63, %v7019_v6 }
 0xcdc   :  { %v7013_v9 = vrot.slane %v7006_v48, %v16733_v20  ;;  %v7029_v4 = vrot.slane %v7022_v10, %v16733_v20  ;;  %v7065_v22 = vpop.trf.xlu0 }
 0xcde   :  { %7016 = vst.msk [vmem:[#allocation16 + $0x5] ss:$8 sm:$0x3] %vm11909_vm0, %v7013_v9  ;;  %v7036_v11 = vrot.slane %v7029_v4, %v16733_v20  ;;  %8037 = vst.msk [vmem:[#allocation2] ss:$8 sm:$0x3] %vm11909_vm0, %v7013_v9 }
 0xce0   :  { %7038 = vst.msk [vmem:[#allocation3] ss:$8 sm:$0x3] %vm11909_vm0, %v7036_v11  ;;  %v7066_v63 = vpop.trf.xlu0 }
 0xce4   :  { %v7067_v9 = vpop.trf.xlu0 }
 0xce5   :  { %v8245_v47 = vld [vmem:[#allocation2 + $0x8] sm:$0xff]  ;;  %v8244_v15 = vld [vmem:[#allocation2] sm:$0xff] }
 0xce6   :  { %v8039_v6 = vld [vmem:[#allocation2] ss:$8 sm:$0x3]  ;;  %8280 = vxpose.xlu1.b32.start.end [1/1] (short) %v8245_v47, 128  ;;  %8248 = vxpose.xlu0.b32.start.end [1/1] (short) %v8244_v15, 128 }
 0xce7   :  { %v8114_v48 = vrot.slane %v8039_v6, %v16731_v32  ;;  %v7043_v10 = vld [vmem:[#allocation3 + $0x8] sm:$0xff]  ;;  %v7042_v14 = vld [vmem:[#allocation3] sm:$0xff] }
 0xce8   :  { %7234 = vmatprep.subr.mxu1 %v7043_v10  ;;  %v7068_v4 = vpop.trf.xlu0 }
 0xce9   :  { %8192 = vmatprep.mubr.f32.mxu0 %v8114_v48  ;;  %7235 = vmatpush1.msra.mxu1 %v7042_v14 }
 0xcea   :  { %10687 = vmatmul.mubr.msk.f32.vlgmr.msra.gmra.mxu1 %vm1086_vm1, %v7060_v44 }
 0xceb   :  { %7274 = vmatprep.mubr.f32.mxu1 %v16730_v46 }
 0xcec   :  { %v7069_v44 = vpop.trf.xlu0 }
 0xcee   :  { %10688 = vmatmul.mubr.msk.f32.gmra.mxu1 %vm1086_vm1, %v7061_v41 }
 0xcef   :  { %7280 = vmatprep.mubr.f32.mxu1 %v16730_v46 }
 0xcf0   :  { %v7070_v41 = vpop.trf.xlu0 }
 0xcf2   :  { %10689 = vmatmul.mubr.msk.f32.gmra.mxu1 %vm1086_vm1, %v7062_v62  ;;  %v7092_v62 = vpop.trf.xlu1 }
 0xcf3   :  { %7286 = vmatprep.mubr.f32.mxu1 %v16730_v46 }
 0xcf6   :  { %10690 = vmatmul.mubr.msk.f32.gmra.mxu1 %vm1086_vm1, %v7063_v45  ;;  %v7071_v45 = vpop.trf.xlu0  ;;  %v7093_v11 = vpop.trf.xlu1 }
 0xcf7   :  { %7292 = vmatprep.mubr.f32.mxu1 %v16730_v46 }
 0xcfa   :  { %10691 = vmatmul.mubr.msk.f32.gmra.mxu1 %vm1086_vm1, %v7064_v27  ;;  %v7072_v27 = vpop.trf.xlu0  ;;  %v7094_v47 = vpop.trf.xlu1 }
 0xcfb   :  { %7298 = vmatprep.mubr.f32.mxu1 %v16730_v46 }
 0xcfe   :  { %10692 = vmatmul.mubr.msk.f32.gmra.mxu1 %vm1086_vm1, %v7065_v22  ;;  %v7073_v15 = vpop.trf.xlu0  ;;  %v7095_v6 = vpop.trf.xlu1 }
 0xcff   :  { %7304 = vmatprep.mubr.f32.mxu1 %v16730_v46 }
 0xd02   :  { %10693 = vmatmul.mubr.msk.f32.gmra.mxu1 %vm1086_vm1, %v7066_v63  ;;  %v7074_v48 = vpop.trf.xlu0  ;;  %v7096_v10 = vpop.trf.xlu1 }
 0xd03   :  { %7310 = vmatprep.mubr.f32.mxu1 %v16730_v46 }
 0xd06   :  { %10694 = vmatmul.mubr.msk.f32.gmra.mxu1 %vm1086_vm1, %v7067_v9  ;;  %v7075_v14 = vpop.trf.xlu0  ;;  %v7097_v22 = vpop.trf.xlu1 }
 0xd07   :  { %7316 = vmatprep.mubr.f32.mxu1 %v16730_v46 }
 0xd0a   :  { %10695 = vmatmul.mubr.msk.f32.gmra.mxu1 %vm1086_vm1, %v7068_v4  ;;  %v7098_v63 = vpop.trf.xlu1 }
 0xd0b   :  { %7322 = vmatprep.mubr.f32.mxu1 %v16730_v46 }
 0xd0e   :  { %10696 = vmatmul.mubr.msk.f32.gmra.mxu1 %vm1086_vm1, %v7069_v44  ;;  %v7099_v9 = vpop.trf.xlu1 }
 0xd0f   :  { %7328 = vmatprep.mubr.f32.mxu1 %v16730_v46 }
 0xd12   :  { %10697 = vmatmul.mubr.msk.f32.gmra.mxu1 %vm1086_vm1, %v7070_v41  ;;  %v7100_v4 = vpop.trf.xlu1 }
 0xd13   :  { %7334 = vmatprep.mubr.f32.mxu1 %v16730_v46 }
 0xd16   :  { %10698 = vmatmul.mubr.msk.f32.gmra.mxu1 %vm1086_vm1, %v7071_v45  ;;  %v7101_v44 = vpop.trf.xlu1 }
 0xd17   :  { %7340 = vmatprep.mubr.f32.mxu1 %v16730_v46 }
 0xd1a   :  { %10699 = vmatmul.mubr.msk.f32.gmra.mxu1 %vm1086_vm1, %v7072_v27  ;;  %v7102_v41 = vpop.trf.xlu1 }
 0xd1b   :  { %7346 = vmatprep.mubr.f32.mxu1 %v16730_v46 }
 0xd1e   :  { %10700 = vmatmul.mubr.msk.f32.gmra.mxu1 %vm1086_vm1, %v7073_v15  ;;  %v7461_v15 = vld [vmem:[#allocation4] sm:$0xff] }
 0xd1f   :  { %7352 = vmatprep.mubr.f32.mxu1 %v16730_v46 }
 0xd22   :  { %10701 = vmatmul.mubr.msk.f32.gmra.mxu1 %vm1086_vm1, %v7074_v48  ;;  %v7525_v48 = vmul.f32 %v7461_v15, %v11987_v3  ;;  %v7466_v15 = vld [vmem:[#allocation4 + $0x28] sm:$0xff] }
 0xd23   :  { %7358 = vmatprep.mubr.f32.mxu1 %v16730_v46 }
 0xd26   :  { %10702 = vmatmul.mubr.msk.f32.gmra.mxu1 %vm1086_vm1, %v7075_v14  ;;  %v7463_v14 = vld [vmem:[#allocation4 + $0x10] sm:$0xff] }
 0xd27   :  { %7364 = vmatprep.mubr.f32.mxu1 %v16730_v46 }
 0xd2a   :  { %10703 = vmatmul.mubr.msk.f32.gmra.mxu1 %vm1086_vm1, %v7092_v62  ;;  %v7103_v62 = vpop.trf.xlu1 }
 0xd2b   :  { %7370 = vmatprep.mubr.f32.mxu1 %v16730_v46 }
 0xd2e   :  { %10704 = vmatmul.mubr.msk.f32.gmra.mxu1 %vm1086_vm1, %v7093_v11  ;;  %v7104_v45 = vpop.trf.xlu1 }
 0xd2f   :  { %7376 = vmatprep.mubr.f32.mxu1 %v16730_v46 }
 0xd32   :  { %10705 = vmatmul.mubr.msk.f32.gmra.mxu1 %vm1086_vm1, %v7094_v47  ;;  %v7105_v11 = vpop.trf.xlu1 }
 0xd33   :  { %7382 = vmatprep.mubr.f32.mxu1 %v16730_v46 }
 0xd36   :  { %10706 = vmatmul.mubr.msk.f32.gmra.mxu1 %vm1086_vm1, %v7095_v6  ;;  %v7106_v27 = vpop.trf.xlu1  ;;  %v7462_v6 = vld [vmem:[#allocation4 + $0x8] sm:$0xff] }
 0xd37   :  { %7388 = vmatprep.mubr.f32.mxu1 %v16730_v46 }
 0xd3a   :  { %10707 = vmatmul.mubr.msk.f32.gmra.mxu1 %vm1086_vm1, %v7096_v10  ;;  %v7107_v47 = vpop.trf.xlu1 }
 0xd3b   :  { %7394 = vmatprep.mubr.f32.mxu1 %v16730_v46 }
 0xd3e   :  { %10708 = vmatmul.mubr.msk.f32.gmra.mxu1 %vm1086_vm1, %v7097_v22 }
 0xd3f   :  { %7400 = vmatprep.mubr.f32.mxu1 %v16730_v46 }
 0xd42   :  { %10709 = vmatmul.mubr.msk.f32.gmra.mxu1 %vm1086_vm1, %v7098_v63  ;;  %v7526_v63 = vmul.f32 %v7462_v6, %v11987_v3 }
 0xd43   :  { %7406 = vmatprep.mubr.f32.mxu1 %v16730_v46 }
 0xd46   :  { %10710 = vmatmul.mubr.msk.f32.gmra.mxu1 %vm1086_vm1, %v7099_v9 }
 0xd47   :  { %7412 = vmatprep.mubr.f32.mxu1 %v16730_v46 }
 0xd4a   :  { %10711 = vmatmul.mubr.msk.f32.gmra.mxu1 %vm1086_vm1, %v7100_v4  ;;  %v7464_v4 = vld [vmem:[#allocation4 + $0x18] sm:$0xff] }
 0xd4b   :  { %7418 = vmatprep.mubr.f32.mxu1 %v16730_v46 }
 0xd4e   :  { %10712 = vmatmul.mubr.msk.f32.gmra.mxu1 %vm1086_vm1, %v7101_v44 }
 0xd4f   :  { %7424 = vmatprep.mubr.f32.mxu1 %v16730_v46 }
 0xd52   :  { %10713 = vmatmul.mubr.msk.f32.gmra.mxu1 %vm1086_vm1, %v7102_v41  ;;  %v7527_v41 = vmul.f32 %v7463_v14, %v11987_v3 }
 0xd53   :  { %7430 = vmatprep.mubr.f32.mxu1 %v16730_v46 }
 0xd56   :  { %10714 = vmatmul.mubr.msk.f32.gmra.mxu1 %vm1086_vm1, %v7103_v62 }
 0xd57   :  { %7436 = vmatprep.mubr.f32.mxu1 %v16730_v46 }
 0xd5a   :  { %10715 = vmatmul.mubr.msk.f32.gmra.mxu1 %vm1086_vm1, %v7104_v45  ;;  %v7465_v45 = vld [vmem:[#allocation4 + $0x20] sm:$0xff] }
 0xd5b   :  { %7442 = vmatprep.mubr.f32.mxu1 %v16730_v46 }
 0xd5e   :  { %10716 = vmatmul.mubr.msk.f32.gmra.mxu1 %vm1086_vm1, %v7105_v11 }
 0xd5f   :  { %7448 = vmatprep.mubr.f32.mxu1 %v16730_v46 }
 0xd62   :  { %10717 = vmatmul.mubr.msk.f32.gmra.mxu1 %vm1086_vm1, %v7106_v27  ;;  %v7528_v27 = vmul.f32 %v7464_v4, %v11987_v3 }
 0xd63   :  { %7454 = vmatprep.mubr.f32.mxu1 %v16730_v46 }
 0xd66   :  { %10718 = vmatmul.mubr.msk.f32.gmra.mxu1 %vm1086_vm1, %v7107_v47 }
 0xdaa   :  { %v7270_v10 = vpop.f32.mrf.mxu1 }
 0xdab   :  { %v14493_v22 = vadd.f32 %v7525_v48, %v7270_v10  ;;  %v7529_v48 = vmul.f32 %v7465_v45, %v11987_v3 }
 0xdac   :  { %v7272_v9 = vpop.f32.mrf.mxu1 }
 0xdad   :  { %7653 = vst [vmem:[#allocation4] sm:$0xff] %v14493_v22  ;;  %v14497_v44 = vadd.f32 %v7526_v63, %v7272_v9  ;;  %v7467_v63 = vld [vmem:[#allocation4 + $0x30] sm:$0xff]  ;;  %v7530_v9 = vmul.f32 %v7466_v15, %v11987_v3 }
 0xdae   :  { %v7276_v62 = vpop.f32.mrf.mxu1  ;;  %v7531_v12 = vmul.f32 %v7467_v63, %v11987_v3 }
 0xdaf   :  { %7654 = vst [vmem:[#allocation4 + $0x8] sm:$0xff] %v14497_v44  ;;  %v14501_v11 = vadd.f32 %v7527_v41, %v7276_v62  ;;  %v7468_v62 = vld [vmem:[#allocation4 + $0x38] sm:$0xff] }
 0xdb0   :  { %v7278_v47 = vpop.f32.mrf.mxu1  ;;  %v7532_v20 = vmul.f32 %v7468_v62, %v11987_v3 }
 0xdb1   :  { %7655 = vst [vmem:[#allocation4 + $0x10] sm:$0xff] %v14501_v11  ;;  %v14505_v6 = vadd.f32 %v7528_v27, %v7278_v47  ;;  %v7469_v47 = vld [vmem:[#allocation4 + $0x40] sm:$0xff] }
 0xdb2   :  { %v7282_v10 = vpop.f32.mrf.mxu1  ;;  %v7533_v31 = vmul.f32 %v7469_v47, %v11987_v3 }
 0xdb3   :  { %7656 = vst [vmem:[#allocation4 + $0x18] sm:$0xff] %v14505_v6  ;;  %v14509_v14 = vadd.f32 %v7529_v48, %v7282_v10  ;;  %v7470_v10 = vld [vmem:[#allocation4 + $0x48] sm:$0xff] }
 0xdb4   :  { %v7284_v41 = vpop.f32.mrf.mxu1  ;;  %v7534_v32 = vmul.f32 %v7470_v10, %v11987_v3 }
 0xdb5   :  { %7657 = vst [vmem:[#allocation4 + $0x20] sm:$0xff] %v14509_v14  ;;  %v14513_v4 = vadd.f32 %v7530_v9, %v7284_v41  ;;  %v7471_v41 = vld [vmem:[#allocation4 + $0x50] sm:$0xff] }
 0xdb6   :  { %v7288_v27 = vpop.f32.mrf.mxu1  ;;  %v7535_v46 = vmul.f32 %v7471_v41, %v11987_v3 }
 0xdb7   :  { %7658 = vst [vmem:[#allocation4 + $0x28] sm:$0xff] %v14513_v4  ;;  %v14517_v45 = vadd.f32 %v7531_v12, %v7288_v27  ;;  %v7472_v27 = vld [vmem:[#allocation4 + $0x58] sm:$0xff] }
 0xdb8   :  { %v7290_v48 = vpop.f32.mrf.mxu1  ;;  %v7536_v5 = vmul.f32 %v7472_v27, %v11987_v3 }
 0xdb9   :  { %7659 = vst [vmem:[#allocation4 + $0x30] sm:$0xff] %v14517_v45  ;;  %v14521_v15 = vadd.f32 %v7532_v20, %v7290_v48  ;;  %v7473_v48 = vld [vmem:[#allocation4 + $0x60] sm:$0xff] }
 0xdba   :  { %v7294_v9 = vpop.f32.mrf.mxu1  ;;  %v7537_v28 = vmul.f32 %v7473_v48, %v11987_v3 }
 0xdbb   :  { %7660 = vst [vmem:[#allocation4 + $0x38] sm:$0xff] %v14521_v15  ;;  %v14525_v63 = vadd.f32 %v7533_v31, %v7294_v9  ;;  %v7474_v9 = vld [vmem:[#allocation4 + $0x68] sm:$0xff] }
 0xdbc   :  { %v7296_v12 = vpop.f32.mrf.mxu1  ;;  %v7538_v25 = vmul.f32 %v7474_v9, %v11987_v3 }
 0xdbd   :  { %7661 = vst [vmem:[#allocation4 + $0x40] sm:$0xff] %v14525_v63  ;;  %v14529_v62 = vadd.f32 %v7534_v32, %v7296_v12  ;;  %v7475_v12 = vld [vmem:[#allocation4 + $0x70] sm:$0xff] }
 0xdbe   :  { %v7300_v20 = vpop.f32.mrf.mxu1  ;;  %v7539_v16 = vmul.f32 %v7475_v12, %v11987_v3 }
 0xdbf   :  { %7662 = vst [vmem:[#allocation4 + $0x48] sm:$0xff] %v14529_v62  ;;  %v14533_v47 = vadd.f32 %v7535_v46, %v7300_v20  ;;  %v7476_v20 = vld [vmem:[#allocation4 + $0x78] sm:$0xff] }
 0xdc0   :  { %v7302_v31 = vpop.f32.mrf.mxu1  ;;  %v7540_v52 = vmul.f32 %v7476_v20, %v11987_v3 }
 0xdc1   :  { %7663 = vst [vmem:[#allocation4 + $0x50] sm:$0xff] %v14533_v47  ;;  %v14537_v10 = vadd.f32 %v7536_v5, %v7302_v31  ;;  %v7477_v31 = vld [vmem:[#allocation4 + $0x80] sm:$0xff] }
 0xdc2   :  { %v7306_v32 = vpop.f32.mrf.mxu1  ;;  %v7541_v51 = vmul.f32 %v7477_v31, %v11987_v3 }
 0xdc3   :  { %7664 = vst [vmem:[#allocation4 + $0x58] sm:$0xff] %v14537_v10  ;;  %v14541_v41 = vadd.f32 %v7537_v28, %v7306_v32  ;;  %v7478_v32 = vld [vmem:[#allocation4 + $0x88] sm:$0xff] }
 0xdc4   :  { %v7308_v46 = vpop.f32.mrf.mxu1  ;;  %v7542_v50 = vmul.f32 %v7478_v32, %v11987_v3 }
 0xdc5   :  { %7665 = vst [vmem:[#allocation4 + $0x60] sm:$0xff] %v14541_v41  ;;  %v14545_v27 = vadd.f32 %v7538_v25, %v7308_v46  ;;  %v7479_v46 = vld [vmem:[#allocation4 + $0x90] sm:$0xff] }
 0xdc6   :  { %v7312_v5 = vpop.f32.mrf.mxu1  ;;  %v7543_v26 = vmul.f32 %v7479_v46, %v11987_v3 }
 0xdc7   :  { %7666 = vst [vmem:[#allocation4 + $0x68] sm:$0xff] %v14545_v27  ;;  %v14549_v48 = vadd.f32 %v7539_v16, %v7312_v5  ;;  %v7480_v5 = vld [vmem:[#allocation4 + $0x98] sm:$0xff] }
 0xdc8   :  { %v7314_v28 = vpop.f32.mrf.mxu1  ;;  %v7544_v59 = vmul.f32 %v7480_v5, %v11987_v3 }
 0xdc9   :  { %7667 = vst [vmem:[#allocation4 + $0x70] sm:$0xff] %v14549_v48  ;;  %v14553_v9 = vadd.f32 %v7540_v52, %v7314_v28  ;;  %v7481_v28 = vld [vmem:[#allocation4 + $0xa0] sm:$0xff] }
 0xdca   :  { %v7318_v25 = vpop.f32.mrf.mxu1  ;;  %v7545_v30 = vmul.f32 %v7481_v28, %v11987_v3 }
 0xdcb   :  { %7668 = vst [vmem:[#allocation4 + $0x78] sm:$0xff] %v14553_v9  ;;  %v14557_v12 = vadd.f32 %v7541_v51, %v7318_v25  ;;  %v7482_v25 = vld [vmem:[#allocation4 + $0xa8] sm:$0xff] }
 0xdcc   :  { %v7320_v16 = vpop.f32.mrf.mxu1  ;;  %v7546_v0 = vmul.f32 %v7482_v25, %v11987_v3 }
 0xdcd   :  { %7669 = vst [vmem:[#allocation4 + $0x80] sm:$0xff] %v14557_v12  ;;  %v14561_v20 = vadd.f32 %v7542_v50, %v7320_v16  ;;  %v7483_v16 = vld [vmem:[#allocation4 + $0xb0] sm:$0xff] }
 0xdce   :  { %v7324_v52 = vpop.f32.mrf.mxu1  ;;  %v7547_v61 = vmul.f32 %v7483_v16, %v11987_v3 }
 0xdcf   :  { %7670 = vst [vmem:[#allocation4 + $0x88] sm:$0xff] %v14561_v20  ;;  %v14565_v31 = vadd.f32 %v7543_v26, %v7324_v52  ;;  %v7484_v52 = vld [vmem:[#allocation4 + $0xb8] sm:$0xff] }
 0xdd0   :  { %v7326_v51 = vpop.f32.mrf.mxu1  ;;  %v7548_v24 = vmul.f32 %v7484_v52, %v11987_v3 }
 0xdd1   :  { %7671 = vst [vmem:[#allocation4 + $0x90] sm:$0xff] %v14565_v31  ;;  %v14569_v32 = vadd.f32 %v7544_v59, %v7326_v51  ;;  %v7485_v51 = vld [vmem:[#allocation4 + $0xc0] sm:$0xff] }
 0xdd2   :  { %v7330_v50 = vpop.f32.mrf.mxu1  ;;  %v7549_v13 = vmul.f32 %v7485_v51, %v11987_v3 }
 0xdd3   :  { %7672 = vst [vmem:[#allocation4 + $0x98] sm:$0xff] %v14569_v32  ;;  %v14573_v46 = vadd.f32 %v7545_v30, %v7330_v50  ;;  %v7486_v50 = vld [vmem:[#allocation4 + $0xc8] sm:$0xff] }
 0xdd4   :  { %v7332_v26 = vpop.f32.mrf.mxu1  ;;  %v7550_v34 = vmul.f32 %v7486_v50, %v11987_v3 }
 0xdd5   :  { %7673 = vst [vmem:[#allocation4 + $0xa0] sm:$0xff] %v14573_v46  ;;  %v14577_v5 = vadd.f32 %v7546_v0, %v7332_v26  ;;  %v7487_v26 = vld [vmem:[#allocation4 + $0xd0] sm:$0xff] }
 0xdd6   :  { %v7336_v59 = vpop.f32.mrf.mxu1  ;;  %v7551_v35 = vmul.f32 %v7487_v26, %v11987_v3  ;;  %v7492_v26 = vld [vmem:[#allocation4 + $0xf8] sm:$0xff] }
 0xdd7   :  { %7674 = vst [vmem:[#allocation4 + $0xa8] sm:$0xff] %v14577_v5  ;;  %v14581_v28 = vadd.f32 %v7547_v61, %v7336_v59  ;;  %v7488_v59 = vld [vmem:[#allocation4 + $0xd8] sm:$0xff] }
 0xdd8   :  { %v7338_v30 = vpop.f32.mrf.mxu1  ;;  %v7552_v51 = vmul.f32 %v7488_v59, %v11987_v3  ;;  %v7493_v59 = vld [vmem:[#allocation4 + $0x100] sm:$0xff] }
 0xdd9   :  { %7675 = vst [vmem:[#allocation4 + $0xb0] sm:$0xff] %v14581_v28  ;;  %v14585_v25 = vadd.f32 %v7548_v24, %v7338_v30  ;;  %v7489_v24 = vld [vmem:[#allocation4 + $0xe0] sm:$0xff] }
 0xdda   :  { %v7342_v0 = vpop.f32.mrf.mxu1 }
 0xddb   :  { %7676 = vst [vmem:[#allocation4 + $0xb8] sm:$0xff] %v14585_v25  ;;  %v14589_v16 = vadd.f32 %v7549_v13, %v7342_v0  ;;  %v7553_v0 = vmul.f32 %v7489_v24, %v11987_v3  ;;  %v7494_v24 = vld [vmem:[#allocation4 + $0x108] sm:$0xff] }
 0xddc   :  { %v7344_v61 = vpop.f32.mrf.mxu1 }
 0xddd   :  { %7677 = vst [vmem:[#allocation4 + $0xc0] sm:$0xff] %v14589_v16  ;;  %v7614_v52 = vadd.f32 %v7550_v34, %v7344_v61  ;;  %v7554_v34 = vmul.f32 %v7490_v39, %v11987_v3 }
 0xdde   :  { %v7348_v42 = vpop.f32.mrf.mxu1 }
 0xddf   :  { %7678 = vst [vmem:[#allocation4 + $0xc8] sm:$0xff] %v7614_v52  ;;  %v7615_v30 = vadd.f32 %v7551_v35, %v7348_v42  ;;  %v7555_v42 = vmul.f32 %v7491_v29, %v11987_v3 }
 0xde0   :  { %v7350_v56 = vpop.f32.mrf.mxu1 }
 0xde1   :  { %7679 = vst [vmem:[#allocation4 + $0xd0] sm:$0xff] %v7615_v30  ;;  %v7616_v13 = vadd.f32 %v7552_v51, %v7350_v56  ;;  %v7556_v56 = vmul.f32 %v7492_v26, %v11987_v3  ;;  %v16735_v26 = vld [vmem:[#allocation125_spill] sm:$0xff] }
 0xde2   :  { %v7354_v50 = vpop.f32.mrf.mxu1 }
 0xde3   :  { %7680 = vst [vmem:[#allocation4 + $0xd8] sm:$0xff] %v7616_v13  ;;  %v7617_v18 = vadd.f32 %v7553_v0, %v7354_v50  ;;  %v7557_v0 = vmul.f32 %v7493_v59, %v11987_v3 }
 0xde4   :  { %v7356_v61 = vpop.f32.mrf.mxu1 }
 0xde5   :  { %7681 = vst [vmem:[#allocation4 + $0xe0] sm:$0xff] %v7617_v18  ;;  %v7618_v58 = vadd.f32 %v7554_v34, %v7356_v61 }
 0xde6   :  { %v7360_v35 = vpop.f32.mrf.mxu1 }
 0xde7   :  { %7682 = vst [vmem:[#allocation4 + $0xe8] sm:$0xff] %v7618_v58  ;;  %v7619_v19 = vadd.f32 %v7555_v42, %v7360_v35  ;;  %v7874_v34 = vmul.f32 %v7618_v58, %v16614_v37  ;;  %v7558_v42 = vmul.f32 %v7494_v24, %v11987_v3  ;;  %v7873_v35 = vmul.f32 %v7617_v18, %v16735_v26  ;;  %v7497_v24 = vld [vmem:[#allocation4 + $0x120] sm:$0xff] }
 0xde8   :  { %v7362_v51 = vpop.f32.mrf.mxu1  ;;  %v7559_v58 = vmul.f32 %v7495_v38, %v11987_v3  ;;  %v7870_v18 = vmul.f32 %v7614_v52, %v16376_v1  ;;  %v7869_v38 = vmul.f32 %v14589_v16, %v16499_v2  ;;  %v16737_v1 = vld [vmem:[#allocation60_spill] sm:$0xff]  ;;  %v16740_v2 = vld [vmem:[#allocation118_spill] sm:$0xff] }
 0xde9   :  { %7683 = vst [vmem:[#allocation4 + $0xf0] sm:$0xff] %v7619_v19  ;;  %v7620_v40 = vadd.f32 %v7556_v56, %v7362_v51  ;;  %v7875_v39 = vmul.f32 %v7619_v19, %v16613_v21  ;;  %v7872_v56 = vmul.f32 %v7616_v13, %v16495_v53 }
 0xdea   :  { %v7366_v50 = vpop.f32.mrf.mxu1 }
 0xdeb   :  { %7684 = vst [vmem:[#allocation4 + $0xf8] sm:$0xff] %v7620_v40  ;;  %v7876_v29 = vmul.f32 %v7620_v40, %v16615_v23  ;;  %v14603_v61 = vadd.f32 %v7557_v0, %v7366_v50  ;;  %v7871_v40 = vmul.f32 %v7615_v30, %v16617_v54  ;;  %v7939_v51 = vadd.f32 %v7875_v39, %v16498_v8  ;;  %v7498_v39 = vld [vmem:[#allocation4 + $0x128] sm:$0xff] }
 0xdec   :  { %v7368_v43 = vpop.f32.mrf.mxu1  ;;  %v7938_v50 = vadd.f32 %v7874_v34, %v16377_v49  ;;  %v7937_v30 = vadd.f32 %v7873_v35, %v16618_v33  ;;  %v7936_v34 = vadd.f32 %v7872_v56, %v16737_v1 }
 0xded   :  { %v7940_v59 = vadd.f32 %v7876_v29, %v16496_v60  ;;  %7685 = vst [vmem:[#allocation4 + $0x100] sm:$0xff] %v14603_v61  ;;  %v14610_v19 = vadd.f32 %v7558_v42, %v7368_v43  ;;  %v7560_v43 = vmul.f32 %v7496_v57, %v11987_v3  ;;  %v16736_v42 = vld [vmem:[#allocation120_spill] sm:$0xff]  ;;  %v7561_v57 = vmul.f32 %v7497_v24, %v11987_v3 }
 0xdee   :  { %v7372_v0 = vpop.f32.mrf.mxu1  ;;  %v7868_v52 = vmul.f32 %v14585_v25, %v16736_v42  ;;  %v7866_v25 = vmul.f32 %v14577_v5, %v16740_v2  ;;  %v16741_v42 = vld [vmem:[#allocation58_spill] sm:$0xff]  ;;  %v7562_v24 = vmul.f32 %v7498_v39, %v11987_v3  ;;  %v16745_v2 = vld [vmem:[#allocation56_spill] sm:$0xff] }
 0xdef   :  { %7686 = vst [vmem:[#allocation4 + $0x108] sm:$0xff] %v14610_v19  ;;  %v14618_v13 = vadd.f32 %v7559_v58, %v7372_v0  ;;  %8128 = vmatprep.subr.mxu0 %v7940_v59  ;;  %v16738_v59 = vld [vmem:[#allocation119_spill] sm:$0xff]  ;;  %v7934_v56 = vadd.f32 %v7870_v18, %v16741_v42 }
 0xdf0   :  { %v7374_v29 = vpop.f32.mrf.mxu1  ;;  %8129 = vmatpush1.msra.mxu0 %v7939_v51  ;;  %v7867_v16 = vmul.f32 %v14581_v28, %v16738_v59  ;;  %v16739_v0 = vld [vmem:[#allocation59_spill] sm:$0xff]  ;;  %v7499_v51 = vld [vmem:[#allocation4 + $0x130] sm:$0xff]  ;;  %v16744_v59 = vld [vmem:[#allocation116_spill] sm:$0xff]  ;;  %v7932_v18 = vadd.f32 %v7868_v52, %v16745_v2 }
 0xdf1   :  { %7687 = vst [vmem:[#allocation4 + $0x110] sm:$0xff] %v14618_v13  ;;  %v14628_v58 = vadd.f32 %v7560_v43, %v7374_v29  ;;  %8130 = vmatprep.subr.mxu0 %v7938_v50  ;;  %v7935_v35 = vadd.f32 %v7871_v40, %v16739_v0  ;;  %v16742_v50 = vld [vmem:[#allocation117_spill] sm:$0xff]  ;;  %v7864_v5 = vmul.f32 %v14569_v32, %v16744_v59  ;;  %v16749_v59 = vld [vmem:[#allocation54_spill] sm:$0xff]  ;;  %v16792_v2 = vld [vmem:[#allocation155_spill] sm:$0xff] }
 0xdf2   :  { %v7378_v33 = vpop.f32.mrf.mxu1  ;;  %8131 = vmatpush1.msra.mxu0 %v7937_v30  ;;  %v7865_v28 = vmul.f32 %v14573_v46, %v16742_v50  ;;  %v16743_v29 = vld [vmem:[#allocation57_spill] sm:$0xff]  ;;  %v7500_v30 = vld [vmem:[#allocation4 + $0x138] sm:$0xff]  ;;  %v7563_v39 = vmul.f32 %v7499_v51, %v11987_v3  ;;  %v7930_v52 = vadd.f32 %v7866_v25, %v16749_v59 }
 0xdf3   :  { %7688 = vst [vmem:[#allocation4 + $0x118] sm:$0xff] %v14628_v58  ;;  %v14638_v43 = vadd.f32 %v7561_v57, %v7378_v33  ;;  %8132 = vmatprep.subr.mxu0 %v7936_v34  ;;  %v7933_v40 = vadd.f32 %v7869_v38, %v16743_v29  ;;  %v16746_v34 = vld [vmem:[#allocation115_spill] sm:$0xff]  ;;  %v16748_v50 = vld [vmem:[#allocation114_spill] sm:$0xff]  ;;  %v7564_v51 = vmul.f32 %v7500_v30, %v11987_v3 }
 0xdf4   :  { %v7380_v0 = vpop.f32.mrf.mxu1  ;;  %8133 = vmatpush1.msra.mxu0 %v7935_v35  ;;  %v7863_v46 = vmul.f32 %v14565_v31, %v16746_v34  ;;  %v16747_v57 = vld [vmem:[#allocation55_spill] sm:$0xff]  ;;  %v7862_v32 = vmul.f32 %v14561_v20, %v16748_v50  ;;  %v16752_v34 = vld [vmem:[#allocation112_spill] sm:$0xff] }
 0xdf5   :  { %7689 = vst [vmem:[#allocation4 + $0x120] sm:$0xff] %v14638_v43  ;;  %v14648_v33 = vadd.f32 %v7562_v24, %v7380_v0  ;;  %8134 = vmatprep.subr.mxu0 %v7934_v56  ;;  %v7931_v38 = vadd.f32 %v7867_v16, %v16747_v57  ;;  %v7501_v35 = vld [vmem:[#allocation4 + $0x140] sm:$0xff]  ;;  %v16750_v56 = vld [vmem:[#allocation113_spill] sm:$0xff]  ;;  %v7860_v20 = vmul.f32 %v14553_v9, %v16752_v34  ;;  %v16753_v50 = vld [vmem:[#allocation52_spill] sm:$0xff] }
 0xdf6   :  { %v7384_v29 = vpop.f32.mrf.mxu1  ;;  %8135 = vmatpush1.msra.mxu0 %v7933_v40  ;;  %v7861_v31 = vmul.f32 %v14557_v12, %v16750_v56  ;;  %v16751_v24 = vld [vmem:[#allocation53_spill] sm:$0xff]  ;;  %v7502_v40 = vld [vmem:[#allocation4 + $0x148] sm:$0xff]  ;;  %v7928_v25 = vadd.f32 %v7864_v5, %v16753_v50  ;;  %v7565_v30 = vmul.f32 %v7501_v35, %v11987_v3  ;;  %v16756_v56 = vld [vmem:[#allocation110_spill] sm:$0xff] }
 0xdf7   :  { %7690 = vst [vmem:[#allocation4 + $0x128] sm:$0xff] %v14648_v33  ;;  %v14658_v0 = vadd.f32 %v7563_v39, %v7384_v29  ;;  %8136 = vmatprep.subr.mxu0 %v7932_v18  ;;  %v7929_v16 = vadd.f32 %v7865_v28, %v16751_v24  ;;  %v16754_v18 = vld [vmem:[#allocation111_spill] sm:$0xff]  ;;  %v7858_v9 = vmul.f32 %v14545_v27, %v16756_v56  ;;  %v16760_v50 = vld [vmem:[#allocation108_spill] sm:$0xff]  ;;  %v16789_v34 = vld [vmem:[#allocation158_spill] sm:$0xff] }
 0xdf8   :  { %v7386_v57 = vpop.f32.mrf.mxu1  ;;  %8137 = vmatpush1.msra.mxu0 %v7931_v38  ;;  %v7859_v12 = vmul.f32 %v14549_v48, %v16754_v18  ;;  %v16755_v39 = vld [vmem:[#allocation51_spill] sm:$0xff]  ;;  %v7503_v38 = vld [vmem:[#allocation4 + $0x150] sm:$0xff]  ;;  %v7856_v27 = vmul.f32 %v14537_v10, %v16760_v50 }
 0xdf9   :  { %7691 = vst [vmem:[#allocation4 + $0x130] sm:$0xff] %v14658_v0  ;;  %v14668_v29 = vadd.f32 %v7564_v51, %v7386_v57  ;;  %8138 = vmatprep.subr.mxu0 %v7930_v52  ;;  %v7927_v28 = vadd.f32 %v7863_v46, %v16755_v39  ;;  %v7566_v57 = vmul.f32 %v7502_v40, %v11987_v3  ;;  %v16757_v52 = vld [vmem:[#allocation50_spill] sm:$0xff]  ;;  %v16758_v51 = vld [vmem:[#allocation109_spill] sm:$0xff] }
 0xdfa   :  { %v7390_v24 = vpop.f32.mrf.mxu1  ;;  %8139 = vmatpush1.msra.mxu0 %v7929_v16  ;;  %v7926_v35 = vadd.f32 %v7862_v32, %v16757_v52  ;;  %v7857_v48 = vmul.f32 %v14541_v41, %v16758_v51  ;;  %v16759_v18 = vld [vmem:[#allocation49_spill] sm:$0xff]  ;;  %v7504_v16 = vld [vmem:[#allocation4 + $0x158] sm:$0xff]  ;;  %v7567_v40 = vmul.f32 %v7503_v38, %v11987_v3  ;;  %v16763_v51 = vld [vmem:[#allocation47_spill] sm:$0xff] }
 0xdfb   :  { %7692 = vst [vmem:[#allocation4 + $0x138] sm:$0xff] %v14668_v29  ;;  %v14677_v5 = vadd.f32 %v7565_v30, %v7390_v24  ;;  %8140 = vmatprep.subr.mxu0 %v7928_v25  ;;  %v7925_v46 = vadd.f32 %v7861_v31, %v16759_v18  ;;  %v16761_v25 = vld [vmem:[#allocation48_spill] sm:$0xff]  ;;  %v16762_v30 = vld [vmem:[#allocation107_spill] sm:$0xff]  ;;  %v7923_v31 = vadd.f32 %v7859_v12, %v16763_v51  ;;  %v16764_v52 = vld [vmem:[#allocation106_spill] sm:$0xff] }
 0xdfc   :  { %v7392_v39 = vpop.f32.mrf.mxu1  ;;  %8141 = vmatpush1.msra.mxu0 %v7927_v28  ;;  %v7924_v32 = vadd.f32 %v7860_v20, %v16761_v25  ;;  %v7855_v41 = vmul.f32 %v14533_v47, %v16762_v30  ;;  %v7505_v28 = vld [vmem:[#allocation4 + $0x160] sm:$0xff]  ;;  %v7854_v10 = vmul.f32 %v14529_v62, %v16764_v52  ;;  %v7568_v38 = vmul.f32 %v7504_v16, %v11987_v3  ;;  %v16767_v30 = vld [vmem:[#allocation45_spill] sm:$0xff]  ;;  %v16768_v25 = vld [vmem:[#allocation104_spill] sm:$0xff] }
 0xdfd   :  { %7693 = vst [vmem:[#allocation4 + $0x140] sm:$0xff] %v14677_v5  ;;  %v14687_v24 = vadd.f32 %v7566_v57, %v7392_v39  ;;  %8142 = vmatprep.subr.mxu0 %v7926_v35  ;;  %v16765_v57 = vld [vmem:[#allocation46_spill] sm:$0xff]  ;;  %v16766_v35 = vld [vmem:[#allocation105_spill] sm:$0xff]  ;;  %v7921_v12 = vadd.f32 %v7857_v48, %v16767_v30  ;;  %v7852_v62 = vmul.f32 %v14521_v15, %v16768_v25 }
 0xdfe   :  { %v7396_v18 = vpop.f32.mrf.mxu1  ;;  %8143 = vmatpush1.msra.mxu0 %v7925_v46  ;;  %v7922_v20 = vadd.f32 %v7858_v9, %v16765_v57  ;;  %v7853_v47 = vmul.f32 %v14525_v63, %v16766_v35  ;;  %v7506_v46 = vld [vmem:[#allocation4 + $0x168] sm:$0xff]  ;;  %v7569_v16 = vmul.f32 %v7505_v28, %v11987_v3  ;;  %v16771_v35 = vld [vmem:[#allocation43_spill] sm:$0xff]  ;;  %v16772_v57 = vld [vmem:[#allocation102_spill] sm:$0xff] }
 0xdff   :  { %7694 = vst [vmem:[#allocation4 + $0x148] sm:$0xff] %v14687_v24  ;;  %v14697_v39 = vadd.f32 %v7567_v40, %v7396_v18  ;;  %8144 = vmatprep.subr.mxu0 %v7924_v32  ;;  %v16769_v40 = vld [vmem:[#allocation44_spill] sm:$0xff]  ;;  %v16770_v32 = vld [vmem:[#allocation103_spill] sm:$0xff]  ;;  %v7919_v48 = vadd.f32 %v7855_v41, %v16771_v35  ;;  %v7850_v15 = vmul.f32 %v14513_v4, %v16772_v57 }
 0xe00   :  { %v7398_v51 = vpop.f32.mrf.mxu1  ;;  %8145 = vmatpush1.msra.mxu0 %v7923_v31  ;;  %v7920_v9 = vadd.f32 %v7856_v27, %v16769_v40  ;;  %v7851_v63 = vmul.f32 %v14517_v45, %v16770_v32  ;;  %v7507_v31 = vld [vmem:[#allocation4 + $0x170] sm:$0xff]  ;;  %v7570_v28 = vmul.f32 %v7506_v46, %v11987_v3  ;;  %v16776_v40 = vld [vmem:[#allocation100_spill] sm:$0xff] }
 0xe01   :  { %7695 = vst [vmem:[#allocation4 + $0x150] sm:$0xff] %v14697_v39  ;;  %v14707_v18 = vadd.f32 %v7568_v38, %v7398_v51  ;;  %8146 = vmatprep.subr.mxu0 %v7922_v20  ;;  %v16773_v38 = vld [vmem:[#allocation42_spill] sm:$0xff]  ;;  %v16774_v20 = vld [vmem:[#allocation101_spill] sm:$0xff]  ;;  %v7848_v4 = vmul.f32 %v14505_v6, %v16776_v40  ;;  %v7571_v46 = vmul.f32 %v7507_v31, %v11987_v3 }
 0xe02   :  { %v7402_v30 = vpop.f32.mrf.mxu1  ;;  %8147 = vmatpush1.msra.mxu0 %v7921_v12  ;;  %v7918_v27 = vadd.f32 %v7854_v10, %v16773_v38  ;;  %v7849_v45 = vmul.f32 %v14509_v14, %v16774_v20  ;;  %v16775_v32 = vld [vmem:[#allocation41_spill] sm:$0xff]  ;;  %v7508_v12 = vld [vmem:[#allocation4 + $0x178] sm:$0xff]  ;;  %v16779_v20 = vld [vmem:[#allocation39_spill] sm:$0xff] }
 0xe03   :  { %7696 = vst [vmem:[#allocation4 + $0x158] sm:$0xff] %v14707_v18  ;;  %v14717_v51 = vadd.f32 %v7569_v16, %v7402_v30  ;;  %8148 = vmatprep.subr.mxu0 %v7920_v9  ;;  %v7917_v41 = vadd.f32 %v7853_v47, %v16775_v32  ;;  %v16777_v16 = vld [vmem:[#allocation40_spill] sm:$0xff]  ;;  %v16778_v9 = vld [vmem:[#allocation99_spill] sm:$0xff]  ;;  %v7915_v47 = vadd.f32 %v7851_v63, %v16779_v20  ;;  %v16780_v38 = vld [vmem:[#allocation98_spill] sm:$0xff] }
 0xe04   :  { %v7404_v35 = vpop.f32.mrf.mxu1  ;;  %8149 = vmatpush1.msra.mxu0 %v7919_v48  ;;  %v7916_v10 = vadd.f32 %v7852_v62, %v16777_v16  ;;  %v7847_v14 = vmul.f32 %v14501_v11, %v16778_v9  ;;  %v7509_v48 = vld [vmem:[#allocation4 + $0x180] sm:$0xff]  ;;  %v7846_v6 = vmul.f32 %v14497_v44, %v16780_v38  ;;  %v7572_v31 = vmul.f32 %v7508_v12, %v11987_v3  ;;  %v16783_v9 = vld [vmem:[#allocation37_spill] sm:$0xff] }
 0xe05   :  { %7697 = vst [vmem:[#allocation4 + $0x160] sm:$0xff] %v14717_v51  ;;  %v14727_v30 = vadd.f32 %v7570_v28, %v7404_v35  ;;  %8150 = vmatprep.subr.mxu0 %v7918_v27  ;;  %v16781_v28 = vld [vmem:[#allocation38_spill] sm:$0xff]  ;;  %v16782_v27 = vld [vmem:[#allocation97_spill] sm:$0xff]  ;;  %v7913_v63 = vadd.f32 %v7849_v45, %v16783_v9  ;;  %v16785_v12 = vld [vmem:[#allocation35_spill] sm:$0xff] }
 0xe06   :  { %v7408_v32 = vpop.f32.mrf.mxu1  ;;  %8151 = vmatpush1.msra.mxu0 %v7917_v41  ;;  %v7914_v62 = vadd.f32 %v7850_v15, %v16781_v28  ;;  %v7845_v11 = vmul.f32 %v14493_v22, %v16782_v27  ;;  %v7510_v41 = vld [vmem:[#allocation4 + $0x188] sm:$0xff]  ;;  %v7911_v38 = vadd.f32 %v7847_v14, %v16785_v12  ;;  %v7511_v28 = vld [vmem:[#allocation4 + $0x190] sm:$0xff]  ;;  %v7520_v27 = vld [vmem:[#allocation4 + $0x1d8] sm:$0xff] }
 0xe07   :  { %7698 = vst [vmem:[#allocation4 + $0x168] sm:$0xff] %v14727_v30  ;;  %v14737_v35 = vadd.f32 %v7571_v46, %v7408_v32  ;;  %8152 = vmatprep.subr.mxu0 %v7916_v10  ;;  %v7573_v32 = vmul.f32 %v7509_v48, %v11987_v3  ;;  %v16784_v46 = vld [vmem:[#allocation36_spill] sm:$0xff]  ;;  %v7574_v45 = vmul.f32 %v7510_v41, %v11987_v3  ;;  %v7512_v48 = vld [vmem:[#allocation4 + $0x198] sm:$0xff] }
 0xe08   :  { %v7410_v20 = vpop.f32.mrf.mxu1  ;;  %8153 = vmatpush1.msra.mxu0 %v7915_v47  ;;  %v7912_v10 = vadd.f32 %v7848_v4, %v16784_v46  ;;  %v16786_v47 = vld [vmem:[#allocation34_spill] sm:$0xff]  ;;  %v7575_v14 = vmul.f32 %v7511_v28, %v11987_v3  ;;  %v7519_v46 = vld [vmem:[#allocation4 + $0x1d0] sm:$0xff] }
 0xe09   :  { %7699 = vst [vmem:[#allocation4 + $0x170] sm:$0xff] %v14737_v35  ;;  %v14745_v44 = vadd.f32 %v7572_v31, %v7410_v20  ;;  %8154 = vmatprep.subr.mxu0 %v7914_v62  ;;  %v7910_v20 = vadd.f32 %v7846_v6, %v16786_v47  ;;  %v16787_v31 = vld [vmem:[#allocation33_spill] sm:$0xff]  ;;  %v7576_v6 = vmul.f32 %v7512_v48, %v11987_v3 }
 0xe0a   :  { %v7414_v15 = vpop.f32.mrf.mxu1  ;;  %8155 = vmatpush1.msra.mxu0 %v7913_v63  ;;  %v7909_v62 = vadd.f32 %v7845_v11, %v16787_v31 }
 0xe0b   :  { %7700 = vst [vmem:[#allocation4 + $0x178] sm:$0xff] %v14745_v44  ;;  %v14751_v22 = vadd.f32 %v7573_v32, %v7414_v15  ;;  %8156 = vmatprep.subr.mxu0 %v7912_v10  ;;  %v7513_v32 = vld [vmem:[#allocation4 + $0x1a0] sm:$0xff]  ;;  %v7514_v10 = vld [vmem:[#allocation4 + $0x1a8] sm:$0xff] }
 0xe0c   :  { %v7416_v9 = vpop.f32.mrf.mxu1  ;;  %8157 = vmatpush1.msra.mxu0 %v7911_v38 }
 0xe0d   :  { %7701 = vst [vmem:[#allocation4 + $0x180] sm:$0xff] %v14751_v22  ;;  %v14757_v4 = vadd.f32 %v7574_v45, %v7416_v9  ;;  %8158 = vmatprep.subr.mxu0 %v7910_v20  ;;  %v7577_v9 = vmul.f32 %v7513_v32, %v11987_v3  ;;  %v7515_v45 = vld [vmem:[#allocation4 + $0x1b0] sm:$0xff]  ;;  %v7578_v20 = vmul.f32 %v7514_v10, %v11987_v3 }
 0xe0e   :  { %v7420_v63 = vpop.f32.mrf.mxu1  ;;  %8159 = vmatpush1.msra.mxu0 %v7909_v62 }
 0xe0f   :  { %7702 = vst [vmem:[#allocation4 + $0x188] sm:$0xff] %v14757_v4  ;;  %v14761_v41 = vadd.f32 %v7575_v14, %v7420_v63  ;;  %v7516_v14 = vld [vmem:[#allocation4 + $0x1b8] sm:$0xff]  ;;  %v7579_v63 = vmul.f32 %v7515_v45, %v11987_v3 }
 0xe10   :  { %v7422_v11 = vpop.f32.mrf.mxu1  ;;  %v7580_v31 = vmul.f32 %v7516_v14, %v11987_v3  ;;  %v7521_v14 = vld [vmem:[#allocation4 + $0x1e0] sm:$0xff] }
 0xe11   :  { %7703 = vst [vmem:[#allocation4 + $0x190] sm:$0xff] %v14761_v41  ;;  %v14765_v38 = vadd.f32 %v7576_v6, %v7422_v11  ;;  %v7517_v11 = vld [vmem:[#allocation4 + $0x1c0] sm:$0xff] }
 0xe12   :  { %v7426_v15 = vpop.f32.mrf.mxu1  ;;  %v7581_v10 = vmul.f32 %v7517_v11, %v11987_v3  ;;  %v7522_v11 = vld [vmem:[#allocation4 + $0x1e8] sm:$0xff] }
 0xe13   :  { %7704 = vst [vmem:[#allocation4 + $0x198] sm:$0xff] %v14765_v38  ;;  %v14769_v28 = vadd.f32 %v7577_v9, %v7426_v15  ;;  %v7518_v9 = vld [vmem:[#allocation4 + $0x1c8] sm:$0xff] }
 0xe14   :  { %v7428_v62 = vpop.f32.mrf.mxu1 }
 0xe15   :  { %7705 = vst [vmem:[#allocation4 + $0x1a0] sm:$0xff] %v14769_v28  ;;  %v14773_v48 = vadd.f32 %v7578_v20, %v7428_v62  ;;  %v7582_v62 = vmul.f32 %v7518_v9, %v11987_v3  ;;  %v7523_v9 = vld [vmem:[#allocation4 + $0x1f0] sm:$0xff] }
 0xe16   :  { %v7432_v6 = vpop.f32.mrf.mxu1 }
 0xe17   :  { %7706 = vst [vmem:[#allocation4 + $0x1a8] sm:$0xff] %v14773_v48  ;;  %v7643_v32 = vadd.f32 %v7579_v63, %v7432_v6  ;;  %v7583_v63 = vmul.f32 %v7519_v46, %v11987_v3  ;;  %v7524_v46 = vld [vmem:[#allocation4 + $0x1f8] sm:$0xff] }
 0xe18   :  { %v7434_v47 = vpop.f32.mrf.mxu1  ;;  %v7588_v50 = vmul.f32 %v7524_v46, %v11987_v3 }
 0xe19   :  { %7707 = vst [vmem:[#allocation4 + $0x1b0] sm:$0xff] %v7643_v32  ;;  %v7644_v15 = vadd.f32 %v7580_v31, %v7434_v47  ;;  %v7584_v47 = vmul.f32 %v7520_v27, %v11987_v3 }
 0xe1a   :  { %v7438_v12 = vpop.f32.mrf.mxu1 }
 0xe1b   :  { %7708 = vst [vmem:[#allocation4 + $0x1b8] sm:$0xff] %v7644_v15  ;;  %v7645_v20 = vadd.f32 %v7581_v10, %v7438_v12  ;;  %v7585_v12 = vmul.f32 %v7521_v14, %v11987_v3 }
 0xe1c   :  { %v7440_v45 = vpop.f32.mrf.mxu1 }
 0xe1d   :  { %7709 = vst [vmem:[#allocation4 + $0x1c0] sm:$0xff] %v7645_v20  ;;  %v7646_v16 = vadd.f32 %v7582_v62, %v7440_v45  ;;  %v7586_v62 = vmul.f32 %v7522_v11, %v11987_v3 }
 0xe1e   :  { %v7444_v6 = vpop.f32.mrf.mxu1 }
 0xe1f   :  { %7710 = vst [vmem:[#allocation4 + $0x1c8] sm:$0xff] %v7646_v16  ;;  %v7647_v40 = vadd.f32 %v7583_v63, %v7444_v6  ;;  %v7587_v63 = vmul.f32 %v7523_v9, %v11987_v3  ;;  %v16791_v9 = vld [vmem:[#allocation96_spill] sm:$0xff] }
 0xe20   :  { %v7446_v31 = vpop.f32.mrf.mxu1 }
 0xe21   :  { %7711 = vst [vmem:[#allocation4 + $0x1d0] sm:$0xff] %v7647_v40  ;;  %v7648_v57 = vadd.f32 %v7584_v47, %v7446_v31  ;;  %v16788_v31 = vld [vmem:[#allocation159_spill] sm:$0xff] }
 0xe22   :  { %v7450_v10 = vpop.f32.mrf.mxu1 }
 0xe23   :  { %7712 = vst [vmem:[#allocation4 + $0x1d8] sm:$0xff] %v7648_v57  ;;  %v7649_v25 = vadd.f32 %v7585_v12, %v7450_v10  ;;  %v16790_v10 = vld [vmem:[#allocation157_spill] sm:$0xff] }
 0xe24   :  { %v7452_v45 = vpop.f32.mrf.mxu1 }
 0xe25   :  { %7713 = vst [vmem:[#allocation4 + $0x1e0] sm:$0xff] %v7649_v25  ;;  %v7650_v52 = vadd.f32 %v7586_v62, %v7452_v45  ;;  %v7905_v59 = vmul.f32 %v7649_v25, %v16790_v10  ;;  %v7904_v62 = vmul.f32 %v7648_v57, %v16669_v55  ;;  %v16797_v10 = vld [vmem:[#allocation92_spill] sm:$0xff] }
 0xe26   :  { %v7456_v6 = vpop.f32.mrf.mxu1 }
 0xe27   :  { %7714 = vst [vmem:[#allocation4 + $0x1e8] sm:$0xff] %v7650_v52  ;;  %v7651_v27 = vadd.f32 %v7587_v63, %v7456_v6  ;;  %v7906_v12 = vmul.f32 %v7650_v52, %v16789_v34  ;;  %v7903_v63 = vmul.f32 %v7647_v40, %v16792_v2  ;;  %v7902_v6 = vmul.f32 %v7646_v16, %v16673_v17  ;;  %v16795_v34 = vld [vmem:[#allocation93_spill] sm:$0xff]  ;;  %v16799_v40 = vld [vmem:[#allocation91_spill] sm:$0xff] }
 0xe28   :  { %v7458_v47 = vpop.f32.mrf.mxu1  ;;  %v7968_v57 = vadd.f32 %v7904_v62, %v16797_v10 }
 0xe29   :  { %7715 = vst [vmem:[#allocation4 + $0x1f0] sm:$0xff] %v7651_v27  ;;  %v7652_v14 = vadd.f32 %v7588_v50, %v7458_v47  ;;  %v7907_v56 = vmul.f32 %v7651_v27, %v16788_v31  ;;  %v16793_v50 = vld [vmem:[#allocation94_spill] sm:$0xff]  ;;  %v16794_v27 = vld [vmem:[#allocation153_spill] sm:$0xff]  ;;  %v7969_v31 = vadd.f32 %v7905_v59, %v16795_v34  ;;  %v7967_v2 = vadd.f32 %v7903_v63, %v16799_v40  ;;  %v16806_v63 = vld [vmem:[#allocation147_spill] sm:$0xff] }
 0xe2a   :  { %v7970_v47 = vadd.f32 %v7906_v12, %v16793_v50  ;;  %v7901_v52 = vmul.f32 %v7645_v20, %v16794_v27  ;;  %v16801_v12 = vld [vmem:[#allocation90_spill] sm:$0xff]  ;;  %v16802_v20 = vld [vmem:[#allocation149_spill] sm:$0xff]  ;;  %v16807_v40 = vld [vmem:[#allocation87_spill] sm:$0xff] }
 0xe2b   :  { %7716 = vst [vmem:[#allocation4 + $0x1f8] sm:$0xff] %v7652_v14  ;;  %v7908_v11 = vmul.f32 %v7652_v14, %v16423_v36  ;;  %v7971_v46 = vadd.f32 %v7907_v56, %v16672_v7  ;;  %v16796_v14 = vld [vmem:[#allocation152_spill] sm:$0xff]  ;;  %v16800_v56 = vld [vmem:[#allocation150_spill] sm:$0xff]  ;;  %v7897_v59 = vmul.f32 %v14769_v28, %v16802_v20 }
 0xe2c   :  { %v7900_v25 = vmul.f32 %v7644_v15, %v16796_v14  ;;  %v7898_v16 = vmul.f32 %v14773_v48, %v16800_v56  ;;  %v16804_v15 = vld [vmem:[#allocation148_spill] sm:$0xff]  ;;  %v8699_v14 = vld [vmem:[#allocation4 + $0x110] sm:$0xff]  ;;  %v8700_v27 = vld [vmem:[#allocation4 + $0x118] sm:$0xff] }
 0xe2d   :  { %v7972_v45 = vadd.f32 %v7908_v11, %v16791_v9  ;;  %v16798_v11 = vld [vmem:[#allocation151_spill] sm:$0xff]  ;;  %v7896_v62 = vmul.f32 %v14765_v38, %v16804_v15  ;;  %v8695_v15 = vld [vmem:[#allocation4 + $0xf0] sm:$0xff] }
 0xe2e   :  { %v7899_v9 = vmul.f32 %v7643_v32, %v16798_v11 }
 0xe2f   :  { %8160 = vmatprep.subr.mxu0 %v7972_v45  ;;  %v7966_v45 = vadd.f32 %v7902_v6, %v16801_v12  ;;  %v16808_v6 = vld [vmem:[#allocation146_spill] sm:$0xff] }
 0xe30   :  { %8161 = vmatpush2.msra.mxu0 %v7971_v46  ;;  %v16803_v46 = vld [vmem:[#allocation89_spill] sm:$0xff]  ;;  %v7963_v48 = vadd.f32 %v7899_v9, %v16807_v40  ;;  %v16809_v12 = vld [vmem:[#allocation86_spill] sm:$0xff]  ;;  %v16814_v9 = vld [vmem:[#allocation143_spill] sm:$0xff] }
 0xe31   :  { %8162 = vmatprep.subr.mxu0 %v7970_v47  ;;  %v7965_v34 = vadd.f32 %v7901_v52, %v16803_v46  ;;  %v16805_v47 = vld [vmem:[#allocation88_spill] sm:$0xff]  ;;  %v7962_v28 = vadd.f32 %v7898_v16, %v16809_v12  ;;  %v16810_v52 = vld [vmem:[#allocation145_spill] sm:$0xff]  ;;  %v16815_v40 = vld [vmem:[#allocation83_spill] sm:$0xff] }
 0xe32   :  { %8163 = vmatpush2.msra.mxu0 %v7969_v31  ;;  %v7964_v32 = vadd.f32 %v7900_v25, %v16805_v47  ;;  %v7895_v31 = vmul.f32 %v14761_v41, %v16806_v63  ;;  %v16811_v46 = vld [vmem:[#allocation85_spill] sm:$0xff]  ;;  %v16812_v25 = vld [vmem:[#allocation144_spill] sm:$0xff]  ;;  %v16816_v16 = vld [vmem:[#allocation142_spill] sm:$0xff] }
 0xe33   :  { %8164 = vmatprep.subr.mxu0 %v7968_v57  ;;  %v7894_v57 = vmul.f32 %v14757_v4, %v16808_v6  ;;  %v7961_v38 = vadd.f32 %v7897_v59, %v16811_v46  ;;  %v16813_v47 = vld [vmem:[#allocation84_spill] sm:$0xff]  ;;  %v16817_v12 = vld [vmem:[#allocation82_spill] sm:$0xff]  ;;  %v16818_v59 = vld [vmem:[#allocation141_spill] sm:$0xff] }
 0xe34   :  { %8165 = vmatpush2.msra.mxu0 %v7967_v2  ;;  %v7893_v2 = vmul.f32 %v14751_v22, %v16810_v52  ;;  %v7960_v41 = vadd.f32 %v7896_v62, %v16813_v47  ;;  %v7959_v4 = vadd.f32 %v7895_v31, %v16815_v40  ;;  %v16819_v46 = vld [vmem:[#allocation81_spill] sm:$0xff]  ;;  %v16820_v62 = vld [vmem:[#allocation140_spill] sm:$0xff]  ;;  %v16822_v31 = vld [vmem:[#allocation139_spill] sm:$0xff] }
 0xe35   :  { %8166 = vmatprep.subr.mxu0 %v7966_v45  ;;  %v7892_v45 = vmul.f32 %v14745_v44, %v16812_v25  ;;  %v7958_v22 = vadd.f32 %v7894_v57, %v16817_v12  ;;  %v16821_v47 = vld [vmem:[#allocation80_spill] sm:$0xff]  ;;  %v16823_v40 = vld [vmem:[#allocation79_spill] sm:$0xff]  ;;  %v16824_v57 = vld [vmem:[#allocation138_spill] sm:$0xff] }
 0xe36   :  { %8167 = vmatpush2.msra.mxu0 %v7965_v34  ;;  %v7891_v34 = vmul.f32 %v14737_v35, %v16814_v9  ;;  %v7957_v44 = vadd.f32 %v7893_v2, %v16819_v46  ;;  %v16825_v12 = vld [vmem:[#allocation78_spill] sm:$0xff]  ;;  %v16826_v2 = vld [vmem:[#allocation137_spill] sm:$0xff]  ;;  %v8694_v63 = vld [vmem:[#allocation4 + $0xe8] sm:$0xff] }
 0xe37   :  { %8168 = vmatprep.subr.mxu0 %v7964_v32  ;;  %v7890_v32 = vmul.f32 %v14727_v30, %v16816_v16  ;;  %v7956_v35 = vadd.f32 %v7892_v45, %v16821_v47  ;;  %v16827_v46 = vld [vmem:[#allocation77_spill] sm:$0xff]  ;;  %v16828_v45 = vld [vmem:[#allocation136_spill] sm:$0xff] }
 0xe38   :  { %8169 = vmatpush2.msra.mxu0 %v7963_v48  ;;  %v7889_v48 = vmul.f32 %v14717_v51, %v16818_v59  ;;  %v7955_v30 = vadd.f32 %v7891_v34, %v16823_v40  ;;  %v16829_v47 = vld [vmem:[#allocation76_spill] sm:$0xff]  ;;  %v16830_v34 = vld [vmem:[#allocation135_spill] sm:$0xff] }
 0xe39   :  { %8170 = vmatprep.subr.mxu0 %v7962_v28  ;;  %v7888_v28 = vmul.f32 %v14707_v18, %v16820_v62  ;;  %v7954_v51 = vadd.f32 %v7890_v32, %v16825_v12  ;;  %v16831_v40 = vld [vmem:[#allocation75_spill] sm:$0xff]  ;;  %v16832_v32 = vld [vmem:[#allocation134_spill] sm:$0xff] }
 0xe3a   :  { %8171 = vmatpush2.msra.mxu0 %v7961_v38  ;;  %v7887_v38 = vmul.f32 %v14697_v39, %v16822_v31  ;;  %v7953_v18 = vadd.f32 %v7889_v48, %v16827_v46  ;;  %v16833_v12 = vld [vmem:[#allocation74_spill] sm:$0xff]  ;;  %v16834_v48 = vld [vmem:[#allocation133_spill] sm:$0xff] }
 0xe3b   :  { %8172 = vmatprep.subr.mxu0 %v7960_v41  ;;  %v7886_v41 = vmul.f32 %v14687_v24, %v16824_v57  ;;  %v7952_v39 = vadd.f32 %v7888_v28, %v16829_v47  ;;  %v16835_v46 = vld [vmem:[#allocation73_spill] sm:$0xff]  ;;  %v16836_v28 = vld [vmem:[#allocation132_spill] sm:$0xff] }
 0xe3c   :  { %8173 = vmatpush2.msra.mxu0 %v7959_v4  ;;  %v7885_v4 = vmul.f32 %v14677_v5, %v16826_v2  ;;  %v7951_v24 = vadd.f32 %v7887_v38, %v16831_v40  ;;  %v16837_v47 = vld [vmem:[#allocation72_spill] sm:$0xff]  ;;  %v16838_v38 = vld [vmem:[#allocation131_spill] sm:$0xff] }
 0xe3d   :  { %8174 = vmatprep.subr.mxu0 %v7958_v22  ;;  %v7884_v22 = vmul.f32 %v14668_v29, %v16828_v45  ;;  %v7950_v5 = vadd.f32 %v7886_v41, %v16833_v12  ;;  %v16839_v40 = vld [vmem:[#allocation71_spill] sm:$0xff]  ;;  %v16840_v41 = vld [vmem:[#allocation130_spill] sm:$0xff] }
 0xe3e   :  { %8175 = vmatpush2.msra.mxu0 %v7957_v44  ;;  %v7883_v44 = vmul.f32 %v14658_v0, %v16830_v34  ;;  %v7949_v29 = vadd.f32 %v7885_v4, %v16835_v46  ;;  %v16841_v12 = vld [vmem:[#allocation70_spill] sm:$0xff]  ;;  %v16842_v4 = vld [vmem:[#allocation129_spill] sm:$0xff] }
 0xe3f   :  { %8176 = vmatprep.subr.mxu0 %v7956_v35  ;;  %v7882_v35 = vmul.f32 %v14648_v33, %v16832_v32  ;;  %v7948_v0 = vadd.f32 %v7884_v22, %v16837_v47  ;;  %v16843_v46 = vld [vmem:[#allocation69_spill] sm:$0xff]  ;;  %v16844_v22 = vld [vmem:[#allocation68_spill] sm:$0xff]  ;;  %v16845_v47 = vld [vmem:[#allocation67_spill] sm:$0xff] }
 0xe40   :  { %8177 = vmatpush2.msra.mxu0 %v7955_v30  ;;  %v7881_v30 = vmul.f32 %v14638_v43, %v16834_v48  ;;  %v7947_v33 = vadd.f32 %v7883_v44, %v16839_v40  ;;  %v16846_v44 = vld [vmem:[#allocation66_spill] sm:$0xff]  ;;  %v16847_v40 = vld [vmem:[#allocation65_spill] sm:$0xff] }
 0xe41   :  { %8178 = vmatprep.subr.mxu0 %v7954_v51  ;;  %v7880_v51 = vmul.f32 %v14628_v58, %v16836_v28  ;;  %v7946_v43 = vadd.f32 %v7882_v35, %v16841_v12  ;;  %v10844_v35 = vld [vmem:[#allocation2] ss:$8 sm:$0x3] }
 0xe42   :  { %8179 = vmatpush2.msra.mxu0 %v7953_v18  ;;  %v7879_v18 = vmul.f32 %v14618_v13, %v16838_v38  ;;  %v7945_v58 = vadd.f32 %v7881_v30, %v16843_v46  ;;  %v8105_v30 = vld [vmem:[#allocation13 + $0x6] ss:$8 sm:$0x3] }
 0xe43   :  { %8180 = vmatprep.subr.mxu0 %v7952_v39  ;;  %v7878_v39 = vmul.f32 %v14610_v19, %v16840_v41 }
 0xe44   :  { %8181 = vmatpush2.msra.mxu0 %v7951_v24  ;;  %v7877_v24 = vmul.f32 %v14603_v61, %v16842_v4  ;;  %v7943_v13 = vadd.f32 %v7879_v18, %v16845_v47  ;;  %v16849_v61 = vmov 0.0  }
 0xe45   :  { %8182 = vmatprep.subr.mxu0 %v7950_v5  ;;  %v7944_v5 = vadd.f32 %v7880_v51, %v16844_v22  ;;  %v16852_v22 = vld [vmem:[#allocation164_spill] sm:$0xff] }
 0xe46   :  { %8183 = vmatpush2.msra.mxu0 %v7949_v29  ;;  %v7942_v29 = vadd.f32 %v7878_v39, %v16846_v44  ;;  %v7941_v19 = vadd.f32 %v7877_v24, %v16847_v40  ;;  %v8264_v24 = vpop.trf.xlu0 }
 0xe47   :  { %8184 = vmatprep.subr.mxu0 %v7948_v0  ;;  %v16848_v0 = vld [vmem:[#allocation162_spill] sm:$0xff] }
 0xe48   :  { %8185 = vmatpush2.msra.mxu0 %v7947_v33  ;;  %v8110_v12 = vrot.slane %v10844_v35, %v16848_v0  ;;  %v8121_v51 = vrot.slane %v8105_v30, %v16848_v0  ;;  %v16850_v33 = vld [vmem:[#allocation161_spill] sm:$0xff] }
 0xe49   :  { %8186 = vmatprep.subr.mxu0 %v7946_v43  ;;  %v8125_v18 = vrot.slane %v8105_v30, %v16850_v33 }
 0xe4a   :  { %8187 = vmatpush2.msra.mxu0 %v7945_v58 }
 0xe4b   :  { %8188 = vmatprep.subr.mxu0 %v7944_v5 }
 0xe4c   :  { %8189 = vmatpush2.msra.mxu0 %v7943_v13  ;;  %v8265_v13 = vpop.trf.xlu0 }
 0xe4d   :  { %8190 = vmatprep.subr.mxu0 %v7942_v29 }
 0xe4e   :  { %8191 = vmatpush2.msra.mxu0 %v7941_v19  ;;  %v16851_v19 = vld [vmem:[#allocation163_spill] sm:$0xff] }
 0xe4f   :  { %8193 = vmatmul.mubr.f32.vlgmr.msra.gmra.mxu0 %v8110_v12 }
 0xe50   :  { %8472 = vmatprep.mubr.f32.mxu0 %v16849_v61  ;;  %v8266_v35 = vpop.trf.xlu0 }
 0xe54   :  { %v8267_v30 = vpop.trf.xlu0 }
 0xf0f   :  { %v8194_v43 = vpop.f32.mrf.mxu0 }
 0xf10   :  { %v8195_v58 = vadd.f32 %v8194_v43, %v8121_v51 }
 0xf11   :  { %v8196_v39 = vpop.f32.mrf.mxu0 }
 0xf12   :  { %10820 = vtanh.f32 %v8195_v58  ;;  %v8197_v5 = vadd.f32 %v8196_v39, %v8125_v18 }
 0xf14   :  { %10822 = vtanh.f32 %v8197_v5 }
 0xf1f   :  { %v10821_v40 = vpop.eup %10820 }
 0xf20   :  { %v8222_v12 = vmul.f32 %v10821_v40, %v16851_v19 }
 0xf21   :  { %v10823_v29 = vpop.eup %10822 }
 0xf22   :  { %v8203_v44 = vcombine.low %v10821_v40, %v10823_v29  ;;  %v8223_v47 = vmul.f32 %v10823_v29, %v16851_v19  ;;  %v8268_v40 = vpop.trf.xlu0 }
 0xf24   :  { %v8210_v0 = vrot.slane %v8203_v44, %v16852_v22  ;;  %v8226_v46 = vcombine.low %v8222_v12, %v8223_v47 }
 0xf26   :  { %v8217_v51 = vrot.slane %v8210_v0, %v16852_v22  ;;  %v8233_v43 = vrot.slane %v8226_v46, %v16852_v22  ;;  %v8269_v29 = vpop.trf.xlu0 }
 0xf28   :  { %8220 = vst.msk [vmem:[#allocation16 + $0x6] ss:$8 sm:$0x3] %vm11909_vm0, %v8217_v51  ;;  %v8240_v58 = vrot.slane %v8233_v43, %v16852_v22  ;;  %9241 = vst.msk [vmem:[#allocation2] ss:$8 sm:$0x3] %vm11909_vm0, %v8217_v51 }
 0xf2a   :  { %8242 = vst.msk [vmem:[#allocation3] ss:$8 sm:$0x3] %vm11909_vm0, %v8240_v58  ;;  %v8270_v12 = vpop.trf.xlu0 }
 0xf2e   :  { %v8271_v51 = vpop.trf.xlu0 }
 0xf2f   :  { %v9449_v39 = vld [vmem:[#allocation2 + $0x8] sm:$0xff]  ;;  %v9448_v44 = vld [vmem:[#allocation2] sm:$0xff] }
 0xf30   :  { %v9243_v47 = vld [vmem:[#allocation2] ss:$8 sm:$0x3]  ;;  %9484 = vxpose.xlu1.b32.start.end [1/1] (short) %v9449_v39, 128  ;;  %9452 = vxpose.xlu0.b32.start.end [1/1] (short) %v9448_v44, 128 }
 0xf31   :  { %v9318_v0 = vrot.slane %v9243_v47, %v16850_v33  ;;  %v8247_v46 = vld [vmem:[#allocation3 + $0x8] sm:$0xff]  ;;  %v8246_v5 = vld [vmem:[#allocation3] sm:$0xff] }
 0xf32   :  { %8438 = vmatprep.subr.mxu0 %v8247_v46  ;;  %v8272_v43 = vpop.trf.xlu0 }
 0xf33   :  { %9396 = vmatprep.mubr.f32.mxu1 %v9318_v0  ;;  %8439 = vmatpush1.msra.mxu0 %v8246_v5 }
 0xf34   :  { %10719 = vmatmul.mubr.msk.f32.vlgmr.msra.gmra.mxu0 %vm1086_vm1, %v8264_v24 }
 0xf35   :  { %8478 = vmatprep.mubr.f32.mxu0 %v16849_v61 }
 0xf36   :  { %v8273_v24 = vpop.trf.xlu0 }
 0xf38   :  { %10720 = vmatmul.mubr.msk.f32.gmra.mxu0 %vm1086_vm1, %v8265_v13 }
 0xf39   :  { %8484 = vmatprep.mubr.f32.mxu0 %v16849_v61 }
 0xf3a   :  { %v8274_v13 = vpop.trf.xlu0 }
 0xf3c   :  { %10721 = vmatmul.mubr.msk.f32.gmra.mxu0 %vm1086_vm1, %v8266_v35  ;;  %v8296_v35 = vpop.trf.xlu1 }
 0xf3d   :  { %8490 = vmatprep.mubr.f32.mxu0 %v16849_v61 }
 0xf40   :  { %10722 = vmatmul.mubr.msk.f32.gmra.mxu0 %vm1086_vm1, %v8267_v30  ;;  %v8275_v30 = vpop.trf.xlu0  ;;  %v8297_v58 = vpop.trf.xlu1 }
 0xf41   :  { %8496 = vmatprep.mubr.f32.mxu0 %v16849_v61 }
 0xf44   :  { %10723 = vmatmul.mubr.msk.f32.gmra.mxu0 %vm1086_vm1, %v8268_v40  ;;  %v8276_v40 = vpop.trf.xlu0  ;;  %v8298_v39 = vpop.trf.xlu1 }
 0xf45   :  { %8502 = vmatprep.mubr.f32.mxu0 %v16849_v61 }
 0xf48   :  { %10724 = vmatmul.mubr.msk.f32.gmra.mxu0 %vm1086_vm1, %v8269_v29  ;;  %v8277_v44 = vpop.trf.xlu0  ;;  %v8299_v47 = vpop.trf.xlu1 }
 0xf49   :  { %8508 = vmatprep.mubr.f32.mxu0 %v16849_v61 }
 0xf4c   :  { %10725 = vmatmul.mubr.msk.f32.gmra.mxu0 %vm1086_vm1, %v8270_v12  ;;  %v8278_v0 = vpop.trf.xlu0  ;;  %v8300_v46 = vpop.trf.xlu1 }
 0xf4d   :  { %8514 = vmatprep.mubr.f32.mxu0 %v16849_v61 }
 0xf50   :  { %10726 = vmatmul.mubr.msk.f32.gmra.mxu0 %vm1086_vm1, %v8271_v51  ;;  %v8279_v5 = vpop.trf.xlu0  ;;  %v8301_v29 = vpop.trf.xlu1 }
 0xf51   :  { %8520 = vmatprep.mubr.f32.mxu0 %v16849_v61 }
 0xf54   :  { %10727 = vmatmul.mubr.msk.f32.gmra.mxu0 %vm1086_vm1, %v8272_v43  ;;  %v8302_v12 = vpop.trf.xlu1 }
 0xf55   :  { %8526 = vmatprep.mubr.f32.mxu0 %v16849_v61 }
 0xf58   :  { %10728 = vmatmul.mubr.msk.f32.gmra.mxu0 %vm1086_vm1, %v8273_v24  ;;  %v8303_v51 = vpop.trf.xlu1 }
 0xf59   :  { %8532 = vmatprep.mubr.f32.mxu0 %v16849_v61 }
 0xf5c   :  { %10729 = vmatmul.mubr.msk.f32.gmra.mxu0 %vm1086_vm1, %v8274_v13  ;;  %v8304_v43 = vpop.trf.xlu1 }
 0xf5d   :  { %8538 = vmatprep.mubr.f32.mxu0 %v16849_v61 }
 0xf60   :  { %10730 = vmatmul.mubr.msk.f32.gmra.mxu0 %vm1086_vm1, %v8275_v30  ;;  %v8305_v24 = vpop.trf.xlu1 }
 0xf61   :  { %8544 = vmatprep.mubr.f32.mxu0 %v16849_v61 }
 0xf64   :  { %10731 = vmatmul.mubr.msk.f32.gmra.mxu0 %vm1086_vm1, %v8276_v40  ;;  %v8306_v13 = vpop.trf.xlu1 }
 0xf65   :  { %8550 = vmatprep.mubr.f32.mxu0 %v16849_v61 }
 0xf68   :  { %10732 = vmatmul.mubr.msk.f32.gmra.mxu0 %vm1086_vm1, %v8277_v44  ;;  %v8665_v44 = vld [vmem:[#allocation4] sm:$0xff] }
 0xf69   :  { %8556 = vmatprep.mubr.f32.mxu0 %v16849_v61 }
 0xf6c   :  { %10733 = vmatmul.mubr.msk.f32.gmra.mxu0 %vm1086_vm1, %v8278_v0  ;;  %v8729_v0 = vmul.f32 %v8665_v44, %v11987_v3  ;;  %v8670_v44 = vld [vmem:[#allocation4 + $0x28] sm:$0xff] }
 0xf6d   :  { %8562 = vmatprep.mubr.f32.mxu0 %v16849_v61 }
 0xf70   :  { %10734 = vmatmul.mubr.msk.f32.gmra.mxu0 %vm1086_vm1, %v8279_v5  ;;  %v8667_v5 = vld [vmem:[#allocation4 + $0x10] sm:$0xff] }
 0xf71   :  { %8568 = vmatprep.mubr.f32.mxu0 %v16849_v61 }
 0xf74   :  { %10735 = vmatmul.mubr.msk.f32.gmra.mxu0 %vm1086_vm1, %v8296_v35  ;;  %v8307_v35 = vpop.trf.xlu1 }
 0xf75   :  { %8574 = vmatprep.mubr.f32.mxu0 %v16849_v61 }
 0xf78   :  { %10736 = vmatmul.mubr.msk.f32.gmra.mxu0 %vm1086_vm1, %v8297_v58  ;;  %v8308_v30 = vpop.trf.xlu1 }
 0xf79   :  { %8580 = vmatprep.mubr.f32.mxu0 %v16849_v61 }
 0xf7c   :  { %10737 = vmatmul.mubr.msk.f32.gmra.mxu0 %vm1086_vm1, %v8298_v39  ;;  %v8309_v58 = vpop.trf.xlu1 }
 0xf7d   :  { %8586 = vmatprep.mubr.f32.mxu0 %v16849_v61 }
 0xf80   :  { %10738 = vmatmul.mubr.msk.f32.gmra.mxu0 %vm1086_vm1, %v8299_v47  ;;  %v8310_v40 = vpop.trf.xlu1  ;;  %v8666_v47 = vld [vmem:[#allocation4 + $0x8] sm:$0xff] }
 0xf81   :  { %8592 = vmatprep.mubr.f32.mxu0 %v16849_v61 }
 0xf84   :  { %10739 = vmatmul.mubr.msk.f32.gmra.mxu0 %vm1086_vm1, %v8300_v46  ;;  %v8311_v39 = vpop.trf.xlu1 }
 0xf85   :  { %8598 = vmatprep.mubr.f32.mxu0 %v16849_v61 }
 0xf88   :  { %10740 = vmatmul.mubr.msk.f32.gmra.mxu0 %vm1086_vm1, %v8301_v29 }
 0xf89   :  { %8604 = vmatprep.mubr.f32.mxu0 %v16849_v61 }
 0xf8c   :  { %10741 = vmatmul.mubr.msk.f32.gmra.mxu0 %vm1086_vm1, %v8302_v12  ;;  %v8730_v12 = vmul.f32 %v8666_v47, %v11987_v3 }
 0xf8d   :  { %8610 = vmatprep.mubr.f32.mxu0 %v16849_v61 }
 0xf90   :  { %10742 = vmatmul.mubr.msk.f32.gmra.mxu0 %vm1086_vm1, %v8303_v51 }
 0xf91   :  { %8616 = vmatprep.mubr.f32.mxu0 %v16849_v61 }
 0xf94   :  { %10743 = vmatmul.mubr.msk.f32.gmra.mxu0 %vm1086_vm1, %v8304_v43  ;;  %v8668_v43 = vld [vmem:[#allocation4 + $0x18] sm:$0xff] }
 0xf95   :  { %8622 = vmatprep.mubr.f32.mxu0 %v16849_v61 }
 0xf98   :  { %10744 = vmatmul.mubr.msk.f32.gmra.mxu0 %vm1086_vm1, %v8305_v24 }
 0xf99   :  { %8628 = vmatprep.mubr.f32.mxu0 %v16849_v61 }
 0xf9c   :  { %10745 = vmatmul.mubr.msk.f32.gmra.mxu0 %vm1086_vm1, %v8306_v13  ;;  %v8731_v13 = vmul.f32 %v8667_v5, %v11987_v3 }
 0xf9d   :  { %8634 = vmatprep.mubr.f32.mxu0 %v16849_v61 }
 0xfa0   :  { %10746 = vmatmul.mubr.msk.f32.gmra.mxu0 %vm1086_vm1, %v8307_v35 }
 0xfa1   :  { %8640 = vmatprep.mubr.f32.mxu0 %v16849_v61 }
 0xfa4   :  { %10747 = vmatmul.mubr.msk.f32.gmra.mxu0 %vm1086_vm1, %v8308_v30  ;;  %v8669_v30 = vld [vmem:[#allocation4 + $0x20] sm:$0xff] }
 0xfa5   :  { %8646 = vmatprep.mubr.f32.mxu0 %v16849_v61 }
 0xfa8   :  { %10748 = vmatmul.mubr.msk.f32.gmra.mxu0 %vm1086_vm1, %v8309_v58 }
 0xfa9   :  { %8652 = vmatprep.mubr.f32.mxu0 %v16849_v61 }
 0xfac   :  { %10749 = vmatmul.mubr.msk.f32.gmra.mxu0 %vm1086_vm1, %v8310_v40  ;;  %v8732_v40 = vmul.f32 %v8668_v43, %v11987_v3 }
 0xfad   :  { %8658 = vmatprep.mubr.f32.mxu0 %v16849_v61 }
 0xfb0   :  { %10750 = vmatmul.mubr.msk.f32.gmra.mxu0 %vm1086_vm1, %v8311_v39 }
 0xff4   :  { %v8474_v46 = vpop.f32.mrf.mxu0 }
 0xff5   :  { %v14953_v29 = vadd.f32 %v8729_v0, %v8474_v46  ;;  %v8733_v0 = vmul.f32 %v8669_v30, %v11987_v3 }
 0xff6   :  { %v8476_v51 = vpop.f32.mrf.mxu0 }
 0xff7   :  { %8857 = vst [vmem:[#allocation4] sm:$0xff] %v14953_v29  ;;  %v14957_v24 = vadd.f32 %v8730_v12, %v8476_v51  ;;  %v8671_v12 = vld [vmem:[#allocation4 + $0x30] sm:$0xff]  ;;  %v8734_v51 = vmul.f32 %v8670_v44, %v11987_v3 }
 0xff8   :  { %v8480_v35 = vpop.f32.mrf.mxu0  ;;  %v8735_v18 = vmul.f32 %v8671_v12, %v11987_v3 }
 0xff9   :  { %8858 = vst [vmem:[#allocation4 + $0x8] sm:$0xff] %v14957_v24  ;;  %v14961_v58 = vadd.f32 %v8731_v13, %v8480_v35  ;;  %v8672_v35 = vld [vmem:[#allocation4 + $0x38] sm:$0xff] }
 0xffa   :  { %v8482_v39 = vpop.f32.mrf.mxu0  ;;  %v8736_v22 = vmul.f32 %v8672_v35, %v11987_v3 }
 0xffb   :  { %8859 = vst [vmem:[#allocation4 + $0x10] sm:$0xff] %v14961_v58  ;;  %v14965_v47 = vadd.f32 %v8732_v40, %v8482_v39  ;;  %v8673_v39 = vld [vmem:[#allocation4 + $0x40] sm:$0xff] }
 0xffc   :  { %v8486_v46 = vpop.f32.mrf.mxu0  ;;  %v8737_v19 = vmul.f32 %v8673_v39, %v11987_v3 }
 0xffd   :  { %8860 = vst [vmem:[#allocation4 + $0x18] sm:$0xff] %v14965_v47  ;;  %v14969_v5 = vadd.f32 %v8733_v0, %v8486_v46  ;;  %v8674_v46 = vld [vmem:[#allocation4 + $0x48] sm:$0xff] }
 0xffe   :  { %v8488_v13 = vpop.f32.mrf.mxu0  ;;  %v8738_v33 = vmul.f32 %v8674_v46, %v11987_v3 }
 0xfff   :  { %8861 = vst [vmem:[#allocation4 + $0x20] sm:$0xff] %v14969_v5  ;;  %v14973_v43 = vadd.f32 %v8734_v51, %v8488_v13  ;;  %v8675_v13 = vld [vmem:[#allocation4 + $0x50] sm:$0xff] }
0x1000   :  { %v8492_v40 = vpop.f32.mrf.mxu0  ;;  %v8739_v61 = vmul.f32 %v8675_v13, %v11987_v3 }
0x1001   :  { %8862 = vst [vmem:[#allocation4 + $0x28] sm:$0xff] %v14973_v43  ;;  %v14977_v30 = vadd.f32 %v8735_v18, %v8492_v40  ;;  %v8676_v40 = vld [vmem:[#allocation4 + $0x58] sm:$0xff] }
0x1002   :  { %v8494_v0 = vpop.f32.mrf.mxu0  ;;  %v8740_v4 = vmul.f32 %v8676_v40, %v11987_v3 }
0x1003   :  { %8863 = vst [vmem:[#allocation4 + $0x30] sm:$0xff] %v14977_v30  ;;  %v14981_v44 = vadd.f32 %v8736_v22, %v8494_v0  ;;  %v8677_v0 = vld [vmem:[#allocation4 + $0x60] sm:$0xff] }
0x1004   :  { %v8498_v51 = vpop.f32.mrf.mxu0  ;;  %v8741_v41 = vmul.f32 %v8677_v0, %v11987_v3 }
0x1005   :  { %8864 = vst [vmem:[#allocation4 + $0x38] sm:$0xff] %v14981_v44  ;;  %v14985_v12 = vadd.f32 %v8737_v19, %v8498_v51  ;;  %v8678_v51 = vld [vmem:[#allocation4 + $0x68] sm:$0xff] }
0x1006   :  { %v8500_v18 = vpop.f32.mrf.mxu0  ;;  %v8742_v38 = vmul.f32 %v8678_v51, %v11987_v3 }
0x1007   :  { %8865 = vst [vmem:[#allocation4 + $0x40] sm:$0xff] %v14985_v12  ;;  %v14989_v35 = vadd.f32 %v8738_v33, %v8500_v18  ;;  %v8679_v18 = vld [vmem:[#allocation4 + $0x70] sm:$0xff] }
0x1008   :  { %v8504_v22 = vpop.f32.mrf.mxu0  ;;  %v8743_v28 = vmul.f32 %v8679_v18, %v11987_v3 }
0x1009   :  { %8866 = vst [vmem:[#allocation4 + $0x48] sm:$0xff] %v14989_v35  ;;  %v14993_v39 = vadd.f32 %v8739_v61, %v8504_v22  ;;  %v8680_v22 = vld [vmem:[#allocation4 + $0x78] sm:$0xff] }
0x100a   :  { %v8506_v19 = vpop.f32.mrf.mxu0  ;;  %v8744_v48 = vmul.f32 %v8680_v22, %v11987_v3 }
0x100b   :  { %8867 = vst [vmem:[#allocation4 + $0x50] sm:$0xff] %v14993_v39  ;;  %v14997_v46 = vadd.f32 %v8740_v4, %v8506_v19  ;;  %v8681_v19 = vld [vmem:[#allocation4 + $0x80] sm:$0xff] }
0x100c   :  { %v8510_v33 = vpop.f32.mrf.mxu0  ;;  %v8745_v32 = vmul.f32 %v8681_v19, %v11987_v3 }
0x100d   :  { %8868 = vst [vmem:[#allocation4 + $0x58] sm:$0xff] %v14997_v46  ;;  %v15001_v13 = vadd.f32 %v8741_v41, %v8510_v33  ;;  %v8682_v33 = vld [vmem:[#allocation4 + $0x88] sm:$0xff] }
0x100e   :  { %v8512_v61 = vpop.f32.mrf.mxu0  ;;  %v8746_v34 = vmul.f32 %v8682_v33, %v11987_v3 }
0x100f   :  { %8869 = vst [vmem:[#allocation4 + $0x60] sm:$0xff] %v15001_v13  ;;  %v15005_v40 = vadd.f32 %v8742_v38, %v8512_v61  ;;  %v8683_v61 = vld [vmem:[#allocation4 + $0x90] sm:$0xff] }
0x1010   :  { %v8516_v4 = vpop.f32.mrf.mxu0  ;;  %v8747_v45 = vmul.f32 %v8683_v61, %v11987_v3 }
0x1011   :  { %8870 = vst [vmem:[#allocation4 + $0x68] sm:$0xff] %v15005_v40  ;;  %v15009_v0 = vadd.f32 %v8743_v28, %v8516_v4  ;;  %v8684_v4 = vld [vmem:[#allocation4 + $0x98] sm:$0xff] }
0x1012   :  { %v8518_v41 = vpop.f32.mrf.mxu0  ;;  %v8748_v2 = vmul.f32 %v8684_v4, %v11987_v3 }
0x1013   :  { %8871 = vst [vmem:[#allocation4 + $0x70] sm:$0xff] %v15009_v0  ;;  %v15013_v51 = vadd.f32 %v8744_v48, %v8518_v41  ;;  %v8685_v41 = vld [vmem:[#allocation4 + $0xa0] sm:$0xff] }
0x1014   :  { %v8522_v38 = vpop.f32.mrf.mxu0  ;;  %v8749_v57 = vmul.f32 %v8685_v41, %v11987_v3 }
0x1015   :  { %8872 = vst [vmem:[#allocation4 + $0x78] sm:$0xff] %v15013_v51  ;;  %v15017_v18 = vadd.f32 %v8745_v32, %v8522_v38  ;;  %v8686_v38 = vld [vmem:[#allocation4 + $0xa8] sm:$0xff] }
0x1016   :  { %v8524_v28 = vpop.f32.mrf.mxu0  ;;  %v8750_v31 = vmul.f32 %v8686_v38, %v11987_v3 }
0x1017   :  { %8873 = vst [vmem:[#allocation4 + $0x80] sm:$0xff] %v15017_v18  ;;  %v15021_v22 = vadd.f32 %v8746_v34, %v8524_v28  ;;  %v8687_v28 = vld [vmem:[#allocation4 + $0xb0] sm:$0xff] }
0x1018   :  { %v8528_v48 = vpop.f32.mrf.mxu0  ;;  %v8751_v62 = vmul.f32 %v8687_v28, %v11987_v3 }
0x1019   :  { %8874 = vst [vmem:[#allocation4 + $0x88] sm:$0xff] %v15021_v22  ;;  %v15025_v19 = vadd.f32 %v8747_v45, %v8528_v48  ;;  %v8688_v48 = vld [vmem:[#allocation4 + $0xb8] sm:$0xff] }
0x101a   :  { %v8530_v32 = vpop.f32.mrf.mxu0  ;;  %v8752_v59 = vmul.f32 %v8688_v48, %v11987_v3 }
0x101b   :  { %8875 = vst [vmem:[#allocation4 + $0x90] sm:$0xff] %v15025_v19  ;;  %v15029_v33 = vadd.f32 %v8748_v2, %v8530_v32  ;;  %v8689_v32 = vld [vmem:[#allocation4 + $0xc0] sm:$0xff] }
0x101c   :  { %v8534_v34 = vpop.f32.mrf.mxu0  ;;  %v8753_v16 = vmul.f32 %v8689_v32, %v11987_v3 }
0x101d   :  { %8876 = vst [vmem:[#allocation4 + $0x98] sm:$0xff] %v15029_v33  ;;  %v15033_v61 = vadd.f32 %v8749_v57, %v8534_v34  ;;  %v8690_v34 = vld [vmem:[#allocation4 + $0xc8] sm:$0xff] }
0x101e   :  { %v8536_v45 = vpop.f32.mrf.mxu0  ;;  %v8754_v9 = vmul.f32 %v8690_v34, %v11987_v3 }
0x101f   :  { %8877 = vst [vmem:[#allocation4 + $0xa0] sm:$0xff] %v15033_v61  ;;  %v15037_v4 = vadd.f32 %v8750_v31, %v8536_v45  ;;  %v8691_v45 = vld [vmem:[#allocation4 + $0xd0] sm:$0xff] }
0x1020   :  { %v8540_v2 = vpop.f32.mrf.mxu0  ;;  %v8755_v25 = vmul.f32 %v8691_v45, %v11987_v3  ;;  %v8696_v45 = vld [vmem:[#allocation4 + $0xf8] sm:$0xff] }
0x1021   :  { %8878 = vst [vmem:[#allocation4 + $0xa8] sm:$0xff] %v15037_v4  ;;  %v15041_v41 = vadd.f32 %v8751_v62, %v8540_v2  ;;  %v8692_v2 = vld [vmem:[#allocation4 + $0xd8] sm:$0xff] }
0x1022   :  { %v8542_v57 = vpop.f32.mrf.mxu0  ;;  %v8756_v32 = vmul.f32 %v8692_v2, %v11987_v3  ;;  %v8697_v2 = vld [vmem:[#allocation4 + $0x100] sm:$0xff] }
0x1023   :  { %8879 = vst [vmem:[#allocation4 + $0xb0] sm:$0xff] %v15041_v41  ;;  %v15045_v38 = vadd.f32 %v8752_v59, %v8542_v57  ;;  %v8693_v59 = vld [vmem:[#allocation4 + $0xe0] sm:$0xff] }
0x1024   :  { %v8546_v31 = vpop.f32.mrf.mxu0 }
0x1025   :  { %8880 = vst [vmem:[#allocation4 + $0xb8] sm:$0xff] %v15045_v38  ;;  %v15049_v28 = vadd.f32 %v8753_v16, %v8546_v31  ;;  %v8757_v31 = vmul.f32 %v8693_v59, %v11987_v3  ;;  %v8698_v59 = vld [vmem:[#allocation4 + $0x108] sm:$0xff] }
0x1026   :  { %v8548_v62 = vpop.f32.mrf.mxu0 }
0x1027   :  { %8881 = vst [vmem:[#allocation4 + $0xc0] sm:$0xff] %v15049_v28  ;;  %v8818_v48 = vadd.f32 %v8754_v9, %v8548_v62  ;;  %v8758_v9 = vmul.f32 %v8694_v63, %v11987_v3 }
0x1028   :  { %v8552_v52 = vpop.f32.mrf.mxu0 }
0x1029   :  { %8882 = vst [vmem:[#allocation4 + $0xc8] sm:$0xff] %v8818_v48  ;;  %v8819_v57 = vadd.f32 %v8755_v25, %v8552_v52  ;;  %v8759_v52 = vmul.f32 %v8695_v15, %v11987_v3 }
0x102a   :  { %v8554_v6 = vpop.f32.mrf.mxu0 }
0x102b   :  { %8883 = vst [vmem:[#allocation4 + $0xd0] sm:$0xff] %v8819_v57  ;;  %v8820_v16 = vadd.f32 %v8756_v32, %v8554_v6  ;;  %v8760_v6 = vmul.f32 %v8696_v45, %v11987_v3 }
0x102c   :  { %v8558_v34 = vpop.f32.mrf.mxu0 }
0x102d   :  { %8884 = vst [vmem:[#allocation4 + $0xd8] sm:$0xff] %v8820_v16  ;;  %v8821_v20 = vadd.f32 %v8757_v31, %v8558_v34  ;;  %v8761_v31 = vmul.f32 %v8697_v2, %v11987_v3 }
0x102e   :  { %v8560_v62 = vpop.f32.mrf.mxu0 }
0x102f   :  { %8885 = vst [vmem:[#allocation4 + $0xe0] sm:$0xff] %v8821_v20  ;;  %v8822_v56 = vadd.f32 %v8758_v9, %v8560_v62  ;;  %v9077_v45 = vmul.f32 %v8821_v20, %v16735_v26 }
0x1030   :  { %v8564_v25 = vpop.f32.mrf.mxu0 }
0x1031   :  { %8886 = vst [vmem:[#allocation4 + $0xe8] sm:$0xff] %v8822_v56  ;;  %v8823_v11 = vadd.f32 %v8759_v52, %v8564_v25  ;;  %v9078_v9 = vmul.f32 %v8822_v56, %v16614_v37  ;;  %v8762_v52 = vmul.f32 %v8698_v59, %v11987_v3  ;;  %v8763_v37 = vmul.f32 %v8699_v14, %v11987_v3  ;;  %v8701_v56 = vld [vmem:[#allocation4 + $0x120] sm:$0xff]  ;;  %v16856_v59 = vld [vmem:[#allocation61_spill] sm:$0xff] }
0x1032   :  { %v8566_v32 = vpop.f32.mrf.mxu0 }
0x1033   :  { %8887 = vst [vmem:[#allocation4 + $0xf0] sm:$0xff] %v8823_v11  ;;  %v8824_v10 = vadd.f32 %v8760_v6, %v8566_v32  ;;  %v9079_v63 = vmul.f32 %v8823_v11, %v16613_v21  ;;  %v9076_v6 = vmul.f32 %v8820_v16, %v16495_v53  ;;  %v16854_v32 = vld [vmem:[#allocation122_spill] sm:$0xff]  ;;  %v9142_v20 = vadd.f32 %v9078_v9, %v16377_v49  ;;  %v16855_v16 = vld [vmem:[#allocation121_spill] sm:$0xff]  ;;  %v16859_v9 = vld [vmem:[#allocation59_spill] sm:$0xff] }
0x1034   :  { %v8570_v34 = vpop.f32.mrf.mxu0  ;;  %v9074_v26 = vmul.f32 %v8818_v48, %v16854_v32  ;;  %v9073_v14 = vmul.f32 %v15049_v28, %v16855_v16  ;;  %v16863_v32 = vld [vmem:[#allocation116_spill] sm:$0xff]  ;;  %v16865_v16 = vld [vmem:[#allocation115_spill] sm:$0xff] }
0x1035   :  { %8888 = vst [vmem:[#allocation4 + $0xf8] sm:$0xff] %v8824_v10  ;;  %v9080_v15 = vmul.f32 %v8824_v10, %v16615_v23  ;;  %v15063_v62 = vadd.f32 %v8761_v31, %v8570_v34  ;;  %v9075_v23 = vmul.f32 %v8819_v57, %v16617_v54  ;;  %v9143_v10 = vadd.f32 %v9079_v63, %v16498_v8  ;;  %v8702_v8 = vld [vmem:[#allocation4 + $0x128] sm:$0xff]  ;;  %v16858_v34 = vld [vmem:[#allocation119_spill] sm:$0xff] }
0x1036   :  { %v8572_v25 = vpop.f32.mrf.mxu0  ;;  %v9141_v54 = vadd.f32 %v9077_v45, %v16856_v59  ;;  %v16857_v31 = vld [vmem:[#allocation120_spill] sm:$0xff]  ;;  %v9140_v49 = vadd.f32 %v9076_v6, %v16737_v1  ;;  %v9071_v28 = vmul.f32 %v15041_v41, %v16858_v34  ;;  %v8703_v45 = vld [vmem:[#allocation4 + $0x130] sm:$0xff]  ;;  %v9138_v1 = vadd.f32 %v9074_v26, %v16741_v42  ;;  %v16866_v59 = vld [vmem:[#allocation55_spill] sm:$0xff] }
0x1037   :  { %v9144_v2 = vadd.f32 %v9080_v15, %v16496_v60  ;;  %8889 = vst [vmem:[#allocation4 + $0x100] sm:$0xff] %v15063_v62  ;;  %v15070_v21 = vadd.f32 %v8762_v52, %v8572_v25  ;;  %v8764_v60 = vmul.f32 %v8700_v27, %v11987_v3  ;;  %v9072_v48 = vmul.f32 %v15045_v38, %v16857_v31  ;;  %v16860_v25 = vld [vmem:[#allocation118_spill] sm:$0xff]  ;;  %v16869_v34 = vld [vmem:[#allocation113_spill] sm:$0xff] }
0x1038   :  { %v8576_v11 = vpop.f32.mrf.mxu0  ;;  %v8765_v27 = vmul.f32 %v8701_v56, %v11987_v3  ;;  %v9139_v15 = vadd.f32 %v9075_v23, %v16859_v9  ;;  %v9070_v38 = vmul.f32 %v15037_v4, %v16860_v25  ;;  %v8704_v56 = vld [vmem:[#allocation4 + $0x138] sm:$0xff]  ;;  %v9068_v4 = vmul.f32 %v15029_v33, %v16863_v32  ;;  %v16870_v9 = vld [vmem:[#allocation53_spill] sm:$0xff]  ;;  %v16872_v25 = vld [vmem:[#allocation52_spill] sm:$0xff] }
0x1039   :  { %8890 = vst [vmem:[#allocation4 + $0x108] sm:$0xff] %v15070_v21  ;;  %v15078_v53 = vadd.f32 %v8763_v37, %v8576_v11  ;;  %9332 = vmatprep.subr.mxu1 %v9144_v2  ;;  %v8766_v2 = vmul.f32 %v8702_v8, %v11987_v3  ;;  %v16861_v37 = vld [vmem:[#allocation117_spill] sm:$0xff]  ;;  %v16867_v8 = vld [vmem:[#allocation114_spill] sm:$0xff] }
0x103a   :  { %v8578_v57 = vpop.f32.mrf.mxu0  ;;  %9333 = vmatpush1.msra.mxu1 %v9143_v10  ;;  %v9069_v41 = vmul.f32 %v15033_v61, %v16861_v37  ;;  %v16862_v10 = vld [vmem:[#allocation57_spill] sm:$0xff]  ;;  %v9067_v61 = vmul.f32 %v15025_v19, %v16865_v16  ;;  %v9066_v33 = vmul.f32 %v15021_v22, %v16867_v8  ;;  %v16868_v31 = vld [vmem:[#allocation54_spill] sm:$0xff]  ;;  %v9065_v19 = vmul.f32 %v15017_v18, %v16869_v34  ;;  %v16873_v37 = vld [vmem:[#allocation111_spill] sm:$0xff] }
0x103b   :  { %8891 = vst [vmem:[#allocation4 + $0x110] sm:$0xff] %v15078_v53  ;;  %v15088_v63 = vadd.f32 %v8764_v60, %v8578_v57  ;;  %9334 = vmatprep.subr.mxu1 %v9142_v20  ;;  %v9137_v23 = vadd.f32 %v9073_v14, %v16862_v10  ;;  %v16864_v20 = vld [vmem:[#allocation56_spill] sm:$0xff]  ;;  %v8767_v60 = vmul.f32 %v8703_v45, %v11987_v3  ;;  %v8705_v57 = vld [vmem:[#allocation4 + $0x140] sm:$0xff]  ;;  %v16876_v32 = vld [vmem:[#allocation50_spill] sm:$0xff] }
0x103c   :  { %v8582_v52 = vpop.f32.mrf.mxu0  ;;  %9335 = vmatpush1.msra.mxu1 %v9141_v54  ;;  %v9136_v42 = vadd.f32 %v9072_v48, %v16864_v20  ;;  %v9135_v14 = vadd.f32 %v9071_v28, %v16866_v59  ;;  %v9134_v48 = vadd.f32 %v9070_v38, %v16868_v31  ;;  %v9133_v28 = vadd.f32 %v9069_v41, %v16870_v9  ;;  %v16871_v45 = vld [vmem:[#allocation112_spill] sm:$0xff]  ;;  %v16874_v10 = vld [vmem:[#allocation51_spill] sm:$0xff]  ;;  %v16878_v16 = vld [vmem:[#allocation49_spill] sm:$0xff] }
0x103d   :  { %8892 = vst [vmem:[#allocation4 + $0x118] sm:$0xff] %v15088_v63  ;;  %v15098_v6 = vadd.f32 %v8765_v27, %v8582_v52  ;;  %9336 = vmatprep.subr.mxu1 %v9140_v49  ;;  %v8768_v27 = vmul.f32 %v8704_v56, %v11987_v3  ;;  %v8706_v52 = vld [vmem:[#allocation4 + $0x148] sm:$0xff]  ;;  %v9064_v22 = vmul.f32 %v15013_v51, %v16871_v45  ;;  %v16875_v56 = vld [vmem:[#allocation110_spill] sm:$0xff]  ;;  %v8709_v9 = vld [vmem:[#allocation4 + $0x160] sm:$0xff] }
0x103e   :  { %v8584_v11 = vpop.f32.mrf.mxu0  ;;  %9337 = vmatpush1.msra.mxu1 %v9139_v15  ;;  %v9132_v38 = vadd.f32 %v9068_v4, %v16872_v25  ;;  %v9063_v18 = vmul.f32 %v15009_v0, %v16873_v37  ;;  %v9131_v41 = vadd.f32 %v9067_v61, %v16874_v10  ;;  %v9062_v51 = vmul.f32 %v15005_v40, %v16875_v56  ;;  %v16885_v25 = vld [vmem:[#allocation105_spill] sm:$0xff]  ;;  %v16887_v10 = vld [vmem:[#allocation104_spill] sm:$0xff] }
0x103f   :  { %8893 = vst [vmem:[#allocation4 + $0x120] sm:$0xff] %v15098_v6  ;;  %v15108_v26 = vadd.f32 %v8766_v2, %v8584_v11  ;;  %9338 = vmatprep.subr.mxu1 %v9138_v1  ;;  %v8769_v2 = vmul.f32 %v8705_v57, %v11987_v3  ;;  %v8707_v11 = vld [vmem:[#allocation4 + $0x150] sm:$0xff]  ;;  %v9130_v4 = vadd.f32 %v9066_v33, %v16876_v32  ;;  %v16880_v57 = vld [vmem:[#allocation48_spill] sm:$0xff]  ;;  %v16890_v32 = vld [vmem:[#allocation43_spill] sm:$0xff] }
0x1040   :  { %v8588_v54 = vpop.f32.mrf.mxu0  ;;  %9339 = vmatpush1.msra.mxu1 %v9137_v23  ;;  %v9129_v61 = vadd.f32 %v9065_v19, %v16878_v16  ;;  %v9128_v8 = vadd.f32 %v9064_v22, %v16880_v57  ;;  %v8771_v31 = vmul.f32 %v8707_v11, %v11987_v3  ;;  %v8773_v56 = vmul.f32 %v8709_v9, %v11987_v3  ;;  %v16892_v16 = vld [vmem:[#allocation42_spill] sm:$0xff] }
0x1041   :  { %8894 = vst [vmem:[#allocation4 + $0x128] sm:$0xff] %v15108_v26  ;;  %v15118_v49 = vadd.f32 %v8767_v60, %v8588_v54  ;;  %9340 = vmatprep.subr.mxu1 %v9136_v42  ;;  %v8770_v42 = vmul.f32 %v8706_v52, %v11987_v3  ;;  %v16877_v60 = vld [vmem:[#allocation109_spill] sm:$0xff]  ;;  %v16879_v54 = vld [vmem:[#allocation108_spill] sm:$0xff] }
0x1042   :  { %v8590_v15 = vpop.f32.mrf.mxu0  ;;  %9341 = vmatpush1.msra.mxu1 %v9135_v14  ;;  %v9061_v0 = vmul.f32 %v15001_v13, %v16877_v60  ;;  %v8708_v14 = vld [vmem:[#allocation4 + $0x158] sm:$0xff]  ;;  %v9060_v40 = vmul.f32 %v14997_v46, %v16879_v54  ;;  %v8711_v60 = vld [vmem:[#allocation4 + $0x170] sm:$0xff] }
0x1043   :  { %8895 = vst [vmem:[#allocation4 + $0x130] sm:$0xff] %v15118_v49  ;;  %v15128_v1 = vadd.f32 %v8768_v27, %v8590_v15  ;;  %9342 = vmatprep.subr.mxu1 %v9134_v48  ;;  %v16881_v48 = vld [vmem:[#allocation107_spill] sm:$0xff]  ;;  %v16884_v15 = vld [vmem:[#allocation46_spill] sm:$0xff]  ;;  %v8772_v22 = vmul.f32 %v8708_v14, %v11987_v3  ;;  %v16893_v54 = vld [vmem:[#allocation101_spill] sm:$0xff] }
0x1044   :  { %v8594_v23 = vpop.f32.mrf.mxu0  ;;  %9343 = vmatpush1.msra.mxu1 %v9133_v28  ;;  %v9059_v13 = vmul.f32 %v14993_v39, %v16881_v48  ;;  %v16882_v27 = vld [vmem:[#allocation47_spill] sm:$0xff]  ;;  %v16883_v28 = vld [vmem:[#allocation106_spill] sm:$0xff]  ;;  %v9126_v52 = vadd.f32 %v9062_v51, %v16884_v15  ;;  %v9057_v39 = vmul.f32 %v14985_v12, %v16885_v25 }
0x1045   :  { %8896 = vst [vmem:[#allocation4 + $0x138] sm:$0xff] %v15128_v1  ;;  %v15138_v20 = vadd.f32 %v8769_v2, %v8594_v23  ;;  %9344 = vmatprep.subr.mxu1 %v9132_v38  ;;  %v9127_v34 = vadd.f32 %v9063_v18, %v16882_v27  ;;  %v9058_v46 = vmul.f32 %v14989_v35, %v16883_v28  ;;  %v16886_v38 = vld [vmem:[#allocation45_spill] sm:$0xff]  ;;  %v8710_v18 = vld [vmem:[#allocation4 + $0x168] sm:$0xff]  ;;  %v16889_v51 = vld [vmem:[#allocation103_spill] sm:$0xff] }
0x1046   :  { %v8596_v59 = vpop.f32.mrf.mxu0  ;;  %9345 = vmatpush1.msra.mxu1 %v9131_v41  ;;  %v9125_v2 = vadd.f32 %v9061_v0, %v16886_v38  ;;  %v9056_v35 = vmul.f32 %v14981_v44, %v16887_v10  ;;  %v16888_v41 = vld [vmem:[#allocation44_spill] sm:$0xff]  ;;  %v9055_v12 = vmul.f32 %v14977_v30, %v16889_v51  ;;  %v16891_v0 = vld [vmem:[#allocation102_spill] sm:$0xff]  ;;  %v8774_v14 = vmul.f32 %v8710_v18, %v11987_v3  ;;  %v16906_v51 = vld [vmem:[#allocation33_spill] sm:$0xff] }
0x1047   :  { %8897 = vst [vmem:[#allocation4 + $0x140] sm:$0xff] %v15138_v20  ;;  %v15148_v33 = vadd.f32 %v8770_v42, %v8596_v59  ;;  %9346 = vmatprep.subr.mxu1 %v9130_v4  ;;  %v9124_v23 = vadd.f32 %v9060_v40, %v16888_v41  ;;  %v9123_v4 = vadd.f32 %v9059_v13, %v16890_v32  ;;  %v16894_v40 = vld [vmem:[#allocation41_spill] sm:$0xff]  ;;  %v16899_v15 = vld [vmem:[#allocation98_spill] sm:$0xff]  ;;  %v16903_v18 = vld [vmem:[#allocation36_spill] sm:$0xff] }
0x1048   :  { %v8600_v19 = vpop.f32.mrf.mxu0  ;;  %9347 = vmatpush1.msra.mxu1 %v9129_v61  ;;  %v9054_v44 = vmul.f32 %v14973_v43, %v16891_v0  ;;  %v9122_v61 = vadd.f32 %v9058_v46, %v16892_v16  ;;  %v9053_v30 = vmul.f32 %v14969_v5, %v16893_v54  ;;  %v9121_v57 = vadd.f32 %v9057_v39, %v16894_v40  ;;  %v16896_v43 = vld [vmem:[#allocation40_spill] sm:$0xff]  ;;  %v16898_v5 = vld [vmem:[#allocation39_spill] sm:$0xff]  ;;  %v16901_v39 = vld [vmem:[#allocation97_spill] sm:$0xff] }
0x1049   :  { %8898 = vst [vmem:[#allocation4 + $0x148] sm:$0xff] %v15148_v33  ;;  %v15158_v45 = vadd.f32 %v8771_v31, %v8600_v19  ;;  %9348 = vmatprep.subr.mxu1 %v9128_v8  ;;  %v16895_v31 = vld [vmem:[#allocation100_spill] sm:$0xff]  ;;  %v9120_v13 = vadd.f32 %v9056_v35, %v16896_v43  ;;  %v16897_v19 = vld [vmem:[#allocation99_spill] sm:$0xff]  ;;  %v9119_v28 = vadd.f32 %v9055_v12, %v16898_v5  ;;  %v8728_v43 = vld [vmem:[#allocation4 + $0x1f8] sm:$0xff] }
0x104a   :  { %v8602_v37 = vpop.f32.mrf.mxu0  ;;  %9349 = vmatpush1.msra.mxu1 %v9127_v34  ;;  %v9052_v48 = vmul.f32 %v14965_v47, %v16895_v31  ;;  %v8775_v34 = vmul.f32 %v8711_v60, %v11987_v3  ;;  %v9051_v9 = vmul.f32 %v14961_v58, %v16897_v19  ;;  %v16900_v47 = vld [vmem:[#allocation38_spill] sm:$0xff]  ;;  %v9049_v38 = vmul.f32 %v14953_v29, %v16901_v39  ;;  %v8726_v40 = vld [vmem:[#allocation4 + $0x1e8] sm:$0xff] }
0x104b   :  { %8899 = vst [vmem:[#allocation4 + $0x150] sm:$0xff] %v15158_v45  ;;  %v15168_v11 = vadd.f32 %v8772_v22, %v8602_v37  ;;  %9350 = vmatprep.subr.mxu1 %v9126_v52  ;;  %v9050_v52 = vmul.f32 %v14957_v24, %v16899_v15  ;;  %v9118_v22 = vadd.f32 %v9054_v44, %v16900_v47  ;;  %v16904_v24 = vld [vmem:[#allocation35_spill] sm:$0xff]  ;;  %v8724_v31 = vld [vmem:[#allocation4 + $0x1d8] sm:$0xff] }
0x104c   :  { %v8606_v42 = vpop.f32.mrf.mxu0  ;;  %9351 = vmatpush1.msra.mxu1 %v9125_v2  ;;  %v16902_v2 = vld [vmem:[#allocation37_spill] sm:$0xff]  ;;  %v9116_v10 = vadd.f32 %v9052_v48, %v16903_v18  ;;  %v9115_v35 = vadd.f32 %v9051_v9, %v16904_v24  ;;  %v9113_v29 = vadd.f32 %v9049_v38, %v16906_v51  ;;  %v8722_v9 = vld [vmem:[#allocation4 + $0x1c8] sm:$0xff]  ;;  %v8788_v15 = vmul.f32 %v8724_v31, %v11987_v3  ;;  %v8720_v39 = vld [vmem:[#allocation4 + $0x1b8] sm:$0xff] }
0x104d   :  { %8900 = vst [vmem:[#allocation4 + $0x158] sm:$0xff] %v15168_v11  ;;  %v15178_v59 = vadd.f32 %v8773_v56, %v8606_v42  ;;  %9352 = vmatprep.subr.mxu1 %v9124_v23  ;;  %v9117_v37 = vadd.f32 %v9053_v30, %v16902_v2  ;;  %v16905_v23 = vld [vmem:[#allocation34_spill] sm:$0xff]  ;;  %v8719_v18 = vld [vmem:[#allocation4 + $0x1b0] sm:$0xff] }
0x104e   :  { %v8608_v8 = vpop.f32.mrf.mxu0  ;;  %9353 = vmatpush1.msra.mxu1 %v9123_v4  ;;  %v9114_v56 = vadd.f32 %v9050_v52, %v16905_v23  ;;  %v8718_v23 = vld [vmem:[#allocation4 + $0x1a8] sm:$0xff]  ;;  %v16908_v31 = vld [vmem:[#allocation158_spill] sm:$0xff] }
0x104f   :  { %8901 = vst [vmem:[#allocation4 + $0x160] sm:$0xff] %v15178_v59  ;;  %v15188_v27 = vadd.f32 %v8774_v14, %v8608_v8  ;;  %9354 = vmatprep.subr.mxu1 %v9122_v61  ;;  %v8725_v8 = vld [vmem:[#allocation4 + $0x1e0] sm:$0xff] }
0x1050   :  { %v8612_v46 = vpop.f32.mrf.mxu0  ;;  %9355 = vmatpush1.msra.mxu1 %v9121_v57  ;;  %v8727_v57 = vld [vmem:[#allocation4 + $0x1f0] sm:$0xff]  ;;  %v8789_v5 = vmul.f32 %v8725_v8, %v11987_v3 }
0x1051   :  { %8902 = vst [vmem:[#allocation4 + $0x168] sm:$0xff] %v15188_v27  ;;  %v15198_v25 = vadd.f32 %v8775_v34, %v8612_v46  ;;  %9356 = vmatprep.subr.mxu1 %v9120_v13  ;;  %v8723_v13 = vld [vmem:[#allocation4 + $0x1d0] sm:$0xff]  ;;  %v8790_v34 = vmul.f32 %v8726_v40, %v11987_v3  ;;  %v8791_v19 = vmul.f32 %v8727_v57, %v11987_v3  ;;  %v8721_v46 = vld [vmem:[#allocation4 + $0x1c0] sm:$0xff] }
0x1052   :  { %v15203_v58 = vpop.f32.mrf.mxu0  ;;  %9357 = vmatpush1.msra.mxu1 %v9119_v28  ;;  %v8787_v38 = vmul.f32 %v8723_v13, %v11987_v3  ;;  %v8717_v57 = vld [vmem:[#allocation4 + $0x1a0] sm:$0xff]  ;;  %v8783_v13 = vmul.f32 %v8719_v18, %v11987_v3 }
0x1053   :  { %8903 = vst [vmem:[#allocation4 + $0x170] sm:$0xff] %v15198_v25  ;;  %9358 = vmatprep.subr.mxu1 %v9118_v22  ;;  %v8792_v22 = vmul.f32 %v8728_v43, %v11987_v3  ;;  %v8716_v43 = vld [vmem:[#allocation4 + $0x198] sm:$0xff]  ;;  %v8713_v18 = vld [vmem:[#allocation4 + $0x180] sm:$0xff] }
0x1054   :  { %v15208_v41 = vpop.f32.mrf.mxu0  ;;  %9359 = vmatpush1.msra.mxu1 %v9117_v37 }
0x1055   :  { %9360 = vmatprep.subr.mxu1 %v9116_v10  ;;  %v8786_v10 = vmul.f32 %v8722_v9, %v11987_v3  ;;  %v8715_v9 = vld [vmem:[#allocation4 + $0x190] sm:$0xff] }
0x1056   :  { %v15212_v12 = vpop.f32.mrf.mxu0  ;;  %9361 = vmatpush1.msra.mxu1 %v9115_v35 }
0x1057   :  { %9362 = vmatprep.subr.mxu1 %v9114_v56  ;;  %v8785_v56 = vmul.f32 %v8721_v46, %v11987_v3  ;;  %v16910_v46 = vld [vmem:[#allocation96_spill] sm:$0xff] }
0x1058   :  { %v15214_v32 = vpop.f32.mrf.mxu0  ;;  %9363 = vmatpush1.msra.mxu1 %v9113_v29  ;;  %v16907_v29 = vld [vmem:[#allocation159_spill] sm:$0xff] }
0x105a   :  { %v15216_v4 = vpop.f32.mrf.mxu0 }
0x105c   :  { %v15218_v42 = vpop.f32.mrf.mxu0 }
0x105e   :  { %v8632_v60 = vpop.f32.mrf.mxu0 }
0x1060   :  { %v8636_v0 = vpop.f32.mrf.mxu0 }
0x1062   :  { %v8638_v44 = vpop.f32.mrf.mxu0 }
0x1064   :  { %v8642_v16 = vpop.f32.mrf.mxu0 }
0x1066   :  { %v8644_v61 = vpop.f32.mrf.mxu0 }
0x1067   :  { %v15243_v8 = vadd.f32 %v8786_v10, %v8644_v61  ;;  %v8780_v10 = vmul.f32 %v8716_v43, %v11987_v3 }
0x1068   :  { %v8648_v14 = vpop.f32.mrf.mxu0 }
0x1069   :  { %v15238_v51 = vadd.f32 %v8787_v38, %v8648_v14  ;;  %v16909_v14 = vld [vmem:[#allocation157_spill] sm:$0xff] }
0x106a   :  { %v8650_v54 = vpop.f32.mrf.mxu0 }
0x106b   :  { %v15233_v24 = vadd.f32 %v8788_v15, %v8650_v54 }
0x106c   :  { %v8654_v30 = vpop.f32.mrf.mxu0 }
0x106d   :  { %v15230_v2 = vadd.f32 %v8789_v5, %v8654_v30  ;;  %v8784_v30 = vmul.f32 %v8720_v39, %v11987_v3  ;;  %v8782_v5 = vmul.f32 %v8718_v23, %v11987_v3  ;;  %v9108_v61 = vmul.f32 %v15233_v24, %v16669_v55 }
0x106e   :  { %v8656_v48 = vpop.f32.mrf.mxu0  ;;  %v15261_v39 = vadd.f32 %v8783_v13, %v8636_v0  ;;  %v9106_v55 = vmul.f32 %v15243_v8, %v16673_v17  ;;  %v8779_v0 = vmul.f32 %v8715_v9, %v11987_v3  ;;  %v16914_v17 = vld [vmem:[#allocation152_spill] sm:$0xff]  ;;  %v16916_v13 = vld [vmem:[#allocation151_spill] sm:$0xff] }
0x106f   :  { %v15224_v52 = vadd.f32 %v8790_v34, %v8656_v48  ;;  %v15250_v34 = vadd.f32 %v8785_v56, %v8642_v16  ;;  %v16911_v16 = vld [vmem:[#allocation155_spill] sm:$0xff]  ;;  %v8712_v56 = vld [vmem:[#allocation4 + $0x178] sm:$0xff] }
0x1070   :  { %v8660_v28 = vpop.f32.mrf.mxu0  ;;  %v9107_v38 = vmul.f32 %v15238_v51, %v16911_v16  ;;  %v15288_v43 = vadd.f32 %v8779_v0, %v15214_v32 }
0x1071   :  { %v15226_v47 = vadd.f32 %v8791_v19, %v8660_v28  ;;  %v9110_v48 = vmul.f32 %v15224_v52, %v16908_v31  ;;  %v9109_v19 = vmul.f32 %v15230_v2, %v16909_v14  ;;  %v15255_v28 = vadd.f32 %v8784_v30, %v8638_v44 }
0x1072   :  { %v8662_v37 = vpop.f32.mrf.mxu0  ;;  %v15267_v44 = vadd.f32 %v8782_v5, %v8632_v60  ;;  %v15281_v31 = vadd.f32 %v8780_v10, %v15216_v4  ;;  %v9103_v14 = vmul.f32 %v15261_v39, %v16916_v13  ;;  %v8776_v4 = vmul.f32 %v8712_v56, %v11987_v3  ;;  %v16931_v13 = vld [vmem:[#allocation84_spill] sm:$0xff] }
0x1073   :  { %v15235_v35 = vadd.f32 %v8792_v22, %v8662_v37  ;;  %v9111_v40 = vmul.f32 %v15226_v47, %v16907_v29  ;;  %v8714_v22 = vld [vmem:[#allocation4 + $0x188] sm:$0xff]  ;;  %v9174_v23 = vadd.f32 %v9110_v48, %v16793_v50  ;;  %v9104_v50 = vmul.f32 %v15255_v28, %v16914_v17 }
0x1074   :  { %v8778_v60 = vmul.f32 %v8714_v22, %v11987_v3  ;;  %v16915_v48 = vld [vmem:[#allocation92_spill] sm:$0xff] }
0x1075   :  { %v9112_v54 = vmul.f32 %v15235_v35, %v16423_v36  ;;  %v8781_v36 = vmul.f32 %v8717_v57, %v11987_v3  ;;  %v9175_v37 = vadd.f32 %v9111_v40, %v16672_v7  ;;  %v16912_v57 = vld [vmem:[#allocation153_spill] sm:$0xff] }
0x1076   :  { %v9105_v7 = vmul.f32 %v15250_v34, %v16912_v57  ;;  %v16913_v40 = vld [vmem:[#allocation93_spill] sm:$0xff]  ;;  %v15295_v5 = vadd.f32 %v8778_v60, %v15212_v12  ;;  %v16922_v12 = vld [vmem:[#allocation148_spill] sm:$0xff] }
0x1077   :  { %v9176_v15 = vadd.f32 %v9112_v54, %v16910_v46  ;;  %v15274_v29 = vadd.f32 %v8781_v36, %v15218_v42  ;;  %v9173_v30 = vadd.f32 %v9109_v19, %v16913_v40  ;;  %v9172_v54 = vadd.f32 %v9108_v61, %v16915_v48  ;;  %v16917_v19 = vld [vmem:[#allocation91_spill] sm:$0xff]  ;;  %v16918_v46 = vld [vmem:[#allocation150_spill] sm:$0xff]  ;;  %v16920_v36 = vld [vmem:[#allocation149_spill] sm:$0xff] }
0x1078   :  { %v8777_v42 = vmul.f32 %v8713_v18, %v11987_v3  ;;  %v9171_v9 = vadd.f32 %v9107_v38, %v16917_v19  ;;  %v9102_v61 = vmul.f32 %v15267_v44, %v16918_v46  ;;  %v15307_v18 = vadd.f32 %v8776_v4, %v15203_v58  ;;  %v16926_v40 = vld [vmem:[#allocation146_spill] sm:$0xff]  ;;  %v16928_v58 = vld [vmem:[#allocation145_spill] sm:$0xff]  ;;  %v16933_v4 = vld [vmem:[#allocation83_spill] sm:$0xff] }
0x1079   :  { %9364 = vmatprep.subr.mxu1 %v9176_v15  ;;  %v16919_v15 = vld [vmem:[#allocation90_spill] sm:$0xff]  ;;  %v9101_v16 = vmul.f32 %v15274_v29, %v16920_v36  ;;  %v9100_v10 = vmul.f32 %v15281_v31, %v16922_v12  ;;  %v16929_v48 = vld [vmem:[#allocation85_spill] sm:$0xff] }
0x107a   :  { %9365 = vmatpush2.msra.mxu1 %v9175_v37  ;;  %v9170_v22 = vadd.f32 %v9106_v55, %v16919_v15  ;;  %v15301_v32 = vadd.f32 %v8777_v42, %v15208_v41  ;;  %v16921_v37 = vld [vmem:[#allocation89_spill] sm:$0xff]  ;;  %v16924_v55 = vld [vmem:[#allocation147_spill] sm:$0xff] }
0x107b   :  { %9366 = vmatprep.subr.mxu1 %v9174_v23  ;;  %v9169_v38 = vadd.f32 %v9105_v7, %v16921_v37  ;;  %v16923_v23 = vld [vmem:[#allocation88_spill] sm:$0xff]  ;;  %v9099_v0 = vmul.f32 %v15288_v43, %v16924_v55  ;;  %v16925_v41 = vld [vmem:[#allocation87_spill] sm:$0xff]  ;;  %v16927_v7 = vld [vmem:[#allocation86_spill] sm:$0xff]  ;;  %v9164_v19 = vadd.f32 %v9100_v10, %v16931_v13 }
0x107c   :  { %9367 = vmatpush2.msra.mxu1 %v9173_v30  ;;  %v9168_v56 = vadd.f32 %v9104_v50, %v16923_v23  ;;  %v9167_v57 = vadd.f32 %v9103_v14, %v16925_v41  ;;  %v9098_v30 = vmul.f32 %v15295_v5, %v16926_v40  ;;  %v9166_v60 = vadd.f32 %v9102_v61, %v16927_v7  ;;  %v16930_v50 = vld [vmem:[#allocation144_spill] sm:$0xff]  ;;  %v16932_v14 = vld [vmem:[#allocation143_spill] sm:$0xff]  ;;  %v16934_v61 = vld [vmem:[#allocation142_spill] sm:$0xff] }
0x107d   :  { %9368 = vmatprep.subr.mxu1 %v9172_v54  ;;  %v9097_v17 = vmul.f32 %v15301_v32, %v16928_v58  ;;  %v9165_v54 = vadd.f32 %v9101_v16, %v16929_v48  ;;  %v9096_v42 = vmul.f32 %v15307_v18, %v16930_v50  ;;  %v9163_v46 = vadd.f32 %v9099_v0, %v16933_v4  ;;  %v16936_v16 = vld [vmem:[#allocation141_spill] sm:$0xff]  ;;  %v16938_v10 = vld [vmem:[#allocation140_spill] sm:$0xff]  ;;  %v16940_v55 = vld [vmem:[#allocation139_spill] sm:$0xff] }
0x107e   :  { %9369 = vmatpush2.msra.mxu1 %v9171_v9  ;;  %v9095_v9 = vmul.f32 %v15198_v25, %v16932_v14  ;;  %v9094_v15 = vmul.f32 %v15188_v27, %v16934_v61  ;;  %v9093_v37 = vmul.f32 %v15178_v59, %v16936_v16  ;;  %v9092_v23 = vmul.f32 %v15168_v11, %v16938_v10  ;;  %v16941_v41 = vld [vmem:[#allocation79_spill] sm:$0xff]  ;;  %v16944_v7 = vld [vmem:[#allocation137_spill] sm:$0xff] }
0x107f   :  { %9370 = vmatprep.subr.mxu1 %v9170_v22  ;;  %v16935_v22 = vld [vmem:[#allocation82_spill] sm:$0xff]  ;;  %v9091_v0 = vmul.f32 %v15158_v45, %v16940_v55  ;;  %v16945_v58 = vld [vmem:[#allocation77_spill] sm:$0xff]  ;;  %v16948_v50 = vld [vmem:[#allocation135_spill] sm:$0xff] }
0x1080   :  { %9371 = vmatpush2.msra.mxu1 %v9169_v38  ;;  %v9162_v36 = vadd.f32 %v9098_v30, %v16935_v22  ;;  %v16937_v38 = vld [vmem:[#allocation81_spill] sm:$0xff]  ;;  %v9159_v27 = vadd.f32 %v9095_v9, %v16941_v41  ;;  %v16943_v30 = vld [vmem:[#allocation78_spill] sm:$0xff]  ;;  %v9157_v11 = vadd.f32 %v9093_v37, %v16945_v58  ;;  %v16949_v13 = vld [vmem:[#allocation75_spill] sm:$0xff] }
0x1081   :  { %9372 = vmatprep.subr.mxu1 %v9168_v56  ;;  %v9161_v12 = vadd.f32 %v9097_v17, %v16937_v38  ;;  %v16939_v56 = vld [vmem:[#allocation80_spill] sm:$0xff]  ;;  %v9158_v59 = vadd.f32 %v9094_v15, %v16943_v30  ;;  %v16951_v9 = vld [vmem:[#allocation74_spill] sm:$0xff]  ;;  %v16952_v4 = vld [vmem:[#allocation133_spill] sm:$0xff] }
0x1082   :  { %9373 = vmatpush2.msra.mxu1 %v9167_v57  ;;  %v9160_v25 = vadd.f32 %v9096_v42, %v16939_v56  ;;  %v16942_v57 = vld [vmem:[#allocation138_spill] sm:$0xff]  ;;  %v16946_v17 = vld [vmem:[#allocation136_spill] sm:$0xff]  ;;  %v9087_v42 = vmul.f32 %v15118_v49, %v16948_v50  ;;  %v16953_v61 = vld [vmem:[#allocation73_spill] sm:$0xff] }
0x1083   :  { %9374 = vmatprep.subr.mxu1 %v9166_v60  ;;  %v9090_v40 = vmul.f32 %v15148_v33, %v16942_v57  ;;  %v9089_v60 = vmul.f32 %v15138_v20, %v16944_v7  ;;  %v9088_v48 = vmul.f32 %v15128_v1, %v16946_v17  ;;  %v9155_v33 = vadd.f32 %v9091_v0, %v16949_v13  ;;  %v16954_v15 = vld [vmem:[#allocation132_spill] sm:$0xff]  ;;  %v16956_v16 = vld [vmem:[#allocation131_spill] sm:$0xff]  ;;  %v16960_v56 = vld [vmem:[#allocation129_spill] sm:$0xff]  ;;  %v9468_v13 = vpop.trf.xlu0 }
0x1084   :  { %9375 = vmatpush2.msra.mxu1 %v9165_v54  ;;  %v16947_v54 = vld [vmem:[#allocation76_spill] sm:$0xff]  ;;  %v9084_v22 = vmul.f32 %v15088_v63, %v16954_v15  ;;  %v9083_v37 = vmul.f32 %v15078_v53, %v16956_v16  ;;  %v16957_v38 = vld [vmem:[#allocation71_spill] sm:$0xff]  ;;  %v16961_v55 = vld [vmem:[#allocation69_spill] sm:$0xff] }
0x1085   :  { %9376 = vmatprep.subr.mxu1 %v9164_v19  ;;  %v9156_v45 = vadd.f32 %v9092_v23, %v16947_v54  ;;  %v16950_v19 = vld [vmem:[#allocation134_spill] sm:$0xff]  ;;  %v9154_v20 = vadd.f32 %v9090_v40, %v16951_v9  ;;  %v9153_v1 = vadd.f32 %v9089_v60, %v16953_v61  ;;  %v16962_v0 = vld [vmem:[#allocation68_spill] sm:$0xff]  ;;  %v16965_v30 = vld [vmem:[#allocation65_spill] sm:$0xff] }
0x1086   :  { %9377 = vmatpush2.msra.mxu1 %v9163_v46  ;;  %v9086_v14 = vmul.f32 %v15108_v26, %v16950_v19  ;;  %v9085_v46 = vmul.f32 %v15098_v6, %v16952_v4  ;;  %v9151_v26 = vadd.f32 %v9087_v42, %v16957_v38  ;;  %v16959_v23 = vld [vmem:[#allocation70_spill] sm:$0xff]  ;;  %v9148_v41 = vadd.f32 %v9084_v22, %v16962_v0  ;;  %v9309_v58 = vld [vmem:[#allocation13 + $0x7] ss:$8 sm:$0x3]  ;;  %v16968_v17 = vld [vmem:[#allocation161_spill] sm:$0xff]  ;;  %v9500_v0 = vpop.trf.xlu1 }
0x1087   :  { %9378 = vmatprep.subr.mxu1 %v9162_v36  ;;  %v16955_v36 = vld [vmem:[#allocation72_spill] sm:$0xff]  ;;  %v16964_v57 = vld [vmem:[#allocation66_spill] sm:$0xff] }
0x1088   :  { %9379 = vmatpush2.msra.mxu1 %v9161_v12  ;;  %v9152_v49 = vadd.f32 %v9088_v48, %v16955_v36  ;;  %v16958_v12 = vld [vmem:[#allocation130_spill] sm:$0xff]  ;;  %v9150_v6 = vadd.f32 %v9086_v14, %v16959_v23  ;;  %v9149_v63 = vadd.f32 %v9085_v46, %v16961_v55  ;;  %v9329_v48 = vrot.slane %v9309_v58, %v16968_v17 }
0x1089   :  { %9380 = vmatprep.subr.mxu1 %v9160_v25  ;;  %v9082_v10 = vmul.f32 %v15070_v21, %v16958_v12  ;;  %v9081_v25 = vmul.f32 %v15063_v62, %v16960_v56  ;;  %v16966_v7 = vld [vmem:[#allocation162_spill] sm:$0xff]  ;;  %v16967_v62 = vmov 0.0  }
0x108a   :  { %9381 = vmatpush2.msra.mxu1 %v9159_v27  ;;  %v16963_v27 = vld [vmem:[#allocation67_spill] sm:$0xff] }
0x108b   :  { %9382 = vmatprep.subr.mxu1 %v9158_v59  ;;  %v9147_v53 = vadd.f32 %v9083_v37, %v16963_v27  ;;  %v9146_v40 = vadd.f32 %v9082_v10, %v16964_v57  ;;  %v9145_v21 = vadd.f32 %v9081_v25, %v16965_v30  ;;  %v10845_v59 = vld [vmem:[#allocation2] ss:$8 sm:$0x3]  ;;  %v9501_v27 = vpop.trf.xlu1 }
0x108c   :  { %9383 = vmatpush2.msra.mxu1 %v9157_v11  ;;  %v9314_v60 = vrot.slane %v10845_v59, %v16966_v7  ;;  %v9325_v11 = vrot.slane %v9309_v58, %v16966_v7 }
0x108d   :  { %9384 = vmatprep.subr.mxu1 %v9156_v45 }
0x108e   :  { %9385 = vmatpush2.msra.mxu1 %v9155_v33  ;;  %v9469_v33 = vpop.trf.xlu0 }
0x108f   :  { %9386 = vmatprep.subr.mxu1 %v9154_v20  ;;  %v16969_v20 = vld [vmem:[#allocation163_spill] sm:$0xff]  ;;  %v9502_v57 = vpop.trf.xlu1 }
0x1090   :  { %9387 = vmatpush2.msra.mxu1 %v9153_v1  ;;  %v16970_v1 = vld [vmem:[#allocation164_spill] sm:$0xff] }
0x1091   :  { %9388 = vmatprep.subr.mxu1 %v9152_v49 }
0x1092   :  { %9389 = vmatpush2.msra.mxu1 %v9151_v26  ;;  %v9470_v14 = vpop.trf.xlu0 }
0x1093   :  { %9390 = vmatprep.subr.mxu1 %v9150_v6  ;;  %v9503_v30 = vpop.trf.xlu1 }
0x1094   :  { %9391 = vmatpush2.msra.mxu1 %v9149_v63 }
0x1095   :  { %9392 = vmatprep.subr.mxu1 %v9148_v41 }
0x1096   :  { %9393 = vmatpush2.msra.mxu1 %v9147_v53  ;;  %v9471_v36 = vpop.trf.xlu0 }
0x1097   :  { %9394 = vmatprep.subr.mxu1 %v9146_v40  ;;  %v9504_v59 = vpop.trf.xlu1 }
0x1098   :  { %9395 = vmatpush2.msra.mxu1 %v9145_v21 }
0x1099   :  { %9397 = vmatmul.mubr.f32.vlgmr.msra.gmra.mxu1 %v9314_v60 }
0x109a   :  { %9676 = vmatprep.mubr.f32.mxu1 %v16967_v62  ;;  %v9472_v26 = vpop.trf.xlu0 }
0x109b   :  { %v9505_v60 = vpop.trf.xlu1 }
0x109e   :  { %v9473_v23 = vpop.trf.xlu0 }
0x109f   :  { %v9506_v58 = vpop.trf.xlu1 }
0x10a2   :  { %v9474_v6 = vpop.trf.xlu0 }
0x10a6   :  { %v9475_v56 = vpop.trf.xlu0 }
0x10aa   :  { %v9476_v25 = vpop.trf.xlu0 }
0x10ae   :  { %v9477_v55 = vpop.trf.xlu0 }
0x10b2   :  { %v9478_v63 = vpop.trf.xlu0 }
0x10b6   :  { %v9479_v41 = vpop.trf.xlu0 }
0x10ba   :  { %v9480_v53 = vpop.trf.xlu0 }
0x10be   :  { %v9481_v40 = vpop.trf.xlu0 }
0x10c2   :  { %v9482_v21 = vpop.trf.xlu0 }
0x10c6   :  { %v9483_v7 = vpop.trf.xlu0 }
0x1159   :  { %v9398_v54 = vpop.f32.mrf.mxu1 }
0x115a   :  { %v9399_v45 = vadd.f32 %v9398_v54, %v9325_v11  ;;  %v9507_v11 = vpop.trf.xlu1 }
0x115b   :  { %v9400_v50 = vpop.f32.mrf.mxu1 }
0x115c   :  { %10824 = vtanh.f32 %v9399_v45  ;;  %v9401_v42 = vadd.f32 %v9400_v50, %v9329_v48 }
0x115e   :  { %10826 = vtanh.f32 %v9401_v42  ;;  %v9508_v17 = vpop.trf.xlu1 }
0x1162   :  { %v9509_v48 = vpop.trf.xlu1 }
0x1166   :  { %v9510_v54 = vpop.trf.xlu1 }
0x1169   :  { %v10825_v19 = vpop.eup %10824 }
0x116a   :  { %v9426_v4 = vmul.f32 %v10825_v19, %v16969_v20  ;;  %v9511_v45 = vpop.trf.xlu1 }
0x116b   :  { %v10827_v9 = vpop.eup %10826 }
0x116c   :  { %v9407_v46 = vcombine.low %v10825_v19, %v10827_v9  ;;  %v9427_v61 = vmul.f32 %v10827_v9, %v16969_v20  ;;  %v9869_v19 = vld [vmem:[#allocation4] sm:$0xff] }
0x116d   :  { %v9933_v9 = vmul.f32 %v9869_v19, %v11987_v3 }
0x116e   :  { %v9414_v15 = vrot.slane %v9407_v46, %v16970_v1  ;;  %v9430_v22 = vcombine.low %v9426_v4, %v9427_v61  ;;  %v9512_v50 = vpop.trf.xlu1  ;;  %v9871_v4 = vld [vmem:[#allocation4 + $0x10] sm:$0xff] }
0x1170   :  { %v9421_v49 = vrot.slane %v9414_v15, %v16970_v1  ;;  %v9437_v16 = vrot.slane %v9430_v22, %v16970_v1  ;;  %v9872_v15 = vld [vmem:[#allocation4 + $0x18] sm:$0xff] }
0x1171   :  { %v9936_v37 = vmul.f32 %v9872_v15, %v11987_v3 }
0x1172   :  { %9424 = vst.msk [vmem:[#allocation16 + $0x7] ss:$8 sm:$0x3] %vm11909_vm0, %v9421_v49  ;;  %v9444_v38 = vrot.slane %v9437_v16, %v16970_v1  ;;  %10445 = vst.msk [vmem:[#allocation2] ss:$8 sm:$0x3] %vm11909_vm0, %v9421_v49  ;;  %v9513_v42 = vpop.trf.xlu1 }
0x1173   :  { %v9873_v16 = vld [vmem:[#allocation4 + $0x20] sm:$0xff] }
0x1174   :  { %9446 = vst.msk [vmem:[#allocation3] ss:$8 sm:$0x3] %vm11909_vm0, %v9444_v38 }
0x117b   :  { %v9451_v12 = vld [vmem:[#allocation3 + $0x8] sm:$0xff]  ;;  %v9450_v10 = vld [vmem:[#allocation3] sm:$0xff] }
0x117c   :  { %9642 = vmatprep.subr.mxu1 %v9451_v12 }
0x117d   :  { %9643 = vmatpush1.msra.mxu1 %v9450_v10  ;;  %v9937_v10 = vmul.f32 %v9873_v16, %v11987_v3 }
0x117e   :  { %10751 = vmatmul.mubr.msk.f32.vlgmr.msra.gmra.mxu1 %vm1086_vm1, %v9468_v13  ;;  %v9514_v13 = vpop.trf.xlu1 }
0x117f   :  { %9682 = vmatprep.mubr.f32.mxu1 %v16967_v62 }
0x1182   :  { %10752 = vmatmul.mubr.msk.f32.gmra.mxu1 %vm1086_vm1, %v9469_v33  ;;  %v9515_v33 = vpop.trf.xlu1 }
0x1183   :  { %9688 = vmatprep.mubr.f32.mxu1 %v16967_v62 }
0x1186   :  { %10753 = vmatmul.mubr.msk.f32.gmra.mxu1 %vm1086_vm1, %v9470_v14  ;;  %v9870_v14 = vld [vmem:[#allocation4 + $0x8] sm:$0xff] }
0x1187   :  { %9694 = vmatprep.mubr.f32.mxu1 %v16967_v62  ;;  %v9934_v61 = vmul.f32 %v9870_v14, %v11987_v3 }
0x118a   :  { %10754 = vmatmul.mubr.msk.f32.gmra.mxu1 %vm1086_vm1, %v9471_v36  ;;  %v9935_v36 = vmul.f32 %v9871_v4, %v11987_v3 }
0x118b   :  { %9700 = vmatprep.mubr.f32.mxu1 %v16967_v62 }
0x118e   :  { %10755 = vmatmul.mubr.msk.f32.gmra.mxu1 %vm1086_vm1, %v9472_v26  ;;  %v9874_v26 = vld [vmem:[#allocation4 + $0x28] sm:$0xff] }
0x118f   :  { %9706 = vmatprep.mubr.f32.mxu1 %v16967_v62 }
0x1192   :  { %10756 = vmatmul.mubr.msk.f32.gmra.mxu1 %vm1086_vm1, %v9473_v23 }
0x1193   :  { %9712 = vmatprep.mubr.f32.mxu1 %v16967_v62 }
0x1196   :  { %10757 = vmatmul.mubr.msk.f32.gmra.mxu1 %vm1086_vm1, %v9474_v6  ;;  %v9875_v6 = vld [vmem:[#allocation4 + $0x30] sm:$0xff] }
0x1197   :  { %9718 = vmatprep.mubr.f32.mxu1 %v16967_v62 }
0x119a   :  { %10758 = vmatmul.mubr.msk.f32.gmra.mxu1 %vm1086_vm1, %v9475_v56 }
0x119b   :  { %9724 = vmatprep.mubr.f32.mxu1 %v16967_v62 }
0x119e   :  { %10759 = vmatmul.mubr.msk.f32.gmra.mxu1 %vm1086_vm1, %v9476_v25  ;;  %v9938_v25 = vmul.f32 %v9874_v26, %v11987_v3 }
0x119f   :  { %9730 = vmatprep.mubr.f32.mxu1 %v16967_v62 }
0x11a2   :  { %10760 = vmatmul.mubr.msk.f32.gmra.mxu1 %vm1086_vm1, %v9477_v55 }
0x11a3   :  { %9736 = vmatprep.mubr.f32.mxu1 %v16967_v62 }
0x11a6   :  { %10761 = vmatmul.mubr.msk.f32.gmra.mxu1 %vm1086_vm1, %v9478_v63  ;;  %v9876_v63 = vld [vmem:[#allocation4 + $0x38] sm:$0xff] }
0x11a7   :  { %9742 = vmatprep.mubr.f32.mxu1 %v16967_v62 }
0x11aa   :  { %10762 = vmatmul.mubr.msk.f32.gmra.mxu1 %vm1086_vm1, %v9479_v41  ;;  %v9939_v41 = vmul.f32 %v9875_v6, %v11987_v3 }
0x11ab   :  { %9748 = vmatprep.mubr.f32.mxu1 %v16967_v62 }
0x11ae   :  { %10763 = vmatmul.mubr.msk.f32.gmra.mxu1 %vm1086_vm1, %v9480_v53  ;;  %v9877_v53 = vld [vmem:[#allocation4 + $0x40] sm:$0xff] }
0x11af   :  { %9754 = vmatprep.mubr.f32.mxu1 %v16967_v62 }
0x11b2   :  { %10764 = vmatmul.mubr.msk.f32.gmra.mxu1 %vm1086_vm1, %v9481_v40  ;;  %v9940_v40 = vmul.f32 %v9876_v63, %v11987_v3 }
0x11b3   :  { %9760 = vmatprep.mubr.f32.mxu1 %v16967_v62 }
0x11b6   :  { %10765 = vmatmul.mubr.msk.f32.gmra.mxu1 %vm1086_vm1, %v9482_v21  ;;  %v9878_v21 = vld [vmem:[#allocation4 + $0x48] sm:$0xff] }
0x11b7   :  { %9766 = vmatprep.mubr.f32.mxu1 %v16967_v62 }
0x11ba   :  { %10766 = vmatmul.mubr.msk.f32.gmra.mxu1 %vm1086_vm1, %v9483_v7  ;;  %v9941_v7 = vmul.f32 %v9877_v53, %v11987_v3 }
0x11bb   :  { %9772 = vmatprep.mubr.f32.mxu1 %v16967_v62 }
0x11be   :  { %10767 = vmatmul.mubr.msk.f32.gmra.mxu1 %vm1086_vm1, %v9500_v0 }
0x11bf   :  { %9778 = vmatprep.mubr.f32.mxu1 %v16967_v62 }
0x11c2   :  { %10768 = vmatmul.mubr.msk.f32.gmra.mxu1 %vm1086_vm1, %v9501_v27 }
0x11c3   :  { %9784 = vmatprep.mubr.f32.mxu1 %v16967_v62 }
0x11c6   :  { %10769 = vmatmul.mubr.msk.f32.gmra.mxu1 %vm1086_vm1, %v9502_v57 }
0x11c7   :  { %9790 = vmatprep.mubr.f32.mxu1 %v16967_v62 }
0x11ca   :  { %10770 = vmatmul.mubr.msk.f32.gmra.mxu1 %vm1086_vm1, %v9503_v30 }
0x11cb   :  { %9796 = vmatprep.mubr.f32.mxu1 %v16967_v62 }
0x11ce   :  { %10771 = vmatmul.mubr.msk.f32.gmra.mxu1 %vm1086_vm1, %v9504_v59 }
0x11cf   :  { %9802 = vmatprep.mubr.f32.mxu1 %v16967_v62 }
0x11d2   :  { %10772 = vmatmul.mubr.msk.f32.gmra.mxu1 %vm1086_vm1, %v9505_v60 }
0x11d3   :  { %9808 = vmatprep.mubr.f32.mxu1 %v16967_v62 }
0x11d6   :  { %10773 = vmatmul.mubr.msk.f32.gmra.mxu1 %vm1086_vm1, %v9506_v58  ;;  %v9879_v58 = vld [vmem:[#allocation4 + $0x50] sm:$0xff] }
0x11d7   :  { %9814 = vmatprep.mubr.f32.mxu1 %v16967_v62 }
0x11da   :  { %10774 = vmatmul.mubr.msk.f32.gmra.mxu1 %vm1086_vm1, %v9507_v11 }
0x11db   :  { %9820 = vmatprep.mubr.f32.mxu1 %v16967_v62 }
0x11de   :  { %10775 = vmatmul.mubr.msk.f32.gmra.mxu1 %vm1086_vm1, %v9508_v17  ;;  %v9942_v17 = vmul.f32 %v9878_v21, %v11987_v3 }
0x11df   :  { %9826 = vmatprep.mubr.f32.mxu1 %v16967_v62 }
0x11e2   :  { %10776 = vmatmul.mubr.msk.f32.gmra.mxu1 %vm1086_vm1, %v9509_v48 }
0x11e3   :  { %9832 = vmatprep.mubr.f32.mxu1 %v16967_v62 }
0x11e6   :  { %10777 = vmatmul.mubr.msk.f32.gmra.mxu1 %vm1086_vm1, %v9510_v54  ;;  %v9880_v54 = vld [vmem:[#allocation4 + $0x58] sm:$0xff] }
0x11e7   :  { %9838 = vmatprep.mubr.f32.mxu1 %v16967_v62  ;;  %v9944_v19 = vmul.f32 %v9880_v54, %v11987_v3 }
0x11ea   :  { %10778 = vmatmul.mubr.msk.f32.gmra.mxu1 %vm1086_vm1, %v9511_v45 }
0x11eb   :  { %9844 = vmatprep.mubr.f32.mxu1 %v16967_v62 }
0x11ee   :  { %10779 = vmatmul.mubr.msk.f32.gmra.mxu1 %vm1086_vm1, %v9512_v50  ;;  %v9943_v50 = vmul.f32 %v9879_v58, %v11987_v3 }
0x11ef   :  { %9850 = vmatprep.mubr.f32.mxu1 %v16967_v62 }
0x11f2   :  { %10780 = vmatmul.mubr.msk.f32.gmra.mxu1 %vm1086_vm1, %v9513_v42 }
0x11f3   :  { %9856 = vmatprep.mubr.f32.mxu1 %v16967_v62 }
0x11f6   :  { %10781 = vmatmul.mubr.msk.f32.gmra.mxu1 %vm1086_vm1, %v9514_v13  ;;  %v9881_v13 = vld [vmem:[#allocation4 + $0x60] sm:$0xff] }
0x11f7   :  { %9862 = vmatprep.mubr.f32.mxu1 %v16967_v62  ;;  %v9945_v4 = vmul.f32 %v9881_v13, %v11987_v3 }
0x11fa   :  { %10782 = vmatmul.mubr.msk.f32.gmra.mxu1 %vm1086_vm1, %v9515_v33 }
0x123e   :  { %v9678_v20 = vpop.f32.mrf.mxu1 }
0x123f   :  { %v9997_v46 = vadd.f32 %v9933_v9, %v9678_v20  ;;  %v9882_v9 = vld [vmem:[#allocation4 + $0x68] sm:$0xff] }
0x1240   :  { %v9680_v1 = vpop.f32.mrf.mxu1  ;;  %v9946_v15 = vmul.f32 %v9882_v9, %v11987_v3 }
0x1241   :  { %10061 = vst [vmem:[#allocation4] sm:$0xff] %v9997_v46  ;;  %v9998_v22 = vadd.f32 %v9934_v61, %v9680_v1  ;;  %v9883_v61 = vld [vmem:[#allocation4 + $0x70] sm:$0xff] }
0x1242   :  { %v9684_v49 = vpop.f32.mrf.mxu1  ;;  %v9947_v16 = vmul.f32 %v9883_v61, %v11987_v3 }
0x1243   :  { %10062 = vst [vmem:[#allocation4 + $0x8] sm:$0xff] %v9998_v22  ;;  %v9999_v62 = vadd.f32 %v9935_v36, %v9684_v49  ;;  %v9884_v36 = vld [vmem:[#allocation4 + $0x78] sm:$0xff] }
0x1244   :  { %v9686_v38 = vpop.f32.mrf.mxu1  ;;  %v9948_v26 = vmul.f32 %v9884_v36, %v11987_v3 }
0x1245   :  { %10063 = vst [vmem:[#allocation4 + $0x10] sm:$0xff] %v9999_v62  ;;  %v10000_v12 = vadd.f32 %v9936_v37, %v9686_v38  ;;  %v9885_v37 = vld [vmem:[#allocation4 + $0x80] sm:$0xff] }
0x1246   :  { %v9690_v23 = vpop.f32.mrf.mxu1  ;;  %v9949_v6 = vmul.f32 %v9885_v37, %v11987_v3 }
0x1247   :  { %10064 = vst [vmem:[#allocation4 + $0x18] sm:$0xff] %v10000_v12  ;;  %v10001_v56 = vadd.f32 %v9937_v10, %v9690_v23  ;;  %v9886_v10 = vld [vmem:[#allocation4 + $0x88] sm:$0xff] }
0x1248   :  { %v9692_v55 = vpop.f32.mrf.mxu1  ;;  %v9950_v63 = vmul.f32 %v9886_v10, %v11987_v3 }
0x1249   :  { %10065 = vst [vmem:[#allocation4 + $0x20] sm:$0xff] %v10001_v56  ;;  %v10002_v0 = vadd.f32 %v9938_v25, %v9692_v55  ;;  %v9887_v25 = vld [vmem:[#allocation4 + $0x90] sm:$0xff] }
0x124a   :  { %v9696_v27 = vpop.f32.mrf.mxu1  ;;  %v9951_v53 = vmul.f32 %v9887_v25, %v11987_v3 }
0x124b   :  { %10066 = vst [vmem:[#allocation4 + $0x28] sm:$0xff] %v10002_v0  ;;  %v10003_v57 = vadd.f32 %v9939_v41, %v9696_v27  ;;  %v9888_v41 = vld [vmem:[#allocation4 + $0x98] sm:$0xff] }
0x124c   :  { %v9698_v30 = vpop.f32.mrf.mxu1  ;;  %v9952_v21 = vmul.f32 %v9888_v41, %v11987_v3 }
0x124d   :  { %10067 = vst [vmem:[#allocation4 + $0x30] sm:$0xff] %v10003_v57  ;;  %v10004_v59 = vadd.f32 %v9940_v40, %v9698_v30  ;;  %v9889_v40 = vld [vmem:[#allocation4 + $0xa0] sm:$0xff] }
0x124e   :  { %v9702_v60 = vpop.f32.mrf.mxu1  ;;  %v9953_v58 = vmul.f32 %v9889_v40, %v11987_v3 }
0x124f   :  { %10068 = vst [vmem:[#allocation4 + $0x38] sm:$0xff] %v10004_v59  ;;  %v10005_v11 = vadd.f32 %v9941_v7, %v9702_v60  ;;  %v9890_v7 = vld [vmem:[#allocation4 + $0xa8] sm:$0xff] }
0x1250   :  { %v9704_v48 = vpop.f32.mrf.mxu1  ;;  %v9954_v54 = vmul.f32 %v9890_v7, %v11987_v3 }
0x1251   :  { %10069 = vst [vmem:[#allocation4 + $0x40] sm:$0xff] %v10005_v11  ;;  %v10006_v45 = vadd.f32 %v9942_v17, %v9704_v48  ;;  %v9891_v17 = vld [vmem:[#allocation4 + $0xb0] sm:$0xff] }
0x1252   :  { %v9708_v42 = vpop.f32.mrf.mxu1  ;;  %v9955_v13 = vmul.f32 %v9891_v17, %v11987_v3 }
0x1253   :  { %10070 = vst [vmem:[#allocation4 + $0x48] sm:$0xff] %v10006_v45  ;;  %v10007_v33 = vadd.f32 %v9943_v50, %v9708_v42  ;;  %v9892_v50 = vld [vmem:[#allocation4 + $0xb8] sm:$0xff] }
0x1254   :  { %v9710_v14 = vpop.f32.mrf.mxu1  ;;  %v9956_v9 = vmul.f32 %v9892_v50, %v11987_v3 }
0x1255   :  { %10071 = vst [vmem:[#allocation4 + $0x50] sm:$0xff] %v10007_v33  ;;  %v10008_v20 = vadd.f32 %v9944_v19, %v9710_v14  ;;  %v9893_v19 = vld [vmem:[#allocation4 + $0xc0] sm:$0xff] }
0x1256   :  { %v9714_v46 = vpop.f32.mrf.mxu1  ;;  %v9957_v61 = vmul.f32 %v9893_v19, %v11987_v3 }
0x1257   :  { %10072 = vst [vmem:[#allocation4 + $0x58] sm:$0xff] %v10008_v20  ;;  %v10009_v1 = vadd.f32 %v9945_v4, %v9714_v46  ;;  %v9894_v4 = vld [vmem:[#allocation4 + $0xc8] sm:$0xff] }
0x1258   :  { %v9716_v22 = vpop.f32.mrf.mxu1  ;;  %v9958_v36 = vmul.f32 %v9894_v4, %v11987_v3 }
0x1259   :  { %10073 = vst [vmem:[#allocation4 + $0x60] sm:$0xff] %v10009_v1  ;;  %v10010_v49 = vadd.f32 %v9946_v15, %v9716_v22  ;;  %v9895_v15 = vld [vmem:[#allocation4 + $0xd0] sm:$0xff] }
0x125a   :  { %v9720_v62 = vpop.f32.mrf.mxu1  ;;  %v9959_v37 = vmul.f32 %v9895_v15, %v11987_v3 }
0x125b   :  { %10074 = vst [vmem:[#allocation4 + $0x68] sm:$0xff] %v10010_v49  ;;  %v10011_v38 = vadd.f32 %v9947_v16, %v9720_v62  ;;  %v9896_v16 = vld [vmem:[#allocation4 + $0xd8] sm:$0xff] }
0x125c   :  { %v9722_v12 = vpop.f32.mrf.mxu1  ;;  %v9960_v10 = vmul.f32 %v9896_v16, %v11987_v3 }
0x125d   :  { %10075 = vst [vmem:[#allocation4 + $0x70] sm:$0xff] %v10011_v38  ;;  %v10012_v23 = vadd.f32 %v9948_v26, %v9722_v12  ;;  %v9897_v26 = vld [vmem:[#allocation4 + $0xe0] sm:$0xff] }
0x125e   :  { %v9726_v56 = vpop.f32.mrf.mxu1  ;;  %v9961_v25 = vmul.f32 %v9897_v26, %v11987_v3 }
0x125f   :  { %10076 = vst [vmem:[#allocation4 + $0x78] sm:$0xff] %v10012_v23  ;;  %v10013_v55 = vadd.f32 %v9949_v6, %v9726_v56  ;;  %v9898_v6 = vld [vmem:[#allocation4 + $0xe8] sm:$0xff] }
0x1260   :  { %v9728_v0 = vpop.f32.mrf.mxu1  ;;  %v9962_v41 = vmul.f32 %v9898_v6, %v11987_v3 }
0x1261   :  { %10077 = vst [vmem:[#allocation4 + $0x80] sm:$0xff] %v10013_v55  ;;  %v10014_v27 = vadd.f32 %v9950_v63, %v9728_v0  ;;  %v9899_v63 = vld [vmem:[#allocation4 + $0xf0] sm:$0xff] }
0x1262   :  { %v9732_v57 = vpop.f32.mrf.mxu1  ;;  %v9963_v40 = vmul.f32 %v9899_v63, %v11987_v3 }
0x1263   :  { %10078 = vst [vmem:[#allocation4 + $0x88] sm:$0xff] %v10014_v27  ;;  %v10015_v30 = vadd.f32 %v9951_v53, %v9732_v57  ;;  %v9900_v53 = vld [vmem:[#allocation4 + $0xf8] sm:$0xff] }
0x1264   :  { %v9734_v59 = vpop.f32.mrf.mxu1  ;;  %v9964_v7 = vmul.f32 %v9900_v53, %v11987_v3 }
0x1265   :  { %10079 = vst [vmem:[#allocation4 + $0x90] sm:$0xff] %v10015_v30  ;;  %v10016_v60 = vadd.f32 %v9952_v21, %v9734_v59  ;;  %v9901_v21 = vld [vmem:[#allocation4 + $0x100] sm:$0xff] }
0x1266   :  { %v9738_v11 = vpop.f32.mrf.mxu1  ;;  %v9965_v17 = vmul.f32 %v9901_v21, %v11987_v3 }
0x1267   :  { %10080 = vst [vmem:[#allocation4 + $0x98] sm:$0xff] %v10016_v60  ;;  %v10017_v48 = vadd.f32 %v9953_v58, %v9738_v11  ;;  %v9902_v58 = vld [vmem:[#allocation4 + $0x108] sm:$0xff] }
0x1268   :  { %v9740_v45 = vpop.f32.mrf.mxu1  ;;  %v9966_v50 = vmul.f32 %v9902_v58, %v11987_v3 }
0x1269   :  { %10081 = vst [vmem:[#allocation4 + $0xa0] sm:$0xff] %v10017_v48  ;;  %v10018_v42 = vadd.f32 %v9954_v54, %v9740_v45  ;;  %v9903_v54 = vld [vmem:[#allocation4 + $0x110] sm:$0xff] }
0x126a   :  { %v9744_v33 = vpop.f32.mrf.mxu1  ;;  %v9967_v19 = vmul.f32 %v9903_v54, %v11987_v3 }
0x126b   :  { %10082 = vst [vmem:[#allocation4 + $0xa8] sm:$0xff] %v10018_v42  ;;  %v10019_v14 = vadd.f32 %v9955_v13, %v9744_v33  ;;  %v9904_v13 = vld [vmem:[#allocation4 + $0x118] sm:$0xff] }
0x126c   :  { %v9746_v20 = vpop.f32.mrf.mxu1  ;;  %v9968_v4 = vmul.f32 %v9904_v13, %v11987_v3 }
0x126d   :  { %10083 = vst [vmem:[#allocation4 + $0xb0] sm:$0xff] %v10019_v14  ;;  %v10020_v46 = vadd.f32 %v9956_v9, %v9746_v20  ;;  %v9905_v9 = vld [vmem:[#allocation4 + $0x120] sm:$0xff] }
0x126e   :  { %v9750_v1 = vpop.f32.mrf.mxu1  ;;  %v9969_v15 = vmul.f32 %v9905_v9, %v11987_v3 }
0x126f   :  { %10084 = vst [vmem:[#allocation4 + $0xb8] sm:$0xff] %v10020_v46  ;;  %v10021_v22 = vadd.f32 %v9957_v61, %v9750_v1  ;;  %v9906_v61 = vld [vmem:[#allocation4 + $0x128] sm:$0xff] }
0x1270   :  { %v9752_v49 = vpop.f32.mrf.mxu1  ;;  %v9970_v16 = vmul.f32 %v9906_v61, %v11987_v3 }
0x1271   :  { %10085 = vst [vmem:[#allocation4 + $0xc0] sm:$0xff] %v10021_v22  ;;  %v10022_v62 = vadd.f32 %v9958_v36, %v9752_v49  ;;  %v9907_v36 = vld [vmem:[#allocation4 + $0x130] sm:$0xff] }
0x1272   :  { %v9756_v38 = vpop.f32.mrf.mxu1  ;;  %v9971_v26 = vmul.f32 %v9907_v36, %v11987_v3  ;;  %v9982_v36 = vmul.f32 %v15295_v5, %v11987_v3 }
0x1273   :  { %10086 = vst [vmem:[#allocation4 + $0xc8] sm:$0xff] %v10022_v62  ;;  %v10023_v12 = vadd.f32 %v9959_v37, %v9756_v38  ;;  %v9908_v37 = vld [vmem:[#allocation4 + $0x138] sm:$0xff] }
0x1274   :  { %v9758_v23 = vpop.f32.mrf.mxu1  ;;  %v9972_v6 = vmul.f32 %v9908_v37, %v11987_v3 }
0x1275   :  { %10087 = vst [vmem:[#allocation4 + $0xd0] sm:$0xff] %v10023_v12  ;;  %v10024_v56 = vadd.f32 %v9960_v10, %v9758_v23  ;;  %v9909_v10 = vld [vmem:[#allocation4 + $0x140] sm:$0xff] }
0x1276   :  { %v9762_v55 = vpop.f32.mrf.mxu1  ;;  %v9973_v63 = vmul.f32 %v9909_v10, %v11987_v3 }
0x1277   :  { %10088 = vst [vmem:[#allocation4 + $0xd8] sm:$0xff] %v10024_v56  ;;  %v10025_v0 = vadd.f32 %v9961_v25, %v9762_v55  ;;  %v9910_v25 = vld [vmem:[#allocation4 + $0x148] sm:$0xff] }
0x1278   :  { %v9764_v27 = vpop.f32.mrf.mxu1  ;;  %v9974_v53 = vmul.f32 %v9910_v25, %v11987_v3 }
0x1279   :  { %10089 = vst [vmem:[#allocation4 + $0xe0] sm:$0xff] %v10025_v0  ;;  %v10026_v57 = vadd.f32 %v9962_v41, %v9764_v27  ;;  %v9911_v41 = vld [vmem:[#allocation4 + $0x150] sm:$0xff] }
0x127a   :  { %v9768_v30 = vpop.f32.mrf.mxu1  ;;  %v9975_v21 = vmul.f32 %v9911_v41, %v11987_v3 }
0x127b   :  { %10090 = vst [vmem:[#allocation4 + $0xe8] sm:$0xff] %v10026_v57  ;;  %v10027_v59 = vadd.f32 %v9963_v40, %v9768_v30  ;;  %v9912_v40 = vld [vmem:[#allocation4 + $0x158] sm:$0xff] }
0x127c   :  { %v9770_v60 = vpop.f32.mrf.mxu1  ;;  %v9976_v58 = vmul.f32 %v9912_v40, %v11987_v3 }
0x127d   :  { %10091 = vst [vmem:[#allocation4 + $0xf0] sm:$0xff] %v10027_v59  ;;  %v10028_v11 = vadd.f32 %v9964_v7, %v9770_v60  ;;  %v9913_v7 = vld [vmem:[#allocation4 + $0x160] sm:$0xff] }
0x127e   :  { %v9774_v48 = vpop.f32.mrf.mxu1  ;;  %v9977_v54 = vmul.f32 %v9913_v7, %v11987_v3 }
0x127f   :  { %10092 = vst [vmem:[#allocation4 + $0xf8] sm:$0xff] %v10028_v11  ;;  %v10029_v45 = vadd.f32 %v9965_v17, %v9774_v48  ;;  %v9914_v17 = vld [vmem:[#allocation4 + $0x168] sm:$0xff] }
0x1280   :  { %v9776_v42 = vpop.f32.mrf.mxu1  ;;  %v9978_v13 = vmul.f32 %v9914_v17, %v11987_v3 }
0x1281   :  { %10093 = vst [vmem:[#allocation4 + $0x100] sm:$0xff] %v10029_v45  ;;  %v10030_v33 = vadd.f32 %v9966_v50, %v9776_v42  ;;  %v9915_v50 = vld [vmem:[#allocation4 + $0x170] sm:$0xff] }
0x1282   :  { %v9780_v14 = vpop.f32.mrf.mxu1 }
0x1283   :  { %10094 = vst [vmem:[#allocation4 + $0x108] sm:$0xff] %v10030_v33  ;;  %v10031_v20 = vadd.f32 %v9967_v19, %v9780_v14  ;;  %v9979_v14 = vmul.f32 %v9915_v50, %v11987_v3 }
0x1284   :  { %v9782_v46 = vpop.f32.mrf.mxu1 }
0x1285   :  { %10095 = vst [vmem:[#allocation4 + $0x110] sm:$0xff] %v10031_v20  ;;  %v10032_v1 = vadd.f32 %v9968_v4, %v9782_v46  ;;  %v9980_v4 = vmul.f32 %v15307_v18, %v11987_v3 }
0x1286   :  { %v9786_v22 = vpop.f32.mrf.mxu1 }
0x1287   :  { %10096 = vst [vmem:[#allocation4 + $0x118] sm:$0xff] %v10032_v1  ;;  %v10033_v49 = vadd.f32 %v9969_v15, %v9786_v22  ;;  %v9981_v1 = vmul.f32 %v15301_v32, %v11987_v3 }
0x1288   :  { %v9788_v62 = vpop.f32.mrf.mxu1 }
0x1289   :  { %10097 = vst [vmem:[#allocation4 + $0x120] sm:$0xff] %v10033_v49  ;;  %v10034_v38 = vadd.f32 %v9970_v16, %v9788_v62  ;;  %v9983_v62 = vmul.f32 %v15288_v43, %v11987_v3 }
0x128a   :  { %v9792_v12 = vpop.f32.mrf.mxu1 }
0x128b   :  { %10098 = vst [vmem:[#allocation4 + $0x128] sm:$0xff] %v10034_v38  ;;  %v10035_v23 = vadd.f32 %v9971_v26, %v9792_v12  ;;  %v9984_v38 = vmul.f32 %v15281_v31, %v11987_v3  ;;  %v9985_v12 = vmul.f32 %v15274_v29, %v11987_v3 }
0x128c   :  { %v9794_v56 = vpop.f32.mrf.mxu1 }
0x128d   :  { %10099 = vst [vmem:[#allocation4 + $0x130] sm:$0xff] %v10035_v23  ;;  %v10036_v55 = vadd.f32 %v9972_v6, %v9794_v56  ;;  %v9986_v23 = vmul.f32 %v15267_v44, %v11987_v3  ;;  %v9987_v56 = vmul.f32 %v15261_v39, %v11987_v3 }
0x128e   :  { %v9798_v0 = vpop.f32.mrf.mxu1 }
0x128f   :  { %10100 = vst [vmem:[#allocation4 + $0x138] sm:$0xff] %v10036_v55  ;;  %v10037_v27 = vadd.f32 %v9973_v63, %v9798_v0  ;;  %v9988_v55 = vmul.f32 %v15255_v28, %v11987_v3  ;;  %v9989_v0 = vmul.f32 %v15250_v34, %v11987_v3 }
0x1290   :  { %v9800_v57 = vpop.f32.mrf.mxu1 }
0x1291   :  { %10101 = vst [vmem:[#allocation4 + $0x140] sm:$0xff] %v10037_v27  ;;  %v10038_v30 = vadd.f32 %v9974_v53, %v9800_v57  ;;  %v9990_v27 = vmul.f32 %v15243_v8, %v11987_v3  ;;  %v9991_v57 = vmul.f32 %v15238_v51, %v11987_v3 }
0x1292   :  { %v9804_v59 = vpop.f32.mrf.mxu1 }
0x1293   :  { %10102 = vst [vmem:[#allocation4 + $0x148] sm:$0xff] %v10038_v30  ;;  %v10039_v60 = vadd.f32 %v9975_v21, %v9804_v59  ;;  %v9992_v30 = vmul.f32 %v15233_v24, %v11987_v3  ;;  %v9993_v59 = vmul.f32 %v15230_v2, %v11987_v3 }
0x1294   :  { %v9806_v11 = vpop.f32.mrf.mxu1 }
0x1295   :  { %10103 = vst [vmem:[#allocation4 + $0x150] sm:$0xff] %v10039_v60  ;;  %v10040_v48 = vadd.f32 %v9976_v58, %v9806_v11  ;;  %v9994_v60 = vmul.f32 %v15224_v52, %v11987_v3  ;;  %v9995_v11 = vmul.f32 %v15226_v47, %v11987_v3 }
0x1296   :  { %v9810_v45 = vpop.f32.mrf.mxu1 }
0x1297   :  { %10104 = vst [vmem:[#allocation4 + $0x158] sm:$0xff] %v10040_v48  ;;  %v10041_v42 = vadd.f32 %v9977_v54, %v9810_v45  ;;  %v9996_v48 = vmul.f32 %v15235_v35, %v11987_v3 }
0x1298   :  { %v9812_v33 = vpop.f32.mrf.mxu1 }
0x1299   :  { %10105 = vst [vmem:[#allocation4 + $0x160] sm:$0xff] %v10041_v42  ;;  %v10042_v19 = vadd.f32 %v9978_v13, %v9812_v33 }
0x129a   :  { %v9816_v9 = vpop.f32.mrf.mxu1 }
0x129b   :  { %10106 = vst [vmem:[#allocation4 + $0x168] sm:$0xff] %v10042_v19  ;;  %v10043_v20 = vadd.f32 %v9979_v14, %v9816_v9 }
0x129c   :  { %v9818_v46 = vpop.f32.mrf.mxu1 }
0x129d   :  { %10107 = vst [vmem:[#allocation4 + $0x170] sm:$0xff] %v10043_v20  ;;  %v10044_v61 = vadd.f32 %v9980_v4, %v9818_v46 }
0x129e   :  { %v9822_v15 = vpop.f32.mrf.mxu1 }
0x129f   :  { %10108 = vst [vmem:[#allocation4 + $0x178] sm:$0xff] %v10044_v61  ;;  %v10045_v22 = vadd.f32 %v9981_v1, %v9822_v15 }
0x12a0   :  { %v9824_v49 = vpop.f32.mrf.mxu1 }
0x12a1   :  { %10109 = vst [vmem:[#allocation4 + $0x180] sm:$0xff] %v10045_v22  ;;  %v10046_v16 = vadd.f32 %v9982_v36, %v9824_v49 }
0x12a2   :  { %v9828_v37 = vpop.f32.mrf.mxu1 }
0x12a3   :  { %10110 = vst [vmem:[#allocation4 + $0x188] sm:$0xff] %v10046_v16  ;;  %v10047_v18 = vadd.f32 %v9983_v62, %v9828_v37 }
0x12a4   :  { %v9830_v26 = vpop.f32.mrf.mxu1 }
0x12a5   :  { %10111 = vst [vmem:[#allocation4 + $0x190] sm:$0xff] %v10047_v18  ;;  %v10048_v32 = vadd.f32 %v9984_v38, %v9830_v26 }
0x12a6   :  { %v9834_v10 = vpop.f32.mrf.mxu1 }
0x12a7   :  { %10112 = vst [vmem:[#allocation4 + $0x198] sm:$0xff] %v10048_v32  ;;  %v10049_v5 = vadd.f32 %v9985_v12, %v9834_v10 }
0x12a8   :  { %v9836_v6 = vpop.f32.mrf.mxu1 }
0x12a9   :  { %10113 = vst [vmem:[#allocation4 + $0x1a0] sm:$0xff] %v10049_v5  ;;  %v10050_v43 = vadd.f32 %v9986_v23, %v9836_v6 }
0x12aa   :  { %v9840_v25 = vpop.f32.mrf.mxu1 }
0x12ab   :  { %10114 = vst [vmem:[#allocation4 + $0x1a8] sm:$0xff] %v10050_v43  ;;  %v10051_v31 = vadd.f32 %v9987_v56, %v9840_v25 }
0x12ac   :  { %v9842_v63 = vpop.f32.mrf.mxu1 }
0x12ad   :  { %10115 = vst [vmem:[#allocation4 + $0x1b0] sm:$0xff] %v10051_v31  ;;  %v10052_v29 = vadd.f32 %v9988_v55, %v9842_v63 }
0x12ae   :  { %v9846_v41 = vpop.f32.mrf.mxu1 }
0x12af   :  { %10116 = vst [vmem:[#allocation4 + $0x1b8] sm:$0xff] %v10052_v29  ;;  %v10053_v44 = vadd.f32 %v9989_v0, %v9846_v41 }
0x12b0   :  { %v9848_v53 = vpop.f32.mrf.mxu1 }
0x12b1   :  { %10117 = vst [vmem:[#allocation4 + $0x1c0] sm:$0xff] %v10053_v44  ;;  %v10054_v39 = vadd.f32 %v9990_v27, %v9848_v53 }
0x12b2   :  { %v9852_v40 = vpop.f32.mrf.mxu1 }
0x12b3   :  { %10118 = vst [vmem:[#allocation4 + $0x1c8] sm:$0xff] %v10054_v39  ;;  %v10055_v28 = vadd.f32 %v9991_v57, %v9852_v40 }
0x12b4   :  { %v9854_v21 = vpop.f32.mrf.mxu1 }
0x12b5   :  { %10119 = vst [vmem:[#allocation4 + $0x1d0] sm:$0xff] %v10055_v28  ;;  %v10056_v34 = vadd.f32 %v9992_v30, %v9854_v21 }
0x12b6   :  { %v9858_v7 = vpop.f32.mrf.mxu1 }
0x12b7   :  { %10120 = vst [vmem:[#allocation4 + $0x1d8] sm:$0xff] %v10056_v34  ;;  %v10057_v8 = vadd.f32 %v9993_v59, %v9858_v7 }
0x12b8   :  { %v9860_v51 = vpop.f32.mrf.mxu1 }
0x12b9   :  { %10121 = vst [vmem:[#allocation4 + $0x1e0] sm:$0xff] %v10057_v8  ;;  %v10058_v58 = vadd.f32 %v9994_v60, %v9860_v51 }
0x12ba   :  { %v9864_v24 = vpop.f32.mrf.mxu1 }
0x12bb   :  { %10122 = vst [vmem:[#allocation4 + $0x1e8] sm:$0xff] %v10058_v58  ;;  %v10059_v17 = vadd.f32 %v9995_v11, %v9864_v24 }
0x12bc   :  { %v9866_v2 = vpop.f32.mrf.mxu1 }
0x12bd   :  { %10123 = vst [vmem:[#allocation4 + $0x1f0] sm:$0xff] %v10059_v17  ;;  %v10060_v54 = vadd.f32 %v9996_v48, %v9866_v2 }
0x12bf   :  { %10124 = vst [vmem:[#allocation4 + $0x1f8] sm:$0xff] %v10060_v54 }
0x12c0   :  { %10925 = shalt.err (!%p11077_p0)  }
0x12c1   :  { %10461 = dma.vmem_to_hbm [thread:$0]  %s11056_s18, 8192, %s15549_s7, [#allocation8 + $0x3] }
0x12c2   :  { %10966 = dma.done.wait [#allocation8 + $0x3], 8192 }
0x12c3   :  { %10967 = vsyncadd [#allocation8 + $0x3], 4294959104  ;;  %s10976_s20 = smov [#allocation16]  }
0x12c4   :  { %s10472_s21 = sshll.u32 %s10976_s20, 4  ;;  %s10473_s21 = int_to_ptr.vmem [resolvable:$true] %s10472_s21 }
0x12c5   :  { %s10934_s22 = scalar_lea.vmem %s10473_s21, 256  ;;  %p10939_p2 = scmp.lt.s32.totalorder %s10473_s21, %s10473_s21 }
0x12c6   :  { %p10935_p1 = scmp.ne.s32.totalorder %s10473_s21, %s10934_s22  ;;  %p10940_p3 = scmp.lt.s32.totalorder %s10934_s22, %s10934_s22 }
0x12c8   :  { %p10941_p4 = por %p10940_p3, %p10939_p2 }
0x12ca   :  { %p10942_p5 = pnand %p10941_p4, %p10935_p1 }
0x12cc   :  { %10945 = shalt.err (!%p10942_p5)
}
0x12cd   :  { %10475 = dma.vmem_to_hbm [thread:$0]  %s10473_s21, 256, %s15548_s6, [#allocation11]  }
0x12ce   :  { %10968 = dma.done.wait [#allocation11], 256  }
0x12cf   :  { %10969 = vsyncadd [#allocation11], 4294967040 }
0x12d0   :  { %10479 = vsyncpa [#allocation10], 1 }
0x12d1   :  { %10480 = vsyncpa [#allocation15], 1 }
0x12d2   :  { %10481 = vsyncpa [#allocation11], 1 }
0x12d3   :  { %10482 = vsyncpa [#allocation12], 1 }
0x12d4   :  { %10483 = vsyncmov [#allocation8] }
0x12d7   :  { %s10484_s7 = vpop.sfrf %10483 }
0x12d8   :  { %p10783_p6 = scmp.ne.s32.totalorder %s10484_s7, 0 }
0x12da   :  { %10488 = shalt.err (%p10783_p6)  }
0x12db   :  { %10490 = vsyncmov [#allocation8 + $0x1] }
0x12de   :  { %s10491_s18 = vpop.sfrf %10490 }
0x12df   :  { %p10784_p7 = scmp.ne.s32.totalorder %s10491_s18, 0 }
0x12e1   :  { %10495 = shalt.err (%p10784_p7)  }
0x12e2   :  { %10497 = vsyncmov [#allocation8 + $0x2] }
0x12e5   :  { %s10498_s24 = vpop.sfrf %10497 }
0x12e6   :  { %p10785_p8 = scmp.ne.s32.totalorder %s10498_s24, 0 }
0x12e8   :  { %10502 = shalt.err (%p10785_p8)  }
0x12e9   :  { %10504 = vsyncmov [#allocation8 + $0x3] }
0x12ec   :  { %s10505_s6 = vpop.sfrf %10504 }
0x12ed   :  { %p10786_p9 = scmp.ne.s32.totalorder %s10505_s6, 0 }
0x12ef   :  { %10509 = shalt.err (%p10786_p9)  }

</bundles_post_ra>
